<compile_context>
chip_gen: v6e
topology: v6e:2x2x1
jax: 0.10.0
libtpu: 0.0.40
codegen_flags: <defaults>
</compile_context>

<pallas_src>
import math
import functools

import jax
import jax.numpy as jnp
from jax.experimental import pallas as pl
from jax.experimental.pallas import tpu as pltpu


# ----------------------------------------------------------------------------
# small helpers
# ----------------------------------------------------------------------------

def _round_up(x, m=128):
    # TODO(synk): on v6e/v7x a 256-multiple pad better fills the 2x256^2 MXU for
    # realistic d_model/d_ff; kept at 128 for these toy shapes.
    return ((x + m - 1) // m) * m


def _row_tile(M):
    """Largest row tile (multiple of 8, <=256) dividing M, preferring an even
    number of grid steps so both v7x TensorCores get work."""
    best = None
    for tm in (256, 128, 64, 32, 16, 8):
        if M % tm == 0:
            if best is None:
                best = tm
            if (M // tm) % 2 == 0:
                return tm
    return best if best is not None else M


def _vmem_limit(arrays, extra_f32_elems=0):
    """Rough per-step VMEM footprint: operand bytes x2 (double buffering) plus
    slack, clamped to a range that is valid on v5e/v6e/v7x."""
    nbytes = sum(int(a.size) * a.dtype.itemsize for a in arrays)
    nbytes += 4 * int(extra_f32_elems)
    return int(min(max(2 * nbytes + (1 << 20), 4 << 20), 48 << 20))


def _bf16(x):
    return x.astype(jnp.bfloat16)


def _residual_layernorm(x, y, g, bln, d_model, eps):
    # LayerNorm(x + y) over the REAL feature width d_model (padded lanes are 0).
    z = x + y
    rows, cols = z.shape
    feat = jax.lax.broadcasted_iota(jnp.int32, (rows, cols), 1) < d_model
    inv_d = 1.0 / float(d_model)
    mu = jnp.sum(z, axis=-1, keepdims=True) * inv_d          # pad lanes of z are zero
    zc = jnp.where(feat, z - mu, 0.0)                        # keep pads out of variance
    var = jnp.sum(zc * zc, axis=-1, keepdims=True) * inv_d   # biased variance (PyTorch)
    return zc * jax.lax.rsqrt(var + eps) * g + bln           # g/bln zero-padded -> pads stay 0


def _build_mask(Sq, Skv, keep_q, keep_k, causal):
    # Rebuild the O(S^2) attention mask in-kernel from O(S) keep vectors.
    parts = []
    if keep_q is not None:
        parts.append(jnp.broadcast_to(keep_q > 0.5, (Sq, Skv)))
    if keep_k is not None:
        parts.append(jnp.broadcast_to(keep_k > 0.5, (Sq, Skv)))
    if causal:
        qi = jax.lax.broadcasted_iota(jnp.int32, (Sq, Skv), 0)
        ki = jax.lax.broadcasted_iota(jnp.int32, (Sq, Skv), 1)
        parts.append(ki <= qi)
    mask = parts[0]
    for m in parts[1:]:
        mask = mask & m
    return mask


def _mha_core(q, k, v, wo_ref, bo_ref, mask, *, num_heads, d_model, d_k):
    """Multi-head attention + single fused output projection.

    q, k, v : f32 (Sq|Skv, Dp), heads at lane offsets h*d_k within [0, d_model).
    Each head's p@V is computed over the full lane width and kept only in its
    lane slot (cheap select), so ONE (Sq,Dp)x(Dp,Dp) matmul does the out-proj.
    """
    Sq, Dp = q.shape
    scale = 1.0 / math.sqrt(d_k)
    v_b = _bf16(v)
    lane = jax.lax.broadcasted_iota(jnp.int32, (Sq, Dp), 1)
    comb = jnp.zeros((Sq, Dp), jnp.float32)
    # TODO(synk): for long sequences / many heads, switch to a head-batched einsum
    # with a flash-style (online-softmax) Skv-tiled inner loop instead of this
    # unrolled loop that materializes full (Sq, Skv) scores.
    for h in range(num_heads):
        lo = h * d_k
        hi = lo + d_k
        qh = _bf16(q[:, lo:hi])
        kh = _bf16(k[:, lo:hi])
        s = jax.lax.dot_general(qh, kh, (((1,), (1,)), ((), ())),
                                preferred_element_type=jnp.float32) * scale
        s = jnp.where(mask, s, -1.0e9)
        s = s - jnp.max(s, axis=-1, keepdims=True)
        p = jnp.exp(s)
        p = p * pl.reciprocal(jnp.sum(p, axis=-1, keepdims=True), approx=True)
        oh = jnp.dot(_bf16(p), v_b, preferred_element_type=jnp.float32)     # (Sq, Dp)
        comb = comb + jnp.where((lane >= lo) & (lane < hi), oh, 0.0)
    return jnp.dot(_bf16(comb), wo_ref[...],
                   preferred_element_type=jnp.float32) + bo_ref[...]


def _ffn(x, w1_ref, b1_ref, w2_ref, b2_ref):
    h = jnp.dot(_bf16(x), w1_ref[...], preferred_element_type=jnp.float32) + b1_ref[...]
    h = jnp.maximum(h, 0.0)
    return jnp.dot(_bf16(h), w2_ref[...], preferred_element_type=jnp.float32) + b2_ref[...]


# ----------------------------------------------------------------------------
# Kernel 1: fused ENCODER layer (self-attn + add&LN + FFN + add&LN)
# ----------------------------------------------------------------------------

def _enc_layer_kernel(x_ref, keepk_ref,
                      wqkv_ref, bqkv_ref, wo_ref, bo_ref, g1_ref, bl1_ref,
                      w1_ref, b1_ref, w2_ref, b2_ref, g2_ref, bl2_ref,
                      o_ref, *, num_heads, d_model, d_k, eps):
    S, Dp = x_ref.shape
    x = x_ref[...]

    # fused QKV projection: one (S,Dp)x(Dp,3Dp) matmul; 128-aligned lane slices
    qkv = jnp.dot(_bf16(x), wqkv_ref[...],
                  preferred_element_type=jnp.float32) + bqkv_ref[...]
    q = qkv[:, 0:Dp]
    k = qkv[:, Dp:2 * Dp]
    v = qkv[:, 2 * Dp:3 * Dp]

    mask = _build_mask(S, S, None, keepk_ref[...], False)       # src padding masks keys
    attn = _mha_core(q, k, v, wo_ref, bo_ref, mask,
                     num_heads=num_heads, d_model=d_model, d_k=d_k)
    x1 = _residual_layernorm(x, attn, g1_ref[...], bl1_ref[...], d_model, eps)

    y = _ffn(x1, w1_ref, b1_ref, w2_ref, b2_ref)
    o_ref[...] = _residual_layernorm(x1, y, g2_ref[...], bl2_ref[...], d_model, eps)


def encoder_layer(x, keep_k_src, p, *, num_heads, d_model, eps=1e-5):
    B, S, Dp = x.shape
    Fp = p["w1"].shape[1]
    d_k = d_model // num_heads
    kernel = functools.partial(_enc_layer_kernel, num_heads=num_heads,
                               d_model=d_model, d_k=d_k, eps=eps)
    weights = [p["w_qkv"], p["b_qkv"], p["w_o"], p["b_o"], p["ln1_g"], p["ln1_b"],
               p["w1"], p["b1"], p["w2"], p["b2"], p["ln2_g"], p["ln2_b"]]

    def wspec(shape):
        # TODO(synk): for realistic d_ff / d_model these constant weight blocks
        # should be tiled along Fp/N with a reduction grid axis (or Buffered(1))
        # to stay inside v7x's 64 MiB VMEM.
        return pl.BlockSpec(shape, lambda b: (0, 0))

    return pl.pallas_call(
        kernel,
        out_shape=jax.ShapeDtypeStruct((B, S, Dp), jnp.float32),
        grid=(B,),
        in_specs=[
            pl.BlockSpec((None, S, Dp), lambda b: (b, 0, 0)),    # x
            pl.BlockSpec((None, 1, S), lambda b: (b, 0, 0)),     # src key-keep
            wspec((Dp, 3 * Dp)), wspec((1, 3 * Dp)),             # W_qkv, b_qkv
            wspec((Dp, Dp)), wspec((1, Dp)),                     # W_o, b_o
            wspec((1, Dp)), wspec((1, Dp)),                      # ln1 g, b
            wspec((Dp, Fp)), wspec((1, Fp)),                     # W1, b1
            wspec((Fp, Dp)), wspec((1, Dp)),                     # W2, b2
            wspec((1, Dp)), wspec((1, Dp)),                      # ln2 g, b
        ],
        out_specs=pl.BlockSpec((None, S, Dp), lambda b: (b, 0, 0)),
        compiler_params=pltpu.CompilerParams(
            dimension_semantics=("parallel",),
            vmem_limit_bytes=_vmem_limit(weights, extra_f32_elems=2 * x.size)),
    )(x, keep_k_src, *weights)


# ----------------------------------------------------------------------------
# Kernel 2: fused DECODER layer (masked self-attn + cross-attn + FFN, each +LN)
# ----------------------------------------------------------------------------

def _dec_layer_kernel(x_ref, enc_ref, keepq_ref, keepk_ref,
                      sa_wqkv_ref, sa_bqkv_ref, sa_wo_ref, sa_bo_ref, g1_ref, bl1_ref,
                      ca_wq_ref, ca_bq_ref, ca_wkv_ref, ca_bkv_ref, ca_wo_ref, ca_bo_ref,
                      g2_ref, bl2_ref,
                      w1_ref, b1_ref, w2_ref, b2_ref, g3_ref, bl3_ref,
                      o_ref, *, num_heads, d_model, d_k, eps):
    St, Dp = x_ref.shape
    Ss = enc_ref.shape[0]
    x = x_ref[...]
    enc = enc_ref[...]

    # --- masked self-attention (causal + tgt padding on the QUERY side) ---
    qkv = jnp.dot(_bf16(x), sa_wqkv_ref[...],
                  preferred_element_type=jnp.float32) + sa_bqkv_ref[...]
    q = qkv[:, 0:Dp]
    k = qkv[:, Dp:2 * Dp]
    v = qkv[:, 2 * Dp:3 * Dp]
    mask_sa = _build_mask(St, St, keepq_ref[...], None, True)
    attn = _mha_core(q, k, v, sa_wo_ref, sa_bo_ref, mask_sa,
                     num_heads=num_heads, d_model=d_model, d_k=d_k)
    x1 = _residual_layernorm(x, attn, g1_ref[...], bl1_ref[...], d_model, eps)

    # --- cross attention (source padding masks the keys); fused K/V matmul ---
    q2 = jnp.dot(_bf16(x1), ca_wq_ref[...],
                 preferred_element_type=jnp.float32) + ca_bq_ref[...]
    kv = jnp.dot(_bf16(enc), ca_wkv_ref[...],
                 preferred_element_type=jnp.float32) + ca_bkv_ref[...]
    k2 = kv[:, 0:Dp]
    v2 = kv[:, Dp:2 * Dp]
    mask_ca = _build_mask(St, Ss, None, keepk_ref[...], False)
    attn2 = _mha_core(q2, k2, v2, ca_wo_ref, ca_bo_ref, mask_ca,
                      num_heads=num_heads, d_model=d_model, d_k=d_k)
    x2 = _residual_layernorm(x1, attn2, g2_ref[...], bl2_ref[...], d_model, eps)

    # --- FFN ---
    y = _ffn(x2, w1_ref, b1_ref, w2_ref, b2_ref)
    o_ref[...] = _residual_layernorm(x2, y, g3_ref[...], bl3_ref[...], d_model, eps)


def decoder_layer(x, enc_out, tgt_keep_q, src_keep_k, p, *, num_heads, d_model, eps=1e-5):
    B, St, Dp = x.shape
    Ss = enc_out.shape[1]
    Fp = p["w1"].shape[1]
    d_k = d_model // num_heads
    kernel = functools.partial(_dec_layer_kernel, num_heads=num_heads,
                               d_model=d_model, d_k=d_k, eps=eps)
    sa, ca = p["self_attn"], p["cross_attn"]
    weights = [sa["w_qkv"], sa["b_qkv"], sa["w_o"], sa["b_o"], p["ln1_g"], p["ln1_b"],
               ca["w_q"], ca["b_q"], ca["w_kv"], ca["b_kv"], ca["w_o"], ca["b_o"],
               p["ln2_g"], p["ln2_b"],
               p["w1"], p["b1"], p["w2"], p["b2"], p["ln3_g"], p["ln3_b"]]

    def wspec(shape):
        return pl.BlockSpec(shape, lambda b: (0, 0))

    return pl.pallas_call(
        kernel,
        out_shape=jax.ShapeDtypeStruct((B, St, Dp), jnp.float32),
        grid=(B,),
        in_specs=[
            pl.BlockSpec((None, St, Dp), lambda b: (b, 0, 0)),   # x
            pl.BlockSpec((None, Ss, Dp), lambda b: (b, 0, 0)),   # enc_out
            pl.BlockSpec((None, St, 1), lambda b: (b, 0, 0)),    # tgt query-keep
            pl.BlockSpec((None, 1, Ss), lambda b: (b, 0, 0)),    # src key-keep
            wspec((Dp, 3 * Dp)), wspec((1, 3 * Dp)),             # self W_qkv, b_qkv
            wspec((Dp, Dp)), wspec((1, Dp)),                     # self W_o, b_o
            wspec((1, Dp)), wspec((1, Dp)),                      # ln1 g, b
            wspec((Dp, Dp)), wspec((1, Dp)),                     # cross W_q, b_q
            wspec((Dp, 2 * Dp)), wspec((1, 2 * Dp)),             # cross W_kv, b_kv
            wspec((Dp, Dp)), wspec((1, Dp)),                     # cross W_o, b_o
            wspec((1, Dp)), wspec((1, Dp)),                      # ln2 g, b
            wspec((Dp, Fp)), wspec((1, Fp)),                     # W1, b1
            wspec((Fp, Dp)), wspec((1, Dp)),                     # W2, b2
            wspec((1, Dp)), wspec((1, Dp)),                      # ln3 g, b
        ],
        out_specs=pl.BlockSpec((None, St, Dp), lambda b: (b, 0, 0)),
        compiler_params=pltpu.CompilerParams(
            dimension_semantics=("parallel",),
            vmem_limit_bytes=_vmem_limit(weights,
                                         extra_f32_elems=2 * x.size + enc_out.size)),
    )(x, enc_out, tgt_keep_q, src_keep_k, *weights)


# ----------------------------------------------------------------------------
# Kernel 3: lane-dense final logits projection (vocab padded to 128)
# ----------------------------------------------------------------------------

def _linear_kernel(x_ref, w_ref, b_ref, o_ref):
    o_ref[...] = jnp.dot(_bf16(x_ref[...]), w_ref[...],
                         preferred_element_type=jnp.float32) + b_ref[...]


def linear_out(x2d, w, b):
    # TODO(synk): for a realistic vocab, tile the N (vocab) dim with a grid axis
    # instead of keeping fc_w as a single resident block.
    M, Kp = x2d.shape
    Np = w.shape[1]
    tm = _row_tile(M)
    return pl.pallas_call(
        _linear_kernel,
        out_shape=jax.ShapeDtypeStruct((M, Np), jnp.float32),
        grid=(M // tm,),
        in_specs=[
            pl.BlockSpec((tm, Kp), lambda i: (i, 0)),
            pl.BlockSpec((Kp, Np), lambda i: (0, 0)),
            pl.BlockSpec((1, Np), lambda i: (0, 0)),
        ],
        out_specs=pl.BlockSpec((tm, Np), lambda i: (i, 0)),
        compiler_params=pltpu.CompilerParams(
            dimension_semantics=("parallel",),
            vmem_limit_bytes=_vmem_limit([w, b], extra_f32_elems=2 * tm * (Kp + Np))),
    )(x2d, w, b)


# ----------------------------------------------------------------------------
# Model glue (embedding gather, keep-vector construction, layer stacking)
# ----------------------------------------------------------------------------

def transformer_forward(params, src, tgt, *, num_heads, d_model, tgt_vocab):
    B, S_src = src.shape
    _, S_tgt = tgt.shape
    Dp = params["pe"].shape[-1]

    # O(S) keep vectors (masks are rebuilt inside the kernels).
    src_keep_k = (src != 0).astype(jnp.float32)[:, None, :]      # (B,1,S_src) key mask
    tgt_keep_q = (tgt != 0).astype(jnp.float32)[:, :, None]      # (B,S_tgt,1) query mask

    # TODO(synk): embedding gather stays in XLA; a Pallas DMA-gather is overkill here.
    pe = params["pe"]
    src_emb = jnp.take(params["enc_emb"], src, axis=0) + pe[None, :S_src, :]
    tgt_emb = jnp.take(params["dec_emb"], tgt, axis=0) + pe[None, :S_tgt, :]
    # dropout == identity (eval mode)

    enc_out = src_emb
    for p in params["enc_layers"]:
        enc_out = encoder_layer(enc_out, src_keep_k, p,
                                num_heads=num_heads, d_model=d_model)

    dec_out = tgt_emb
    for p in params["dec_layers"]:
        dec_out = decoder_layer(dec_out, enc_out, tgt_keep_q, src_keep_k, p,
                                num_heads=num_heads, d_model=d_model)

    logits = linear_out(dec_out.reshape(B * S_tgt, Dp), params["fc_w"], params["fc_b"])
    return logits[:, :tgt_vocab].reshape(B, S_tgt, tgt_vocab)


# ----------------------------------------------------------------------------
# Deterministic parameter init (PyTorch-like)
# ----------------------------------------------------------------------------

def _init_linear(key, out_dim, in_dim):
    kw, kb = jax.random.split(key)
    bound = 1.0 / math.sqrt(in_dim)
    w = jax.random.uniform(kw, (out_dim, in_dim), jnp.float32, -bound, bound)
    b = jax.random.uniform(kb, (out_dim,), jnp.float32, -bound, bound)
    return w, b


def _init_mha(key, d_model):
    ks = jax.random.split(key, 4)
    wq, bq = _init_linear(ks[0], d_model, d_model)
    wk, bk = _init_linear(ks[1], d_model, d_model)
    wv, bv = _init_linear(ks[2], d_model, d_model)
    wo, bo = _init_linear(ks[3], d_model, d_model)
    return dict(wq=wq, bq=bq, wk=wk, bk=bk, wv=wv, bv=bv, wo=wo, bo=bo)


def _init_enc_layer(key, d_model, d_ff):
    ks = jax.random.split(key, 3)
    w1, b1 = _init_linear(ks[1], d_ff, d_model)
    w2, b2 = _init_linear(ks[2], d_model, d_ff)
    return dict(
        self_attn=_init_mha(ks[0], d_model),
        w1=w1, b1=b1, w2=w2, b2=b2,
        ln1_g=jnp.ones((d_model,), jnp.float32), ln1_b=jnp.zeros((d_model,), jnp.float32),
        ln2_g=jnp.ones((d_model,), jnp.float32), ln2_b=jnp.zeros((d_model,), jnp.float32),
    )


def _init_dec_layer(key, d_model, d_ff):
    ks = jax.random.split(key, 4)
    w1, b1 = _init_linear(ks[2], d_ff, d_model)
    w2, b2 = _init_linear(ks[3], d_model, d_ff)
    return dict(
        self_attn=_init_mha(ks[0], d_model),
        cross_attn=_init_mha(ks[1], d_model),
        w1=w1, b1=b1, w2=w2, b2=b2,
        ln1_g=jnp.ones((d_model,), jnp.float32), ln1_b=jnp.zeros((d_model,), jnp.float32),
        ln2_g=jnp.ones((d_model,), jnp.float32), ln2_b=jnp.zeros((d_model,), jnp.float32),
        ln3_g=jnp.ones((d_model,), jnp.float32), ln3_b=jnp.zeros((d_model,), jnp.float32),
    )


def init_params(key, src_vocab, tgt_vocab, d_model, num_layers, d_ff, max_seq):
    ks = jax.random.split(key, 3 + 2 * num_layers)
    enc_emb = jax.random.normal(ks[0], (src_vocab, d_model), jnp.float32)
    dec_emb = jax.random.normal(ks[1], (tgt_vocab, d_model), jnp.float32)
    fc_w, fc_b = _init_linear(ks[2], tgt_vocab, d_model)

    position = jnp.arange(max_seq, dtype=jnp.float32)[:, None]
    div_term = jnp.exp(jnp.arange(0, d_model, 2, dtype=jnp.float32)
                       * (-math.log(10000.0) / d_model))
    pe = jnp.zeros((max_seq, d_model), jnp.float32)
    pe = pe.at[:, 0::2].set(jnp.sin(position * div_term))
    pe = pe.at[:, 1::2].set(jnp.cos(position * div_term))

    enc_layers = [_init_enc_layer(ks[3 + i], d_model, d_ff) for i in range(num_layers)]
    dec_layers = [_init_dec_layer(ks[3 + num_layers + i], d_model, d_ff)
                  for i in range(num_layers)]
    return dict(enc_emb=enc_emb, dec_emb=dec_emb, pe=pe,
                enc_layers=enc_layers, dec_layers=dec_layers,
                fc_w=fc_w, fc_b=fc_b)


# --- one-time padding (lane-dense, 128-multiples) + pre-transpose + bf16 cast --

def _pad2d(x, rows, cols, dtype=jnp.float32):
    out = jnp.zeros((rows, cols), dtype)
    return out.at[: x.shape[0], : x.shape[1]].set(x.astype(dtype))


def _prep_linear(w, b, k_pad, n_pad):
    # PyTorch (out,in) -> pre-transposed zero-padded bf16 (K_pad,N_pad) + f32 (1,N_pad) bias.
    return (_pad2d(w.T, k_pad, n_pad, jnp.bfloat16),
            _pad2d(b.reshape(1, -1), 1, n_pad, jnp.float32))


def _prep_ln(g, b, d_pad):
    return (_pad2d(g.reshape(1, -1), 1, d_pad, jnp.float32),
            _pad2d(b.reshape(1, -1), 1, d_pad, jnp.float32))


def _prep_mha_self(p, Dp):
    wq, bq = _prep_linear(p["wq"], p["bq"], Dp, Dp)
    wk, bk = _prep_linear(p["wk"], p["bk"], Dp, Dp)
    wv, bv = _prep_linear(p["wv"], p["bv"], Dp, Dp)
    wo, bo = _prep_linear(p["wo"], p["bo"], Dp, Dp)
    return dict(w_qkv=jnp.concatenate([wq, wk, wv], axis=1),
                b_qkv=jnp.concatenate([bq, bk, bv], axis=1),
                w_o=wo, b_o=bo)


def _prep_mha_cross(p, Dp):
    wq, bq = _prep_linear(p["wq"], p["bq"], Dp, Dp)
    wk, bk = _prep_linear(p["wk"], p["bk"], Dp, Dp)
    wv, bv = _prep_linear(p["wv"], p["bv"], Dp, Dp)
    wo, bo = _prep_linear(p["wo"], p["bo"], Dp, Dp)
    return dict(w_q=wq, b_q=bq,
                w_kv=jnp.concatenate([wk, wv], axis=1),
                b_kv=jnp.concatenate([bk, bv], axis=1),
                w_o=wo, b_o=bo)


def _prep_enc_layer(p, Dp, Fp):
    w1, b1 = _prep_linear(p["w1"], p["b1"], Dp, Fp)
    w2, b2 = _prep_linear(p["w2"], p["b2"], Fp, Dp)
    g1, bl1 = _prep_ln(p["ln1_g"], p["ln1_b"], Dp)
    g2, bl2 = _prep_ln(p["ln2_g"], p["ln2_b"], Dp)
    return dict(**{"self_attn": None},  # placeholder replaced below
                w1=w1, b1=b1, w2=w2, b2=b2,
                ln1_g=g1, ln1_b=bl1, ln2_g=g2, ln2_b=bl2) | {
                    **_prep_mha_self(p["self_attn"], Dp)}


def _prep_dec_layer(p, Dp, Fp):
    w1, b1 = _prep_linear(p["w1"], p["b1"], Dp, Fp)
    w2, b2 = _prep_linear(p["w2"], p["b2"], Fp, Dp)
    g1, bl1 = _prep_ln(p["ln1_g"], p["ln1_b"], Dp)
    g2, bl2 = _prep_ln(p["ln2_g"], p["ln2_b"], Dp)
    g3, bl3 = _prep_ln(p["ln3_g"], p["ln3_b"], Dp)
    return dict(self_attn=_prep_mha_self(p["self_attn"], Dp),
                cross_attn=_prep_mha_cross(p["cross_attn"], Dp),
                w1=w1, b1=b1, w2=w2, b2=b2,
                ln1_g=g1, ln1_b=bl1, ln2_g=g2, ln2_b=bl2, ln3_g=g3, ln3_b=bl3)


def prepare_params(raw, d_model, d_ff, tgt_vocab):
    Dp = _round_up(d_model)
    Fp = _round_up(d_ff)
    Vp = _round_up(tgt_vocab)
    src_vocab = raw["enc_emb"].shape[0]
    dec_vocab = raw["dec_emb"].shape[0]
    max_seq = raw["pe"].shape[0]
    fc_w, fc_b = _prep_linear(raw["fc_w"], raw["fc_b"], Dp, Vp)
    return dict(
        enc_emb=_pad2d(raw["enc_emb"], src_vocab, Dp),
        dec_emb=_pad2d(raw["dec_emb"], dec_vocab, Dp),
        pe=_pad2d(raw["pe"], max_seq, Dp),
        enc_layers=[_prep_enc_layer(p, Dp, Fp) for p in raw["enc_layers"]],
        dec_layers=[_prep_dec_layer(p, Dp, Fp) for p in raw["dec_layers"]],
        fc_w=fc_w, fc_b=fc_b,
    )


# ----------------------------------------------------------------------------
# Main
# ----------------------------------------------------------------------------

if __name__ == "__main__":
    src_vocab_size = 16
    tgt_vocab_size = 16
    d_model = 32
    num_heads = 4
    num_layers = 2
    d_ff = 64
    max_seq_length = 16
    batch = 2
    seq = 8

    key = jax.random.PRNGKey(0)
    k_param, k_src, k_tgt = jax.random.split(key, 3)

    raw_params = init_params(k_param, src_vocab_size, tgt_vocab_size,
                             d_model, num_layers, d_ff, max_seq_length)
    params = prepare_params(raw_params, d_model, d_ff, tgt_vocab_size)

    src = jax.random.randint(k_src, (batch, seq), 0, src_vocab_size, dtype=jnp.int32)
    tgt = jax.random.randint(k_tgt, (batch, seq), 0, tgt_vocab_size, dtype=jnp.int32)

    fwd = jax.jit(functools.partial(transformer_forward,
                                    num_heads=num_heads,
                                    d_model=d_model,
                                    tgt_vocab=tgt_vocab_size))
    out = jax.block_until_ready(fwd(params, src, tgt))

    assert out.shape == (batch, seq, tgt_vocab_size), out.shape
    assert bool(jnp.all(jnp.isfinite(out)))
    print("KERNEL_OK")
</pallas_src>

<mosaic_0001>
module attributes {stable_mosaic.version = 11 : i64} {
  func.func @_enc_layer_kernel(%arg0: i32, %arg1: memref<1x8x128xf32, #tpu.memory_space<vmem>>, %arg2: memref<1x1x8xf32, #tpu.memory_space<vmem>>, %arg3: memref<128x384xbf16, #tpu.memory_space<vmem>>, %arg4: memref<1x384xf32, #tpu.memory_space<vmem>>, %arg5: memref<128x128xbf16, #tpu.memory_space<vmem>>, %arg6: memref<1x128xf32, #tpu.memory_space<vmem>>, %arg7: memref<1x128xf32, #tpu.memory_space<vmem>>, %arg8: memref<1x128xf32, #tpu.memory_space<vmem>>, %arg9: memref<128x128xbf16, #tpu.memory_space<vmem>>, %arg10: memref<1x128xf32, #tpu.memory_space<vmem>>, %arg11: memref<128x128xbf16, #tpu.memory_space<vmem>>, %arg12: memref<1x128xf32, #tpu.memory_space<vmem>>, %arg13: memref<1x128xf32, #tpu.memory_space<vmem>>, %arg14: memref<1x128xf32, #tpu.memory_space<vmem>>, %arg15: memref<1x8x128xf32, #tpu.memory_space<vmem>>) attributes {dimension_semantics = [#tpu.dimension_semantics<parallel>], iteration_bounds = array<i64: 2>, scalar_prefetch = 0 : i64, scratch_operands = 0 : i64, tpu.core_type = #tpu.core_type<tc>, window_params = [{transform_indices = @transform_0, window_bounds = array<i64: 1, 8, 128>}, {transform_indices = @transform_1, window_bounds = array<i64: 1, 1, 8>}, {pipeline_mode = #tpu.pipeline_mode<synchronous>, transform_indices = @transform_2, window_bounds = array<i64: 128, 384>}, {pipeline_mode = #tpu.pipeline_mode<synchronous>, transform_indices = @transform_3, window_bounds = array<i64: 1, 384>}, {pipeline_mode = #tpu.pipeline_mode<synchronous>, transform_indices = @transform_4, window_bounds = array<i64: 128, 128>}, {pipeline_mode = #tpu.pipeline_mode<synchronous>, transform_indices = @transform_5, window_bounds = array<i64: 1, 128>}, {pipeline_mode = #tpu.pipeline_mode<synchronous>, transform_indices = @transform_6, window_bounds = array<i64: 1, 128>}, {pipeline_mode = #tpu.pipeline_mode<synchronous>, transform_indices = @transform_7, window_bounds = array<i64: 1, 128>}, {pipeline_mode = #tpu.pipeline_mode<synchronous>, transform_indices = @transform_8, window_bounds = array<i64: 128, 128>}, {pipeline_mode = #tpu.pipeline_mode<synchronous>, transform_indices = @transform_9, window_bounds = array<i64: 1, 128>}, {pipeline_mode = #tpu.pipeline_mode<synchronous>, transform_indices = @transform_10, window_bounds = array<i64: 128, 128>}, {pipeline_mode = #tpu.pipeline_mode<synchronous>, transform_indices = @transform_11, window_bounds = array<i64: 1, 128>}, {pipeline_mode = #tpu.pipeline_mode<synchronous>, transform_indices = @transform_12, window_bounds = array<i64: 1, 128>}, {pipeline_mode = #tpu.pipeline_mode<synchronous>, transform_indices = @transform_13, window_bounds = array<i64: 1, 128>}, {transform_indices = @transform_14, window_bounds = array<i64: 1, 8, 128>}]} {
    %c0 = arith.constant 0 : index
    %c0_0 = arith.constant 0 : index
    %c0_1 = arith.constant 0 : index
    %0 = vector.load %arg1[%c0, %c0_0, %c0_1] : memref<1x8x128xf32, #tpu.memory_space<vmem>>, vector<1x8x128xf32>
    %1 = vector.shape_cast %0 : vector<1x8x128xf32> to vector<8x128xf32>
    %2 = arith.truncf %1 : vector<8x128xf32> to vector<8x128xbf16>
    %c0_2 = arith.constant 0 : index
    %c0_3 = arith.constant 0 : index
    %3 = vector.load %arg3[%c0_2, %c0_3] : memref<128x384xbf16, #tpu.memory_space<vmem>>, vector<128x384xbf16>
    %cst = arith.constant dense<0.000000e+00> : vector<8x384xf32>
    %4 = tpu.matmul %2, %3, %cst {dimension_numbers = #tpu.dot_dimension_numbers<[1], [0], [0], [1], [0, 0, 1, 1], [], []>} : vector<8x128xbf16>, vector<128x384xbf16>, vector<8x384xf32> -> vector<8x384xf32>
    %c0_4 = arith.constant 0 : index
    %c0_5 = arith.constant 0 : index
    %5 = vector.load %arg4[%c0_4, %c0_5] : memref<1x384xf32, #tpu.memory_space<vmem>>, vector<1x384xf32>
    %6 = vector.broadcast %5 : vector<1x384xf32> to vector<8x384xf32>
    %7 = arith.addf %4, %6 : vector<8x384xf32>
    %8 = vector.extract_strided_slice %7 {offsets = [0, 0], sizes = [8, 128], strides = [1, 1]} : vector<8x384xf32> to vector<8x128xf32>
    %9 = vector.extract_strided_slice %7 {offsets = [0, 128], sizes = [8, 128], strides = [1, 1]} : vector<8x384xf32> to vector<8x128xf32>
    %10 = vector.extract_strided_slice %7 {offsets = [0, 256], sizes = [8, 128], strides = [1, 1]} : vector<8x384xf32> to vector<8x128xf32>
    %c0_6 = arith.constant 0 : index
    %c0_7 = arith.constant 0 : index
    %c0_8 = arith.constant 0 : index
    %11 = vector.load %arg2[%c0_6, %c0_7, %c0_8] : memref<1x1x8xf32, #tpu.memory_space<vmem>>, vector<1x1x8xf32>
    %12 = vector.shape_cast %11 : vector<1x1x8xf32> to vector<1x8xf32>
    %cst_9 = arith.constant 5.000000e-01 : f32
    %13 = vector.broadcast %cst_9 : f32 to vector<1x8xf32>
    %14 = arith.cmpf ogt, %12, %13 : vector<1x8xf32>
    %15 = vector.shape_cast %14 : vector<1x8xi1> to vector<1x8xi1>
    %16 = vector.broadcast %15 : vector<1x8xi1> to vector<8x8xi1>
    %17 = arith.truncf %10 : vector<8x128xf32> to vector<8x128xbf16>
    %18 = tpu.iota {dimensions = array<i32: 1>} : vector<8x128xi32>
    %cst_10 = arith.constant 0.000000e+00 : f32
    %19 = vector.broadcast %cst_10 : f32 to vector<8x128xf32>
    %20 = vector.extract_strided_slice %8 {offsets = [0, 0], sizes = [8, 8], strides = [1, 1]} : vector<8x128xf32> to vector<8x8xf32>
    %21 = arith.truncf %20 : vector<8x8xf32> to vector<8x8xbf16>
    %22 = vector.extract_strided_slice %9 {offsets = [0, 0], sizes = [8, 8], strides = [1, 1]} : vector<8x128xf32> to vector<8x8xf32>
    %23 = arith.truncf %22 : vector<8x8xf32> to vector<8x8xbf16>
    %cst_11 = arith.constant dense<0.000000e+00> : vector<8x8xf32>
    %24 = tpu.matmul %21, %23, %cst_11 {dimension_numbers = #tpu.dot_dimension_numbers<[1], [1], [0], [0], [0, 0, 1, 0], [], []>} : vector<8x8xbf16>, vector<8x8xbf16>, vector<8x8xf32> -> vector<8x8xf32>
    %cst_12 = arith.constant 0.353553385 : f32
    %25 = vector.broadcast %cst_12 : f32 to vector<8x8xf32>
    %26 = arith.mulf %24, %25 : vector<8x8xf32>
    %cst_13 = arith.constant -1.000000e+09 : f32
    %27 = vector.broadcast %cst_13 : f32 to vector<8x8xf32>
    %28 = arith.select %16, %26, %27 : vector<8x8xi1>, vector<8x8xf32>
    %cst_14 = arith.constant dense<0xFF800000> : vector<8xf32>
    %29 = vector.multi_reduction <maximumf>, %28, %cst_14 [1] : vector<8x8xf32> to vector<8xf32>
    %30 = vector.shape_cast %29 : vector<8xf32> to vector<8x1xf32>
    %31 = vector.broadcast %30 : vector<8x1xf32> to vector<8x8xf32>
    %32 = arith.subf %28, %31 : vector<8x8xf32>
    %33 = math.exp %32 : vector<8x8xf32>
    %cst_15 = arith.constant dense<0.000000e+00> : vector<8xf32>
    %34 = vector.multi_reduction <add>, %33, %cst_15 [1] : vector<8x8xf32> to vector<8xf32>
    %35 = vector.shape_cast %34 : vector<8xf32> to vector<8x1xf32>
    %36 = tpu.reciprocal %35 {approx = true} : vector<8x1xf32> -> vector<8x1xf32>
    %37 = vector.broadcast %36 : vector<8x1xf32> to vector<8x8xf32>
    %38 = arith.mulf %33, %37 : vector<8x8xf32>
    %39 = arith.truncf %38 : vector<8x8xf32> to vector<8x8xbf16>
    %cst_16 = arith.constant dense<0.000000e+00> : vector<8x128xf32>
    %40 = tpu.matmul %39, %17, %cst_16 {dimension_numbers = #tpu.dot_dimension_numbers<[1], [0], [0], [1], [0, 0, 1, 1], [], []>} : vector<8x8xbf16>, vector<8x128xbf16>, vector<8x128xf32> -> vector<8x128xf32>
    %c0_i32 = arith.constant 0 : i32
    %41 = vector.broadcast %c0_i32 : i32 to vector<8x128xi32>
    %42 = arith.cmpi sge, %18, %41 : vector<8x128xi32>
    %c8_i32 = arith.constant 8 : i32
    %43 = vector.broadcast %c8_i32 : i32 to vector<8x128xi32>
    %44 = arith.cmpi slt, %18, %43 : vector<8x128xi32>
    %45 = arith.andi %42, %44 : vector<8x128xi1>
    %cst_17 = arith.constant 0.000000e+00 : f32
    %46 = vector.broadcast %cst_17 : f32 to vector<8x128xf32>
    %47 = arith.select %45, %40, %46 : vector<8x128xi1>, vector<8x128xf32>
    %48 = arith.addf %19, %47 : vector<8x128xf32>
    %49 = vector.extract_strided_slice %8 {offsets = [0, 8], sizes = [8, 8], strides = [1, 1]} : vector<8x128xf32> to vector<8x8xf32>
    %50 = arith.truncf %49 : vector<8x8xf32> to vector<8x8xbf16>
    %51 = vector.extract_strided_slice %9 {offsets = [0, 8], sizes = [8, 8], strides = [1, 1]} : vector<8x128xf32> to vector<8x8xf32>
    %52 = arith.truncf %51 : vector<8x8xf32> to vector<8x8xbf16>
    %cst_18 = arith.constant dense<0.000000e+00> : vector<8x8xf32>
    %53 = tpu.matmul %50, %52, %cst_18 {dimension_numbers = #tpu.dot_dimension_numbers<[1], [1], [0], [0], [0, 0, 1, 0], [], []>} : vector<8x8xbf16>, vector<8x8xbf16>, vector<8x8xf32> -> vector<8x8xf32>
    %cst_19 = arith.constant 0.353553385 : f32
    %54 = vector.broadcast %cst_19 : f32 to vector<8x8xf32>
    %55 = arith.mulf %53, %54 : vector<8x8xf32>
    %cst_20 = arith.constant -1.000000e+09 : f32
    %56 = vector.broadcast %cst_20 : f32 to vector<8x8xf32>
    %57 = arith.select %16, %55, %56 : vector<8x8xi1>, vector<8x8xf32>
    %cst_21 = arith.constant dense<0xFF800000> : vector<8xf32>
    %58 = vector.multi_reduction <maximumf>, %57, %cst_21 [1] : vector<8x8xf32> to vector<8xf32>
    %59 = vector.shape_cast %58 : vector<8xf32> to vector<8x1xf32>
    %60 = vector.broadcast %59 : vector<8x1xf32> to vector<8x8xf32>
    %61 = arith.subf %57, %60 : vector<8x8xf32>
    %62 = math.exp %61 : vector<8x8xf32>
    %cst_22 = arith.constant dense<0.000000e+00> : vector<8xf32>
    %63 = vector.multi_reduction <add>, %62, %cst_22 [1] : vector<8x8xf32> to vector<8xf32>
    %64 = vector.shape_cast %63 : vector<8xf32> to vector<8x1xf32>
    %65 = tpu.reciprocal %64 {approx = true} : vector<8x1xf32> -> vector<8x1xf32>
    %66 = vector.broadcast %65 : vector<8x1xf32> to vector<8x8xf32>
    %67 = arith.mulf %62, %66 : vector<8x8xf32>
    %68 = arith.truncf %67 : vector<8x8xf32> to vector<8x8xbf16>
    %cst_23 = arith.constant dense<0.000000e+00> : vector<8x128xf32>
    %69 = tpu.matmul %68, %17, %cst_23 {dimension_numbers = #tpu.dot_dimension_numbers<[1], [0], [0], [1], [0, 0, 1, 1], [], []>} : vector<8x8xbf16>, vector<8x128xbf16>, vector<8x128xf32> -> vector<8x128xf32>
    %c8_i32_24 = arith.constant 8 : i32
    %70 = vector.broadcast %c8_i32_24 : i32 to vector<8x128xi32>
    %71 = arith.cmpi sge, %18, %70 : vector<8x128xi32>
    %c16_i32 = arith.constant 16 : i32
    %72 = vector.broadcast %c16_i32 : i32 to vector<8x128xi32>
    %73 = arith.cmpi slt, %18, %72 : vector<8x128xi32>
    %74 = arith.andi %71, %73 : vector<8x128xi1>
    %cst_25 = arith.constant 0.000000e+00 : f32
    %75 = vector.broadcast %cst_25 : f32 to vector<8x128xf32>
    %76 = arith.select %74, %69, %75 : vector<8x128xi1>, vector<8x128xf32>
    %77 = arith.addf %48, %76 : vector<8x128xf32>
    %78 = vector.extract_strided_slice %8 {offsets = [0, 16], sizes = [8, 8], strides = [1, 1]} : vector<8x128xf32> to vector<8x8xf32>
    %79 = arith.truncf %78 : vector<8x8xf32> to vector<8x8xbf16>
    %80 = vector.extract_strided_slice %9 {offsets = [0, 16], sizes = [8, 8], strides = [1, 1]} : vector<8x128xf32> to vector<8x8xf32>
    %81 = arith.truncf %80 : vector<8x8xf32> to vector<8x8xbf16>
    %cst_26 = arith.constant dense<0.000000e+00> : vector<8x8xf32>
    %82 = tpu.matmul %79, %81, %cst_26 {dimension_numbers = #tpu.dot_dimension_numbers<[1], [1], [0], [0], [0, 0, 1, 0], [], []>} : vector<8x8xbf16>, vector<8x8xbf16>, vector<8x8xf32> -> vector<8x8xf32>
    %cst_27 = arith.constant 0.353553385 : f32
    %83 = vector.broadcast %cst_27 : f32 to vector<8x8xf32>
    %84 = arith.mulf %82, %83 : vector<8x8xf32>
    %cst_28 = arith.constant -1.000000e+09 : f32
    %85 = vector.broadcast %cst_28 : f32 to vector<8x8xf32>
    %86 = arith.select %16, %84, %85 : vector<8x8xi1>, vector<8x8xf32>
    %cst_29 = arith.constant dense<0xFF800000> : vector<8xf32>
    %87 = vector.multi_reduction <maximumf>, %86, %cst_29 [1] : vector<8x8xf32> to vector<8xf32>
    %88 = vector.shape_cast %87 : vector<8xf32> to vector<8x1xf32>
    %89 = vector.broadcast %88 : vector<8x1xf32> to vector<8x8xf32>
    %90 = arith.subf %86, %89 : vector<8x8xf32>
    %91 = math.exp %90 : vector<8x8xf32>
    %cst_30 = arith.constant dense<0.000000e+00> : vector<8xf32>
    %92 = vector.multi_reduction <add>, %91, %cst_30 [1] : vector<8x8xf32> to vector<8xf32>
    %93 = vector.shape_cast %92 : vector<8xf32> to vector<8x1xf32>
    %94 = tpu.reciprocal %93 {approx = true} : vector<8x1xf32> -> vector<8x1xf32>
    %95 = vector.broadcast %94 : vector<8x1xf32> to vector<8x8xf32>
    %96 = arith.mulf %91, %95 : vector<8x8xf32>
    %97 = arith.truncf %96 : vector<8x8xf32> to vector<8x8xbf16>
    %cst_31 = arith.constant dense<0.000000e+00> : vector<8x128xf32>
    %98 = tpu.matmul %97, %17, %cst_31 {dimension_numbers = #tpu.dot_dimension_numbers<[1], [0], [0], [1], [0, 0, 1, 1], [], []>} : vector<8x8xbf16>, vector<8x128xbf16>, vector<8x128xf32> -> vector<8x128xf32>
    %c16_i32_32 = arith.constant 16 : i32
    %99 = vector.broadcast %c16_i32_32 : i32 to vector<8x128xi32>
    %100 = arith.cmpi sge, %18, %99 : vector<8x128xi32>
    %c24_i32 = arith.constant 24 : i32
    %101 = vector.broadcast %c24_i32 : i32 to vector<8x128xi32>
    %102 = arith.cmpi slt, %18, %101 : vector<8x128xi32>
    %103 = arith.andi %100, %102 : vector<8x128xi1>
    %cst_33 = arith.constant 0.000000e+00 : f32
    %104 = vector.broadcast %cst_33 : f32 to vector<8x128xf32>
    %105 = arith.select %103, %98, %104 : vector<8x128xi1>, vector<8x128xf32>
    %106 = arith.addf %77, %105 : vector<8x128xf32>
    %107 = vector.extract_strided_slice %8 {offsets = [0, 24], sizes = [8, 8], strides = [1, 1]} : vector<8x128xf32> to vector<8x8xf32>
    %108 = arith.truncf %107 : vector<8x8xf32> to vector<8x8xbf16>
    %109 = vector.extract_strided_slice %9 {offsets = [0, 24], sizes = [8, 8], strides = [1, 1]} : vector<8x128xf32> to vector<8x8xf32>
    %110 = arith.truncf %109 : vector<8x8xf32> to vector<8x8xbf16>
    %cst_34 = arith.constant dense<0.000000e+00> : vector<8x8xf32>
    %111 = tpu.matmul %108, %110, %cst_34 {dimension_numbers = #tpu.dot_dimension_numbers<[1], [1], [0], [0], [0, 0, 1, 0], [], []>} : vector<8x8xbf16>, vector<8x8xbf16>, vector<8x8xf32> -> vector<8x8xf32>
    %cst_35 = arith.constant 0.353553385 : f32
    %112 = vector.broadcast %cst_35 : f32 to vector<8x8xf32>
    %113 = arith.mulf %111, %112 : vector<8x8xf32>
    %cst_36 = arith.constant -1.000000e+09 : f32
    %114 = vector.broadcast %cst_36 : f32 to vector<8x8xf32>
    %115 = arith.select %16, %113, %114 : vector<8x8xi1>, vector<8x8xf32>
    %cst_37 = arith.constant dense<0xFF800000> : vector<8xf32>
    %116 = vector.multi_reduction <maximumf>, %115, %cst_37 [1] : vector<8x8xf32> to vector<8xf32>
    %117 = vector.shape_cast %116 : vector<8xf32> to vector<8x1xf32>
    %118 = vector.broadcast %117 : vector<8x1xf32> to vector<8x8xf32>
    %119 = arith.subf %115, %118 : vector<8x8xf32>
    %120 = math.exp %119 : vector<8x8xf32>
    %cst_38 = arith.constant dense<0.000000e+00> : vector<8xf32>
    %121 = vector.multi_reduction <add>, %120, %cst_38 [1] : vector<8x8xf32> to vector<8xf32>
    %122 = vector.shape_cast %121 : vector<8xf32> to vector<8x1xf32>
    %123 = tpu.reciprocal %122 {approx = true} : vector<8x1xf32> -> vector<8x1xf32>
    %124 = vector.broadcast %123 : vector<8x1xf32> to vector<8x8xf32>
    %125 = arith.mulf %120, %124 : vector<8x8xf32>
    %126 = arith.truncf %125 : vector<8x8xf32> to vector<8x8xbf16>
    %cst_39 = arith.constant dense<0.000000e+00> : vector<8x128xf32>
    %127 = tpu.matmul %126, %17, %cst_39 {dimension_numbers = #tpu.dot_dimension_numbers<[1], [0], [0], [1], [0, 0, 1, 1], [], []>} : vector<8x8xbf16>, vector<8x128xbf16>, vector<8x128xf32> -> vector<8x128xf32>
    %c24_i32_40 = arith.constant 24 : i32
    %128 = vector.broadcast %c24_i32_40 : i32 to vector<8x128xi32>
    %129 = arith.cmpi sge, %18, %128 : vector<8x128xi32>
    %c32_i32 = arith.constant 32 : i32
    %130 = vector.broadcast %c32_i32 : i32 to vector<8x128xi32>
    %131 = arith.cmpi slt, %18, %130 : vector<8x128xi32>
    %132 = arith.andi %129, %131 : vector<8x128xi1>
    %cst_41 = arith.constant 0.000000e+00 : f32
    %133 = vector.broadcast %cst_41 : f32 to vector<8x128xf32>
    %134 = arith.select %132, %127, %133 : vector<8x128xi1>, vector<8x128xf32>
    %135 = arith.addf %106, %134 : vector<8x128xf32>
    %136 = arith.truncf %135 : vector<8x128xf32> to vector<8x128xbf16>
    %c0_42 = arith.constant 0 : index
    %c0_43 = arith.constant 0 : index
    %137 = vector.load %arg5[%c0_42, %c0_43] : memref<128x128xbf16, #tpu.memory_space<vmem>>, vector<128x128xbf16>
    %cst_44 = arith.constant dense<0.000000e+00> : vector<8x128xf32>
    %138 = tpu.matmul %136, %137, %cst_44 {dimension_numbers = #tpu.dot_dimension_numbers<[1], [0], [0], [1], [0, 0, 1, 1], [], []>} : vector<8x128xbf16>, vector<128x128xbf16>, vector<8x128xf32> -> vector<8x128xf32>
    %c0_45 = arith.constant 0 : index
    %c0_46 = arith.constant 0 : index
    %139 = vector.load %arg6[%c0_45, %c0_46] : memref<1x128xf32, #tpu.memory_space<vmem>>, vector<1x128xf32>
    %140 = vector.broadcast %139 : vector<1x128xf32> to vector<8x128xf32>
    %141 = arith.addf %138, %140 : vector<8x128xf32>
    %c0_47 = arith.constant 0 : index
    %c0_48 = arith.constant 0 : index
    %142 = vector.load %arg7[%c0_47, %c0_48] : memref<1x128xf32, #tpu.memory_space<vmem>>, vector<1x128xf32>
    %c0_49 = arith.constant 0 : index
    %c0_50 = arith.constant 0 : index
    %143 = vector.load %arg8[%c0_49, %c0_50] : memref<1x128xf32, #tpu.memory_space<vmem>>, vector<1x128xf32>
    %144 = arith.addf %1, %141 : vector<8x128xf32>
    %145 = tpu.iota {dimensions = array<i32: 1>} : vector<8x128xi32>
    %c32_i32_51 = arith.constant 32 : i32
    %146 = vector.broadcast %c32_i32_51 : i32 to vector<8x128xi32>
    %147 = arith.cmpi slt, %145, %146 : vector<8x128xi32>
    %cst_52 = arith.constant dense<0.000000e+00> : vector<8xf32>
    %148 = vector.multi_reduction <add>, %144, %cst_52 [1] : vector<8x128xf32> to vector<8xf32>
    %149 = vector.shape_cast %148 : vector<8xf32> to vector<8x1xf32>
    %cst_53 = arith.constant 3.125000e-02 : f32
    %150 = vector.broadcast %cst_53 : f32 to vector<8x1xf32>
    %151 = arith.mulf %149, %150 : vector<8x1xf32>
    %152 = vector.broadcast %151 : vector<8x1xf32> to vector<8x128xf32>
    %153 = arith.subf %144, %152 : vector<8x128xf32>
    %cst_54 = arith.constant 0.000000e+00 : f32
    %154 = vector.broadcast %cst_54 : f32 to vector<8x128xf32>
    %155 = arith.select %147, %153, %154 : vector<8x128xi1>, vector<8x128xf32>
    %156 = arith.mulf %155, %155 : vector<8x128xf32>
    %cst_55 = arith.constant dense<0.000000e+00> : vector<8xf32>
    %157 = vector.multi_reduction <add>, %156, %cst_55 [1] : vector<8x128xf32> to vector<8xf32>
    %158 = vector.shape_cast %157 : vector<8xf32> to vector<8x1xf32>
    %cst_56 = arith.constant 3.125000e-02 : f32
    %159 = vector.broadcast %cst_56 : f32 to vector<8x1xf32>
    %160 = arith.mulf %158, %159 : vector<8x1xf32>
    %cst_57 = arith.constant 9.99999974E-6 : f32
    %161 = vector.broadcast %cst_57 : f32 to vector<8x1xf32>
    %162 = arith.addf %160, %161 : vector<8x1xf32>
    %163 = math.rsqrt %162 : vector<8x1xf32>
    %164 = vector.broadcast %163 : vector<8x1xf32> to vector<8x128xf32>
    %165 = arith.mulf %155, %164 : vector<8x128xf32>
    %166 = vector.broadcast %142 : vector<1x128xf32> to vector<8x128xf32>
    %167 = arith.mulf %165, %166 : vector<8x128xf32>
    %168 = vector.broadcast %143 : vector<1x128xf32> to vector<8x128xf32>
    %169 = arith.addf %167, %168 : vector<8x128xf32>
    %170 = arith.truncf %169 : vector<8x128xf32> to vector<8x128xbf16>
    %c0_58 = arith.constant 0 : index
    %c0_59 = arith.constant 0 : index
    %171 = vector.load %arg9[%c0_58, %c0_59] : memref<128x128xbf16, #tpu.memory_space<vmem>>, vector<128x128xbf16>
    %cst_60 = arith.constant dense<0.000000e+00> : vector<8x128xf32>
    %172 = tpu.matmul %170, %171, %cst_60 {dimension_numbers = #tpu.dot_dimension_numbers<[1], [0], [0], [1], [0, 0, 1, 1], [], []>} : vector<8x128xbf16>, vector<128x128xbf16>, vector<8x128xf32> -> vector<8x128xf32>
    %c0_61 = arith.constant 0 : index
    %c0_62 = arith.constant 0 : index
    %173 = vector.load %arg10[%c0_61, %c0_62] : memref<1x128xf32, #tpu.memory_space<vmem>>, vector<1x128xf32>
    %174 = vector.broadcast %173 : vector<1x128xf32> to vector<8x128xf32>
    %175 = arith.addf %172, %174 : vector<8x128xf32>
    %cst_63 = arith.constant 0.000000e+00 : f32
    %176 = vector.broadcast %cst_63 : f32 to vector<8x128xf32>
    %177 = arith.maximumf %175, %176 : vector<8x128xf32>
    %178 = arith.truncf %177 : vector<8x128xf32> to vector<8x128xbf16>
    %c0_64 = arith.constant 0 : index
    %c0_65 = arith.constant 0 : index
    %179 = vector.load %arg11[%c0_64, %c0_65] : memref<128x128xbf16, #tpu.memory_space<vmem>>, vector<128x128xbf16>
    %cst_66 = arith.constant dense<0.000000e+00> : vector<8x128xf32>
    %180 = tpu.matmul %178, %179, %cst_66 {dimension_numbers = #tpu.dot_dimension_numbers<[1], [0], [0], [1], [0, 0, 1, 1], [], []>} : vector<8x128xbf16>, vector<128x128xbf16>, vector<8x128xf32> -> vector<8x128xf32>
    %c0_67 = arith.constant 0 : index
    %c0_68 = arith.constant 0 : index
    %181 = vector.load %arg12[%c0_67, %c0_68] : memref<1x128xf32, #tpu.memory_space<vmem>>, vector<1x128xf32>
    %182 = vector.broadcast %181 : vector<1x128xf32> to vector<8x128xf32>
    %183 = arith.addf %180, %182 : vector<8x128xf32>
    %c0_69 = arith.constant 0 : index
    %c0_70 = arith.constant 0 : index
    %184 = vector.load %arg13[%c0_69, %c0_70] : memref<1x128xf32, #tpu.memory_space<vmem>>, vector<1x128xf32>
    %c0_71 = arith.constant 0 : index
    %c0_72 = arith.constant 0 : index
    %185 = vector.load %arg14[%c0_71, %c0_72] : memref<1x128xf32, #tpu.memory_space<vmem>>, vector<1x128xf32>
    %186 = arith.addf %169, %183 : vector<8x128xf32>
    %187 = tpu.iota {dimensions = array<i32: 1>} : vector<8x128xi32>
    %c32_i32_73 = arith.constant 32 : i32
    %188 = vector.broadcast %c32_i32_73 : i32 to vector<8x128xi32>
    %189 = arith.cmpi slt, %187, %188 : vector<8x128xi32>
    %cst_74 = arith.constant dense<0.000000e+00> : vector<8xf32>
    %190 = vector.multi_reduction <add>, %186, %cst_74 [1] : vector<8x128xf32> to vector<8xf32>
    %191 = vector.shape_cast %190 : vector<8xf32> to vector<8x1xf32>
    %cst_75 = arith.constant 3.125000e-02 : f32
    %192 = vector.broadcast %cst_75 : f32 to vector<8x1xf32>
    %193 = arith.mulf %191, %192 : vector<8x1xf32>
    %194 = vector.broadcast %193 : vector<8x1xf32> to vector<8x128xf32>
    %195 = arith.subf %186, %194 : vector<8x128xf32>
    %cst_76 = arith.constant 0.000000e+00 : f32
    %196 = vector.broadcast %cst_76 : f32 to vector<8x128xf32>
    %197 = arith.select %189, %195, %196 : vector<8x128xi1>, vector<8x128xf32>
    %198 = arith.mulf %197, %197 : vector<8x128xf32>
    %cst_77 = arith.constant dense<0.000000e+00> : vector<8xf32>
    %199 = vector.multi_reduction <add>, %198, %cst_77 [1] : vector<8x128xf32> to vector<8xf32>
    %200 = vector.shape_cast %199 : vector<8xf32> to vector<8x1xf32>
    %cst_78 = arith.constant 3.125000e-02 : f32
    %201 = vector.broadcast %cst_78 : f32 to vector<8x1xf32>
    %202 = arith.mulf %200, %201 : vector<8x1xf32>
    %cst_79 = arith.constant 9.99999974E-6 : f32
    %203 = vector.broadcast %cst_79 : f32 to vector<8x1xf32>
    %204 = arith.addf %202, %203 : vector<8x1xf32>
    %205 = math.rsqrt %204 : vector<8x1xf32>
    %206 = vector.broadcast %205 : vector<8x1xf32> to vector<8x128xf32>
    %207 = arith.mulf %197, %206 : vector<8x128xf32>
    %208 = vector.broadcast %184 : vector<1x128xf32> to vector<8x128xf32>
    %209 = arith.mulf %207, %208 : vector<8x128xf32>
    %210 = vector.broadcast %185 : vector<1x128xf32> to vector<8x128xf32>
    %211 = arith.addf %209, %210 : vector<8x128xf32>
    %c0_80 = arith.constant 0 : index
    %c0_81 = arith.constant 0 : index
    %c0_82 = arith.constant 0 : index
    %212 = vector.load %arg15[%c0_80, %c0_81, %c0_82] : memref<1x8x128xf32, #tpu.memory_space<vmem>>, vector<1x8x128xf32>
    %213 = vector.shape_cast %212 : vector<1x8x128xf32> to vector<8x128xf32>
    %214 = vector.shape_cast %211 : vector<8x128xf32> to vector<1x8x128xf32>
    tpu.vector_store %arg15[%c0_80, %c0_81, %c0_82], %214 {strides = array<i32>} : memref<1x8x128xf32, #tpu.memory_space<vmem>>, vector<1x8x128xf32>,
    return
  }
  func.func @transform_0(%arg0: i32) -> (i32, i32, i32) {
    %c0_i32 = arith.constant 0 : i32
    %c0_i32_0 = arith.constant 0 : i32
    %c0_i32_1 = arith.constant 0 : i32
    return %arg0, %c0_i32, %c0_i32_0 : i32, i32, i32
  }
  func.func @transform_1(%arg0: i32) -> (i32, i32, i32) {
    %c0_i32 = arith.constant 0 : i32
    %c0_i32_0 = arith.constant 0 : i32
    %c0_i32_1 = arith.constant 0 : i32
    return %arg0, %c0_i32, %c0_i32_0 : i32, i32, i32
  }
  func.func @transform_2(%arg0: i32) -> (i32, i32) {
    %c0_i32 = arith.constant 0 : i32
    %c0_i32_0 = arith.constant 0 : i32
    %c0_i32_1 = arith.constant 0 : i32
    return %c0_i32, %c0_i32_0 : i32, i32
  }
  func.func @transform_3(%arg0: i32) -> (i32, i32) {
    %c0_i32 = arith.constant 0 : i32
    %c0_i32_0 = arith.constant 0 : i32
    %c0_i32_1 = arith.constant 0 : i32
    return %c0_i32, %c0_i32_0 : i32, i32
  }
  func.func @transform_4(%arg0: i32) -> (i32, i32) {
    %c0_i32 = arith.constant 0 : i32
    %c0_i32_0 = arith.constant 0 : i32
    %c0_i32_1 = arith.constant 0 : i32
    return %c0_i32, %c0_i32_0 : i32, i32
  }
  func.func @transform_5(%arg0: i32) -> (i32, i32) {
    %c0_i32 = arith.constant 0 : i32
    %c0_i32_0 = arith.constant 0 : i32
    %c0_i32_1 = arith.constant 0 : i32
    return %c0_i32, %c0_i32_0 : i32, i32
  }
  func.func @transform_6(%arg0: i32) -> (i32, i32) {
    %c0_i32 = arith.constant 0 : i32
    %c0_i32_0 = arith.constant 0 : i32
    %c0_i32_1 = arith.constant 0 : i32
    return %c0_i32, %c0_i32_0 : i32, i32
  }
  func.func @transform_7(%arg0: i32) -> (i32, i32) {
    %c0_i32 = arith.constant 0 : i32
    %c0_i32_0 = arith.constant 0 : i32
    %c0_i32_1 = arith.constant 0 : i32
    return %c0_i32, %c0_i32_0 : i32, i32
  }
  func.func @transform_8(%arg0: i32) -> (i32, i32) {
    %c0_i32 = arith.constant 0 : i32
    %c0_i32_0 = arith.constant 0 : i32
    %c0_i32_1 = arith.constant 0 : i32
    return %c0_i32, %c0_i32_0 : i32, i32
  }
  func.func @transform_9(%arg0: i32) -> (i32, i32) {
    %c0_i32 = arith.constant 0 : i32
    %c0_i32_0 = arith.constant 0 : i32
    %c0_i32_1 = arith.constant 0 : i32
    return %c0_i32, %c0_i32_0 : i32, i32
  }
  func.func @transform_10(%arg0: i32) -> (i32, i32) {
    %c0_i32 = arith.constant 0 : i32
    %c0_i32_0 = arith.constant 0 : i32
    %c0_i32_1 = arith.constant 0 : i32
    return %c0_i32, %c0_i32_0 : i32, i32
  }
  func.func @transform_11(%arg0: i32) -> (i32, i32) {
    %c0_i32 = arith.constant 0 : i32
    %c0_i32_0 = arith.constant 0 : i32
    %c0_i32_1 = arith.constant 0 : i32
    return %c0_i32, %c0_i32_0 : i32, i32
  }
  func.func @transform_12(%arg0: i32) -> (i32, i32) {
    %c0_i32 = arith.constant 0 : i32
    %c0_i32_0 = arith.constant 0 : i32
    %c0_i32_1 = arith.constant 0 : i32
    return %c0_i32, %c0_i32_0 : i32, i32
  }
  func.func @transform_13(%arg0: i32) -> (i32, i32) {
    %c0_i32 = arith.constant 0 : i32
    %c0_i32_0 = arith.constant 0 : i32
    %c0_i32_1 = arith.constant 0 : i32
    return %c0_i32, %c0_i32_0 : i32, i32
  }
  func.func @transform_14(%arg0: i32) -> (i32, i32, i32) {
    %c0_i32 = arith.constant 0 : i32
    %c0_i32_0 = arith.constant 0 : i32
    %c0_i32_1 = arith.constant 0 : i32
    return %arg0, %c0_i32, %c0_i32_0 : i32, i32, i32
  }
}

module attributes {stable_mosaic.version = 11 : i64} {
  func.func @_enc_layer_kernel(%arg0: i32, %arg1: memref<1x8x128xf32, #tpu.memory_space<vmem>>, %arg2: memref<1x1x8xf32, #tpu.memory_space<vmem>>, %arg3: memref<128x384xbf16, #tpu.memory_space<vmem>>, %arg4: memref<1x384xf32, #tpu.memory_space<vmem>>, %arg5: memref<128x128xbf16, #tpu.memory_space<vmem>>, %arg6: memref<1x128xf32, #tpu.memory_space<vmem>>, %arg7: memref<1x128xf32, #tpu.memory_space<vmem>>, %arg8: memref<1x128xf32, #tpu.memory_space<vmem>>, %arg9: memref<128x128xbf16, #tpu.memory_space<vmem>>, %arg10: memref<1x128xf32, #tpu.memory_space<vmem>>, %arg11: memref<128x128xbf16, #tpu.memory_space<vmem>>, %arg12: memref<1x128xf32, #tpu.memory_space<vmem>>, %arg13: memref<1x128xf32, #tpu.memory_space<vmem>>, %arg14: memref<1x128xf32, #tpu.memory_space<vmem>>, %arg15: memref<1x8x128xf32, #tpu.memory_space<vmem>>) attributes {dimension_semantics = [#tpu.dimension_semantics<parallel>], iteration_bounds = array<i64: 2>, scalar_prefetch = 0 : i64, scratch_operands = 0 : i64, tpu.core_type = #tpu.core_type<tc>, window_params = [{transform_indices = @transform_0, window_bounds = array<i64: 1, 8, 128>}, {transform_indices = @transform_1, window_bounds = array<i64: 1, 1, 8>}, {pipeline_mode = #tpu.pipeline_mode<synchronous>, transform_indices = @transform_2, window_bounds = array<i64: 128, 384>}, {pipeline_mode = #tpu.pipeline_mode<synchronous>, transform_indices = @transform_3, window_bounds = array<i64: 1, 384>}, {pipeline_mode = #tpu.pipeline_mode<synchronous>, transform_indices = @transform_4, window_bounds = array<i64: 128, 128>}, {pipeline_mode = #tpu.pipeline_mode<synchronous>, transform_indices = @transform_5, window_bounds = array<i64: 1, 128>}, {pipeline_mode = #tpu.pipeline_mode<synchronous>, transform_indices = @transform_6, window_bounds = array<i64: 1, 128>}, {pipeline_mode = #tpu.pipeline_mode<synchronous>, transform_indices = @transform_7, window_bounds = array<i64: 1, 128>}, {pipeline_mode = #tpu.pipeline_mode<synchronous>, transform_indices = @transform_8, window_bounds = array<i64: 128, 128>}, {pipeline_mode = #tpu.pipeline_mode<synchronous>, transform_indices = @transform_9, window_bounds = array<i64: 1, 128>}, {pipeline_mode = #tpu.pipeline_mode<synchronous>, transform_indices = @transform_10, window_bounds = array<i64: 128, 128>}, {pipeline_mode = #tpu.pipeline_mode<synchronous>, transform_indices = @transform_11, window_bounds = array<i64: 1, 128>}, {pipeline_mode = #tpu.pipeline_mode<synchronous>, transform_indices = @transform_12, window_bounds = array<i64: 1, 128>}, {pipeline_mode = #tpu.pipeline_mode<synchronous>, transform_indices = @transform_13, window_bounds = array<i64: 1, 128>}, {transform_indices = @transform_14, window_bounds = array<i64: 1, 8, 128>}]} {
    %c0 = arith.constant 0 : index
    %c0_0 = arith.constant 0 : index
    %c0_1 = arith.constant 0 : index
    %0 = vector.load %arg1[%c0, %c0_0, %c0_1] : memref<1x8x128xf32, #tpu.memory_space<vmem>>, vector<1x8x128xf32>
    %1 = vector.shape_cast %0 : vector<1x8x128xf32> to vector<8x128xf32>
    %2 = arith.truncf %1 : vector<8x128xf32> to vector<8x128xbf16>
    %c0_2 = arith.constant 0 : index
    %c0_3 = arith.constant 0 : index
    %3 = vector.load %arg3[%c0_2, %c0_3] : memref<128x384xbf16, #tpu.memory_space<vmem>>, vector<128x384xbf16>
    %cst = arith.constant dense<0.000000e+00> : vector<8x384xf32>
    %4 = tpu.matmul %2, %3, %cst {dimension_numbers = #tpu.dot_dimension_numbers<[1], [0], [0], [1], [0, 0, 1, 1], [], []>} : vector<8x128xbf16>, vector<128x384xbf16>, vector<8x384xf32> -> vector<8x384xf32>
    %c0_4 = arith.constant 0 : index
    %c0_5 = arith.constant 0 : index
    %5 = vector.load %arg4[%c0_4, %c0_5] : memref<1x384xf32, #tpu.memory_space<vmem>>, vector<1x384xf32>
    %6 = vector.broadcast %5 : vector<1x384xf32> to vector<8x384xf32>
    %7 = arith.addf %4, %6 : vector<8x384xf32>
    %8 = vector.extract_strided_slice %7 {offsets = [0, 0], sizes = [8, 128], strides = [1, 1]} : vector<8x384xf32> to vector<8x128xf32>
    %9 = vector.extract_strided_slice %7 {offsets = [0, 128], sizes = [8, 128], strides = [1, 1]} : vector<8x384xf32> to vector<8x128xf32>
    %10 = vector.extract_strided_slice %7 {offsets = [0, 256], sizes = [8, 128], strides = [1, 1]} : vector<8x384xf32> to vector<8x128xf32>
    %c0_6 = arith.constant 0 : index
    %c0_7 = arith.constant 0 : index
    %c0_8 = arith.constant 0 : index
    %11 = vector.load %arg2[%c0_6, %c0_7, %c0_8] : memref<1x1x8xf32, #tpu.memory_space<vmem>>, vector<1x1x8xf32>
    %12 = vector.shape_cast %11 : vector<1x1x8xf32> to vector<1x8xf32>
    %cst_9 = arith.constant 5.000000e-01 : f32
    %13 = vector.broadcast %cst_9 : f32 to vector<1x8xf32>
    %14 = arith.cmpf ogt, %12, %13 : vector<1x8xf32>
    %15 = vector.shape_cast %14 : vector<1x8xi1> to vector<1x8xi1>
    %16 = vector.broadcast %15 : vector<1x8xi1> to vector<8x8xi1>
    %17 = arith.truncf %10 : vector<8x128xf32> to vector<8x128xbf16>
    %18 = tpu.iota {dimensions = array<i32: 1>} : vector<8x128xi32>
    %cst_10 = arith.constant 0.000000e+00 : f32
    %19 = vector.broadcast %cst_10 : f32 to vector<8x128xf32>
    %20 = vector.extract_strided_slice %8 {offsets = [0, 0], sizes = [8, 8], strides = [1, 1]} : vector<8x128xf32> to vector<8x8xf32>
    %21 = arith.truncf %20 : vector<8x8xf32> to vector<8x8xbf16>
    %22 = vector.extract_strided_slice %9 {offsets = [0, 0], sizes = [8, 8], strides = [1, 1]} : vector<8x128xf32> to vector<8x8xf32>
    %23 = arith.truncf %22 : vector<8x8xf32> to vector<8x8xbf16>
    %cst_11 = arith.constant dense<0.000000e+00> : vector<8x8xf32>
    %24 = tpu.matmul %21, %23, %cst_11 {dimension_numbers = #tpu.dot_dimension_numbers<[1], [1], [0], [0], [0, 0, 1, 0], [], []>} : vector<8x8xbf16>, vector<8x8xbf16>, vector<8x8xf32> -> vector<8x8xf32>
    %cst_12 = arith.constant 0.353553385 : f32
    %25 = vector.broadcast %cst_12 : f32 to vector<8x8xf32>
    %26 = arith.mulf %24, %25 : vector<8x8xf32>
    %cst_13 = arith.constant -1.000000e+09 : f32
    %27 = vector.broadcast %cst_13 : f32 to vector<8x8xf32>
    %28 = arith.select %16, %26, %27 : vector<8x8xi1>, vector<8x8xf32>
    %cst_14 = arith.constant dense<0xFF800000> : vector<8xf32>
    %29 = vector.multi_reduction <maximumf>, %28, %cst_14 [1] : vector<8x8xf32> to vector<8xf32>
    %30 = vector.shape_cast %29 : vector<8xf32> to vector<8x1xf32>
    %31 = vector.broadcast %30 : vector<8x1xf32> to vector<8x8xf32>
    %32 = arith.subf %28, %31 : vector<8x8xf32>
    %33 = math.exp %32 : vector<8x8xf32>
    %cst_15 = arith.constant dense<0.000000e+00> : vector<8xf32>
    %34 = vector.multi_reduction <add>, %33, %cst_15 [1] : vector<8x8xf32> to vector<8xf32>
    %35 = vector.shape_cast %34 : vector<8xf32> to vector<8x1xf32>
    %36 = tpu.reciprocal %35 {approx = true} : vector<8x1xf32> -> vector<8x1xf32>
    %37 = vector.broadcast %36 : vector<8x1xf32> to vector<8x8xf32>
    %38 = arith.mulf %33, %37 : vector<8x8xf32>
    %39 = arith.truncf %38 : vector<8x8xf32> to vector<8x8xbf16>
    %cst_16 = arith.constant dense<0.000000e+00> : vector<8x128xf32>
    %40 = tpu.matmul %39, %17, %cst_16 {dimension_numbers = #tpu.dot_dimension_numbers<[1], [0], [0], [1], [0, 0, 1, 1], [], []>} : vector<8x8xbf16>, vector<8x128xbf16>, vector<8x128xf32> -> vector<8x128xf32>
    %c0_i32 = arith.constant 0 : i32
    %41 = vector.broadcast %c0_i32 : i32 to vector<8x128xi32>
    %42 = arith.cmpi sge, %18, %41 : vector<8x128xi32>
    %c8_i32 = arith.constant 8 : i32
    %43 = vector.broadcast %c8_i32 : i32 to vector<8x128xi32>
    %44 = arith.cmpi slt, %18, %43 : vector<8x128xi32>
    %45 = arith.andi %42, %44 : vector<8x128xi1>
    %cst_17 = arith.constant 0.000000e+00 : f32
    %46 = vector.broadcast %cst_17 : f32 to vector<8x128xf32>
    %47 = arith.select %45, %40, %46 : vector<8x128xi1>, vector<8x128xf32>
    %48 = arith.addf %19, %47 : vector<8x128xf32>
    %49 = vector.extract_strided_slice %8 {offsets = [0, 8], sizes = [8, 8], strides = [1, 1]} : vector<8x128xf32> to vector<8x8xf32>
    %50 = arith.truncf %49 : vector<8x8xf32> to vector<8x8xbf16>
    %51 = vector.extract_strided_slice %9 {offsets = [0, 8], sizes = [8, 8], strides = [1, 1]} : vector<8x128xf32> to vector<8x8xf32>
    %52 = arith.truncf %51 : vector<8x8xf32> to vector<8x8xbf16>
    %cst_18 = arith.constant dense<0.000000e+00> : vector<8x8xf32>
    %53 = tpu.matmul %50, %52, %cst_18 {dimension_numbers = #tpu.dot_dimension_numbers<[1], [1], [0], [0], [0, 0, 1, 0], [], []>} : vector<8x8xbf16>, vector<8x8xbf16>, vector<8x8xf32> -> vector<8x8xf32>
    %cst_19 = arith.constant 0.353553385 : f32
    %54 = vector.broadcast %cst_19 : f32 to vector<8x8xf32>
    %55 = arith.mulf %53, %54 : vector<8x8xf32>
    %cst_20 = arith.constant -1.000000e+09 : f32
    %56 = vector.broadcast %cst_20 : f32 to vector<8x8xf32>
    %57 = arith.select %16, %55, %56 : vector<8x8xi1>, vector<8x8xf32>
    %cst_21 = arith.constant dense<0xFF800000> : vector<8xf32>
    %58 = vector.multi_reduction <maximumf>, %57, %cst_21 [1] : vector<8x8xf32> to vector<8xf32>
    %59 = vector.shape_cast %58 : vector<8xf32> to vector<8x1xf32>
    %60 = vector.broadcast %59 : vector<8x1xf32> to vector<8x8xf32>
    %61 = arith.subf %57, %60 : vector<8x8xf32>
    %62 = math.exp %61 : vector<8x8xf32>
    %cst_22 = arith.constant dense<0.000000e+00> : vector<8xf32>
    %63 = vector.multi_reduction <add>, %62, %cst_22 [1] : vector<8x8xf32> to vector<8xf32>
    %64 = vector.shape_cast %63 : vector<8xf32> to vector<8x1xf32>
    %65 = tpu.reciprocal %64 {approx = true} : vector<8x1xf32> -> vector<8x1xf32>
    %66 = vector.broadcast %65 : vector<8x1xf32> to vector<8x8xf32>
    %67 = arith.mulf %62, %66 : vector<8x8xf32>
    %68 = arith.truncf %67 : vector<8x8xf32> to vector<8x8xbf16>
    %cst_23 = arith.constant dense<0.000000e+00> : vector<8x128xf32>
    %69 = tpu.matmul %68, %17, %cst_23 {dimension_numbers = #tpu.dot_dimension_numbers<[1], [0], [0], [1], [0, 0, 1, 1], [], []>} : vector<8x8xbf16>, vector<8x128xbf16>, vector<8x128xf32> -> vector<8x128xf32>
    %c8_i32_24 = arith.constant 8 : i32
    %70 = vector.broadcast %c8_i32_24 : i32 to vector<8x128xi32>
    %71 = arith.cmpi sge, %18, %70 : vector<8x128xi32>
    %c16_i32 = arith.constant 16 : i32
    %72 = vector.broadcast %c16_i32 : i32 to vector<8x128xi32>
    %73 = arith.cmpi slt, %18, %72 : vector<8x128xi32>
    %74 = arith.andi %71, %73 : vector<8x128xi1>
    %cst_25 = arith.constant 0.000000e+00 : f32
    %75 = vector.broadcast %cst_25 : f32 to vector<8x128xf32>
    %76 = arith.select %74, %69, %75 : vector<8x128xi1>, vector<8x128xf32>
    %77 = arith.addf %48, %76 : vector<8x128xf32>
    %78 = vector.extract_strided_slice %8 {offsets = [0, 16], sizes = [8, 8], strides = [1, 1]} : vector<8x128xf32> to vector<8x8xf32>
    %79 = arith.truncf %78 : vector<8x8xf32> to vector<8x8xbf16>
    %80 = vector.extract_strided_slice %9 {offsets = [0, 16], sizes = [8, 8], strides = [1, 1]} : vector<8x128xf32> to vector<8x8xf32>
    %81 = arith.truncf %80 : vector<8x8xf32> to vector<8x8xbf16>
    %cst_26 = arith.constant dense<0.000000e+00> : vector<8x8xf32>
    %82 = tpu.matmul %79, %81, %cst_26 {dimension_numbers = #tpu.dot_dimension_numbers<[1], [1], [0], [0], [0, 0, 1, 0], [], []>} : vector<8x8xbf16>, vector<8x8xbf16>, vector<8x8xf32> -> vector<8x8xf32>
    %cst_27 = arith.constant 0.353553385 : f32
    %83 = vector.broadcast %cst_27 : f32 to vector<8x8xf32>
    %84 = arith.mulf %82, %83 : vector<8x8xf32>
    %cst_28 = arith.constant -1.000000e+09 : f32
    %85 = vector.broadcast %cst_28 : f32 to vector<8x8xf32>
    %86 = arith.select %16, %84, %85 : vector<8x8xi1>, vector<8x8xf32>
    %cst_29 = arith.constant dense<0xFF800000> : vector<8xf32>
    %87 = vector.multi_reduction <maximumf>, %86, %cst_29 [1] : vector<8x8xf32> to vector<8xf32>
    %88 = vector.shape_cast %87 : vector<8xf32> to vector<8x1xf32>
    %89 = vector.broadcast %88 : vector<8x1xf32> to vector<8x8xf32>
    %90 = arith.subf %86, %89 : vector<8x8xf32>
    %91 = math.exp %90 : vector<8x8xf32>
    %cst_30 = arith.constant dense<0.000000e+00> : vector<8xf32>
    %92 = vector.multi_reduction <add>, %91, %cst_30 [1] : vector<8x8xf32> to vector<8xf32>
    %93 = vector.shape_cast %92 : vector<8xf32> to vector<8x1xf32>
    %94 = tpu.reciprocal %93 {approx = true} : vector<8x1xf32> -> vector<8x1xf32>
    %95 = vector.broadcast %94 : vector<8x1xf32> to vector<8x8xf32>
    %96 = arith.mulf %91, %95 : vector<8x8xf32>
    %97 = arith.truncf %96 : vector<8x8xf32> to vector<8x8xbf16>
    %cst_31 = arith.constant dense<0.000000e+00> : vector<8x128xf32>
    %98 = tpu.matmul %97, %17, %cst_31 {dimension_numbers = #tpu.dot_dimension_numbers<[1], [0], [0], [1], [0, 0, 1, 1], [], []>} : vector<8x8xbf16>, vector<8x128xbf16>, vector<8x128xf32> -> vector<8x128xf32>
    %c16_i32_32 = arith.constant 16 : i32
    %99 = vector.broadcast %c16_i32_32 : i32 to vector<8x128xi32>
    %100 = arith.cmpi sge, %18, %99 : vector<8x128xi32>
    %c24_i32 = arith.constant 24 : i32
    %101 = vector.broadcast %c24_i32 : i32 to vector<8x128xi32>
    %102 = arith.cmpi slt, %18, %101 : vector<8x128xi32>
    %103 = arith.andi %100, %102 : vector<8x128xi1>
    %cst_33 = arith.constant 0.000000e+00 : f32
    %104 = vector.broadcast %cst_33 : f32 to vector<8x128xf32>
    %105 = arith.select %103, %98, %104 : vector<8x128xi1>, vector<8x128xf32>
    %106 = arith.addf %77, %105 : vector<8x128xf32>
    %107 = vector.extract_strided_slice %8 {offsets = [0, 24], sizes = [8, 8], strides = [1, 1]} : vector<8x128xf32> to vector<8x8xf32>
    %108 = arith.truncf %107 : vector<8x8xf32> to vector<8x8xbf16>
    %109 = vector.extract_strided_slice %9 {offsets = [0, 24], sizes = [8, 8], strides = [1, 1]} : vector<8x128xf32> to vector<8x8xf32>
    %110 = arith.truncf %109 : vector<8x8xf32> to vector<8x8xbf16>
    %cst_34 = arith.constant dense<0.000000e+00> : vector<8x8xf32>
    %111 = tpu.matmul %108, %110, %cst_34 {dimension_numbers = #tpu.dot_dimension_numbers<[1], [1], [0], [0], [0, 0, 1, 0], [], []>} : vector<8x8xbf16>, vector<8x8xbf16>, vector<8x8xf32> -> vector<8x8xf32>
    %cst_35 = arith.constant 0.353553385 : f32
    %112 = vector.broadcast %cst_35 : f32 to vector<8x8xf32>
    %113 = arith.mulf %111, %112 : vector<8x8xf32>
    %cst_36 = arith.constant -1.000000e+09 : f32
    %114 = vector.broadcast %cst_36 : f32 to vector<8x8xf32>
    %115 = arith.select %16, %113, %114 : vector<8x8xi1>, vector<8x8xf32>
    %cst_37 = arith.constant dense<0xFF800000> : vector<8xf32>
    %116 = vector.multi_reduction <maximumf>, %115, %cst_37 [1] : vector<8x8xf32> to vector<8xf32>
    %117 = vector.shape_cast %116 : vector<8xf32> to vector<8x1xf32>
    %118 = vector.broadcast %117 : vector<8x1xf32> to vector<8x8xf32>
    %119 = arith.subf %115, %118 : vector<8x8xf32>
    %120 = math.exp %119 : vector<8x8xf32>
    %cst_38 = arith.constant dense<0.000000e+00> : vector<8xf32>
    %121 = vector.multi_reduction <add>, %120, %cst_38 [1] : vector<8x8xf32> to vector<8xf32>
    %122 = vector.shape_cast %121 : vector<8xf32> to vector<8x1xf32>
    %123 = tpu.reciprocal %122 {approx = true} : vector<8x1xf32> -> vector<8x1xf32>
    %124 = vector.broadcast %123 : vector<8x1xf32> to vector<8x8xf32>
    %125 = arith.mulf %120, %124 : vector<8x8xf32>
    %126 = arith.truncf %125 : vector<8x8xf32> to vector<8x8xbf16>
    %cst_39 = arith.constant dense<0.000000e+00> : vector<8x128xf32>
    %127 = tpu.matmul %126, %17, %cst_39 {dimension_numbers = #tpu.dot_dimension_numbers<[1], [0], [0], [1], [0, 0, 1, 1], [], []>} : vector<8x8xbf16>, vector<8x128xbf16>, vector<8x128xf32> -> vector<8x128xf32>
    %c24_i32_40 = arith.constant 24 : i32
    %128 = vector.broadcast %c24_i32_40 : i32 to vector<8x128xi32>
    %129 = arith.cmpi sge, %18, %128 : vector<8x128xi32>
    %c32_i32 = arith.constant 32 : i32
    %130 = vector.broadcast %c32_i32 : i32 to vector<8x128xi32>
    %131 = arith.cmpi slt, %18, %130 : vector<8x128xi32>
    %132 = arith.andi %129, %131 : vector<8x128xi1>
    %cst_41 = arith.constant 0.000000e+00 : f32
    %133 = vector.broadcast %cst_41 : f32 to vector<8x128xf32>
    %134 = arith.select %132, %127, %133 : vector<8x128xi1>, vector<8x128xf32>
    %135 = arith.addf %106, %134 : vector<8x128xf32>
    %136 = arith.truncf %135 : vector<8x128xf32> to vector<8x128xbf16>
    %c0_42 = arith.constant 0 : index
    %c0_43 = arith.constant 0 : index
    %137 = vector.load %arg5[%c0_42, %c0_43] : memref<128x128xbf16, #tpu.memory_space<vmem>>, vector<128x128xbf16>
    %cst_44 = arith.constant dense<0.000000e+00> : vector<8x128xf32>
    %138 = tpu.matmul %136, %137, %cst_44 {dimension_numbers = #tpu.dot_dimension_numbers<[1], [0], [0], [1], [0, 0, 1, 1], [], []>} : vector<8x128xbf16>, vector<128x128xbf16>, vector<8x128xf32> -> vector<8x128xf32>
    %c0_45 = arith.constant 0 : index
    %c0_46 = arith.constant 0 : index
    %139 = vector.load %arg6[%c0_45, %c0_46] : memref<1x128xf32, #tpu.memory_space<vmem>>, vector<1x128xf32>
    %140 = vector.broadcast %139 : vector<1x128xf32> to vector<8x128xf32>
    %141 = arith.addf %138, %140 : vector<8x128xf32>
    %c0_47 = arith.constant 0 : index
    %c0_48 = arith.constant 0 : index
    %142 = vector.load %arg7[%c0_47, %c0_48] : memref<1x128xf32, #tpu.memory_space<vmem>>, vector<1x128xf32>
    %c0_49 = arith.constant 0 : index
    %c0_50 = arith.constant 0 : index
    %143 = vector.load %arg8[%c0_49, %c0_50] : memref<1x128xf32, #tpu.memory_space<vmem>>, vector<1x128xf32>
    %144 = arith.addf %1, %141 : vector<8x128xf32>
    %145 = tpu.iota {dimensions = array<i32: 1>} : vector<8x128xi32>
    %c32_i32_51 = arith.constant 32 : i32
    %146 = vector.broadcast %c32_i32_51 : i32 to vector<8x128xi32>
    %147 = arith.cmpi slt, %145, %146 : vector<8x128xi32>
    %cst_52 = arith.constant dense<0.000000e+00> : vector<8xf32>
    %148 = vector.multi_reduction <add>, %144, %cst_52 [1] : vector<8x128xf32> to vector<8xf32>
    %149 = vector.shape_cast %148 : vector<8xf32> to vector<8x1xf32>
    %cst_53 = arith.constant 3.125000e-02 : f32
    %150 = vector.broadcast %cst_53 : f32 to vector<8x1xf32>
    %151 = arith.mulf %149, %150 : vector<8x1xf32>
    %152 = vector.broadcast %151 : vector<8x1xf32> to vector<8x128xf32>
    %153 = arith.subf %144, %152 : vector<8x128xf32>
    %cst_54 = arith.constant 0.000000e+00 : f32
    %154 = vector.broadcast %cst_54 : f32 to vector<8x128xf32>
    %155 = arith.select %147, %153, %154 : vector<8x128xi1>, vector<8x128xf32>
    %156 = arith.mulf %155, %155 : vector<8x128xf32>
    %cst_55 = arith.constant dense<0.000000e+00> : vector<8xf32>
    %157 = vector.multi_reduction <add>, %156, %cst_55 [1] : vector<8x128xf32> to vector<8xf32>
    %158 = vector.shape_cast %157 : vector<8xf32> to vector<8x1xf32>
    %cst_56 = arith.constant 3.125000e-02 : f32
    %159 = vector.broadcast %cst_56 : f32 to vector<8x1xf32>
    %160 = arith.mulf %158, %159 : vector<8x1xf32>
    %cst_57 = arith.constant 9.99999974E-6 : f32
    %161 = vector.broadcast %cst_57 : f32 to vector<8x1xf32>
    %162 = arith.addf %160, %161 : vector<8x1xf32>
    %163 = math.rsqrt %162 : vector<8x1xf32>
    %164 = vector.broadcast %163 : vector<8x1xf32> to vector<8x128xf32>
    %165 = arith.mulf %155, %164 : vector<8x128xf32>
    %166 = vector.broadcast %142 : vector<1x128xf32> to vector<8x128xf32>
    %167 = arith.mulf %165, %166 : vector<8x128xf32>
    %168 = vector.broadcast %143 : vector<1x128xf32> to vector<8x128xf32>
    %169 = arith.addf %167, %168 : vector<8x128xf32>
    %170 = arith.truncf %169 : vector<8x128xf32> to vector<8x128xbf16>
    %c0_58 = arith.constant 0 : index
    %c0_59 = arith.constant 0 : index
    %171 = vector.load %arg9[%c0_58, %c0_59] : memref<128x128xbf16, #tpu.memory_space<vmem>>, vector<128x128xbf16>
    %cst_60 = arith.constant dense<0.000000e+00> : vector<8x128xf32>
    %172 = tpu.matmul %170, %171, %cst_60 {dimension_numbers = #tpu.dot_dimension_numbers<[1], [0], [0], [1], [0, 0, 1, 1], [], []>} : vector<8x128xbf16>, vector<128x128xbf16>, vector<8x128xf32> -> vector<8x128xf32>
    %c0_61 = arith.constant 0 : index
    %c0_62 = arith.constant 0 : index
    %173 = vector.load %arg10[%c0_61, %c0_62] : memref<1x128xf32, #tpu.memory_space<vmem>>, vector<1x128xf32>
    %174 = vector.broadcast %173 : vector<1x128xf32> to vector<8x128xf32>
    %175 = arith.addf %172, %174 : vector<8x128xf32>
    %cst_63 = arith.constant 0.000000e+00 : f32
    %176 = vector.broadcast %cst_63 : f32 to vector<8x128xf32>
    %177 = arith.maximumf %175, %176 : vector<8x128xf32>
    %178 = arith.truncf %177 : vector<8x128xf32> to vector<8x128xbf16>
    %c0_64 = arith.constant 0 : index
    %c0_65 = arith.constant 0 : index
    %179 = vector.load %arg11[%c0_64, %c0_65] : memref<128x128xbf16, #tpu.memory_space<vmem>>, vector<128x128xbf16>
    %cst_66 = arith.constant dense<0.000000e+00> : vector<8x128xf32>
    %180 = tpu.matmul %178, %179, %cst_66 {dimension_numbers = #tpu.dot_dimension_numbers<[1], [0], [0], [1], [0, 0, 1, 1], [], []>} : vector<8x128xbf16>, vector<128x128xbf16>, vector<8x128xf32> -> vector<8x128xf32>
    %c0_67 = arith.constant 0 : index
    %c0_68 = arith.constant 0 : index
    %181 = vector.load %arg12[%c0_67, %c0_68] : memref<1x128xf32, #tpu.memory_space<vmem>>, vector<1x128xf32>
    %182 = vector.broadcast %181 : vector<1x128xf32> to vector<8x128xf32>
    %183 = arith.addf %180, %182 : vector<8x128xf32>
    %c0_69 = arith.constant 0 : index
    %c0_70 = arith.constant 0 : index
    %184 = vector.load %arg13[%c0_69, %c0_70] : memref<1x128xf32, #tpu.memory_space<vmem>>, vector<1x128xf32>
    %c0_71 = arith.constant 0 : index
    %c0_72 = arith.constant 0 : index
    %185 = vector.load %arg14[%c0_71, %c0_72] : memref<1x128xf32, #tpu.memory_space<vmem>>, vector<1x128xf32>
    %186 = arith.addf %169, %183 : vector<8x128xf32>
    %187 = tpu.iota {dimensions = array<i32: 1>} : vector<8x128xi32>
    %c32_i32_73 = arith.constant 32 : i32
    %188 = vector.broadcast %c32_i32_73 : i32 to vector<8x128xi32>
    %189 = arith.cmpi slt, %187, %188 : vector<8x128xi32>
    %cst_74 = arith.constant dense<0.000000e+00> : vector<8xf32>
    %190 = vector.multi_reduction <add>, %186, %cst_74 [1] : vector<8x128xf32> to vector<8xf32>
    %191 = vector.shape_cast %190 : vector<8xf32> to vector<8x1xf32>
    %cst_75 = arith.constant 3.125000e-02 : f32
    %192 = vector.broadcast %cst_75 : f32 to vector<8x1xf32>
    %193 = arith.mulf %191, %192 : vector<8x1xf32>
    %194 = vector.broadcast %193 : vector<8x1xf32> to vector<8x128xf32>
    %195 = arith.subf %186, %194 : vector<8x128xf32>
    %cst_76 = arith.constant 0.000000e+00 : f32
    %196 = vector.broadcast %cst_76 : f32 to vector<8x128xf32>
    %197 = arith.select %189, %195, %196 : vector<8x128xi1>, vector<8x128xf32>
    %198 = arith.mulf %197, %197 : vector<8x128xf32>
    %cst_77 = arith.constant dense<0.000000e+00> : vector<8xf32>
    %199 = vector.multi_reduction <add>, %198, %cst_77 [1] : vector<8x128xf32> to vector<8xf32>
    %200 = vector.shape_cast %199 : vector<8xf32> to vector<8x1xf32>
    %cst_78 = arith.constant 3.125000e-02 : f32
    %201 = vector.broadcast %cst_78 : f32 to vector<8x1xf32>
    %202 = arith.mulf %200, %201 : vector<8x1xf32>
    %cst_79 = arith.constant 9.99999974E-6 : f32
    %203 = vector.broadcast %cst_79 : f32 to vector<8x1xf32>
    %204 = arith.addf %202, %203 : vector<8x1xf32>
    %205 = math.rsqrt %204 : vector<8x1xf32>
    %206 = vector.broadcast %205 : vector<8x1xf32> to vector<8x128xf32>
    %207 = arith.mulf %197, %206 : vector<8x128xf32>
    %208 = vector.broadcast %184 : vector<1x128xf32> to vector<8x128xf32>
    %209 = arith.mulf %207, %208 : vector<8x128xf32>
    %210 = vector.broadcast %185 : vector<1x128xf32> to vector<8x128xf32>
    %211 = arith.addf %209, %210 : vector<8x128xf32>
    %c0_80 = arith.constant 0 : index
    %c0_81 = arith.constant 0 : index
    %c0_82 = arith.constant 0 : index
    %212 = vector.load %arg15[%c0_80, %c0_81, %c0_82] : memref<1x8x128xf32, #tpu.memory_space<vmem>>, vector<1x8x128xf32>
    %213 = vector.shape_cast %212 : vector<1x8x128xf32> to vector<8x128xf32>
    %214 = vector.shape_cast %211 : vector<8x128xf32> to vector<1x8x128xf32>
    tpu.vector_store %arg15[%c0_80, %c0_81, %c0_82], %214 {strides = array<i32>} : memref<1x8x128xf32, #tpu.memory_space<vmem>>, vector<1x8x128xf32>,
    return
  }
  func.func @transform_0(%arg0: i32) -> (i32, i32, i32) {
    %c0_i32 = arith.constant 0 : i32
    %c0_i32_0 = arith.constant 0 : i32
    %c0_i32_1 = arith.constant 0 : i32
    return %arg0, %c0_i32, %c0_i32_0 : i32, i32, i32
  }
  func.func @transform_1(%arg0: i32) -> (i32, i32, i32) {
    %c0_i32 = arith.constant 0 : i32
    %c0_i32_0 = arith.constant 0 : i32
    %c0_i32_1 = arith.constant 0 : i32
    return %arg0, %c0_i32, %c0_i32_0 : i32, i32, i32
  }
  func.func @transform_2(%arg0: i32) -> (i32, i32) {
    %c0_i32 = arith.constant 0 : i32
    %c0_i32_0 = arith.constant 0 : i32
    %c0_i32_1 = arith.constant 0 : i32
    return %c0_i32, %c0_i32_0 : i32, i32
  }
  func.func @transform_3(%arg0: i32) -> (i32, i32) {
    %c0_i32 = arith.constant 0 : i32
    %c0_i32_0 = arith.constant 0 : i32
    %c0_i32_1 = arith.constant 0 : i32
    return %c0_i32, %c0_i32_0 : i32, i32
  }
  func.func @transform_4(%arg0: i32) -> (i32, i32) {
    %c0_i32 = arith.constant 0 : i32
    %c0_i32_0 = arith.constant 0 : i32
    %c0_i32_1 = arith.constant 0 : i32
    return %c0_i32, %c0_i32_0 : i32, i32
  }
  func.func @transform_5(%arg0: i32) -> (i32, i32) {
    %c0_i32 = arith.constant 0 : i32
    %c0_i32_0 = arith.constant 0 : i32
    %c0_i32_1 = arith.constant 0 : i32
    return %c0_i32, %c0_i32_0 : i32, i32
  }
  func.func @transform_6(%arg0: i32) -> (i32, i32) {
    %c0_i32 = arith.constant 0 : i32
    %c0_i32_0 = arith.constant 0 : i32
    %c0_i32_1 = arith.constant 0 : i32
    return %c0_i32, %c0_i32_0 : i32, i32
  }
  func.func @transform_7(%arg0: i32) -> (i32, i32) {
    %c0_i32 = arith.constant 0 : i32
    %c0_i32_0 = arith.constant 0 : i32
    %c0_i32_1 = arith.constant 0 : i32
    return %c0_i32, %c0_i32_0 : i32, i32
  }
  func.func @transform_8(%arg0: i32) -> (i32, i32) {
    %c0_i32 = arith.constant 0 : i32
    %c0_i32_0 = arith.constant 0 : i32
    %c0_i32_1 = arith.constant 0 : i32
    return %c0_i32, %c0_i32_0 : i32, i32
  }
  func.func @transform_9(%arg0: i32) -> (i32, i32) {
    %c0_i32 = arith.constant 0 : i32
    %c0_i32_0 = arith.constant 0 : i32
    %c0_i32_1 = arith.constant 0 : i32
    return %c0_i32, %c0_i32_0 : i32, i32
  }
  func.func @transform_10(%arg0: i32) -> (i32, i32) {
    %c0_i32 = arith.constant 0 : i32
    %c0_i32_0 = arith.constant 0 : i32
    %c0_i32_1 = arith.constant 0 : i32
    return %c0_i32, %c0_i32_0 : i32, i32
  }
  func.func @transform_11(%arg0: i32) -> (i32, i32) {
    %c0_i32 = arith.constant 0 : i32
    %c0_i32_0 = arith.constant 0 : i32
    %c0_i32_1 = arith.constant 0 : i32
    return %c0_i32, %c0_i32_0 : i32, i32
  }
  func.func @transform_12(%arg0: i32) -> (i32, i32) {
    %c0_i32 = arith.constant 0 : i32
    %c0_i32_0 = arith.constant 0 : i32
    %c0_i32_1 = arith.constant 0 : i32
    return %c0_i32, %c0_i32_0 : i32, i32
  }
  func.func @transform_13(%arg0: i32) -> (i32, i32) {
    %c0_i32 = arith.constant 0 : i32
    %c0_i32_0 = arith.constant 0 : i32
    %c0_i32_1 = arith.constant 0 : i32
    return %c0_i32, %c0_i32_0 : i32, i32
  }
  func.func @transform_14(%arg0: i32) -> (i32, i32, i32) {
    %c0_i32 = arith.constant 0 : i32
    %c0_i32_0 = arith.constant 0 : i32
    %c0_i32_1 = arith.constant 0 : i32
    return %arg0, %c0_i32, %c0_i32_0 : i32, i32, i32
  }
}

module attributes {stable_mosaic.version = 11 : i64} {
  func.func @_dec_layer_kernel(%arg0: i32, %arg1: memref<1x8x128xf32, #tpu.memory_space<vmem>>, %arg2: memref<1x8x128xf32, #tpu.memory_space<vmem>>, %arg3: memref<1x8x1xf32, #tpu.memory_space<vmem>>, %arg4: memref<1x1x8xf32, #tpu.memory_space<vmem>>, %arg5: memref<128x384xbf16, #tpu.memory_space<vmem>>, %arg6: memref<1x384xf32, #tpu.memory_space<vmem>>, %arg7: memref<128x128xbf16, #tpu.memory_space<vmem>>, %arg8: memref<1x128xf32, #tpu.memory_space<vmem>>, %arg9: memref<1x128xf32, #tpu.memory_space<vmem>>, %arg10: memref<1x128xf32, #tpu.memory_space<vmem>>, %arg11: memref<128x128xbf16, #tpu.memory_space<vmem>>, %arg12: memref<1x128xf32, #tpu.memory_space<vmem>>, %arg13: memref<128x256xbf16, #tpu.memory_space<vmem>>, %arg14: memref<1x256xf32, #tpu.memory_space<vmem>>, %arg15: memref<128x128xbf16, #tpu.memory_space<vmem>>, %arg16: memref<1x128xf32, #tpu.memory_space<vmem>>, %arg17: memref<1x128xf32, #tpu.memory_space<vmem>>, %arg18: memref<1x128xf32, #tpu.memory_space<vmem>>, %arg19: memref<128x128xbf16, #tpu.memory_space<vmem>>, %arg20: memref<1x128xf32, #tpu.memory_space<vmem>>, %arg21: memref<128x128xbf16, #tpu.memory_space<vmem>>, %arg22: memref<1x128xf32, #tpu.memory_space<vmem>>, %arg23: memref<1x128xf32, #tpu.memory_space<vmem>>, %arg24: memref<1x128xf32, #tpu.memory_space<vmem>>, %arg25: memref<1x8x128xf32, #tpu.memory_space<vmem>>) attributes {dimension_semantics = [#tpu.dimension_semantics<parallel>], iteration_bounds = array<i64: 2>, scalar_prefetch = 0 : i64, scratch_operands = 0 : i64, tpu.core_type = #tpu.core_type<tc>, window_params = [{transform_indices = @transform_0, window_bounds = array<i64: 1, 8, 128>}, {transform_indices = @transform_1, window_bounds = array<i64: 1, 8, 128>}, {transform_indices = @transform_2, window_bounds = array<i64: 1, 8, 1>}, {transform_indices = @transform_3, window_bounds = array<i64: 1, 1, 8>}, {pipeline_mode = #tpu.pipeline_mode<synchronous>, transform_indices = @transform_4, window_bounds = array<i64: 128, 384>}, {pipeline_mode = #tpu.pipeline_mode<synchronous>, transform_indices = @transform_5, window_bounds = array<i64: 1, 384>}, {pipeline_mode = #tpu.pipeline_mode<synchronous>, transform_indices = @transform_6, window_bounds = array<i64: 128, 128>}, {pipeline_mode = #tpu.pipeline_mode<synchronous>, transform_indices = @transform_7, window_bounds = array<i64: 1, 128>}, {pipeline_mode = #tpu.pipeline_mode<synchronous>, transform_indices = @transform_8, window_bounds = array<i64: 1, 128>}, {pipeline_mode = #tpu.pipeline_mode<synchronous>, transform_indices = @transform_9, window_bounds = array<i64: 1, 128>}, {pipeline_mode = #tpu.pipeline_mode<synchronous>, transform_indices = @transform_10, window_bounds = array<i64: 128, 128>}, {pipeline_mode = #tpu.pipeline_mode<synchronous>, transform_indices = @transform_11, window_bounds = array<i64: 1, 128>}, {pipeline_mode = #tpu.pipeline_mode<synchronous>, transform_indices = @transform_12, window_bounds = array<i64: 128, 256>}, {pipeline_mode = #tpu.pipeline_mode<synchronous>, transform_indices = @transform_13, window_bounds = array<i64: 1, 256>}, {pipeline_mode = #tpu.pipeline_mode<synchronous>, transform_indices = @transform_14, window_bounds = array<i64: 128, 128>}, {pipeline_mode = #tpu.pipeline_mode<synchronous>, transform_indices = @transform_15, window_bounds = array<i64: 1, 128>}, {pipeline_mode = #tpu.pipeline_mode<synchronous>, transform_indices = @transform_16, window_bounds = array<i64: 1, 128>}, {pipeline_mode = #tpu.pipeline_mode<synchronous>, transform_indices = @transform_17, window_bounds = array<i64: 1, 128>}, {pipeline_mode = #tpu.pipeline_mode<synchronous>, transform_indices = @transform_18, window_bounds = array<i64: 128, 128>}, {pipeline_mode = #tpu.pipeline_mode<synchronous>, transform_indices = @transform_19, window_bounds = array<i64: 1, 128>}, {pipeline_mode = #tpu.pipeline_mode<synchronous>, transform_indices = @transform_20, window_bounds = array<i64: 128, 128>}, {pipeline_mode = #tpu.pipeline_mode<synchronous>, transform_indices = @transform_21, window_bounds = array<i64: 1, 128>}, {pipeline_mode = #tpu.pipeline_mode<synchronous>, transform_indices = @transform_22, window_bounds = array<i64: 1, 128>}, {pipeline_mode = #tpu.pipeline_mode<synchronous>, transform_indices = @transform_23, window_bounds = array<i64: 1, 128>}, {transform_indices = @transform_24, window_bounds = array<i64: 1, 8, 128>}]} {
    %c0 = arith.constant 0 : index
    %c0_0 = arith.constant 0 : index
    %c0_1 = arith.constant 0 : index
    %0 = vector.load %arg1[%c0, %c0_0, %c0_1] : memref<1x8x128xf32, #tpu.memory_space<vmem>>, vector<1x8x128xf32>
    %1 = vector.shape_cast %0 : vector<1x8x128xf32> to vector<8x128xf32>
    %c0_2 = arith.constant 0 : index
    %c0_3 = arith.constant 0 : index
    %c0_4 = arith.constant 0 : index
    %2 = vector.load %arg2[%c0_2, %c0_3, %c0_4] : memref<1x8x128xf32, #tpu.memory_space<vmem>>, vector<1x8x128xf32>
    %3 = vector.shape_cast %2 : vector<1x8x128xf32> to vector<8x128xf32>
    %4 = arith.truncf %1 : vector<8x128xf32> to vector<8x128xbf16>
    %c0_5 = arith.constant 0 : index
    %c0_6 = arith.constant 0 : index
    %5 = vector.load %arg5[%c0_5, %c0_6] : memref<128x384xbf16, #tpu.memory_space<vmem>>, vector<128x384xbf16>
    %cst = arith.constant dense<0.000000e+00> : vector<8x384xf32>
    %6 = tpu.matmul %4, %5, %cst {dimension_numbers = #tpu.dot_dimension_numbers<[1], [0], [0], [1], [0, 0, 1, 1], [], []>} : vector<8x128xbf16>, vector<128x384xbf16>, vector<8x384xf32> -> vector<8x384xf32>
    %c0_7 = arith.constant 0 : index
    %c0_8 = arith.constant 0 : index
    %7 = vector.load %arg6[%c0_7, %c0_8] : memref<1x384xf32, #tpu.memory_space<vmem>>, vector<1x384xf32>
    %8 = vector.broadcast %7 : vector<1x384xf32> to vector<8x384xf32>
    %9 = arith.addf %6, %8 : vector<8x384xf32>
    %10 = vector.extract_strided_slice %9 {offsets = [0, 0], sizes = [8, 128], strides = [1, 1]} : vector<8x384xf32> to vector<8x128xf32>
    %11 = vector.extract_strided_slice %9 {offsets = [0, 128], sizes = [8, 128], strides = [1, 1]} : vector<8x384xf32> to vector<8x128xf32>
    %12 = vector.extract_strided_slice %9 {offsets = [0, 256], sizes = [8, 128], strides = [1, 1]} : vector<8x384xf32> to vector<8x128xf32>
    %c0_9 = arith.constant 0 : index
    %c0_10 = arith.constant 0 : index
    %c0_11 = arith.constant 0 : index
    %13 = vector.load %arg3[%c0_9, %c0_10, %c0_11] : memref<1x8x1xf32, #tpu.memory_space<vmem>>, vector<1x8x1xf32>
    %14 = vector.shape_cast %13 : vector<1x8x1xf32> to vector<8x1xf32>
    %cst_12 = arith.constant 5.000000e-01 : f32
    %15 = vector.broadcast %cst_12 : f32 to vector<8x1xf32>
    %16 = arith.cmpf ogt, %14, %15 : vector<8x1xf32>
    %17 = vector.shape_cast %16 : vector<8x1xi1> to vector<8x1xi1>
    %18 = vector.broadcast %17 : vector<8x1xi1> to vector<8x8xi1>
    %19 = tpu.iota {dimensions = array<i32: 0>} : vector<8x8xi32>
    %20 = tpu.iota {dimensions = array<i32: 1>} : vector<8x8xi32>
    %21 = arith.cmpi sle, %20, %19 : vector<8x8xi32>
    %22 = arith.andi %18, %21 : vector<8x8xi1>
    %23 = arith.truncf %12 : vector<8x128xf32> to vector<8x128xbf16>
    %24 = tpu.iota {dimensions = array<i32: 1>} : vector<8x128xi32>
    %cst_13 = arith.constant 0.000000e+00 : f32
    %25 = vector.broadcast %cst_13 : f32 to vector<8x128xf32>
    %26 = vector.extract_strided_slice %10 {offsets = [0, 0], sizes = [8, 8], strides = [1, 1]} : vector<8x128xf32> to vector<8x8xf32>
    %27 = arith.truncf %26 : vector<8x8xf32> to vector<8x8xbf16>
    %28 = vector.extract_strided_slice %11 {offsets = [0, 0], sizes = [8, 8], strides = [1, 1]} : vector<8x128xf32> to vector<8x8xf32>
    %29 = arith.truncf %28 : vector<8x8xf32> to vector<8x8xbf16>
    %cst_14 = arith.constant dense<0.000000e+00> : vector<8x8xf32>
    %30 = tpu.matmul %27, %29, %cst_14 {dimension_numbers = #tpu.dot_dimension_numbers<[1], [1], [0], [0], [0, 0, 1, 0], [], []>} : vector<8x8xbf16>, vector<8x8xbf16>, vector<8x8xf32> -> vector<8x8xf32>
    %cst_15 = arith.constant 0.353553385 : f32
    %31 = vector.broadcast %cst_15 : f32 to vector<8x8xf32>
    %32 = arith.mulf %30, %31 : vector<8x8xf32>
    %cst_16 = arith.constant -1.000000e+09 : f32
    %33 = vector.broadcast %cst_16 : f32 to vector<8x8xf32>
    %34 = arith.select %22, %32, %33 : vector<8x8xi1>, vector<8x8xf32>
    %cst_17 = arith.constant dense<0xFF800000> : vector<8xf32>
    %35 = vector.multi_reduction <maximumf>, %34, %cst_17 [1] : vector<8x8xf32> to vector<8xf32>
    %36 = vector.shape_cast %35 : vector<8xf32> to vector<8x1xf32>
    %37 = vector.broadcast %36 : vector<8x1xf32> to vector<8x8xf32>
    %38 = arith.subf %34, %37 : vector<8x8xf32>
    %39 = math.exp %38 : vector<8x8xf32>
    %cst_18 = arith.constant dense<0.000000e+00> : vector<8xf32>
    %40 = vector.multi_reduction <add>, %39, %cst_18 [1] : vector<8x8xf32> to vector<8xf32>
    %41 = vector.shape_cast %40 : vector<8xf32> to vector<8x1xf32>
    %42 = tpu.reciprocal %41 {approx = true} : vector<8x1xf32> -> vector<8x1xf32>
    %43 = vector.broadcast %42 : vector<8x1xf32> to vector<8x8xf32>
    %44 = arith.mulf %39, %43 : vector<8x8xf32>
    %45 = arith.truncf %44 : vector<8x8xf32> to vector<8x8xbf16>
    %cst_19 = arith.constant dense<0.000000e+00> : vector<8x128xf32>
    %46 = tpu.matmul %45, %23, %cst_19 {dimension_numbers = #tpu.dot_dimension_numbers<[1], [0], [0], [1], [0, 0, 1, 1], [], []>} : vector<8x8xbf16>, vector<8x128xbf16>, vector<8x128xf32> -> vector<8x128xf32>
    %c0_i32 = arith.constant 0 : i32
    %47 = vector.broadcast %c0_i32 : i32 to vector<8x128xi32>
    %48 = arith.cmpi sge, %24, %47 : vector<8x128xi32>
    %c8_i32 = arith.constant 8 : i32
    %49 = vector.broadcast %c8_i32 : i32 to vector<8x128xi32>
    %50 = arith.cmpi slt, %24, %49 : vector<8x128xi32>
    %51 = arith.andi %48, %50 : vector<8x128xi1>
    %cst_20 = arith.constant 0.000000e+00 : f32
    %52 = vector.broadcast %cst_20 : f32 to vector<8x128xf32>
    %53 = arith.select %51, %46, %52 : vector<8x128xi1>, vector<8x128xf32>
    %54 = arith.addf %25, %53 : vector<8x128xf32>
    %55 = vector.extract_strided_slice %10 {offsets = [0, 8], sizes = [8, 8], strides = [1, 1]} : vector<8x128xf32> to vector<8x8xf32>
    %56 = arith.truncf %55 : vector<8x8xf32> to vector<8x8xbf16>
    %57 = vector.extract_strided_slice %11 {offsets = [0, 8], sizes = [8, 8], strides = [1, 1]} : vector<8x128xf32> to vector<8x8xf32>
    %58 = arith.truncf %57 : vector<8x8xf32> to vector<8x8xbf16>
    %cst_21 = arith.constant dense<0.000000e+00> : vector<8x8xf32>
    %59 = tpu.matmul %56, %58, %cst_21 {dimension_numbers = #tpu.dot_dimension_numbers<[1], [1], [0], [0], [0, 0, 1, 0], [], []>} : vector<8x8xbf16>, vector<8x8xbf16>, vector<8x8xf32> -> vector<8x8xf32>
    %cst_22 = arith.constant 0.353553385 : f32
    %60 = vector.broadcast %cst_22 : f32 to vector<8x8xf32>
    %61 = arith.mulf %59, %60 : vector<8x8xf32>
    %cst_23 = arith.constant -1.000000e+09 : f32
    %62 = vector.broadcast %cst_23 : f32 to vector<8x8xf32>
    %63 = arith.select %22, %61, %62 : vector<8x8xi1>, vector<8x8xf32>
    %cst_24 = arith.constant dense<0xFF800000> : vector<8xf32>
    %64 = vector.multi_reduction <maximumf>, %63, %cst_24 [1] : vector<8x8xf32> to vector<8xf32>
    %65 = vector.shape_cast %64 : vector<8xf32> to vector<8x1xf32>
    %66 = vector.broadcast %65 : vector<8x1xf32> to vector<8x8xf32>
    %67 = arith.subf %63, %66 : vector<8x8xf32>
    %68 = math.exp %67 : vector<8x8xf32>
    %cst_25 = arith.constant dense<0.000000e+00> : vector<8xf32>
    %69 = vector.multi_reduction <add>, %68, %cst_25 [1] : vector<8x8xf32> to vector<8xf32>
    %70 = vector.shape_cast %69 : vector<8xf32> to vector<8x1xf32>
    %71 = tpu.reciprocal %70 {approx = true} : vector<8x1xf32> -> vector<8x1xf32>
    %72 = vector.broadcast %71 : vector<8x1xf32> to vector<8x8xf32>
    %73 = arith.mulf %68, %72 : vector<8x8xf32>
    %74 = arith.truncf %73 : vector<8x8xf32> to vector<8x8xbf16>
    %cst_26 = arith.constant dense<0.000000e+00> : vector<8x128xf32>
    %75 = tpu.matmul %74, %23, %cst_26 {dimension_numbers = #tpu.dot_dimension_numbers<[1], [0], [0], [1], [0, 0, 1, 1], [], []>} : vector<8x8xbf16>, vector<8x128xbf16>, vector<8x128xf32> -> vector<8x128xf32>
    %c8_i32_27 = arith.constant 8 : i32
    %76 = vector.broadcast %c8_i32_27 : i32 to vector<8x128xi32>
    %77 = arith.cmpi sge, %24, %76 : vector<8x128xi32>
    %c16_i32 = arith.constant 16 : i32
    %78 = vector.broadcast %c16_i32 : i32 to vector<8x128xi32>
    %79 = arith.cmpi slt, %24, %78 : vector<8x128xi32>
    %80 = arith.andi %77, %79 : vector<8x128xi1>
    %cst_28 = arith.constant 0.000000e+00 : f32
    %81 = vector.broadcast %cst_28 : f32 to vector<8x128xf32>
    %82 = arith.select %80, %75, %81 : vector<8x128xi1>, vector<8x128xf32>
    %83 = arith.addf %54, %82 : vector<8x128xf32>
    %84 = vector.extract_strided_slice %10 {offsets = [0, 16], sizes = [8, 8], strides = [1, 1]} : vector<8x128xf32> to vector<8x8xf32>
    %85 = arith.truncf %84 : vector<8x8xf32> to vector<8x8xbf16>
    %86 = vector.extract_strided_slice %11 {offsets = [0, 16], sizes = [8, 8], strides = [1, 1]} : vector<8x128xf32> to vector<8x8xf32>
    %87 = arith.truncf %86 : vector<8x8xf32> to vector<8x8xbf16>
    %cst_29 = arith.constant dense<0.000000e+00> : vector<8x8xf32>
    %88 = tpu.matmul %85, %87, %cst_29 {dimension_numbers = #tpu.dot_dimension_numbers<[1], [1], [0], [0], [0, 0, 1, 0], [], []>} : vector<8x8xbf16>, vector<8x8xbf16>, vector<8x8xf32> -> vector<8x8xf32>
    %cst_30 = arith.constant 0.353553385 : f32
    %89 = vector.broadcast %cst_30 : f32 to vector<8x8xf32>
    %90 = arith.mulf %88, %89 : vector<8x8xf32>
    %cst_31 = arith.constant -1.000000e+09 : f32
    %91 = vector.broadcast %cst_31 : f32 to vector<8x8xf32>
    %92 = arith.select %22, %90, %91 : vector<8x8xi1>, vector<8x8xf32>
    %cst_32 = arith.constant dense<0xFF800000> : vector<8xf32>
    %93 = vector.multi_reduction <maximumf>, %92, %cst_32 [1] : vector<8x8xf32> to vector<8xf32>
    %94 = vector.shape_cast %93 : vector<8xf32> to vector<8x1xf32>
    %95 = vector.broadcast %94 : vector<8x1xf32> to vector<8x8xf32>
    %96 = arith.subf %92, %95 : vector<8x8xf32>
    %97 = math.exp %96 : vector<8x8xf32>
    %cst_33 = arith.constant dense<0.000000e+00> : vector<8xf32>
    %98 = vector.multi_reduction <add>, %97, %cst_33 [1] : vector<8x8xf32> to vector<8xf32>
    %99 = vector.shape_cast %98 : vector<8xf32> to vector<8x1xf32>
    %100 = tpu.reciprocal %99 {approx = true} : vector<8x1xf32> -> vector<8x1xf32>
    %101 = vector.broadcast %100 : vector<8x1xf32> to vector<8x8xf32>
    %102 = arith.mulf %97, %101 : vector<8x8xf32>
    %103 = arith.truncf %102 : vector<8x8xf32> to vector<8x8xbf16>
    %cst_34 = arith.constant dense<0.000000e+00> : vector<8x128xf32>
    %104 = tpu.matmul %103, %23, %cst_34 {dimension_numbers = #tpu.dot_dimension_numbers<[1], [0], [0], [1], [0, 0, 1, 1], [], []>} : vector<8x8xbf16>, vector<8x128xbf16>, vector<8x128xf32> -> vector<8x128xf32>
    %c16_i32_35 = arith.constant 16 : i32
    %105 = vector.broadcast %c16_i32_35 : i32 to vector<8x128xi32>
    %106 = arith.cmpi sge, %24, %105 : vector<8x128xi32>
    %c24_i32 = arith.constant 24 : i32
    %107 = vector.broadcast %c24_i32 : i32 to vector<8x128xi32>
    %108 = arith.cmpi slt, %24, %107 : vector<8x128xi32>
    %109 = arith.andi %106, %108 : vector<8x128xi1>
    %cst_36 = arith.constant 0.000000e+00 : f32
    %110 = vector.broadcast %cst_36 : f32 to vector<8x128xf32>
    %111 = arith.select %109, %104, %110 : vector<8x128xi1>, vector<8x128xf32>
    %112 = arith.addf %83, %111 : vector<8x128xf32>
    %113 = vector.extract_strided_slice %10 {offsets = [0, 24], sizes = [8, 8], strides = [1, 1]} : vector<8x128xf32> to vector<8x8xf32>
    %114 = arith.truncf %113 : vector<8x8xf32> to vector<8x8xbf16>
    %115 = vector.extract_strided_slice %11 {offsets = [0, 24], sizes = [8, 8], strides = [1, 1]} : vector<8x128xf32> to vector<8x8xf32>
    %116 = arith.truncf %115 : vector<8x8xf32> to vector<8x8xbf16>
    %cst_37 = arith.constant dense<0.000000e+00> : vector<8x8xf32>
    %117 = tpu.matmul %114, %116, %cst_37 {dimension_numbers = #tpu.dot_dimension_numbers<[1], [1], [0], [0], [0, 0, 1, 0], [], []>} : vector<8x8xbf16>, vector<8x8xbf16>, vector<8x8xf32> -> vector<8x8xf32>
    %cst_38 = arith.constant 0.353553385 : f32
    %118 = vector.broadcast %cst_38 : f32 to vector<8x8xf32>
    %119 = arith.mulf %117, %118 : vector<8x8xf32>
    %cst_39 = arith.constant -1.000000e+09 : f32
    %120 = vector.broadcast %cst_39 : f32 to vector<8x8xf32>
    %121 = arith.select %22, %119, %120 : vector<8x8xi1>, vector<8x8xf32>
    %cst_40 = arith.constant dense<0xFF800000> : vector<8xf32>
    %122 = vector.multi_reduction <maximumf>, %121, %cst_40 [1] : vector<8x8xf32> to vector<8xf32>
    %123 = vector.shape_cast %122 : vector<8xf32> to vector<8x1xf32>
    %124 = vector.broadcast %123 : vector<8x1xf32> to vector<8x8xf32>
    %125 = arith.subf %121, %124 : vector<8x8xf32>
    %126 = math.exp %125 : vector<8x8xf32>
    %cst_41 = arith.constant dense<0.000000e+00> : vector<8xf32>
    %127 = vector.multi_reduction <add>, %126, %cst_41 [1] : vector<8x8xf32> to vector<8xf32>
    %128 = vector.shape_cast %127 : vector<8xf32> to vector<8x1xf32>
    %129 = tpu.reciprocal %128 {approx = true} : vector<8x1xf32> -> vector<8x1xf32>
    %130 = vector.broadcast %129 : vector<8x1xf32> to vector<8x8xf32>
    %131 = arith.mulf %126, %130 : vector<8x8xf32>
    %132 = arith.truncf %131 : vector<8x8xf32> to vector<8x8xbf16>
    %cst_42 = arith.constant dense<0.000000e+00> : vector<8x128xf32>
    %133 = tpu.matmul %132, %23, %cst_42 {dimension_numbers = #tpu.dot_dimension_numbers<[1], [0], [0], [1], [0, 0, 1, 1], [], []>} : vector<8x8xbf16>, vector<8x128xbf16>, vector<8x128xf32> -> vector<8x128xf32>
    %c24_i32_43 = arith.constant 24 : i32
    %134 = vector.broadcast %c24_i32_43 : i32 to vector<8x128xi32>
    %135 = arith.cmpi sge, %24, %134 : vector<8x128xi32>
    %c32_i32 = arith.constant 32 : i32
    %136 = vector.broadcast %c32_i32 : i32 to vector<8x128xi32>
    %137 = arith.cmpi slt, %24, %136 : vector<8x128xi32>
    %138 = arith.andi %135, %137 : vector<8x128xi1>
    %cst_44 = arith.constant 0.000000e+00 : f32
    %139 = vector.broadcast %cst_44 : f32 to vector<8x128xf32>
    %140 = arith.select %138, %133, %139 : vector<8x128xi1>, vector<8x128xf32>
    %141 = arith.addf %112, %140 : vector<8x128xf32>
    %142 = arith.truncf %141 : vector<8x128xf32> to vector<8x128xbf16>
    %c0_45 = arith.constant 0 : index
    %c0_46 = arith.constant 0 : index
    %143 = vector.load %arg7[%c0_45, %c0_46] : memref<128x128xbf16, #tpu.memory_space<vmem>>, vector<128x128xbf16>
    %cst_47 = arith.constant dense<0.000000e+00> : vector<8x128xf32>
    %144 = tpu.matmul %142, %143, %cst_47 {dimension_numbers = #tpu.dot_dimension_numbers<[1], [0], [0], [1], [0, 0, 1, 1], [], []>} : vector<8x128xbf16>, vector<128x128xbf16>, vector<8x128xf32> -> vector<8x128xf32>
    %c0_48 = arith.constant 0 : index
    %c0_49 = arith.constant 0 : index
    %145 = vector.load %arg8[%c0_48, %c0_49] : memref<1x128xf32, #tpu.memory_space<vmem>>, vector<1x128xf32>
    %146 = vector.broadcast %145 : vector<1x128xf32> to vector<8x128xf32>
    %147 = arith.addf %144, %146 : vector<8x128xf32>
    %c0_50 = arith.constant 0 : index
    %c0_51 = arith.constant 0 : index
    %148 = vector.load %arg9[%c0_50, %c0_51] : memref<1x128xf32, #tpu.memory_space<vmem>>, vector<1x128xf32>
    %c0_52 = arith.constant 0 : index
    %c0_53 = arith.constant 0 : index
    %149 = vector.load %arg10[%c0_52, %c0_53] : memref<1x128xf32, #tpu.memory_space<vmem>>, vector<1x128xf32>
    %150 = arith.addf %1, %147 : vector<8x128xf32>
    %151 = tpu.iota {dimensions = array<i32: 1>} : vector<8x128xi32>
    %c32_i32_54 = arith.constant 32 : i32
    %152 = vector.broadcast %c32_i32_54 : i32 to vector<8x128xi32>
    %153 = arith.cmpi slt, %151, %152 : vector<8x128xi32>
    %cst_55 = arith.constant dense<0.000000e+00> : vector<8xf32>
    %154 = vector.multi_reduction <add>, %150, %cst_55 [1] : vector<8x128xf32> to vector<8xf32>
    %155 = vector.shape_cast %154 : vector<8xf32> to vector<8x1xf32>
    %cst_56 = arith.constant 3.125000e-02 : f32
    %156 = vector.broadcast %cst_56 : f32 to vector<8x1xf32>
    %157 = arith.mulf %155, %156 : vector<8x1xf32>
    %158 = vector.broadcast %157 : vector<8x1xf32> to vector<8x128xf32>
    %159 = arith.subf %150, %158 : vector<8x128xf32>
    %cst_57 = arith.constant 0.000000e+00 : f32
    %160 = vector.broadcast %cst_57 : f32 to vector<8x128xf32>
    %161 = arith.select %153, %159, %160 : vector<8x128xi1>, vector<8x128xf32>
    %162 = arith.mulf %161, %161 : vector<8x128xf32>
    %cst_58 = arith.constant dense<0.000000e+00> : vector<8xf32>
    %163 = vector.multi_reduction <add>, %162, %cst_58 [1] : vector<8x128xf32> to vector<8xf32>
    %164 = vector.shape_cast %163 : vector<8xf32> to vector<8x1xf32>
    %cst_59 = arith.constant 3.125000e-02 : f32
    %165 = vector.broadcast %cst_59 : f32 to vector<8x1xf32>
    %166 = arith.mulf %164, %165 : vector<8x1xf32>
    %cst_60 = arith.constant 9.99999974E-6 : f32
    %167 = vector.broadcast %cst_60 : f32 to vector<8x1xf32>
    %168 = arith.addf %166, %167 : vector<8x1xf32>
    %169 = math.rsqrt %168 : vector<8x1xf32>
    %170 = vector.broadcast %169 : vector<8x1xf32> to vector<8x128xf32>
    %171 = arith.mulf %161, %170 : vector<8x128xf32>
    %172 = vector.broadcast %148 : vector<1x128xf32> to vector<8x128xf32>
    %173 = arith.mulf %171, %172 : vector<8x128xf32>
    %174 = vector.broadcast %149 : vector<1x128xf32> to vector<8x128xf32>
    %175 = arith.addf %173, %174 : vector<8x128xf32>
    %176 = arith.truncf %175 : vector<8x128xf32> to vector<8x128xbf16>
    %c0_61 = arith.constant 0 : index
    %c0_62 = arith.constant 0 : index
    %177 = vector.load %arg11[%c0_61, %c0_62] : memref<128x128xbf16, #tpu.memory_space<vmem>>, vector<128x128xbf16>
    %cst_63 = arith.constant dense<0.000000e+00> : vector<8x128xf32>
    %178 = tpu.matmul %176, %177, %cst_63 {dimension_numbers = #tpu.dot_dimension_numbers<[1], [0], [0], [1], [0, 0, 1, 1], [], []>} : vector<8x128xbf16>, vector<128x128xbf16>, vector<8x128xf32> -> vector<8x128xf32>
    %c0_64 = arith.constant 0 : index
    %c0_65 = arith.constant 0 : index
    %179 = vector.load %arg12[%c0_64, %c0_65] : memref<1x128xf32, #tpu.memory_space<vmem>>, vector<1x128xf32>
    %180 = vector.broadcast %179 : vector<1x128xf32> to vector<8x128xf32>
    %181 = arith.addf %178, %180 : vector<8x128xf32>
    %182 = arith.truncf %3 : vector<8x128xf32> to vector<8x128xbf16>
    %c0_66 = arith.constant 0 : index
    %c0_67 = arith.constant 0 : index
    %183 = vector.load %arg13[%c0_66, %c0_67] : memref<128x256xbf16, #tpu.memory_space<vmem>>, vector<128x256xbf16>
    %cst_68 = arith.constant dense<0.000000e+00> : vector<8x256xf32>
    %184 = tpu.matmul %182, %183, %cst_68 {dimension_numbers = #tpu.dot_dimension_numbers<[1], [0], [0], [1], [0, 0, 1, 1], [], []>} : vector<8x128xbf16>, vector<128x256xbf16>, vector<8x256xf32> -> vector<8x256xf32>
    %c0_69 = arith.constant 0 : index
    %c0_70 = arith.constant 0 : index
    %185 = vector.load %arg14[%c0_69, %c0_70] : memref<1x256xf32, #tpu.memory_space<vmem>>, vector<1x256xf32>
    %186 = vector.broadcast %185 : vector<1x256xf32> to vector<8x256xf32>
    %187 = arith.addf %184, %186 : vector<8x256xf32>
    %188 = vector.extract_strided_slice %187 {offsets = [0, 0], sizes = [8, 128], strides = [1, 1]} : vector<8x256xf32> to vector<8x128xf32>
    %189 = vector.extract_strided_slice %187 {offsets = [0, 128], sizes = [8, 128], strides = [1, 1]} : vector<8x256xf32> to vector<8x128xf32>
    %c0_71 = arith.constant 0 : index
    %c0_72 = arith.constant 0 : index
    %c0_73 = arith.constant 0 : index
    %190 = vector.load %arg4[%c0_71, %c0_72, %c0_73] : memref<1x1x8xf32, #tpu.memory_space<vmem>>, vector<1x1x8xf32>
    %191 = vector.shape_cast %190 : vector<1x1x8xf32> to vector<1x8xf32>
    %cst_74 = arith.constant 5.000000e-01 : f32
    %192 = vector.broadcast %cst_74 : f32 to vector<1x8xf32>
    %193 = arith.cmpf ogt, %191, %192 : vector<1x8xf32>
    %194 = vector.shape_cast %193 : vector<1x8xi1> to vector<1x8xi1>
    %195 = vector.broadcast %194 : vector<1x8xi1> to vector<8x8xi1>
    %196 = arith.truncf %189 : vector<8x128xf32> to vector<8x128xbf16>
    %197 = tpu.iota {dimensions = array<i32: 1>} : vector<8x128xi32>
    %cst_75 = arith.constant 0.000000e+00 : f32
    %198 = vector.broadcast %cst_75 : f32 to vector<8x128xf32>
    %199 = vector.extract_strided_slice %181 {offsets = [0, 0], sizes = [8, 8], strides = [1, 1]} : vector<8x128xf32> to vector<8x8xf32>
    %200 = arith.truncf %199 : vector<8x8xf32> to vector<8x8xbf16>
    %201 = vector.extract_strided_slice %188 {offsets = [0, 0], sizes = [8, 8], strides = [1, 1]} : vector<8x128xf32> to vector<8x8xf32>
    %202 = arith.truncf %201 : vector<8x8xf32> to vector<8x8xbf16>
    %cst_76 = arith.constant dense<0.000000e+00> : vector<8x8xf32>
    %203 = tpu.matmul %200, %202, %cst_76 {dimension_numbers = #tpu.dot_dimension_numbers<[1], [1], [0], [0], [0, 0, 1, 0], [], []>} : vector<8x8xbf16>, vector<8x8xbf16>, vector<8x8xf32> -> vector<8x8xf32>
    %cst_77 = arith.constant 0.353553385 : f32
    %204 = vector.broadcast %cst_77 : f32 to vector<8x8xf32>
    %205 = arith.mulf %203, %204 : vector<8x8xf32>
    %cst_78 = arith.constant -1.000000e+09 : f32
    %206 = vector.broadcast %cst_78 : f32 to vector<8x8xf32>
    %207 = arith.select %195, %205, %206 : vector<8x8xi1>, vector<8x8xf32>
    %cst_79 = arith.constant dense<0xFF800000> : vector<8xf32>
    %208 = vector.multi_reduction <maximumf>, %207, %cst_79 [1] : vector<8x8xf32> to vector<8xf32>
    %209 = vector.shape_cast %208 : vector<8xf32> to vector<8x1xf32>
    %210 = vector.broadcast %209 : vector<8x1xf32> to vector<8x8xf32>
    %211 = arith.subf %207, %210 : vector<8x8xf32>
    %212 = math.exp %211 : vector<8x8xf32>
    %cst_80 = arith.constant dense<0.000000e+00> : vector<8xf32>
    %213 = vector.multi_reduction <add>, %212, %cst_80 [1] : vector<8x8xf32> to vector<8xf32>
    %214 = vector.shape_cast %213 : vector<8xf32> to vector<8x1xf32>
    %215 = tpu.reciprocal %214 {approx = true} : vector<8x1xf32> -> vector<8x1xf32>
    %216 = vector.broadcast %215 : vector<8x1xf32> to vector<8x8xf32>
    %217 = arith.mulf %212, %216 : vector<8x8xf32>
    %218 = arith.truncf %217 : vector<8x8xf32> to vector<8x8xbf16>
    %cst_81 = arith.constant dense<0.000000e+00> : vector<8x128xf32>
    %219 = tpu.matmul %218, %196, %cst_81 {dimension_numbers = #tpu.dot_dimension_numbers<[1], [0], [0], [1], [0, 0, 1, 1], [], []>} : vector<8x8xbf16>, vector<8x128xbf16>, vector<8x128xf32> -> vector<8x128xf32>
    %c0_i32_82 = arith.constant 0 : i32
    %220 = vector.broadcast %c0_i32_82 : i32 to vector<8x128xi32>
    %221 = arith.cmpi sge, %197, %220 : vector<8x128xi32>
    %c8_i32_83 = arith.constant 8 : i32
    %222 = vector.broadcast %c8_i32_83 : i32 to vector<8x128xi32>
    %223 = arith.cmpi slt, %197, %222 : vector<8x128xi32>
    %224 = arith.andi %221, %223 : vector<8x128xi1>
    %cst_84 = arith.constant 0.000000e+00 : f32
    %225 = vector.broadcast %cst_84 : f32 to vector<8x128xf32>
    %226 = arith.select %224, %219, %225 : vector<8x128xi1>, vector<8x128xf32>
    %227 = arith.addf %198, %226 : vector<8x128xf32>
    %228 = vector.extract_strided_slice %181 {offsets = [0, 8], sizes = [8, 8], strides = [1, 1]} : vector<8x128xf32> to vector<8x8xf32>
    %229 = arith.truncf %228 : vector<8x8xf32> to vector<8x8xbf16>
    %230 = vector.extract_strided_slice %188 {offsets = [0, 8], sizes = [8, 8], strides = [1, 1]} : vector<8x128xf32> to vector<8x8xf32>
    %231 = arith.truncf %230 : vector<8x8xf32> to vector<8x8xbf16>
    %cst_85 = arith.constant dense<0.000000e+00> : vector<8x8xf32>
    %232 = tpu.matmul %229, %231, %cst_85 {dimension_numbers = #tpu.dot_dimension_numbers<[1], [1], [0], [0], [0, 0, 1, 0], [], []>} : vector<8x8xbf16>, vector<8x8xbf16>, vector<8x8xf32> -> vector<8x8xf32>
    %cst_86 = arith.constant 0.353553385 : f32
    %233 = vector.broadcast %cst_86 : f32 to vector<8x8xf32>
    %234 = arith.mulf %232, %233 : vector<8x8xf32>
    %cst_87 = arith.constant -1.000000e+09 : f32
    %235 = vector.broadcast %cst_87 : f32 to vector<8x8xf32>
    %236 = arith.select %195, %234, %235 : vector<8x8xi1>, vector<8x8xf32>
    %cst_88 = arith.constant dense<0xFF800000> : vector<8xf32>
    %237 = vector.multi_reduction <maximumf>, %236, %cst_88 [1] : vector<8x8xf32> to vector<8xf32>
    %238 = vector.shape_cast %237 : vector<8xf32> to vector<8x1xf32>
    %239 = vector.broadcast %238 : vector<8x1xf32> to vector<8x8xf32>
    %240 = arith.subf %236, %239 : vector<8x8xf32>
    %241 = math.exp %240 : vector<8x8xf32>
    %cst_89 = arith.constant dense<0.000000e+00> : vector<8xf32>
    %242 = vector.multi_reduction <add>, %241, %cst_89 [1] : vector<8x8xf32> to vector<8xf32>
    %243 = vector.shape_cast %242 : vector<8xf32> to vector<8x1xf32>
    %244 = tpu.reciprocal %243 {approx = true} : vector<8x1xf32> -> vector<8x1xf32>
    %245 = vector.broadcast %244 : vector<8x1xf32> to vector<8x8xf32>
    %246 = arith.mulf %241, %245 : vector<8x8xf32>
    %247 = arith.truncf %246 : vector<8x8xf32> to vector<8x8xbf16>
    %cst_90 = arith.constant dense<0.000000e+00> : vector<8x128xf32>
    %248 = tpu.matmul %247, %196, %cst_90 {dimension_numbers = #tpu.dot_dimension_numbers<[1], [0], [0], [1], [0, 0, 1, 1], [], []>} : vector<8x8xbf16>, vector<8x128xbf16>, vector<8x128xf32> -> vector<8x128xf32>
    %c8_i32_91 = arith.constant 8 : i32
    %249 = vector.broadcast %c8_i32_91 : i32 to vector<8x128xi32>
    %250 = arith.cmpi sge, %197, %249 : vector<8x128xi32>
    %c16_i32_92 = arith.constant 16 : i32
    %251 = vector.broadcast %c16_i32_92 : i32 to vector<8x128xi32>
    %252 = arith.cmpi slt, %197, %251 : vector<8x128xi32>
    %253 = arith.andi %250, %252 : vector<8x128xi1>
    %cst_93 = arith.constant 0.000000e+00 : f32
    %254 = vector.broadcast %cst_93 : f32 to vector<8x128xf32>
    %255 = arith.select %253, %248, %254 : vector<8x128xi1>, vector<8x128xf32>
    %256 = arith.addf %227, %255 : vector<8x128xf32>
    %257 = vector.extract_strided_slice %181 {offsets = [0, 16], sizes = [8, 8], strides = [1, 1]} : vector<8x128xf32> to vector<8x8xf32>
    %258 = arith.truncf %257 : vector<8x8xf32> to vector<8x8xbf16>
    %259 = vector.extract_strided_slice %188 {offsets = [0, 16], sizes = [8, 8], strides = [1, 1]} : vector<8x128xf32> to vector<8x8xf32>
    %260 = arith.truncf %259 : vector<8x8xf32> to vector<8x8xbf16>
    %cst_94 = arith.constant dense<0.000000e+00> : vector<8x8xf32>
    %261 = tpu.matmul %258, %260, %cst_94 {dimension_numbers = #tpu.dot_dimension_numbers<[1], [1], [0], [0], [0, 0, 1, 0], [], []>} : vector<8x8xbf16>, vector<8x8xbf16>, vector<8x8xf32> -> vector<8x8xf32>
    %cst_95 = arith.constant 0.353553385 : f32
    %262 = vector.broadcast %cst_95 : f32 to vector<8x8xf32>
    %263 = arith.mulf %261, %262 : vector<8x8xf32>
    %cst_96 = arith.constant -1.000000e+09 : f32
    %264 = vector.broadcast %cst_96 : f32 to vector<8x8xf32>
    %265 = arith.select %195, %263, %264 : vector<8x8xi1>, vector<8x8xf32>
    %cst_97 = arith.constant dense<0xFF800000> : vector<8xf32>
    %266 = vector.multi_reduction <maximumf>, %265, %cst_97 [1] : vector<8x8xf32> to vector<8xf32>
    %267 = vector.shape_cast %266 : vector<8xf32> to vector<8x1xf32>
    %268 = vector.broadcast %267 : vector<8x1xf32> to vector<8x8xf32>
    %269 = arith.subf %265, %268 : vector<8x8xf32>
    %270 = math.exp %269 : vector<8x8xf32>
    %cst_98 = arith.constant dense<0.000000e+00> : vector<8xf32>
    %271 = vector.multi_reduction <add>, %270, %cst_98 [1] : vector<8x8xf32> to vector<8xf32>
    %272 = vector.shape_cast %271 : vector<8xf32> to vector<8x1xf32>
    %273 = tpu.reciprocal %272 {approx = true} : vector<8x1xf32> -> vector<8x1xf32>
    %274 = vector.broadcast %273 : vector<8x1xf32> to vector<8x8xf32>
    %275 = arith.mulf %270, %274 : vector<8x8xf32>
    %276 = arith.truncf %275 : vector<8x8xf32> to vector<8x8xbf16>
    %cst_99 = arith.constant dense<0.000000e+00> : vector<8x128xf32>
    %277 = tpu.matmul %276, %196, %cst_99 {dimension_numbers = #tpu.dot_dimension_numbers<[1], [0], [0], [1], [0, 0, 1, 1], [], []>} : vector<8x8xbf16>, vector<8x128xbf16>, vector<8x128xf32> -> vector<8x128xf32>
    %c16_i32_100 = arith.constant 16 : i32
    %278 = vector.broadcast %c16_i32_100 : i32 to vector<8x128xi32>
    %279 = arith.cmpi sge, %197, %278 : vector<8x128xi32>
    %c24_i32_101 = arith.constant 24 : i32
    %280 = vector.broadcast %c24_i32_101 : i32 to vector<8x128xi32>
    %281 = arith.cmpi slt, %197, %280 : vector<8x128xi32>
    %282 = arith.andi %279, %281 : vector<8x128xi1>
    %cst_102 = arith.constant 0.000000e+00 : f32
    %283 = vector.broadcast %cst_102 : f32 to vector<8x128xf32>
    %284 = arith.select %282, %277, %283 : vector<8x128xi1>, vector<8x128xf32>
    %285 = arith.addf %256, %284 : vector<8x128xf32>
    %286 = vector.extract_strided_slice %181 {offsets = [0, 24], sizes = [8, 8], strides = [1, 1]} : vector<8x128xf32> to vector<8x8xf32>
    %287 = arith.truncf %286 : vector<8x8xf32> to vector<8x8xbf16>
    %288 = vector.extract_strided_slice %188 {offsets = [0, 24], sizes = [8, 8], strides = [1, 1]} : vector<8x128xf32> to vector<8x8xf32>
    %289 = arith.truncf %288 : vector<8x8xf32> to vector<8x8xbf16>
    %cst_103 = arith.constant dense<0.000000e+00> : vector<8x8xf32>
    %290 = tpu.matmul %287, %289, %cst_103 {dimension_numbers = #tpu.dot_dimension_numbers<[1], [1], [0], [0], [0, 0, 1, 0], [], []>} : vector<8x8xbf16>, vector<8x8xbf16>, vector<8x8xf32> -> vector<8x8xf32>
    %cst_104 = arith.constant 0.353553385 : f32
    %291 = vector.broadcast %cst_104 : f32 to vector<8x8xf32>
    %292 = arith.mulf %290, %291 : vector<8x8xf32>
    %cst_105 = arith.constant -1.000000e+09 : f32
    %293 = vector.broadcast %cst_105 : f32 to vector<8x8xf32>
    %294 = arith.select %195, %292, %293 : vector<8x8xi1>, vector<8x8xf32>
    %cst_106 = arith.constant dense<0xFF800000> : vector<8xf32>
    %295 = vector.multi_reduction <maximumf>, %294, %cst_106 [1] : vector<8x8xf32> to vector<8xf32>
    %296 = vector.shape_cast %295 : vector<8xf32> to vector<8x1xf32>
    %297 = vector.broadcast %296 : vector<8x1xf32> to vector<8x8xf32>
    %298 = arith.subf %294, %297 : vector<8x8xf32>
    %299 = math.exp %298 : vector<8x8xf32>
    %cst_107 = arith.constant dense<0.000000e+00> : vector<8xf32>
    %300 = vector.multi_reduction <add>, %299, %cst_107 [1] : vector<8x8xf32> to vector<8xf32>
    %301 = vector.shape_cast %300 : vector<8xf32> to vector<8x1xf32>
    %302 = tpu.reciprocal %301 {approx = true} : vector<8x1xf32> -> vector<8x1xf32>
    %303 = vector.broadcast %302 : vector<8x1xf32> to vector<8x8xf32>
    %304 = arith.mulf %299, %303 : vector<8x8xf32>
    %305 = arith.truncf %304 : vector<8x8xf32> to vector<8x8xbf16>
    %cst_108 = arith.constant dense<0.000000e+00> : vector<8x128xf32>
    %306 = tpu.matmul %305, %196, %cst_108 {dimension_numbers = #tpu.dot_dimension_numbers<[1], [0], [0], [1], [0, 0, 1, 1], [], []>} : vector<8x8xbf16>, vector<8x128xbf16>, vector<8x128xf32> -> vector<8x128xf32>
    %c24_i32_109 = arith.constant 24 : i32
    %307 = vector.broadcast %c24_i32_109 : i32 to vector<8x128xi32>
    %308 = arith.cmpi sge, %197, %307 : vector<8x128xi32>
    %c32_i32_110 = arith.constant 32 : i32
    %309 = vector.broadcast %c32_i32_110 : i32 to vector<8x128xi32>
    %310 = arith.cmpi slt, %197, %309 : vector<8x128xi32>
    %311 = arith.andi %308, %310 : vector<8x128xi1>
    %cst_111 = arith.constant 0.000000e+00 : f32
    %312 = vector.broadcast %cst_111 : f32 to vector<8x128xf32>
    %313 = arith.select %311, %306, %312 : vector<8x128xi1>, vector<8x128xf32>
    %314 = arith.addf %285, %313 : vector<8x128xf32>
    %315 = arith.truncf %314 : vector<8x128xf32> to vector<8x128xbf16>
    %c0_112 = arith.constant 0 : index
    %c0_113 = arith.constant 0 : index
    %316 = vector.load %arg15[%c0_112, %c0_113] : memref<128x128xbf16, #tpu.memory_space<vmem>>, vector<128x128xbf16>
    %cst_114 = arith.constant dense<0.000000e+00> : vector<8x128xf32>
    %317 = tpu.matmul %315, %316, %cst_114 {dimension_numbers = #tpu.dot_dimension_numbers<[1], [0], [0], [1], [0, 0, 1, 1], [], []>} : vector<8x128xbf16>, vector<128x128xbf16>, vector<8x128xf32> -> vector<8x128xf32>
    %c0_115 = arith.constant 0 : index
    %c0_116 = arith.constant 0 : index
    %318 = vector.load %arg16[%c0_115, %c0_116] : memref<1x128xf32, #tpu.memory_space<vmem>>, vector<1x128xf32>
    %319 = vector.broadcast %318 : vector<1x128xf32> to vector<8x128xf32>
    %320 = arith.addf %317, %319 : vector<8x128xf32>
    %c0_117 = arith.constant 0 : index
    %c0_118 = arith.constant 0 : index
    %321 = vector.load %arg17[%c0_117, %c0_118] : memref<1x128xf32, #tpu.memory_space<vmem>>, vector<1x128xf32>
    %c0_119 = arith.constant 0 : index
    %c0_120 = arith.constant 0 : index
    %322 = vector.load %arg18[%c0_119, %c0_120] : memref<1x128xf32, #tpu.memory_space<vmem>>, vector<1x128xf32>
    %323 = arith.addf %175, %320 : vector<8x128xf32>
    %324 = tpu.iota {dimensions = array<i32: 1>} : vector<8x128xi32>
    %c32_i32_121 = arith.constant 32 : i32
    %325 = vector.broadcast %c32_i32_121 : i32 to vector<8x128xi32>
    %326 = arith.cmpi slt, %324, %325 : vector<8x128xi32>
    %cst_122 = arith.constant dense<0.000000e+00> : vector<8xf32>
    %327 = vector.multi_reduction <add>, %323, %cst_122 [1] : vector<8x128xf32> to vector<8xf32>
    %328 = vector.shape_cast %327 : vector<8xf32> to vector<8x1xf32>
    %cst_123 = arith.constant 3.125000e-02 : f32
    %329 = vector.broadcast %cst_123 : f32 to vector<8x1xf32>
    %330 = arith.mulf %328, %329 : vector<8x1xf32>
    %331 = vector.broadcast %330 : vector<8x1xf32> to vector<8x128xf32>
    %332 = arith.subf %323, %331 : vector<8x128xf32>
    %cst_124 = arith.constant 0.000000e+00 : f32
    %333 = vector.broadcast %cst_124 : f32 to vector<8x128xf32>
    %334 = arith.select %326, %332, %333 : vector<8x128xi1>, vector<8x128xf32>
    %335 = arith.mulf %334, %334 : vector<8x128xf32>
    %cst_125 = arith.constant dense<0.000000e+00> : vector<8xf32>
    %336 = vector.multi_reduction <add>, %335, %cst_125 [1] : vector<8x128xf32> to vector<8xf32>
    %337 = vector.shape_cast %336 : vector<8xf32> to vector<8x1xf32>
    %cst_126 = arith.constant 3.125000e-02 : f32
    %338 = vector.broadcast %cst_126 : f32 to vector<8x1xf32>
    %339 = arith.mulf %337, %338 : vector<8x1xf32>
    %cst_127 = arith.constant 9.99999974E-6 : f32
    %340 = vector.broadcast %cst_127 : f32 to vector<8x1xf32>
    %341 = arith.addf %339, %340 : vector<8x1xf32>
    %342 = math.rsqrt %341 : vector<8x1xf32>
    %343 = vector.broadcast %342 : vector<8x1xf32> to vector<8x128xf32>
    %344 = arith.mulf %334, %343 : vector<8x128xf32>
    %345 = vector.broadcast %321 : vector<1x128xf32> to vector<8x128xf32>
    %346 = arith.mulf %344, %345 : vector<8x128xf32>
    %347 = vector.broadcast %322 : vector<1x128xf32> to vector<8x128xf32>
    %348 = arith.addf %346, %347 : vector<8x128xf32>
    %349 = arith.truncf %348 : vector<8x128xf32> to vector<8x128xbf16>
    %c0_128 = arith.constant 0 : index
    %c0_129 = arith.constant 0 : index
    %350 = vector.load %arg19[%c0_128, %c0_129] : memref<128x128xbf16, #tpu.memory_space<vmem>>, vector<128x128xbf16>
    %cst_130 = arith.constant dense<0.000000e+00> : vector<8x128xf32>
    %351 = tpu.matmul %349, %350, %cst_130 {dimension_numbers = #tpu.dot_dimension_numbers<[1], [0], [0], [1], [0, 0, 1, 1], [], []>} : vector<8x128xbf16>, vector<128x128xbf16>, vector<8x128xf32> -> vector<8x128xf32>
    %c0_131 = arith.constant 0 : index
    %c0_132 = arith.constant 0 : index
    %352 = vector.load %arg20[%c0_131, %c0_132] : memref<1x128xf32, #tpu.memory_space<vmem>>, vector<1x128xf32>
    %353 = vector.broadcast %352 : vector<1x128xf32> to vector<8x128xf32>
    %354 = arith.addf %351, %353 : vector<8x128xf32>
    %cst_133 = arith.constant 0.000000e+00 : f32
    %355 = vector.broadcast %cst_133 : f32 to vector<8x128xf32>
    %356 = arith.maximumf %354, %355 : vector<8x128xf32>
    %357 = arith.truncf %356 : vector<8x128xf32> to vector<8x128xbf16>
    %c0_134 = arith.constant 0 : index
    %c0_135 = arith.constant 0 : index
    %358 = vector.load %arg21[%c0_134, %c0_135] : memref<128x128xbf16, #tpu.memory_space<vmem>>, vector<128x128xbf16>
    %cst_136 = arith.constant dense<0.000000e+00> : vector<8x128xf32>
    %359 = tpu.matmul %357, %358, %cst_136 {dimension_numbers = #tpu.dot_dimension_numbers<[1], [0], [0], [1], [0, 0, 1, 1], [], []>} : vector<8x128xbf16>, vector<128x128xbf16>, vector<8x128xf32> -> vector<8x128xf32>
    %c0_137 = arith.constant 0 : index
    %c0_138 = arith.constant 0 : index
    %360 = vector.load %arg22[%c0_137, %c0_138] : memref<1x128xf32, #tpu.memory_space<vmem>>, vector<1x128xf32>
    %361 = vector.broadcast %360 : vector<1x128xf32> to vector<8x128xf32>
    %362 = arith.addf %359, %361 : vector<8x128xf32>
    %c0_139 = arith.constant 0 : index
    %c0_140 = arith.constant 0 : index
    %363 = vector.load %arg23[%c0_139, %c0_140] : memref<1x128xf32, #tpu.memory_space<vmem>>, vector<1x128xf32>
    %c0_141 = arith.constant 0 : index
    %c0_142 = arith.constant 0 : index
    %364 = vector.load %arg24[%c0_141, %c0_142] : memref<1x128xf32, #tpu.memory_space<vmem>>, vector<1x128xf32>
    %365 = arith.addf %348, %362 : vector<8x128xf32>
    %366 = tpu.iota {dimensions = array<i32: 1>} : vector<8x128xi32>
    %c32_i32_143 = arith.constant 32 : i32
    %367 = vector.broadcast %c32_i32_143 : i32 to vector<8x128xi32>
    %368 = arith.cmpi slt, %366, %367 : vector<8x128xi32>
    %cst_144 = arith.constant dense<0.000000e+00> : vector<8xf32>
    %369 = vector.multi_reduction <add>, %365, %cst_144 [1] : vector<8x128xf32> to vector<8xf32>
    %370 = vector.shape_cast %369 : vector<8xf32> to vector<8x1xf32>
    %cst_145 = arith.constant 3.125000e-02 : f32
    %371 = vector.broadcast %cst_145 : f32 to vector<8x1xf32>
    %372 = arith.mulf %370, %371 : vector<8x1xf32>
    %373 = vector.broadcast %372 : vector<8x1xf32> to vector<8x128xf32>
    %374 = arith.subf %365, %373 : vector<8x128xf32>
    %cst_146 = arith.constant 0.000000e+00 : f32
    %375 = vector.broadcast %cst_146 : f32 to vector<8x128xf32>
    %376 = arith.select %368, %374, %375 : vector<8x128xi1>, vector<8x128xf32>
    %377 = arith.mulf %376, %376 : vector<8x128xf32>
    %cst_147 = arith.constant dense<0.000000e+00> : vector<8xf32>
    %378 = vector.multi_reduction <add>, %377, %cst_147 [1] : vector<8x128xf32> to vector<8xf32>
    %379 = vector.shape_cast %378 : vector<8xf32> to vector<8x1xf32>
    %cst_148 = arith.constant 3.125000e-02 : f32
    %380 = vector.broadcast %cst_148 : f32 to vector<8x1xf32>
    %381 = arith.mulf %379, %380 : vector<8x1xf32>
    %cst_149 = arith.constant 9.99999974E-6 : f32
    %382 = vector.broadcast %cst_149 : f32 to vector<8x1xf32>
    %383 = arith.addf %381, %382 : vector<8x1xf32>
    %384 = math.rsqrt %383 : vector<8x1xf32>
    %385 = vector.broadcast %384 : vector<8x1xf32> to vector<8x128xf32>
    %386 = arith.mulf %376, %385 : vector<8x128xf32>
    %387 = vector.broadcast %363 : vector<1x128xf32> to vector<8x128xf32>
    %388 = arith.mulf %386, %387 : vector<8x128xf32>
    %389 = vector.broadcast %364 : vector<1x128xf32> to vector<8x128xf32>
    %390 = arith.addf %388, %389 : vector<8x128xf32>
    %c0_150 = arith.constant 0 : index
    %c0_151 = arith.constant 0 : index
    %c0_152 = arith.constant 0 : index
    %391 = vector.load %arg25[%c0_150, %c0_151, %c0_152] : memref<1x8x128xf32, #tpu.memory_space<vmem>>, vector<1x8x128xf32>
    %392 = vector.shape_cast %391 : vector<1x8x128xf32> to vector<8x128xf32>
    %393 = vector.shape_cast %390 : vector<8x128xf32> to vector<1x8x128xf32>
    tpu.vector_store %arg25[%c0_150, %c0_151, %c0_152], %393 {strides = array<i32>} : memref<1x8x128xf32, #tpu.memory_space<vmem>>, vector<1x8x128xf32>,
    return
  }
  func.func @transform_0(%arg0: i32) -> (i32, i32, i32) {
    %c0_i32 = arith.constant 0 : i32
    %c0_i32_0 = arith.constant 0 : i32
    %c0_i32_1 = arith.constant 0 : i32
    return %arg0, %c0_i32, %c0_i32_0 : i32, i32, i32
  }
  func.func @transform_1(%arg0: i32) -> (i32, i32, i32) {
    %c0_i32 = arith.constant 0 : i32
    %c0_i32_0 = arith.constant 0 : i32
    %c0_i32_1 = arith.constant 0 : i32
    return %arg0, %c0_i32, %c0_i32_0 : i32, i32, i32
  }
  func.func @transform_2(%arg0: i32) -> (i32, i32, i32) {
    %c0_i32 = arith.constant 0 : i32
    %c0_i32_0 = arith.constant 0 : i32
    %c0_i32_1 = arith.constant 0 : i32
    return %arg0, %c0_i32, %c0_i32_0 : i32, i32, i32
  }
  func.func @transform_3(%arg0: i32) -> (i32, i32, i32) {
    %c0_i32 = arith.constant 0 : i32
    %c0_i32_0 = arith.constant 0 : i32
    %c0_i32_1 = arith.constant 0 : i32
    return %arg0, %c0_i32, %c0_i32_0 : i32, i32, i32
  }
  func.func @transform_4(%arg0: i32) -> (i32, i32) {
    %c0_i32 = arith.constant 0 : i32
    %c0_i32_0 = arith.constant 0 : i32
    %c0_i32_1 = arith.constant 0 : i32
    return %c0_i32, %c0_i32_0 : i32, i32
  }
  func.func @transform_5(%arg0: i32) -> (i32, i32) {
    %c0_i32 = arith.constant 0 : i32
    %c0_i32_0 = arith.constant 0 : i32
    %c0_i32_1 = arith.constant 0 : i32
    return %c0_i32, %c0_i32_0 : i32, i32
  }
  func.func @transform_6(%arg0: i32) -> (i32, i32) {
    %c0_i32 = arith.constant 0 : i32
    %c0_i32_0 = arith.constant 0 : i32
    %c0_i32_1 = arith.constant 0 : i32
    return %c0_i32, %c0_i32_0 : i32, i32
  }
  func.func @transform_7(%arg0: i32) -> (i32, i32) {
    %c0_i32 = arith.constant 0 : i32
    %c0_i32_0 = arith.constant 0 : i32
    %c0_i32_1 = arith.constant 0 : i32
    return %c0_i32, %c0_i32_0 : i32, i32
  }
  func.func @transform_8(%arg0: i32) -> (i32, i32) {
    %c0_i32 = arith.constant 0 : i32
    %c0_i32_0 = arith.constant 0 : i32
    %c0_i32_1 = arith.constant 0 : i32
    return %c0_i32, %c0_i32_0 : i32, i32
  }
  func.func @transform_9(%arg0: i32) -> (i32, i32) {
    %c0_i32 = arith.constant 0 : i32
    %c0_i32_0 = arith.constant 0 : i32
    %c0_i32_1 = arith.constant 0 : i32
    return %c0_i32, %c0_i32_0 : i32, i32
  }
  func.func @transform_10(%arg0: i32) -> (i32, i32) {
    %c0_i32 = arith.constant 0 : i32
    %c0_i32_0 = arith.constant 0 : i32
    %c0_i32_1 = arith.constant 0 : i32
    return %c0_i32, %c0_i32_0 : i32, i32
  }
  func.func @transform_11(%arg0: i32) -> (i32, i32) {
    %c0_i32 = arith.constant 0 : i32
    %c0_i32_0 = arith.constant 0 : i32
    %c0_i32_1 = arith.constant 0 : i32
    return %c0_i32, %c0_i32_0 : i32, i32
  }
  func.func @transform_12(%arg0: i32) -> (i32, i32) {
    %c0_i32 = arith.constant 0 : i32
    %c0_i32_0 = arith.constant 0 : i32
    %c0_i32_1 = arith.constant 0 : i32
    return %c0_i32, %c0_i32_0 : i32, i32
  }
  func.func @transform_13(%arg0: i32) -> (i32, i32) {
    %c0_i32 = arith.constant 0 : i32
    %c0_i32_0 = arith.constant 0 : i32
    %c0_i32_1 = arith.constant 0 : i32
    return %c0_i32, %c0_i32_0 : i32, i32
  }
  func.func @transform_14(%arg0: i32) -> (i32, i32) {
    %c0_i32 = arith.constant 0 : i32
    %c0_i32_0 = arith.constant 0 : i32
    %c0_i32_1 = arith.constant 0 : i32
    return %c0_i32, %c0_i32_0 : i32, i32
  }
  func.func @transform_15(%arg0: i32) -> (i32, i32) {
    %c0_i32 = arith.constant 0 : i32
    %c0_i32_0 = arith.constant 0 : i32
    %c0_i32_1 = arith.constant 0 : i32
    return %c0_i32, %c0_i32_0 : i32, i32
  }
  func.func @transform_16(%arg0: i32) -> (i32, i32) {
    %c0_i32 = arith.constant 0 : i32
    %c0_i32_0 = arith.constant 0 : i32
    %c0_i32_1 = arith.constant 0 : i32
    return %c0_i32, %c0_i32_0 : i32, i32
  }
  func.func @transform_17(%arg0: i32) -> (i32, i32) {
    %c0_i32 = arith.constant 0 : i32
    %c0_i32_0 = arith.constant 0 : i32
    %c0_i32_1 = arith.constant 0 : i32
    return %c0_i32, %c0_i32_0 : i32, i32
  }
  func.func @transform_18(%arg0: i32) -> (i32, i32) {
    %c0_i32 = arith.constant 0 : i32
    %c0_i32_0 = arith.constant 0 : i32
    %c0_i32_1 = arith.constant 0 : i32
    return %c0_i32, %c0_i32_0 : i32, i32
  }
  func.func @transform_19(%arg0: i32) -> (i32, i32) {
    %c0_i32 = arith.constant 0 : i32
    %c0_i32_0 = arith.constant 0 : i32
    %c0_i32_1 = arith.constant 0 : i32
    return %c0_i32, %c0_i32_0 : i32, i32
  }
  func.func @transform_20(%arg0: i32) -> (i32, i32) {
    %c0_i32 = arith.constant 0 : i32
    %c0_i32_0 = arith.constant 0 : i32
    %c0_i32_1 = arith.constant 0 : i32
    return %c0_i32, %c0_i32_0 : i32, i32
  }
  func.func @transform_21(%arg0: i32) -> (i32, i32) {
    %c0_i32 = arith.constant 0 : i32
    %c0_i32_0 = arith.constant 0 : i32
    %c0_i32_1 = arith.constant 0 : i32
    return %c0_i32, %c0_i32_0 : i32, i32
  }
  func.func @transform_22(%arg0: i32) -> (i32, i32) {
    %c0_i32 = arith.constant 0 : i32
    %c0_i32_0 = arith.constant 0 : i32
    %c0_i32_1 = arith.constant 0 : i32
    return %c0_i32, %c0_i32_0 : i32, i32
  }
  func.func @transform_23(%arg0: i32) -> (i32, i32) {
    %c0_i32 = arith.constant 0 : i32
    %c0_i32_0 = arith.constant 0 : i32
    %c0_i32_1 = arith.constant 0 : i32
    return %c0_i32, %c0_i32_0 : i32, i32
  }
  func.func @transform_24(%arg0: i32) -> (i32, i32, i32) {
    %c0_i32 = arith.constant 0 : i32
    %c0_i32_0 = arith.constant 0 : i32
    %c0_i32_1 = arith.constant 0 : i32
    return %arg0, %c0_i32, %c0_i32_0 : i32, i32, i32
  }
}

module attributes {stable_mosaic.version = 11 : i64} {
  func.func @_dec_layer_kernel(%arg0: i32, %arg1: memref<1x8x128xf32, #tpu.memory_space<vmem>>, %arg2: memref<1x8x128xf32, #tpu.memory_space<vmem>>, %arg3: memref<1x8x1xf32, #tpu.memory_space<vmem>>, %arg4: memref<1x1x8xf32, #tpu.memory_space<vmem>>, %arg5: memref<128x384xbf16, #tpu.memory_space<vmem>>, %arg6: memref<1x384xf32, #tpu.memory_space<vmem>>, %arg7: memref<128x128xbf16, #tpu.memory_space<vmem>>, %arg8: memref<1x128xf32, #tpu.memory_space<vmem>>, %arg9: memref<1x128xf32, #tpu.memory_space<vmem>>, %arg10: memref<1x128xf32, #tpu.memory_space<vmem>>, %arg11: memref<128x128xbf16, #tpu.memory_space<vmem>>, %arg12: memref<1x128xf32, #tpu.memory_space<vmem>>, %arg13: memref<128x256xbf16, #tpu.memory_space<vmem>>, %arg14: memref<1x256xf32, #tpu.memory_space<vmem>>, %arg15: memref<128x128xbf16, #tpu.memory_space<vmem>>, %arg16: memref<1x128xf32, #tpu.memory_space<vmem>>, %arg17: memref<1x128xf32, #tpu.memory_space<vmem>>, %arg18: memref<1x128xf32, #tpu.memory_space<vmem>>, %arg19: memref<128x128xbf16, #tpu.memory_space<vmem>>, %arg20: memref<1x128xf32, #tpu.memory_space<vmem>>, %arg21: memref<128x128xbf16, #tpu.memory_space<vmem>>, %arg22: memref<1x128xf32, #tpu.memory_space<vmem>>, %arg23: memref<1x128xf32, #tpu.memory_space<vmem>>, %arg24: memref<1x128xf32, #tpu.memory_space<vmem>>, %arg25: memref<1x8x128xf32, #tpu.memory_space<vmem>>) attributes {dimension_semantics = [#tpu.dimension_semantics<parallel>], iteration_bounds = array<i64: 2>, scalar_prefetch = 0 : i64, scratch_operands = 0 : i64, tpu.core_type = #tpu.core_type<tc>, window_params = [{transform_indices = @transform_0, window_bounds = array<i64: 1, 8, 128>}, {transform_indices = @transform_1, window_bounds = array<i64: 1, 8, 128>}, {transform_indices = @transform_2, window_bounds = array<i64: 1, 8, 1>}, {transform_indices = @transform_3, window_bounds = array<i64: 1, 1, 8>}, {pipeline_mode = #tpu.pipeline_mode<synchronous>, transform_indices = @transform_4, window_bounds = array<i64: 128, 384>}, {pipeline_mode = #tpu.pipeline_mode<synchronous>, transform_indices = @transform_5, window_bounds = array<i64: 1, 384>}, {pipeline_mode = #tpu.pipeline_mode<synchronous>, transform_indices = @transform_6, window_bounds = array<i64: 128, 128>}, {pipeline_mode = #tpu.pipeline_mode<synchronous>, transform_indices = @transform_7, window_bounds = array<i64: 1, 128>}, {pipeline_mode = #tpu.pipeline_mode<synchronous>, transform_indices = @transform_8, window_bounds = array<i64: 1, 128>}, {pipeline_mode = #tpu.pipeline_mode<synchronous>, transform_indices = @transform_9, window_bounds = array<i64: 1, 128>}, {pipeline_mode = #tpu.pipeline_mode<synchronous>, transform_indices = @transform_10, window_bounds = array<i64: 128, 128>}, {pipeline_mode = #tpu.pipeline_mode<synchronous>, transform_indices = @transform_11, window_bounds = array<i64: 1, 128>}, {pipeline_mode = #tpu.pipeline_mode<synchronous>, transform_indices = @transform_12, window_bounds = array<i64: 128, 256>}, {pipeline_mode = #tpu.pipeline_mode<synchronous>, transform_indices = @transform_13, window_bounds = array<i64: 1, 256>}, {pipeline_mode = #tpu.pipeline_mode<synchronous>, transform_indices = @transform_14, window_bounds = array<i64: 128, 128>}, {pipeline_mode = #tpu.pipeline_mode<synchronous>, transform_indices = @transform_15, window_bounds = array<i64: 1, 128>}, {pipeline_mode = #tpu.pipeline_mode<synchronous>, transform_indices = @transform_16, window_bounds = array<i64: 1, 128>}, {pipeline_mode = #tpu.pipeline_mode<synchronous>, transform_indices = @transform_17, window_bounds = array<i64: 1, 128>}, {pipeline_mode = #tpu.pipeline_mode<synchronous>, transform_indices = @transform_18, window_bounds = array<i64: 128, 128>}, {pipeline_mode = #tpu.pipeline_mode<synchronous>, transform_indices = @transform_19, window_bounds = array<i64: 1, 128>}, {pipeline_mode = #tpu.pipeline_mode<synchronous>, transform_indices = @transform_20, window_bounds = array<i64: 128, 128>}, {pipeline_mode = #tpu.pipeline_mode<synchronous>, transform_indices = @transform_21, window_bounds = array<i64: 1, 128>}, {pipeline_mode = #tpu.pipeline_mode<synchronous>, transform_indices = @transform_22, window_bounds = array<i64: 1, 128>}, {pipeline_mode = #tpu.pipeline_mode<synchronous>, transform_indices = @transform_23, window_bounds = array<i64: 1, 128>}, {transform_indices = @transform_24, window_bounds = array<i64: 1, 8, 128>}]} {
    %c0 = arith.constant 0 : index
    %c0_0 = arith.constant 0 : index
    %c0_1 = arith.constant 0 : index
    %0 = vector.load %arg1[%c0, %c0_0, %c0_1] : memref<1x8x128xf32, #tpu.memory_space<vmem>>, vector<1x8x128xf32>
    %1 = vector.shape_cast %0 : vector<1x8x128xf32> to vector<8x128xf32>
    %c0_2 = arith.constant 0 : index
    %c0_3 = arith.constant 0 : index
    %c0_4 = arith.constant 0 : index
    %2 = vector.load %arg2[%c0_2, %c0_3, %c0_4] : memref<1x8x128xf32, #tpu.memory_space<vmem>>, vector<1x8x128xf32>
    %3 = vector.shape_cast %2 : vector<1x8x128xf32> to vector<8x128xf32>
    %4 = arith.truncf %1 : vector<8x128xf32> to vector<8x128xbf16>
    %c0_5 = arith.constant 0 : index
    %c0_6 = arith.constant 0 : index
    %5 = vector.load %arg5[%c0_5, %c0_6] : memref<128x384xbf16, #tpu.memory_space<vmem>>, vector<128x384xbf16>
    %cst = arith.constant dense<0.000000e+00> : vector<8x384xf32>
    %6 = tpu.matmul %4, %5, %cst {dimension_numbers = #tpu.dot_dimension_numbers<[1], [0], [0], [1], [0, 0, 1, 1], [], []>} : vector<8x128xbf16>, vector<128x384xbf16>, vector<8x384xf32> -> vector<8x384xf32>
    %c0_7 = arith.constant 0 : index
    %c0_8 = arith.constant 0 : index
    %7 = vector.load %arg6[%c0_7, %c0_8] : memref<1x384xf32, #tpu.memory_space<vmem>>, vector<1x384xf32>
    %8 = vector.broadcast %7 : vector<1x384xf32> to vector<8x384xf32>
    %9 = arith.addf %6, %8 : vector<8x384xf32>
    %10 = vector.extract_strided_slice %9 {offsets = [0, 0], sizes = [8, 128], strides = [1, 1]} : vector<8x384xf32> to vector<8x128xf32>
    %11 = vector.extract_strided_slice %9 {offsets = [0, 128], sizes = [8, 128], strides = [1, 1]} : vector<8x384xf32> to vector<8x128xf32>
    %12 = vector.extract_strided_slice %9 {offsets = [0, 256], sizes = [8, 128], strides = [1, 1]} : vector<8x384xf32> to vector<8x128xf32>
    %c0_9 = arith.constant 0 : index
    %c0_10 = arith.constant 0 : index
    %c0_11 = arith.constant 0 : index
    %13 = vector.load %arg3[%c0_9, %c0_10, %c0_11] : memref<1x8x1xf32, #tpu.memory_space<vmem>>, vector<1x8x1xf32>
    %14 = vector.shape_cast %13 : vector<1x8x1xf32> to vector<8x1xf32>
    %cst_12 = arith.constant 5.000000e-01 : f32
    %15 = vector.broadcast %cst_12 : f32 to vector<8x1xf32>
    %16 = arith.cmpf ogt, %14, %15 : vector<8x1xf32>
    %17 = vector.shape_cast %16 : vector<8x1xi1> to vector<8x1xi1>
    %18 = vector.broadcast %17 : vector<8x1xi1> to vector<8x8xi1>
    %19 = tpu.iota {dimensions = array<i32: 0>} : vector<8x8xi32>
    %20 = tpu.iota {dimensions = array<i32: 1>} : vector<8x8xi32>
    %21 = arith.cmpi sle, %20, %19 : vector<8x8xi32>
    %22 = arith.andi %18, %21 : vector<8x8xi1>
    %23 = arith.truncf %12 : vector<8x128xf32> to vector<8x128xbf16>
    %24 = tpu.iota {dimensions = array<i32: 1>} : vector<8x128xi32>
    %cst_13 = arith.constant 0.000000e+00 : f32
    %25 = vector.broadcast %cst_13 : f32 to vector<8x128xf32>
    %26 = vector.extract_strided_slice %10 {offsets = [0, 0], sizes = [8, 8], strides = [1, 1]} : vector<8x128xf32> to vector<8x8xf32>
    %27 = arith.truncf %26 : vector<8x8xf32> to vector<8x8xbf16>
    %28 = vector.extract_strided_slice %11 {offsets = [0, 0], sizes = [8, 8], strides = [1, 1]} : vector<8x128xf32> to vector<8x8xf32>
    %29 = arith.truncf %28 : vector<8x8xf32> to vector<8x8xbf16>
    %cst_14 = arith.constant dense<0.000000e+00> : vector<8x8xf32>
    %30 = tpu.matmul %27, %29, %cst_14 {dimension_numbers = #tpu.dot_dimension_numbers<[1], [1], [0], [0], [0, 0, 1, 0], [], []>} : vector<8x8xbf16>, vector<8x8xbf16>, vector<8x8xf32> -> vector<8x8xf32>
    %cst_15 = arith.constant 0.353553385 : f32
    %31 = vector.broadcast %cst_15 : f32 to vector<8x8xf32>
    %32 = arith.mulf %30, %31 : vector<8x8xf32>
    %cst_16 = arith.constant -1.000000e+09 : f32
    %33 = vector.broadcast %cst_16 : f32 to vector<8x8xf32>
    %34 = arith.select %22, %32, %33 : vector<8x8xi1>, vector<8x8xf32>
    %cst_17 = arith.constant dense<0xFF800000> : vector<8xf32>
    %35 = vector.multi_reduction <maximumf>, %34, %cst_17 [1] : vector<8x8xf32> to vector<8xf32>
    %36 = vector.shape_cast %35 : vector<8xf32> to vector<8x1xf32>
    %37 = vector.broadcast %36 : vector<8x1xf32> to vector<8x8xf32>
    %38 = arith.subf %34, %37 : vector<8x8xf32>
    %39 = math.exp %38 : vector<8x8xf32>
    %cst_18 = arith.constant dense<0.000000e+00> : vector<8xf32>
    %40 = vector.multi_reduction <add>, %39, %cst_18 [1] : vector<8x8xf32> to vector<8xf32>
    %41 = vector.shape_cast %40 : vector<8xf32> to vector<8x1xf32>
    %42 = tpu.reciprocal %41 {approx = true} : vector<8x1xf32> -> vector<8x1xf32>
    %43 = vector.broadcast %42 : vector<8x1xf32> to vector<8x8xf32>
    %44 = arith.mulf %39, %43 : vector<8x8xf32>
    %45 = arith.truncf %44 : vector<8x8xf32> to vector<8x8xbf16>
    %cst_19 = arith.constant dense<0.000000e+00> : vector<8x128xf32>
    %46 = tpu.matmul %45, %23, %cst_19 {dimension_numbers = #tpu.dot_dimension_numbers<[1], [0], [0], [1], [0, 0, 1, 1], [], []>} : vector<8x8xbf16>, vector<8x128xbf16>, vector<8x128xf32> -> vector<8x128xf32>
    %c0_i32 = arith.constant 0 : i32
    %47 = vector.broadcast %c0_i32 : i32 to vector<8x128xi32>
    %48 = arith.cmpi sge, %24, %47 : vector<8x128xi32>
    %c8_i32 = arith.constant 8 : i32
    %49 = vector.broadcast %c8_i32 : i32 to vector<8x128xi32>
    %50 = arith.cmpi slt, %24, %49 : vector<8x128xi32>
    %51 = arith.andi %48, %50 : vector<8x128xi1>
    %cst_20 = arith.constant 0.000000e+00 : f32
    %52 = vector.broadcast %cst_20 : f32 to vector<8x128xf32>
    %53 = arith.select %51, %46, %52 : vector<8x128xi1>, vector<8x128xf32>
    %54 = arith.addf %25, %53 : vector<8x128xf32>
    %55 = vector.extract_strided_slice %10 {offsets = [0, 8], sizes = [8, 8], strides = [1, 1]} : vector<8x128xf32> to vector<8x8xf32>
    %56 = arith.truncf %55 : vector<8x8xf32> to vector<8x8xbf16>
    %57 = vector.extract_strided_slice %11 {offsets = [0, 8], sizes = [8, 8], strides = [1, 1]} : vector<8x128xf32> to vector<8x8xf32>
    %58 = arith.truncf %57 : vector<8x8xf32> to vector<8x8xbf16>
    %cst_21 = arith.constant dense<0.000000e+00> : vector<8x8xf32>
    %59 = tpu.matmul %56, %58, %cst_21 {dimension_numbers = #tpu.dot_dimension_numbers<[1], [1], [0], [0], [0, 0, 1, 0], [], []>} : vector<8x8xbf16>, vector<8x8xbf16>, vector<8x8xf32> -> vector<8x8xf32>
    %cst_22 = arith.constant 0.353553385 : f32
    %60 = vector.broadcast %cst_22 : f32 to vector<8x8xf32>
    %61 = arith.mulf %59, %60 : vector<8x8xf32>
    %cst_23 = arith.constant -1.000000e+09 : f32
    %62 = vector.broadcast %cst_23 : f32 to vector<8x8xf32>
    %63 = arith.select %22, %61, %62 : vector<8x8xi1>, vector<8x8xf32>
    %cst_24 = arith.constant dense<0xFF800000> : vector<8xf32>
    %64 = vector.multi_reduction <maximumf>, %63, %cst_24 [1] : vector<8x8xf32> to vector<8xf32>
    %65 = vector.shape_cast %64 : vector<8xf32> to vector<8x1xf32>
    %66 = vector.broadcast %65 : vector<8x1xf32> to vector<8x8xf32>
    %67 = arith.subf %63, %66 : vector<8x8xf32>
    %68 = math.exp %67 : vector<8x8xf32>
    %cst_25 = arith.constant dense<0.000000e+00> : vector<8xf32>
    %69 = vector.multi_reduction <add>, %68, %cst_25 [1] : vector<8x8xf32> to vector<8xf32>
    %70 = vector.shape_cast %69 : vector<8xf32> to vector<8x1xf32>
    %71 = tpu.reciprocal %70 {approx = true} : vector<8x1xf32> -> vector<8x1xf32>
    %72 = vector.broadcast %71 : vector<8x1xf32> to vector<8x8xf32>
    %73 = arith.mulf %68, %72 : vector<8x8xf32>
    %74 = arith.truncf %73 : vector<8x8xf32> to vector<8x8xbf16>
    %cst_26 = arith.constant dense<0.000000e+00> : vector<8x128xf32>
    %75 = tpu.matmul %74, %23, %cst_26 {dimension_numbers = #tpu.dot_dimension_numbers<[1], [0], [0], [1], [0, 0, 1, 1], [], []>} : vector<8x8xbf16>, vector<8x128xbf16>, vector<8x128xf32> -> vector<8x128xf32>
    %c8_i32_27 = arith.constant 8 : i32
    %76 = vector.broadcast %c8_i32_27 : i32 to vector<8x128xi32>
    %77 = arith.cmpi sge, %24, %76 : vector<8x128xi32>
    %c16_i32 = arith.constant 16 : i32
    %78 = vector.broadcast %c16_i32 : i32 to vector<8x128xi32>
    %79 = arith.cmpi slt, %24, %78 : vector<8x128xi32>
    %80 = arith.andi %77, %79 : vector<8x128xi1>
    %cst_28 = arith.constant 0.000000e+00 : f32
    %81 = vector.broadcast %cst_28 : f32 to vector<8x128xf32>
    %82 = arith.select %80, %75, %81 : vector<8x128xi1>, vector<8x128xf32>
    %83 = arith.addf %54, %82 : vector<8x128xf32>
    %84 = vector.extract_strided_slice %10 {offsets = [0, 16], sizes = [8, 8], strides = [1, 1]} : vector<8x128xf32> to vector<8x8xf32>
    %85 = arith.truncf %84 : vector<8x8xf32> to vector<8x8xbf16>
    %86 = vector.extract_strided_slice %11 {offsets = [0, 16], sizes = [8, 8], strides = [1, 1]} : vector<8x128xf32> to vector<8x8xf32>
    %87 = arith.truncf %86 : vector<8x8xf32> to vector<8x8xbf16>
    %cst_29 = arith.constant dense<0.000000e+00> : vector<8x8xf32>
    %88 = tpu.matmul %85, %87, %cst_29 {dimension_numbers = #tpu.dot_dimension_numbers<[1], [1], [0], [0], [0, 0, 1, 0], [], []>} : vector<8x8xbf16>, vector<8x8xbf16>, vector<8x8xf32> -> vector<8x8xf32>
    %cst_30 = arith.constant 0.353553385 : f32
    %89 = vector.broadcast %cst_30 : f32 to vector<8x8xf32>
    %90 = arith.mulf %88, %89 : vector<8x8xf32>
    %cst_31 = arith.constant -1.000000e+09 : f32
    %91 = vector.broadcast %cst_31 : f32 to vector<8x8xf32>
    %92 = arith.select %22, %90, %91 : vector<8x8xi1>, vector<8x8xf32>
    %cst_32 = arith.constant dense<0xFF800000> : vector<8xf32>
    %93 = vector.multi_reduction <maximumf>, %92, %cst_32 [1] : vector<8x8xf32> to vector<8xf32>
    %94 = vector.shape_cast %93 : vector<8xf32> to vector<8x1xf32>
    %95 = vector.broadcast %94 : vector<8x1xf32> to vector<8x8xf32>
    %96 = arith.subf %92, %95 : vector<8x8xf32>
    %97 = math.exp %96 : vector<8x8xf32>
    %cst_33 = arith.constant dense<0.000000e+00> : vector<8xf32>
    %98 = vector.multi_reduction <add>, %97, %cst_33 [1] : vector<8x8xf32> to vector<8xf32>
    %99 = vector.shape_cast %98 : vector<8xf32> to vector<8x1xf32>
    %100 = tpu.reciprocal %99 {approx = true} : vector<8x1xf32> -> vector<8x1xf32>
    %101 = vector.broadcast %100 : vector<8x1xf32> to vector<8x8xf32>
    %102 = arith.mulf %97, %101 : vector<8x8xf32>
    %103 = arith.truncf %102 : vector<8x8xf32> to vector<8x8xbf16>
    %cst_34 = arith.constant dense<0.000000e+00> : vector<8x128xf32>
    %104 = tpu.matmul %103, %23, %cst_34 {dimension_numbers = #tpu.dot_dimension_numbers<[1], [0], [0], [1], [0, 0, 1, 1], [], []>} : vector<8x8xbf16>, vector<8x128xbf16>, vector<8x128xf32> -> vector<8x128xf32>
    %c16_i32_35 = arith.constant 16 : i32
    %105 = vector.broadcast %c16_i32_35 : i32 to vector<8x128xi32>
    %106 = arith.cmpi sge, %24, %105 : vector<8x128xi32>
    %c24_i32 = arith.constant 24 : i32
    %107 = vector.broadcast %c24_i32 : i32 to vector<8x128xi32>
    %108 = arith.cmpi slt, %24, %107 : vector<8x128xi32>
    %109 = arith.andi %106, %108 : vector<8x128xi1>
    %cst_36 = arith.constant 0.000000e+00 : f32
    %110 = vector.broadcast %cst_36 : f32 to vector<8x128xf32>
    %111 = arith.select %109, %104, %110 : vector<8x128xi1>, vector<8x128xf32>
    %112 = arith.addf %83, %111 : vector<8x128xf32>
    %113 = vector.extract_strided_slice %10 {offsets = [0, 24], sizes = [8, 8], strides = [1, 1]} : vector<8x128xf32> to vector<8x8xf32>
    %114 = arith.truncf %113 : vector<8x8xf32> to vector<8x8xbf16>
    %115 = vector.extract_strided_slice %11 {offsets = [0, 24], sizes = [8, 8], strides = [1, 1]} : vector<8x128xf32> to vector<8x8xf32>
    %116 = arith.truncf %115 : vector<8x8xf32> to vector<8x8xbf16>
    %cst_37 = arith.constant dense<0.000000e+00> : vector<8x8xf32>
    %117 = tpu.matmul %114, %116, %cst_37 {dimension_numbers = #tpu.dot_dimension_numbers<[1], [1], [0], [0], [0, 0, 1, 0], [], []>} : vector<8x8xbf16>, vector<8x8xbf16>, vector<8x8xf32> -> vector<8x8xf32>
    %cst_38 = arith.constant 0.353553385 : f32
    %118 = vector.broadcast %cst_38 : f32 to vector<8x8xf32>
    %119 = arith.mulf %117, %118 : vector<8x8xf32>
    %cst_39 = arith.constant -1.000000e+09 : f32
    %120 = vector.broadcast %cst_39 : f32 to vector<8x8xf32>
    %121 = arith.select %22, %119, %120 : vector<8x8xi1>, vector<8x8xf32>
    %cst_40 = arith.constant dense<0xFF800000> : vector<8xf32>
    %122 = vector.multi_reduction <maximumf>, %121, %cst_40 [1] : vector<8x8xf32> to vector<8xf32>
    %123 = vector.shape_cast %122 : vector<8xf32> to vector<8x1xf32>
    %124 = vector.broadcast %123 : vector<8x1xf32> to vector<8x8xf32>
    %125 = arith.subf %121, %124 : vector<8x8xf32>
    %126 = math.exp %125 : vector<8x8xf32>
    %cst_41 = arith.constant dense<0.000000e+00> : vector<8xf32>
    %127 = vector.multi_reduction <add>, %126, %cst_41 [1] : vector<8x8xf32> to vector<8xf32>
    %128 = vector.shape_cast %127 : vector<8xf32> to vector<8x1xf32>
    %129 = tpu.reciprocal %128 {approx = true} : vector<8x1xf32> -> vector<8x1xf32>
    %130 = vector.broadcast %129 : vector<8x1xf32> to vector<8x8xf32>
    %131 = arith.mulf %126, %130 : vector<8x8xf32>
    %132 = arith.truncf %131 : vector<8x8xf32> to vector<8x8xbf16>
    %cst_42 = arith.constant dense<0.000000e+00> : vector<8x128xf32>
    %133 = tpu.matmul %132, %23, %cst_42 {dimension_numbers = #tpu.dot_dimension_numbers<[1], [0], [0], [1], [0, 0, 1, 1], [], []>} : vector<8x8xbf16>, vector<8x128xbf16>, vector<8x128xf32> -> vector<8x128xf32>
    %c24_i32_43 = arith.constant 24 : i32
    %134 = vector.broadcast %c24_i32_43 : i32 to vector<8x128xi32>
    %135 = arith.cmpi sge, %24, %134 : vector<8x128xi32>
    %c32_i32 = arith.constant 32 : i32
    %136 = vector.broadcast %c32_i32 : i32 to vector<8x128xi32>
    %137 = arith.cmpi slt, %24, %136 : vector<8x128xi32>
    %138 = arith.andi %135, %137 : vector<8x128xi1>
    %cst_44 = arith.constant 0.000000e+00 : f32
    %139 = vector.broadcast %cst_44 : f32 to vector<8x128xf32>
    %140 = arith.select %138, %133, %139 : vector<8x128xi1>, vector<8x128xf32>
    %141 = arith.addf %112, %140 : vector<8x128xf32>
    %142 = arith.truncf %141 : vector<8x128xf32> to vector<8x128xbf16>
    %c0_45 = arith.constant 0 : index
    %c0_46 = arith.constant 0 : index
    %143 = vector.load %arg7[%c0_45, %c0_46] : memref<128x128xbf16, #tpu.memory_space<vmem>>, vector<128x128xbf16>
    %cst_47 = arith.constant dense<0.000000e+00> : vector<8x128xf32>
    %144 = tpu.matmul %142, %143, %cst_47 {dimension_numbers = #tpu.dot_dimension_numbers<[1], [0], [0], [1], [0, 0, 1, 1], [], []>} : vector<8x128xbf16>, vector<128x128xbf16>, vector<8x128xf32> -> vector<8x128xf32>
    %c0_48 = arith.constant 0 : index
    %c0_49 = arith.constant 0 : index
    %145 = vector.load %arg8[%c0_48, %c0_49] : memref<1x128xf32, #tpu.memory_space<vmem>>, vector<1x128xf32>
    %146 = vector.broadcast %145 : vector<1x128xf32> to vector<8x128xf32>
    %147 = arith.addf %144, %146 : vector<8x128xf32>
    %c0_50 = arith.constant 0 : index
    %c0_51 = arith.constant 0 : index
    %148 = vector.load %arg9[%c0_50, %c0_51] : memref<1x128xf32, #tpu.memory_space<vmem>>, vector<1x128xf32>
    %c0_52 = arith.constant 0 : index
    %c0_53 = arith.constant 0 : index
    %149 = vector.load %arg10[%c0_52, %c0_53] : memref<1x128xf32, #tpu.memory_space<vmem>>, vector<1x128xf32>
    %150 = arith.addf %1, %147 : vector<8x128xf32>
    %151 = tpu.iota {dimensions = array<i32: 1>} : vector<8x128xi32>
    %c32_i32_54 = arith.constant 32 : i32
    %152 = vector.broadcast %c32_i32_54 : i32 to vector<8x128xi32>
    %153 = arith.cmpi slt, %151, %152 : vector<8x128xi32>
    %cst_55 = arith.constant dense<0.000000e+00> : vector<8xf32>
    %154 = vector.multi_reduction <add>, %150, %cst_55 [1] : vector<8x128xf32> to vector<8xf32>
    %155 = vector.shape_cast %154 : vector<8xf32> to vector<8x1xf32>
    %cst_56 = arith.constant 3.125000e-02 : f32
    %156 = vector.broadcast %cst_56 : f32 to vector<8x1xf32>
    %157 = arith.mulf %155, %156 : vector<8x1xf32>
    %158 = vector.broadcast %157 : vector<8x1xf32> to vector<8x128xf32>
    %159 = arith.subf %150, %158 : vector<8x128xf32>
    %cst_57 = arith.constant 0.000000e+00 : f32
    %160 = vector.broadcast %cst_57 : f32 to vector<8x128xf32>
    %161 = arith.select %153, %159, %160 : vector<8x128xi1>, vector<8x128xf32>
    %162 = arith.mulf %161, %161 : vector<8x128xf32>
    %cst_58 = arith.constant dense<0.000000e+00> : vector<8xf32>
    %163 = vector.multi_reduction <add>, %162, %cst_58 [1] : vector<8x128xf32> to vector<8xf32>
    %164 = vector.shape_cast %163 : vector<8xf32> to vector<8x1xf32>
    %cst_59 = arith.constant 3.125000e-02 : f32
    %165 = vector.broadcast %cst_59 : f32 to vector<8x1xf32>
    %166 = arith.mulf %164, %165 : vector<8x1xf32>
    %cst_60 = arith.constant 9.99999974E-6 : f32
    %167 = vector.broadcast %cst_60 : f32 to vector<8x1xf32>
    %168 = arith.addf %166, %167 : vector<8x1xf32>
    %169 = math.rsqrt %168 : vector<8x1xf32>
    %170 = vector.broadcast %169 : vector<8x1xf32> to vector<8x128xf32>
    %171 = arith.mulf %161, %170 : vector<8x128xf32>
    %172 = vector.broadcast %148 : vector<1x128xf32> to vector<8x128xf32>
    %173 = arith.mulf %171, %172 : vector<8x128xf32>
    %174 = vector.broadcast %149 : vector<1x128xf32> to vector<8x128xf32>
    %175 = arith.addf %173, %174 : vector<8x128xf32>
    %176 = arith.truncf %175 : vector<8x128xf32> to vector<8x128xbf16>
    %c0_61 = arith.constant 0 : index
    %c0_62 = arith.constant 0 : index
    %177 = vector.load %arg11[%c0_61, %c0_62] : memref<128x128xbf16, #tpu.memory_space<vmem>>, vector<128x128xbf16>
    %cst_63 = arith.constant dense<0.000000e+00> : vector<8x128xf32>
    %178 = tpu.matmul %176, %177, %cst_63 {dimension_numbers = #tpu.dot_dimension_numbers<[1], [0], [0], [1], [0, 0, 1, 1], [], []>} : vector<8x128xbf16>, vector<128x128xbf16>, vector<8x128xf32> -> vector<8x128xf32>
    %c0_64 = arith.constant 0 : index
    %c0_65 = arith.constant 0 : index
    %179 = vector.load %arg12[%c0_64, %c0_65] : memref<1x128xf32, #tpu.memory_space<vmem>>, vector<1x128xf32>
    %180 = vector.broadcast %179 : vector<1x128xf32> to vector<8x128xf32>
    %181 = arith.addf %178, %180 : vector<8x128xf32>
    %182 = arith.truncf %3 : vector<8x128xf32> to vector<8x128xbf16>
    %c0_66 = arith.constant 0 : index
    %c0_67 = arith.constant 0 : index
    %183 = vector.load %arg13[%c0_66, %c0_67] : memref<128x256xbf16, #tpu.memory_space<vmem>>, vector<128x256xbf16>
    %cst_68 = arith.constant dense<0.000000e+00> : vector<8x256xf32>
    %184 = tpu.matmul %182, %183, %cst_68 {dimension_numbers = #tpu.dot_dimension_numbers<[1], [0], [0], [1], [0, 0, 1, 1], [], []>} : vector<8x128xbf16>, vector<128x256xbf16>, vector<8x256xf32> -> vector<8x256xf32>
    %c0_69 = arith.constant 0 : index
    %c0_70 = arith.constant 0 : index
    %185 = vector.load %arg14[%c0_69, %c0_70] : memref<1x256xf32, #tpu.memory_space<vmem>>, vector<1x256xf32>
    %186 = vector.broadcast %185 : vector<1x256xf32> to vector<8x256xf32>
    %187 = arith.addf %184, %186 : vector<8x256xf32>
    %188 = vector.extract_strided_slice %187 {offsets = [0, 0], sizes = [8, 128], strides = [1, 1]} : vector<8x256xf32> to vector<8x128xf32>
    %189 = vector.extract_strided_slice %187 {offsets = [0, 128], sizes = [8, 128], strides = [1, 1]} : vector<8x256xf32> to vector<8x128xf32>
    %c0_71 = arith.constant 0 : index
    %c0_72 = arith.constant 0 : index
    %c0_73 = arith.constant 0 : index
    %190 = vector.load %arg4[%c0_71, %c0_72, %c0_73] : memref<1x1x8xf32, #tpu.memory_space<vmem>>, vector<1x1x8xf32>
    %191 = vector.shape_cast %190 : vector<1x1x8xf32> to vector<1x8xf32>
    %cst_74 = arith.constant 5.000000e-01 : f32
    %192 = vector.broadcast %cst_74 : f32 to vector<1x8xf32>
    %193 = arith.cmpf ogt, %191, %192 : vector<1x8xf32>
    %194 = vector.shape_cast %193 : vector<1x8xi1> to vector<1x8xi1>
    %195 = vector.broadcast %194 : vector<1x8xi1> to vector<8x8xi1>
    %196 = arith.truncf %189 : vector<8x128xf32> to vector<8x128xbf16>
    %197 = tpu.iota {dimensions = array<i32: 1>} : vector<8x128xi32>
    %cst_75 = arith.constant 0.000000e+00 : f32
    %198 = vector.broadcast %cst_75 : f32 to vector<8x128xf32>
    %199 = vector.extract_strided_slice %181 {offsets = [0, 0], sizes = [8, 8], strides = [1, 1]} : vector<8x128xf32> to vector<8x8xf32>
    %200 = arith.truncf %199 : vector<8x8xf32> to vector<8x8xbf16>
    %201 = vector.extract_strided_slice %188 {offsets = [0, 0], sizes = [8, 8], strides = [1, 1]} : vector<8x128xf32> to vector<8x8xf32>
    %202 = arith.truncf %201 : vector<8x8xf32> to vector<8x8xbf16>
    %cst_76 = arith.constant dense<0.000000e+00> : vector<8x8xf32>
    %203 = tpu.matmul %200, %202, %cst_76 {dimension_numbers = #tpu.dot_dimension_numbers<[1], [1], [0], [0], [0, 0, 1, 0], [], []>} : vector<8x8xbf16>, vector<8x8xbf16>, vector<8x8xf32> -> vector<8x8xf32>
    %cst_77 = arith.constant 0.353553385 : f32
    %204 = vector.broadcast %cst_77 : f32 to vector<8x8xf32>
    %205 = arith.mulf %203, %204 : vector<8x8xf32>
    %cst_78 = arith.constant -1.000000e+09 : f32
    %206 = vector.broadcast %cst_78 : f32 to vector<8x8xf32>
    %207 = arith.select %195, %205, %206 : vector<8x8xi1>, vector<8x8xf32>
    %cst_79 = arith.constant dense<0xFF800000> : vector<8xf32>
    %208 = vector.multi_reduction <maximumf>, %207, %cst_79 [1] : vector<8x8xf32> to vector<8xf32>
    %209 = vector.shape_cast %208 : vector<8xf32> to vector<8x1xf32>
    %210 = vector.broadcast %209 : vector<8x1xf32> to vector<8x8xf32>
    %211 = arith.subf %207, %210 : vector<8x8xf32>
    %212 = math.exp %211 : vector<8x8xf32>
    %cst_80 = arith.constant dense<0.000000e+00> : vector<8xf32>
    %213 = vector.multi_reduction <add>, %212, %cst_80 [1] : vector<8x8xf32> to vector<8xf32>
    %214 = vector.shape_cast %213 : vector<8xf32> to vector<8x1xf32>
    %215 = tpu.reciprocal %214 {approx = true} : vector<8x1xf32> -> vector<8x1xf32>
    %216 = vector.broadcast %215 : vector<8x1xf32> to vector<8x8xf32>
    %217 = arith.mulf %212, %216 : vector<8x8xf32>
    %218 = arith.truncf %217 : vector<8x8xf32> to vector<8x8xbf16>
    %cst_81 = arith.constant dense<0.000000e+00> : vector<8x128xf32>
    %219 = tpu.matmul %218, %196, %cst_81 {dimension_numbers = #tpu.dot_dimension_numbers<[1], [0], [0], [1], [0, 0, 1, 1], [], []>} : vector<8x8xbf16>, vector<8x128xbf16>, vector<8x128xf32> -> vector<8x128xf32>
    %c0_i32_82 = arith.constant 0 : i32
    %220 = vector.broadcast %c0_i32_82 : i32 to vector<8x128xi32>
    %221 = arith.cmpi sge, %197, %220 : vector<8x128xi32>
    %c8_i32_83 = arith.constant 8 : i32
    %222 = vector.broadcast %c8_i32_83 : i32 to vector<8x128xi32>
    %223 = arith.cmpi slt, %197, %222 : vector<8x128xi32>
    %224 = arith.andi %221, %223 : vector<8x128xi1>
    %cst_84 = arith.constant 0.000000e+00 : f32
    %225 = vector.broadcast %cst_84 : f32 to vector<8x128xf32>
    %226 = arith.select %224, %219, %225 : vector<8x128xi1>, vector<8x128xf32>
    %227 = arith.addf %198, %226 : vector<8x128xf32>
    %228 = vector.extract_strided_slice %181 {offsets = [0, 8], sizes = [8, 8], strides = [1, 1]} : vector<8x128xf32> to vector<8x8xf32>
    %229 = arith.truncf %228 : vector<8x8xf32> to vector<8x8xbf16>
    %230 = vector.extract_strided_slice %188 {offsets = [0, 8], sizes = [8, 8], strides = [1, 1]} : vector<8x128xf32> to vector<8x8xf32>
    %231 = arith.truncf %230 : vector<8x8xf32> to vector<8x8xbf16>
    %cst_85 = arith.constant dense<0.000000e+00> : vector<8x8xf32>
    %232 = tpu.matmul %229, %231, %cst_85 {dimension_numbers = #tpu.dot_dimension_numbers<[1], [1], [0], [0], [0, 0, 1, 0], [], []>} : vector<8x8xbf16>, vector<8x8xbf16>, vector<8x8xf32> -> vector<8x8xf32>
    %cst_86 = arith.constant 0.353553385 : f32
    %233 = vector.broadcast %cst_86 : f32 to vector<8x8xf32>
    %234 = arith.mulf %232, %233 : vector<8x8xf32>
    %cst_87 = arith.constant -1.000000e+09 : f32
    %235 = vector.broadcast %cst_87 : f32 to vector<8x8xf32>
    %236 = arith.select %195, %234, %235 : vector<8x8xi1>, vector<8x8xf32>
    %cst_88 = arith.constant dense<0xFF800000> : vector<8xf32>
    %237 = vector.multi_reduction <maximumf>, %236, %cst_88 [1] : vector<8x8xf32> to vector<8xf32>
    %238 = vector.shape_cast %237 : vector<8xf32> to vector<8x1xf32>
    %239 = vector.broadcast %238 : vector<8x1xf32> to vector<8x8xf32>
    %240 = arith.subf %236, %239 : vector<8x8xf32>
    %241 = math.exp %240 : vector<8x8xf32>
    %cst_89 = arith.constant dense<0.000000e+00> : vector<8xf32>
    %242 = vector.multi_reduction <add>, %241, %cst_89 [1] : vector<8x8xf32> to vector<8xf32>
    %243 = vector.shape_cast %242 : vector<8xf32> to vector<8x1xf32>
    %244 = tpu.reciprocal %243 {approx = true} : vector<8x1xf32> -> vector<8x1xf32>
    %245 = vector.broadcast %244 : vector<8x1xf32> to vector<8x8xf32>
    %246 = arith.mulf %241, %245 : vector<8x8xf32>
    %247 = arith.truncf %246 : vector<8x8xf32> to vector<8x8xbf16>
    %cst_90 = arith.constant dense<0.000000e+00> : vector<8x128xf32>
    %248 = tpu.matmul %247, %196, %cst_90 {dimension_numbers = #tpu.dot_dimension_numbers<[1], [0], [0], [1], [0, 0, 1, 1], [], []>} : vector<8x8xbf16>, vector<8x128xbf16>, vector<8x128xf32> -> vector<8x128xf32>
    %c8_i32_91 = arith.constant 8 : i32
    %249 = vector.broadcast %c8_i32_91 : i32 to vector<8x128xi32>
    %250 = arith.cmpi sge, %197, %249 : vector<8x128xi32>
    %c16_i32_92 = arith.constant 16 : i32
    %251 = vector.broadcast %c16_i32_92 : i32 to vector<8x128xi32>
    %252 = arith.cmpi slt, %197, %251 : vector<8x128xi32>
    %253 = arith.andi %250, %252 : vector<8x128xi1>
    %cst_93 = arith.constant 0.000000e+00 : f32
    %254 = vector.broadcast %cst_93 : f32 to vector<8x128xf32>
    %255 = arith.select %253, %248, %254 : vector<8x128xi1>, vector<8x128xf32>
    %256 = arith.addf %227, %255 : vector<8x128xf32>
    %257 = vector.extract_strided_slice %181 {offsets = [0, 16], sizes = [8, 8], strides = [1, 1]} : vector<8x128xf32> to vector<8x8xf32>
    %258 = arith.truncf %257 : vector<8x8xf32> to vector<8x8xbf16>
    %259 = vector.extract_strided_slice %188 {offsets = [0, 16], sizes = [8, 8], strides = [1, 1]} : vector<8x128xf32> to vector<8x8xf32>
    %260 = arith.truncf %259 : vector<8x8xf32> to vector<8x8xbf16>
    %cst_94 = arith.constant dense<0.000000e+00> : vector<8x8xf32>
    %261 = tpu.matmul %258, %260, %cst_94 {dimension_numbers = #tpu.dot_dimension_numbers<[1], [1], [0], [0], [0, 0, 1, 0], [], []>} : vector<8x8xbf16>, vector<8x8xbf16>, vector<8x8xf32> -> vector<8x8xf32>
    %cst_95 = arith.constant 0.353553385 : f32
    %262 = vector.broadcast %cst_95 : f32 to vector<8x8xf32>
    %263 = arith.mulf %261, %262 : vector<8x8xf32>
    %cst_96 = arith.constant -1.000000e+09 : f32
    %264 = vector.broadcast %cst_96 : f32 to vector<8x8xf32>
    %265 = arith.select %195, %263, %264 : vector<8x8xi1>, vector<8x8xf32>
    %cst_97 = arith.constant dense<0xFF800000> : vector<8xf32>
    %266 = vector.multi_reduction <maximumf>, %265, %cst_97 [1] : vector<8x8xf32> to vector<8xf32>
    %267 = vector.shape_cast %266 : vector<8xf32> to vector<8x1xf32>
    %268 = vector.broadcast %267 : vector<8x1xf32> to vector<8x8xf32>
    %269 = arith.subf %265, %268 : vector<8x8xf32>
    %270 = math.exp %269 : vector<8x8xf32>
    %cst_98 = arith.constant dense<0.000000e+00> : vector<8xf32>
    %271 = vector.multi_reduction <add>, %270, %cst_98 [1] : vector<8x8xf32> to vector<8xf32>
    %272 = vector.shape_cast %271 : vector<8xf32> to vector<8x1xf32>
    %273 = tpu.reciprocal %272 {approx = true} : vector<8x1xf32> -> vector<8x1xf32>
    %274 = vector.broadcast %273 : vector<8x1xf32> to vector<8x8xf32>
    %275 = arith.mulf %270, %274 : vector<8x8xf32>
    %276 = arith.truncf %275 : vector<8x8xf32> to vector<8x8xbf16>
    %cst_99 = arith.constant dense<0.000000e+00> : vector<8x128xf32>
    %277 = tpu.matmul %276, %196, %cst_99 {dimension_numbers = #tpu.dot_dimension_numbers<[1], [0], [0], [1], [0, 0, 1, 1], [], []>} : vector<8x8xbf16>, vector<8x128xbf16>, vector<8x128xf32> -> vector<8x128xf32>
    %c16_i32_100 = arith.constant 16 : i32
    %278 = vector.broadcast %c16_i32_100 : i32 to vector<8x128xi32>
    %279 = arith.cmpi sge, %197, %278 : vector<8x128xi32>
    %c24_i32_101 = arith.constant 24 : i32
    %280 = vector.broadcast %c24_i32_101 : i32 to vector<8x128xi32>
    %281 = arith.cmpi slt, %197, %280 : vector<8x128xi32>
    %282 = arith.andi %279, %281 : vector<8x128xi1>
    %cst_102 = arith.constant 0.000000e+00 : f32
    %283 = vector.broadcast %cst_102 : f32 to vector<8x128xf32>
    %284 = arith.select %282, %277, %283 : vector<8x128xi1>, vector<8x128xf32>
    %285 = arith.addf %256, %284 : vector<8x128xf32>
    %286 = vector.extract_strided_slice %181 {offsets = [0, 24], sizes = [8, 8], strides = [1, 1]} : vector<8x128xf32> to vector<8x8xf32>
    %287 = arith.truncf %286 : vector<8x8xf32> to vector<8x8xbf16>
    %288 = vector.extract_strided_slice %188 {offsets = [0, 24], sizes = [8, 8], strides = [1, 1]} : vector<8x128xf32> to vector<8x8xf32>
    %289 = arith.truncf %288 : vector<8x8xf32> to vector<8x8xbf16>
    %cst_103 = arith.constant dense<0.000000e+00> : vector<8x8xf32>
    %290 = tpu.matmul %287, %289, %cst_103 {dimension_numbers = #tpu.dot_dimension_numbers<[1], [1], [0], [0], [0, 0, 1, 0], [], []>} : vector<8x8xbf16>, vector<8x8xbf16>, vector<8x8xf32> -> vector<8x8xf32>
    %cst_104 = arith.constant 0.353553385 : f32
    %291 = vector.broadcast %cst_104 : f32 to vector<8x8xf32>
    %292 = arith.mulf %290, %291 : vector<8x8xf32>
    %cst_105 = arith.constant -1.000000e+09 : f32
    %293 = vector.broadcast %cst_105 : f32 to vector<8x8xf32>
    %294 = arith.select %195, %292, %293 : vector<8x8xi1>, vector<8x8xf32>
    %cst_106 = arith.constant dense<0xFF800000> : vector<8xf32>
    %295 = vector.multi_reduction <maximumf>, %294, %cst_106 [1] : vector<8x8xf32> to vector<8xf32>
    %296 = vector.shape_cast %295 : vector<8xf32> to vector<8x1xf32>
    %297 = vector.broadcast %296 : vector<8x1xf32> to vector<8x8xf32>
    %298 = arith.subf %294, %297 : vector<8x8xf32>
    %299 = math.exp %298 : vector<8x8xf32>
    %cst_107 = arith.constant dense<0.000000e+00> : vector<8xf32>
    %300 = vector.multi_reduction <add>, %299, %cst_107 [1] : vector<8x8xf32> to vector<8xf32>
    %301 = vector.shape_cast %300 : vector<8xf32> to vector<8x1xf32>
    %302 = tpu.reciprocal %301 {approx = true} : vector<8x1xf32> -> vector<8x1xf32>
    %303 = vector.broadcast %302 : vector<8x1xf32> to vector<8x8xf32>
    %304 = arith.mulf %299, %303 : vector<8x8xf32>
    %305 = arith.truncf %304 : vector<8x8xf32> to vector<8x8xbf16>
    %cst_108 = arith.constant dense<0.000000e+00> : vector<8x128xf32>
    %306 = tpu.matmul %305, %196, %cst_108 {dimension_numbers = #tpu.dot_dimension_numbers<[1], [0], [0], [1], [0, 0, 1, 1], [], []>} : vector<8x8xbf16>, vector<8x128xbf16>, vector<8x128xf32> -> vector<8x128xf32>
    %c24_i32_109 = arith.constant 24 : i32
    %307 = vector.broadcast %c24_i32_109 : i32 to vector<8x128xi32>
    %308 = arith.cmpi sge, %197, %307 : vector<8x128xi32>
    %c32_i32_110 = arith.constant 32 : i32
    %309 = vector.broadcast %c32_i32_110 : i32 to vector<8x128xi32>
    %310 = arith.cmpi slt, %197, %309 : vector<8x128xi32>
    %311 = arith.andi %308, %310 : vector<8x128xi1>
    %cst_111 = arith.constant 0.000000e+00 : f32
    %312 = vector.broadcast %cst_111 : f32 to vector<8x128xf32>
    %313 = arith.select %311, %306, %312 : vector<8x128xi1>, vector<8x128xf32>
    %314 = arith.addf %285, %313 : vector<8x128xf32>
    %315 = arith.truncf %314 : vector<8x128xf32> to vector<8x128xbf16>
    %c0_112 = arith.constant 0 : index
    %c0_113 = arith.constant 0 : index
    %316 = vector.load %arg15[%c0_112, %c0_113] : memref<128x128xbf16, #tpu.memory_space<vmem>>, vector<128x128xbf16>
    %cst_114 = arith.constant dense<0.000000e+00> : vector<8x128xf32>
    %317 = tpu.matmul %315, %316, %cst_114 {dimension_numbers = #tpu.dot_dimension_numbers<[1], [0], [0], [1], [0, 0, 1, 1], [], []>} : vector<8x128xbf16>, vector<128x128xbf16>, vector<8x128xf32> -> vector<8x128xf32>
    %c0_115 = arith.constant 0 : index
    %c0_116 = arith.constant 0 : index
    %318 = vector.load %arg16[%c0_115, %c0_116] : memref<1x128xf32, #tpu.memory_space<vmem>>, vector<1x128xf32>
    %319 = vector.broadcast %318 : vector<1x128xf32> to vector<8x128xf32>
    %320 = arith.addf %317, %319 : vector<8x128xf32>
    %c0_117 = arith.constant 0 : index
    %c0_118 = arith.constant 0 : index
    %321 = vector.load %arg17[%c0_117, %c0_118] : memref<1x128xf32, #tpu.memory_space<vmem>>, vector<1x128xf32>
    %c0_119 = arith.constant 0 : index
    %c0_120 = arith.constant 0 : index
    %322 = vector.load %arg18[%c0_119, %c0_120] : memref<1x128xf32, #tpu.memory_space<vmem>>, vector<1x128xf32>
    %323 = arith.addf %175, %320 : vector<8x128xf32>
    %324 = tpu.iota {dimensions = array<i32: 1>} : vector<8x128xi32>
    %c32_i32_121 = arith.constant 32 : i32
    %325 = vector.broadcast %c32_i32_121 : i32 to vector<8x128xi32>
    %326 = arith.cmpi slt, %324, %325 : vector<8x128xi32>
    %cst_122 = arith.constant dense<0.000000e+00> : vector<8xf32>
    %327 = vector.multi_reduction <add>, %323, %cst_122 [1] : vector<8x128xf32> to vector<8xf32>
    %328 = vector.shape_cast %327 : vector<8xf32> to vector<8x1xf32>
    %cst_123 = arith.constant 3.125000e-02 : f32
    %329 = vector.broadcast %cst_123 : f32 to vector<8x1xf32>
    %330 = arith.mulf %328, %329 : vector<8x1xf32>
    %331 = vector.broadcast %330 : vector<8x1xf32> to vector<8x128xf32>
    %332 = arith.subf %323, %331 : vector<8x128xf32>
    %cst_124 = arith.constant 0.000000e+00 : f32
    %333 = vector.broadcast %cst_124 : f32 to vector<8x128xf32>
    %334 = arith.select %326, %332, %333 : vector<8x128xi1>, vector<8x128xf32>
    %335 = arith.mulf %334, %334 : vector<8x128xf32>
    %cst_125 = arith.constant dense<0.000000e+00> : vector<8xf32>
    %336 = vector.multi_reduction <add>, %335, %cst_125 [1] : vector<8x128xf32> to vector<8xf32>
    %337 = vector.shape_cast %336 : vector<8xf32> to vector<8x1xf32>
    %cst_126 = arith.constant 3.125000e-02 : f32
    %338 = vector.broadcast %cst_126 : f32 to vector<8x1xf32>
    %339 = arith.mulf %337, %338 : vector<8x1xf32>
    %cst_127 = arith.constant 9.99999974E-6 : f32
    %340 = vector.broadcast %cst_127 : f32 to vector<8x1xf32>
    %341 = arith.addf %339, %340 : vector<8x1xf32>
    %342 = math.rsqrt %341 : vector<8x1xf32>
    %343 = vector.broadcast %342 : vector<8x1xf32> to vector<8x128xf32>
    %344 = arith.mulf %334, %343 : vector<8x128xf32>
    %345 = vector.broadcast %321 : vector<1x128xf32> to vector<8x128xf32>
    %346 = arith.mulf %344, %345 : vector<8x128xf32>
    %347 = vector.broadcast %322 : vector<1x128xf32> to vector<8x128xf32>
    %348 = arith.addf %346, %347 : vector<8x128xf32>
    %349 = arith.truncf %348 : vector<8x128xf32> to vector<8x128xbf16>
    %c0_128 = arith.constant 0 : index
    %c0_129 = arith.constant 0 : index
    %350 = vector.load %arg19[%c0_128, %c0_129] : memref<128x128xbf16, #tpu.memory_space<vmem>>, vector<128x128xbf16>
    %cst_130 = arith.constant dense<0.000000e+00> : vector<8x128xf32>
    %351 = tpu.matmul %349, %350, %cst_130 {dimension_numbers = #tpu.dot_dimension_numbers<[1], [0], [0], [1], [0, 0, 1, 1], [], []>} : vector<8x128xbf16>, vector<128x128xbf16>, vector<8x128xf32> -> vector<8x128xf32>
    %c0_131 = arith.constant 0 : index
    %c0_132 = arith.constant 0 : index
    %352 = vector.load %arg20[%c0_131, %c0_132] : memref<1x128xf32, #tpu.memory_space<vmem>>, vector<1x128xf32>
    %353 = vector.broadcast %352 : vector<1x128xf32> to vector<8x128xf32>
    %354 = arith.addf %351, %353 : vector<8x128xf32>
    %cst_133 = arith.constant 0.000000e+00 : f32
    %355 = vector.broadcast %cst_133 : f32 to vector<8x128xf32>
    %356 = arith.maximumf %354, %355 : vector<8x128xf32>
    %357 = arith.truncf %356 : vector<8x128xf32> to vector<8x128xbf16>
    %c0_134 = arith.constant 0 : index
    %c0_135 = arith.constant 0 : index
    %358 = vector.load %arg21[%c0_134, %c0_135] : memref<128x128xbf16, #tpu.memory_space<vmem>>, vector<128x128xbf16>
    %cst_136 = arith.constant dense<0.000000e+00> : vector<8x128xf32>
    %359 = tpu.matmul %357, %358, %cst_136 {dimension_numbers = #tpu.dot_dimension_numbers<[1], [0], [0], [1], [0, 0, 1, 1], [], []>} : vector<8x128xbf16>, vector<128x128xbf16>, vector<8x128xf32> -> vector<8x128xf32>
    %c0_137 = arith.constant 0 : index
    %c0_138 = arith.constant 0 : index
    %360 = vector.load %arg22[%c0_137, %c0_138] : memref<1x128xf32, #tpu.memory_space<vmem>>, vector<1x128xf32>
    %361 = vector.broadcast %360 : vector<1x128xf32> to vector<8x128xf32>
    %362 = arith.addf %359, %361 : vector<8x128xf32>
    %c0_139 = arith.constant 0 : index
    %c0_140 = arith.constant 0 : index
    %363 = vector.load %arg23[%c0_139, %c0_140] : memref<1x128xf32, #tpu.memory_space<vmem>>, vector<1x128xf32>
    %c0_141 = arith.constant 0 : index
    %c0_142 = arith.constant 0 : index
    %364 = vector.load %arg24[%c0_141, %c0_142] : memref<1x128xf32, #tpu.memory_space<vmem>>, vector<1x128xf32>
    %365 = arith.addf %348, %362 : vector<8x128xf32>
    %366 = tpu.iota {dimensions = array<i32: 1>} : vector<8x128xi32>
    %c32_i32_143 = arith.constant 32 : i32
    %367 = vector.broadcast %c32_i32_143 : i32 to vector<8x128xi32>
    %368 = arith.cmpi slt, %366, %367 : vector<8x128xi32>
    %cst_144 = arith.constant dense<0.000000e+00> : vector<8xf32>
    %369 = vector.multi_reduction <add>, %365, %cst_144 [1] : vector<8x128xf32> to vector<8xf32>
    %370 = vector.shape_cast %369 : vector<8xf32> to vector<8x1xf32>
    %cst_145 = arith.constant 3.125000e-02 : f32
    %371 = vector.broadcast %cst_145 : f32 to vector<8x1xf32>
    %372 = arith.mulf %370, %371 : vector<8x1xf32>
    %373 = vector.broadcast %372 : vector<8x1xf32> to vector<8x128xf32>
    %374 = arith.subf %365, %373 : vector<8x128xf32>
    %cst_146 = arith.constant 0.000000e+00 : f32
    %375 = vector.broadcast %cst_146 : f32 to vector<8x128xf32>
    %376 = arith.select %368, %374, %375 : vector<8x128xi1>, vector<8x128xf32>
    %377 = arith.mulf %376, %376 : vector<8x128xf32>
    %cst_147 = arith.constant dense<0.000000e+00> : vector<8xf32>
    %378 = vector.multi_reduction <add>, %377, %cst_147 [1] : vector<8x128xf32> to vector<8xf32>
    %379 = vector.shape_cast %378 : vector<8xf32> to vector<8x1xf32>
    %cst_148 = arith.constant 3.125000e-02 : f32
    %380 = vector.broadcast %cst_148 : f32 to vector<8x1xf32>
    %381 = arith.mulf %379, %380 : vector<8x1xf32>
    %cst_149 = arith.constant 9.99999974E-6 : f32
    %382 = vector.broadcast %cst_149 : f32 to vector<8x1xf32>
    %383 = arith.addf %381, %382 : vector<8x1xf32>
    %384 = math.rsqrt %383 : vector<8x1xf32>
    %385 = vector.broadcast %384 : vector<8x1xf32> to vector<8x128xf32>
    %386 = arith.mulf %376, %385 : vector<8x128xf32>
    %387 = vector.broadcast %363 : vector<1x128xf32> to vector<8x128xf32>
    %388 = arith.mulf %386, %387 : vector<8x128xf32>
    %389 = vector.broadcast %364 : vector<1x128xf32> to vector<8x128xf32>
    %390 = arith.addf %388, %389 : vector<8x128xf32>
    %c0_150 = arith.constant 0 : index
    %c0_151 = arith.constant 0 : index
    %c0_152 = arith.constant 0 : index
    %391 = vector.load %arg25[%c0_150, %c0_151, %c0_152] : memref<1x8x128xf32, #tpu.memory_space<vmem>>, vector<1x8x128xf32>
    %392 = vector.shape_cast %391 : vector<1x8x128xf32> to vector<8x128xf32>
    %393 = vector.shape_cast %390 : vector<8x128xf32> to vector<1x8x128xf32>
    tpu.vector_store %arg25[%c0_150, %c0_151, %c0_152], %393 {strides = array<i32>} : memref<1x8x128xf32, #tpu.memory_space<vmem>>, vector<1x8x128xf32>,
    return
  }
  func.func @transform_0(%arg0: i32) -> (i32, i32, i32) {
    %c0_i32 = arith.constant 0 : i32
    %c0_i32_0 = arith.constant 0 : i32
    %c0_i32_1 = arith.constant 0 : i32
    return %arg0, %c0_i32, %c0_i32_0 : i32, i32, i32
  }
  func.func @transform_1(%arg0: i32) -> (i32, i32, i32) {
    %c0_i32 = arith.constant 0 : i32
    %c0_i32_0 = arith.constant 0 : i32
    %c0_i32_1 = arith.constant 0 : i32
    return %arg0, %c0_i32, %c0_i32_0 : i32, i32, i32
  }
  func.func @transform_2(%arg0: i32) -> (i32, i32, i32) {
    %c0_i32 = arith.constant 0 : i32
    %c0_i32_0 = arith.constant 0 : i32
    %c0_i32_1 = arith.constant 0 : i32
    return %arg0, %c0_i32, %c0_i32_0 : i32, i32, i32
  }
  func.func @transform_3(%arg0: i32) -> (i32, i32, i32) {
    %c0_i32 = arith.constant 0 : i32
    %c0_i32_0 = arith.constant 0 : i32
    %c0_i32_1 = arith.constant 0 : i32
    return %arg0, %c0_i32, %c0_i32_0 : i32, i32, i32
  }
  func.func @transform_4(%arg0: i32) -> (i32, i32) {
    %c0_i32 = arith.constant 0 : i32
    %c0_i32_0 = arith.constant 0 : i32
    %c0_i32_1 = arith.constant 0 : i32
    return %c0_i32, %c0_i32_0 : i32, i32
  }
  func.func @transform_5(%arg0: i32) -> (i32, i32) {
    %c0_i32 = arith.constant 0 : i32
    %c0_i32_0 = arith.constant 0 : i32
    %c0_i32_1 = arith.constant 0 : i32
    return %c0_i32, %c0_i32_0 : i32, i32
  }
  func.func @transform_6(%arg0: i32) -> (i32, i32) {
    %c0_i32 = arith.constant 0 : i32
    %c0_i32_0 = arith.constant 0 : i32
    %c0_i32_1 = arith.constant 0 : i32
    return %c0_i32, %c0_i32_0 : i32, i32
  }
  func.func @transform_7(%arg0: i32) -> (i32, i32) {
    %c0_i32 = arith.constant 0 : i32
    %c0_i32_0 = arith.constant 0 : i32
    %c0_i32_1 = arith.constant 0 : i32
    return %c0_i32, %c0_i32_0 : i32, i32
  }
  func.func @transform_8(%arg0: i32) -> (i32, i32) {
    %c0_i32 = arith.constant 0 : i32
    %c0_i32_0 = arith.constant 0 : i32
    %c0_i32_1 = arith.constant 0 : i32
    return %c0_i32, %c0_i32_0 : i32, i32
  }
  func.func @transform_9(%arg0: i32) -> (i32, i32) {
    %c0_i32 = arith.constant 0 : i32
    %c0_i32_0 = arith.constant 0 : i32
    %c0_i32_1 = arith.constant 0 : i32
    return %c0_i32, %c0_i32_0 : i32, i32
  }
  func.func @transform_10(%arg0: i32) -> (i32, i32) {
    %c0_i32 = arith.constant 0 : i32
    %c0_i32_0 = arith.constant 0 : i32
    %c0_i32_1 = arith.constant 0 : i32
    return %c0_i32, %c0_i32_0 : i32, i32
  }
  func.func @transform_11(%arg0: i32) -> (i32, i32) {
    %c0_i32 = arith.constant 0 : i32
    %c0_i32_0 = arith.constant 0 : i32
    %c0_i32_1 = arith.constant 0 : i32
    return %c0_i32, %c0_i32_0 : i32, i32
  }
  func.func @transform_12(%arg0: i32) -> (i32, i32) {
    %c0_i32 = arith.constant 0 : i32
    %c0_i32_0 = arith.constant 0 : i32
    %c0_i32_1 = arith.constant 0 : i32
    return %c0_i32, %c0_i32_0 : i32, i32
  }
  func.func @transform_13(%arg0: i32) -> (i32, i32) {
    %c0_i32 = arith.constant 0 : i32
    %c0_i32_0 = arith.constant 0 : i32
    %c0_i32_1 = arith.constant 0 : i32
    return %c0_i32, %c0_i32_0 : i32, i32
  }
  func.func @transform_14(%arg0: i32) -> (i32, i32) {
    %c0_i32 = arith.constant 0 : i32
    %c0_i32_0 = arith.constant 0 : i32
    %c0_i32_1 = arith.constant 0 : i32
    return %c0_i32, %c0_i32_0 : i32, i32
  }
  func.func @transform_15(%arg0: i32) -> (i32, i32) {
    %c0_i32 = arith.constant 0 : i32
    %c0_i32_0 = arith.constant 0 : i32
    %c0_i32_1 = arith.constant 0 : i32
    return %c0_i32, %c0_i32_0 : i32, i32
  }
  func.func @transform_16(%arg0: i32) -> (i32, i32) {
    %c0_i32 = arith.constant 0 : i32
    %c0_i32_0 = arith.constant 0 : i32
    %c0_i32_1 = arith.constant 0 : i32
    return %c0_i32, %c0_i32_0 : i32, i32
  }
  func.func @transform_17(%arg0: i32) -> (i32, i32) {
    %c0_i32 = arith.constant 0 : i32
    %c0_i32_0 = arith.constant 0 : i32
    %c0_i32_1 = arith.constant 0 : i32
    return %c0_i32, %c0_i32_0 : i32, i32
  }
  func.func @transform_18(%arg0: i32) -> (i32, i32) {
    %c0_i32 = arith.constant 0 : i32
    %c0_i32_0 = arith.constant 0 : i32
    %c0_i32_1 = arith.constant 0 : i32
    return %c0_i32, %c0_i32_0 : i32, i32
  }
  func.func @transform_19(%arg0: i32) -> (i32, i32) {
    %c0_i32 = arith.constant 0 : i32
    %c0_i32_0 = arith.constant 0 : i32
    %c0_i32_1 = arith.constant 0 : i32
    return %c0_i32, %c0_i32_0 : i32, i32
  }
  func.func @transform_20(%arg0: i32) -> (i32, i32) {
    %c0_i32 = arith.constant 0 : i32
    %c0_i32_0 = arith.constant 0 : i32
    %c0_i32_1 = arith.constant 0 : i32
    return %c0_i32, %c0_i32_0 : i32, i32
  }
  func.func @transform_21(%arg0: i32) -> (i32, i32) {
    %c0_i32 = arith.constant 0 : i32
    %c0_i32_0 = arith.constant 0 : i32
    %c0_i32_1 = arith.constant 0 : i32
    return %c0_i32, %c0_i32_0 : i32, i32
  }
  func.func @transform_22(%arg0: i32) -> (i32, i32) {
    %c0_i32 = arith.constant 0 : i32
    %c0_i32_0 = arith.constant 0 : i32
    %c0_i32_1 = arith.constant 0 : i32
    return %c0_i32, %c0_i32_0 : i32, i32
  }
  func.func @transform_23(%arg0: i32) -> (i32, i32) {
    %c0_i32 = arith.constant 0 : i32
    %c0_i32_0 = arith.constant 0 : i32
    %c0_i32_1 = arith.constant 0 : i32
    return %c0_i32, %c0_i32_0 : i32, i32
  }
  func.func @transform_24(%arg0: i32) -> (i32, i32, i32) {
    %c0_i32 = arith.constant 0 : i32
    %c0_i32_0 = arith.constant 0 : i32
    %c0_i32_1 = arith.constant 0 : i32
    return %arg0, %c0_i32, %c0_i32_0 : i32, i32, i32
  }
}

module attributes {stable_mosaic.version = 11 : i64} {
  func.func @_linear_kernel(%arg0: i32, %arg1: memref<8x128xf32, #tpu.memory_space<vmem>>, %arg2: memref<128x128xbf16, #tpu.memory_space<vmem>>, %arg3: memref<1x128xf32, #tpu.memory_space<vmem>>, %arg4: memref<8x128xf32, #tpu.memory_space<vmem>>) attributes {dimension_semantics = [#tpu.dimension_semantics<parallel>], iteration_bounds = array<i64: 2>, scalar_prefetch = 0 : i64, scratch_operands = 0 : i64, tpu.core_type = #tpu.core_type<tc>, window_params = [{transform_indices = @transform_0, window_bounds = array<i64: 8, 128>}, {pipeline_mode = #tpu.pipeline_mode<synchronous>, transform_indices = @transform_1, window_bounds = array<i64: 128, 128>}, {pipeline_mode = #tpu.pipeline_mode<synchronous>, transform_indices = @transform_2, window_bounds = array<i64: 1, 128>}, {transform_indices = @transform_3, window_bounds = array<i64: 8, 128>}]} {
    %c0 = arith.constant 0 : index
    %c0_0 = arith.constant 0 : index
    %0 = vector.load %arg1[%c0, %c0_0] : memref<8x128xf32, #tpu.memory_space<vmem>>, vector<8x128xf32>
    %1 = arith.truncf %0 : vector<8x128xf32> to vector<8x128xbf16>
    %c0_1 = arith.constant 0 : index
    %c0_2 = arith.constant 0 : index
    %2 = vector.load %arg2[%c0_1, %c0_2] : memref<128x128xbf16, #tpu.memory_space<vmem>>, vector<128x128xbf16>
    %cst = arith.constant dense<0.000000e+00> : vector<8x128xf32>
    %3 = tpu.matmul %1, %2, %cst {dimension_numbers = #tpu.dot_dimension_numbers<[1], [0], [0], [1], [0, 0, 1, 1], [], []>} : vector<8x128xbf16>, vector<128x128xbf16>, vector<8x128xf32> -> vector<8x128xf32>
    %c0_3 = arith.constant 0 : index
    %c0_4 = arith.constant 0 : index
    %4 = vector.load %arg3[%c0_3, %c0_4] : memref<1x128xf32, #tpu.memory_space<vmem>>, vector<1x128xf32>
    %5 = vector.broadcast %4 : vector<1x128xf32> to vector<8x128xf32>
    %6 = arith.addf %3, %5 : vector<8x128xf32>
    %c0_5 = arith.constant 0 : index
    %c0_6 = arith.constant 0 : index
    %7 = vector.load %arg4[%c0_5, %c0_6] : memref<8x128xf32, #tpu.memory_space<vmem>>, vector<8x128xf32>
    tpu.vector_store %arg4[%c0_5, %c0_6], %6 {strides = array<i32>} : memref<8x128xf32, #tpu.memory_space<vmem>>, vector<8x128xf32>,
    return
  }
  func.func @transform_0(%arg0: i32) -> (i32, i32) {
    %c0_i32 = arith.constant 0 : i32
    %c0_i32_0 = arith.constant 0 : i32
    return %arg0, %c0_i32 : i32, i32
  }
  func.func @transform_1(%arg0: i32) -> (i32, i32) {
    %c0_i32 = arith.constant 0 : i32
    %c0_i32_0 = arith.constant 0 : i32
    %c0_i32_1 = arith.constant 0 : i32
    return %c0_i32, %c0_i32_0 : i32, i32
  }
  func.func @transform_2(%arg0: i32) -> (i32, i32) {
    %c0_i32 = arith.constant 0 : i32
    %c0_i32_0 = arith.constant 0 : i32
    %c0_i32_1 = arith.constant 0 : i32
    return %c0_i32, %c0_i32_0 : i32, i32
  }
  func.func @transform_3(%arg0: i32) -> (i32, i32) {
    %c0_i32 = arith.constant 0 : i32
    %c0_i32_0 = arith.constant 0 : i32
    return %arg0, %c0_i32 : i32, i32
  }
}

</mosaic_0001>

<bundles_post_ra>
// kernel: transformer_forward.6
= control target key start
LH: loop header
LB: loop body
LE: loop exit
PB: predicated region body
PF: predicated region fallthrough
CT: control target
= control target key end

     0   :  { %19 = vsyncpa [#allocation3], 0  ;;  %s2166_s29 = smov 0   ;;  %s2493_s0 = inlined_call_operand.vmem [shape: f32[2,8,128], index: 0, kind: input, shape index: {}]   ;;  %s2494_s1 = inlined_call_operand.vmem [shape: f32[2,1,8], index: 1, kind: input, shape index: {}]   ;;  %s2495_s2 = inlined_call_operand.vmem [shape: bf16[128,384], index: 2, kind: input, shape index: {}]   ;;  %s2496_s3 = inlined_call_operand.vmem [shape: f32[1,384], index: 3, kind: input, shape index: {}]   ;;  %s2497_s4 = inlined_call_operand.vmem [shape: bf16[128,128], index: 4, kind: input, shape index: {}]   ;;  %s2498_s5 = inlined_call_operand.vmem [shape: f32[1,128], index: 5, kind: input, shape index: {}]   ;;  %s2499_s6 = inlined_call_operand.vmem [shape: f32[1,128], index: 6, kind: input, shape index: {}]   ;;  %s2500_s7 = inlined_call_operand.vmem [shape: f32[1,128], index: 7, kind: input, shape index: {}]   ;;  %s2501_s8 = inlined_call_operand.vmem [shape: bf16[128,128], index: 8, kind: input, shape index: {}]   ;;  %s2502_s9 = inlined_call_operand.vmem [shape: f32[1,128], index: 9, kind: input, shape index: {}]   ;;  %s2503_s10 = inlined_call_operand.hbm [shape: bf16[128,128], index: 10, kind: input, shape index: {}]   ;;  %s2504_s11 = inlined_call_operand.vmem [shape: f32[1,128], index: 11, kind: input, shape index: {}]   ;;  %s2505_s12 = inlined_call_operand.vmem [shape: f32[1,128], index: 12, kind: input, shape index: {}]   ;;  %s2506_s13 = inlined_call_operand.vmem [shape: f32[1,128], index: 13, kind: input, shape index: {}]   ;;  %s2507_s14 = inlined_call_operand.vmem [shape: f32[2,8,128], index: 14, kind: output, shape index: {}]  }
   0x1 LB: > { %s2172_s30 = sadd.s32 4294967295, %s2080_s29   ;;  %p1689_p0 = scmp.ge.s32.totalorder %s2080_s29, 1  ;;  %s2080_s29 = sphi %s2166_s29, %s25_s29  }
   0x2   : > { %p360_p1 = scmp.lt.s32.totalorder %s2080_s29, 3  ;;  %s2082_s15 = smov [#allocation2]  }
   0x3   : > { %s396_s16 = sshll.u32 %s2082_s15, 4  ;;  %p1949_p3 = scmp.eq.s32.totalorder %s2172_s30, 0  ;;  %s397_s16 = int_to_ptr.vmem [resolvable:$true] %s396_s16 }
   0x4   : > { %p2176_p2 = pnand %p1689_p0, %p360_p1  ;;  %s2055_s18 = scalar_lea.vmem %s397_s16, 1024 }
   0x5   : > { %p2056_p7 = scmp.ne.s32.totalorder %s397_s16, %s2055_s18  ;;  %p2063_p10 = scmp.lt.s32.totalorder %s397_s16, %s397_s16 }
   0x6   : > { %p1945_p4 = pneg %p2176_p2  ;;  %p2064_p11 = scmp.lt.s32.totalorder %s2055_s18, %s2055_s18 }
   0x8   : > { %p1946_p5 = pnand %p1949_p3, %p1945_p4  ;;  %p2065_p12 = por %p2064_p11, %p2063_p10 }
   0xa   : > { %p2046_p6 = pneg %p1946_p5 }
   0xc   : > { %p2058_p8 = pnand %p2056_p7, %p2046_p6 }
   0xe   : > { %p2059_p9 = pneg %p2058_p8 }
  0x10   : > { %p2066_p13 = pnand %p2065_p12, %p2059_p9 }
  0x12   : > { %2069 = shalt.err (!%p2066_p13)
}
  0x13   : > { %s2083_s19 = smov 64   ;;  %s2084_s20 = smov 4  }
  0x14   : > { %1948 = dma.hbm_to_vmem [thread:$0]  (!%p1946_p5), %s2503_s10, 1024, %s397_s16, [#allocation3], %s2083_s19, %s2083_s19, %s2084_s20  }
  0x15   : > { %434 = sbr.rel (%p2176_p2) target bundleno = 2720 (0xaa0), region = 76 }
  0x1a   : > { %2075 = dma.done.wait (%p1949_p3), [#allocation3], 1024  }
  0x1b   : > { %2077 = vsyncadd (%p1949_p3), [#allocation3], 4294966272  ;;  %v2085_v0 = vmov 0   ;;  %v2086_v1 = vmov 0.0   ;;  %v1968_v2 = vld [vmem:[%s2495_s2 + $0xac] ss:$12 sps:$4 sm:$0xff]   ;;  %v529_v6 = vlaneseq }
  0x1c   : > { %704 = vmatprep.mubr.bf16.mxu0 %v2085_v0  ;;  %1813 = vmatprep.subr.bf16.mxu1 %v2086_v1  ;;  %v1970_v3 = vld [vmem:[%s2495_s2 + $0xa8] ss:$12 sps:$4 sm:$0xff]   ;;  %p481_p0 = scmp.lt.s32.totalorder %s2172_s30, 1  ;;  %v1973_v5 = vld [vmem:[%s2495_s2 + $0x90] ss:$12 sps:$4 sm:$0xff]   ;;  %vm2087_vm1 = vmmov 0  }
  0x1d   : > { %672 = vmatprep.subr.bf16.mxu0 %v1968_v2  ;;  %v1971_v4 = vld [vmem:[%s2495_s2 + $0x94] ss:$12 sps:$4 sm:$0xff]   ;;  %v1974_v7 = vld [vmem:[%s2495_s2 + $0x7c] ss:$12 sps:$4 sm:$0xff]   ;;  %v1976_v8 = vld [vmem:[%s2495_s2 + $0x78] ss:$12 sps:$4 sm:$0xff]   ;;  %1829 = vmatprep.mubr.msk.bf16.mxu1 %vm2087_vm1, %v2086_v1 }
  0x1e   : > { %673 = vmatpush1.bf16.msra.mxu0 %v1970_v3  ;;  %s2510_s30 = smov (!%p481_p0, %s2172_s30), 1  ;;  %v2222_v9 = vshrl.u32 %v529_v6, 7  ;;  %v1977_v10 = vld [vmem:[%s2495_s2 + $0x64] ss:$12 sps:$4 sm:$0xff]   ;;  %v1979_v11 = vld [vmem:[%s2495_s2 + $0x60] ss:$12 sps:$4 sm:$0xff]  }
  0x1f   : > { %674 = vmatprep.subr.bf16.mxu0 %v1971_v4  ;;  %s487_s23 = scalar_lea.vmem %s2494_s1, %s2510_s30  ;;  %v1980_v12 = vld [vmem:[%s2495_s2 + $0x4c] ss:$12 sps:$4 sm:$0xff]   ;;  %v1992_v16 = vld [vmem:[%s2495_s2 + $0xb0] ss:$12 sps:$4 sm:$0xff]   ;;  %v1982_v19 = vld [vmem:[%s2495_s2 + $0x48] ss:$12 sps:$4 sm:$0xff]  }
  0x20   : > { %v753_v13 = vld [vmem:[%s487_s23] sm:$0x1]  ;;  %v531_v14 = vsub.s32 0, %v2222_v9  ;;  %1814 = vmatpush3.bf16.msra.mxu1 %v1992_v16  ;;  %v1993_v18 = vld [vmem:[%s2495_s2 + $0x98] ss:$12 sps:$4 sm:$0xff]   ;;  %s1694_s22 = sshll.u32 %s2510_s30, 3 }
  0x21   : > { %vm754_vm0 = vcmp.gt.f32.partialorder %v753_v13, 0.5  ;;  %1815 = vmatprep.subr.bf16.mxu1 %v2086_v1  ;;  %v1983_v20 = vld [vmem:[%s2495_s2 + $0x34] ss:$12 sps:$4 sm:$0xff]   ;;  %v1985_v21 = vld [vmem:[%s2495_s2 + $0x30] ss:$12 sps:$4 sm:$0xff]   ;;  %s484_s26 = scalar_lea.vmem %s2493_s0, %s1694_s22  ;;  %v535_v34 = vsub.s32 1, %v2222_v9  ;;  %s491_s25 = scalar_lea.vmem %s2507_s14, %s1694_s22 }
  0x22   : > { %675 = vmatpush1.bf16.msra.mxu0 %v1973_v5  ;;  %v755_v15 = vsel %vm754_vm0, 1, %v2085_v0  ;;  %v1994_v22 = vld [vmem:[%s2495_s2 + $0x80] ss:$12 sps:$4 sm:$0xff]   ;;  %v1986_v23 = vld [vmem:[%s2495_s2 + $0x1c] ss:$12 sps:$4 sm:$0xff]   ;;  %vm766_vm2 = vcmask 64512  }
  0x23   : > { %676 = vmatprep.subr.bf16.mxu0 %v1974_v7  ;;  %v2237_v17 = vrot.slane %v755_v15, %v531_v14  ;;  %v1995_v24 = vld [vmem:[%s2495_s2 + $0x68] ss:$12 sps:$4 sm:$0xff]   ;;  %v1988_v25 = vld [vmem:[%s2495_s2 + $0x18] ss:$12 sps:$4 sm:$0xff]   ;;  %v1996_v27 = vld [vmem:[%s2495_s2 + $0x50] ss:$12 sps:$4 sm:$0xff]  }
  0x24   : > { %1816 = vmatpush3.bf16.msra.mxu1 %v1993_v18  ;;  %v1989_v26 = vld [vmem:[%s2495_s2 + $0x4] ss:$12 sps:$4 sm:$0xff]   ;;  %v1991_v28 = vld [vmem:[%s2495_s2] ss:$12 sps:$4 sm:$0xff]   ;;  %v1999_v33 = vld [vmem:[%s2495_s2 + $0x8] ss:$12 sps:$4 sm:$0xff]  }
  0x25   : > { %1817 = vmatprep.subr.bf16.mxu1 %v2086_v1  ;;  %v2281_v29 = vld [vmem:[%s484_s26] sm:$0xff]  ;;  %s2088_s26 = smov 120   ;;  %s2089_s27 = smov 112   ;;  %v539_v47 = vsub.s32 2, %v2222_v9  ;;  %vm830_vm3 = vcmask 1043456   ;;  %vm760_vm4 = vcmp.eq.s32.totalorder %v2237_v17, 1 }
  0x26   : > { %677 = vmatpush1.bf16.msra.mxu0 %v1976_v8  ;;  %v1997_v30 = vld [vmem:[%s2495_s2 + $0x38] ss:$12 sps:$4 sm:$0xff]   ;;  %v494_v31 = vpack.c.bf16 %v2281_v29, %v2281_v29  ;;  %v1998_v32 = vld [vmem:[%s2495_s2 + $0x20] ss:$12 sps:$4 sm:$0xff]   ;;  %s2090_s28 = smov 104  }
  0x27   : > { %678 = vmatprep.subr.bf16.mxu0 %v1977_v10  ;;  %v527_v35 = vld [vmem:[%s2496_s3] sm:$0x7] }
  0x28   : > { %1818 = vmatpush3.bf16.msra.mxu1 %v1994_v22  ;;  %v536_v36 = vrot.slane %v527_v35, %v535_v34  ;;  %v532_v38 = vrot.slane %v527_v35, %v531_v14  ;;  %v540_v48 = vrot.slane %v527_v35, %v539_v47 }
  0x29   : > { %1819 = vmatprep.subr.bf16.mxu1 %v2086_v1 }
  0x2a   : > { %679 = vmatpush1.bf16.msra.mxu0 %v1979_v11 }
  0x2b   : > { %680 = vmatprep.subr.bf16.mxu0 %v1980_v12 }
  0x2c   : > { %1820 = vmatpush3.bf16.msra.mxu1 %v1995_v24 }
  0x2d   : > { %1821 = vmatprep.subr.bf16.mxu1 %v2086_v1 }
  0x2e   : > { %681 = vmatpush1.bf16.msra.mxu0 %v1982_v19 }
  0x2f   : > { %682 = vmatprep.subr.bf16.mxu0 %v1983_v20  ;;  %v2348_v20 = vand.u32 127, %v529_v6 }
  0x30   : > { %1822 = vmatpush3.bf16.msra.mxu1 %v1996_v27 }
  0x31   : > { %1823 = vmatprep.subr.bf16.mxu1 %v2086_v1  ;;  %vm875_vm5 = vcmp.lt.s32.totalorder %v2348_v20, 8  ;;  %vm988_vm6 = vcmp.ge.s32.totalorder %v2348_v20, 8  ;;  %vm989_vm7 = vcmp.lt.s32.totalorder %v2348_v20, 16  ;;  %vm1100_vm9 = vcmp.ge.s32.totalorder %v2348_v20, 16 }
  0x32   : > { %683 = vmatpush1.bf16.msra.mxu0 %v1985_v21  ;;  %vm990_vm8 = vmand %vm988_vm6, %vm989_vm7  ;;  %vm1101_vm10 = vcmp.lt.s32.totalorder %v2348_v20, 24  ;;  %vm1212_vm12 = vcmp.ge.s32.totalorder %v2348_v20, 24  ;;  %vm1213_vm13 = vcmp.lt.s32.totalorder %v2348_v20, 32 }
  0x33   : > { %684 = vmatprep.subr.bf16.mxu0 %v1986_v23  ;;  %vm1102_vm11 = vmand %vm1100_vm9, %vm1101_vm10 }
  0x34   : > { %1824 = vmatpush3.bf16.msra.mxu1 %v1997_v30  ;;  %vm1214_vm14 = vmand %vm1212_vm12, %vm1213_vm13 }
  0x35   : > { %1825 = vmatprep.subr.bf16.mxu1 %v2086_v1 }
  0x36   : > { %685 = vmatpush1.bf16.msra.mxu0 %v1988_v25 }
  0x37   : > { %686 = vmatprep.subr.bf16.mxu0 %v1989_v26 }
  0x38   : > { %1826 = vmatpush3.bf16.msra.mxu1 %v1998_v32 }
  0x39   : > { %1827 = vmatprep.subr.bf16.mxu1 %v2086_v1 }
  0x3a   : > { %687 = vmatpush1.bf16.msra.mxu0 %v1991_v28 }
  0x3b   : > { %1857 = vmatprep.subr.bf16.mxu0 %v2086_v1 }
  0x3c   : > { %1828 = vmatpush3.bf16.msra.mxu1 %v1999_v33 }
  0x3d   : > { %705 = vmatmul.mubr.bf16.vlgmr.msra.gmra.mxu0 %v494_v31  ;;  %1833 = vmatprep.subr.bf16.mxu1 %v2086_v1 }
  0x3e   : > { %1859 = vmatprep.mubr.msk.bf16.mxu0 %vm2087_vm1, %v2086_v1 }
  0x3f   : > { %1830 = vmatmul.mubr.bf16.vlgmr.msra.gmra.mxu1 %v494_v31 }
  0x40   : > { %1835 = vmatprep.mubr.msk.bf16.mxu1 %vm2087_vm1, %v2086_v1 }
  0xfd   : > { %v706_v37 = vpop.f32.mrf.mxu0 }
  0xfe   : > { %v707_v42 = vadd.f32 %v706_v37, %v532_v38 }
  0xff   : > { %v708_v39 = vpop.f32.mrf.mxu0  ;;  %v747_v49 = vpop.f32.mrf.mxu1 }
 0x100   : > { %v709_v40 = vadd.f32 %v708_v39, %v536_v36  ;;  %v764_v46 = vpack.c.bf16 %v707_v42, %v707_v42  ;;  %v748_v50 = vadd.f32 %v747_v49, %v540_v48 }
 0x101   : > { %v710_v41 = vpop.f32.mrf.mxu0  ;;  %v1831_v51 = vpop.f32.mrf.mxu1 }
 0x102   : > { %v765_v43 = vpack.c.bf16 %v709_v40, %v709_v40  ;;  %v761_v52 = vpack.c.bf16 %v748_v50, %v748_v50 }
 0x103   : > { %v711_v44 = vpop.f32.mrf.mxu0  ;;  %v750_v53 = vpop.f32.mrf.mxu1 }
 0x104   : > { %883 = vrot.lane.b32.xlu1 %v765_v43, %s2088_s26  ;;  %v771_v45 = vsel %vm766_vm2, %v765_v43, 0  ;;  %v2317_v54 = vsel %vm830_vm3, %v761_v52, 0 }
 0x105   : > { %1834 = vmatpush3.bf16.xpose.msra.mxu1 %v771_v45  ;;  %v1832_v55 = vpop.f32.mrf.mxu1 }
 0x106   : > { %1839 = vmatprep.subr.bf16.mxu1 %v2086_v1 }
 0x108   : > { %880 = vrot.lane.b32.xlu1 %v764_v46, %s2088_s26 }
 0x10c   : > { %993 = vrot.lane.b32.xlu1 %v764_v46, %s2089_s27  ;;  %1836 = vmatmul.mubr.msk.bf16.vlgmr.msra.gmra.mxu1 %vm766_vm2, %v764_v46 }
 0x10d   : > { %1841 = vmatprep.mubr.msk.bf16.mxu1 %vm2087_vm1, %v2086_v1  ;;  %1840 = vmatpush3.bf16.msra.mxu1 %v2317_v54 }
 0x10e   : > { %1845 = vmatprep.subr.bf16.mxu1 %v2086_v1 }
 0x110   : > { %1107 = vrot.lane.b32.xlu1 %v765_v43, %s2090_s28 }
 0x114   : > { %1105 = vrot.lane.b32.xlu1 %v764_v46, %s2090_s28 }
 0x176   : > { %v884_v5 = vpop.permute.xlu1 %883 }
 0x177   : > { %v889_v18 = vsel %vm766_vm2, %v884_v5, 0 }
 0x17a   : > { %v881_v7 = vpop.permute.xlu1 %880 }
 0x17e   : > { %v994_v9 = vpop.permute.xlu1 %993 }
 0x182   : > { %v1108_v12 = vpop.permute.xlu1 %1107 }
 0x183   : > { %v1113_v13 = vsel %vm766_vm2, %v1108_v12, 0 }
 0x186   : > { %v1106_v19 = vpop.permute.xlu1 %1105 }
 0x1cc   : > { %v807_v56 = vpop.f32.mrf.mxu1 }
 0x1cd   : > { %v813_v57 = vmul.f32 0.35355338, %v807_v56 }
 0x1ce   : > { %v1837_v58 = vpop.f32.mrf.mxu1 }
 0x1cf   : > { %v814_v59 = vsel %vm760_vm4, %v813_v57, -1e+09 }
 0x1d0   : > { %v810_v60 = vpop.f32.mrf.mxu1  ;;  %v815_v61 = vsel %vm766_vm2, %v814_v59, -inf }
 0x1d1   : > { %816 = vmax.xlane.f32.xlu0 %v815_v61 }
 0x1d2   : > { %v1838_v62 = vpop.f32.mrf.mxu1 }
 0x1d3   : > { %v2000_v62 = vld [vmem:[%s2497_s4 + $0x38] sm:$0xff]  }
 0x25a   : > { %v817_v63 = vpop.xlane.xlu0 %816 }
 0x25b   : > { %v818_v0 = vsub.f32 %v814_v59, %v817_v63  ;;  %v2001_v63 = vld [vmem:[%s2497_s4 + $0x30] sm:$0xff]  }
 0x25d   : > { %v819_v2 = vmul.f32 1.442695, %v818_v0  ;;  %v2002_v0 = vld [vmem:[%s2497_s4 + $0x28] sm:$0xff]  }
 0x25f   : > { %2024 = vpow2.f32 %v819_v2 }
 0x26c   : > { %v2025_v3 = vpop.eup %2024 }
 0x26d   : > { %v821_v4 = vsel %vm766_vm2, %v2025_v3, 0.0 }
 0x26e   : > { %822 = vadd.xlane.f32.xlu0 %v821_v4 }
 0x284   : > { %995 = vrot.lane.b32.xlu0 %v765_v43, %s2089_s27 }
 0x2f7   : > { %v823_v8 = vpop.xlane.xlu0 %822 }
 0x2f8   : > { %2026 = vrcp.f32 %v823_v8 }
 0x2fb   : > { %v996_v10 = vpop.permute.xlu0 %995 }
 0x2fc   : > { %v1001_v11 = vsel %vm766_vm2, %v996_v10, 0 }
 0x2fd   : > { %1858 = vmatpush3.bf16.xpose.msra.mxu0 %v1001_v11 }
 0x2fe   : > { %1869 = vmatprep.subr.bf16.mxu0 %v2086_v1 }
 0x304   : > { %1860 = vmatmul.mubr.msk.bf16.vlgmr.msra.gmra.mxu0 %vm766_vm2, %v994_v9 }
 0x305   : > { %v2027_v14 = vpop.eup %2026  ;;  %1870 = vmatpush3.bf16.xpose.msra.mxu0 %v1113_v13  ;;  %1871 = vmatprep.mubr.msk.bf16.mxu0 %vm2087_vm1, %v2086_v1 }
 0x306   : > { %v825_v15 = vmul.f32 %v2027_v14, %v2025_v3  ;;  %1881 = vmatprep.subr.bf16.mxu0 %v2086_v1 }
 0x308   : > { %v826_v16 = vpack.c.bf16 %v825_v15, %v825_v15  ;;  %v2003_v15 = vld [vmem:[%s2497_s4 + $0x20] sm:$0xff]  }
 0x30a   : > { %1842 = vmatmul.mubr.msk.bf16.vlgmr.msra.gmra.mxu1 %vm766_vm2, %v826_v16  ;;  %v2005_v16 = vld [vmem:[%s2497_s4 + $0x10] sm:$0xff]  }
 0x30b   : > { %1846 = vmatpush3.bf16.xpose.msra.mxu1 %v889_v18  ;;  %1847 = vmatprep.mubr.msk.bf16.mxu1 %vm2087_vm1, %v2086_v1  ;;  %v2006_v18 = vld [vmem:[%s2497_s4 + $0x8] sm:$0xff]  }
 0x30c   : > { %1872 = vmatmul.mubr.msk.bf16.vlgmr.msra.gmra.mxu0 %vm766_vm2, %v1106_v19  ;;  %1851 = vmatprep.subr.bf16.mxu1 %v2086_v1  ;;  %v2007_v19 = vld [vmem:[%s2497_s4] sm:$0xff]  }
 0x30d   : > { %1897 = vmatprep.mubr.msk.bf16.mxu0 %vm2087_vm1, %v2086_v1  ;;  %1882 = vmatpush3.bf16.msra.mxu0 %v2000_v62  ;;  %v2019_v62 = vld [vmem:[#allocation2 + $0x20] sm:$0xff]  }
 0x30e   : > { %1883 = vmatprep.subr.bf16.mxu0 %v2086_v1 }
 0x311   : > { %1884 = vmatpush3.bf16.msra.mxu0 %v2001_v63  ;;  %v2020_v63 = vld [vmem:[#allocation2 + $0x18] sm:$0xff]  }
 0x312   : > { %1848 = vmatmul.mubr.msk.bf16.vlgmr.msra.gmra.mxu1 %vm766_vm2, %v881_v7  ;;  %1885 = vmatprep.subr.bf16.mxu0 %v2086_v1 }
 0x313   : > { %1852 = vmatpush3.bf16.msra.mxu1 %v2317_v54  ;;  %1853 = vmatprep.mubr.msk.bf16.mxu1 %vm2087_vm1, %v2086_v1 }
 0x314   : > { %1863 = vmatprep.subr.bf16.mxu1 %v2086_v1 }
 0x315   : > { %1886 = vmatpush3.bf16.msra.mxu0 %v2002_v0  ;;  %v2021_v0 = vld [vmem:[#allocation2 + $0x10] sm:$0xff]  }
 0x316   : > { %1887 = vmatprep.subr.bf16.mxu0 %v2086_v1 }
 0x319   : > { %1888 = vmatpush3.bf16.msra.mxu0 %v2003_v15  ;;  %v1739_v15 = vld [vmem:[%s2502_s9] ss:$0 sm:$0xff] }
 0x31a   : > { %1889 = vmatprep.subr.bf16.mxu0 %v2086_v1 }
 0x3c4   : > { %v1037_v21 = vpop.f32.mrf.mxu0 }
 0x3c5   : > { %v1043_v22 = vmul.f32 0.35355338, %v1037_v21 }
 0x3c6   : > { %v1861_v23 = vpop.f32.mrf.mxu0 }
 0x3c7   : > { %v1044_v24 = vsel %vm760_vm4, %v1043_v22, -1e+09 }
 0x3c8   : > { %v1040_v25 = vpop.f32.mrf.mxu0  ;;  %v1045_v26 = vsel %vm766_vm2, %v1044_v24, -inf }
 0x3c9   : > { %1046 = vmax.xlane.f32.xlu0 %v1045_v26 }
 0x3ca   : > { %v868_v27 = vpop.f32.mrf.mxu1  ;;  %v1862_v28 = vpop.f32.mrf.mxu0 }
 0x3cb   : > { %v2354_v30 = vsel %vm875_vm5, %v868_v27, 0.0 }
 0x3cc   : > { %v1843_v31 = vpop.f32.mrf.mxu1  ;;  %v1149_v32 = vpop.f32.mrf.mxu0 }
 0x3cd   : > { %v1155_v38 = vmul.f32 0.35355338, %v1149_v32 }
 0x3ce   : > { %v871_v6 = vpop.f32.mrf.mxu1  ;;  %v1873_v33 = vpop.f32.mrf.mxu0 }
 0x3cf   : > { %v1156_v44 = vsel %vm760_vm4, %v1155_v38, -1e+09 }
 0x3d0   : > { %v1844_v34 = vpop.f32.mrf.mxu1  ;;  %v1152_v35 = vpop.f32.mrf.mxu0  ;;  %v1157_v46 = vsel %vm766_vm2, %v1156_v44, -inf }
 0x3d2   : > { %v925_v36 = vpop.f32.mrf.mxu1  ;;  %v1874_v37 = vpop.f32.mrf.mxu0 }
 0x3d3   : > { %v931_v39 = vmul.f32 0.35355338, %v925_v36 }
 0x3d4   : > { %v1849_v40 = vpop.f32.mrf.mxu1 }
 0x3d5   : > { %v932_v41 = vsel %vm760_vm4, %v931_v39, -1e+09  ;;  %v1728_v40 = vld [vmem:[%s2498_s5] ss:$0 sm:$0xff] }
 0x3d6   : > { %v928_v42 = vpop.f32.mrf.mxu1  ;;  %v933_v43 = vsel %vm766_vm2, %v932_v41, -inf }
 0x3d7   : > { %934 = vmax.xlane.f32.xlu1 %v933_v43 }
 0x3d8   : > { %v1850_v45 = vpop.f32.mrf.mxu1 }
 0x3db   : > { %1158 = vmax.xlane.f32.xlu1 %v1157_v46 }
 0x452   : > { %v1047_v47 = vpop.xlane.xlu0 %1046 }
 0x453   : > { %v1048_v48 = vsub.f32 %v1044_v24, %v1047_v47  ;;  %v2008_v47 = vld [vmem:[%s2501_s8 + $0x38] sm:$0xff]  }
 0x455   : > { %v1049_v49 = vmul.f32 1.442695, %v1048_v48  ;;  %v2009_v48 = vld [vmem:[%s2501_s8 + $0x30] sm:$0xff]  }
 0x457   : > { %2028 = vpow2.f32 %v1049_v49 }
 0x460   : > { %v935_v50 = vpop.xlane.xlu1 %934 }
 0x461   : > { %v936_v51 = vsub.f32 %v932_v41, %v935_v50 }
 0x463   : > { %v937_v52 = vmul.f32 1.442695, %v936_v51 }
 0x464   : > { %v2029_v53 = vpop.eup %2028  ;;  %v1159_v55 = vpop.xlane.xlu1 %1158 }
 0x465   : > { %2030 = vpow2.f32 %v937_v52  ;;  %v1160_v56 = vsub.f32 %v1156_v44, %v1159_v55  ;;  %v1051_v57 = vsel %vm766_vm2, %v2029_v53, 0.0  ;;  %v2011_v55 = vld [vmem:[%s2501_s8 + $0x20] sm:$0xff]  }
 0x466   : > { %1052 = vadd.xlane.f32.xlu0 %v1051_v57  ;;  %v2013_v57 = vld [vmem:[%s2501_s8 + $0x10] sm:$0xff]  }
 0x467   : > { %v1161_v17 = vmul.f32 1.442695, %v1160_v56  ;;  %v2012_v56 = vld [vmem:[%s2501_s8 + $0x18] sm:$0xff]  }
 0x469   : > { %2032 = vpow2.f32 %v1161_v17  ;;  %v2014_v17 = vld [vmem:[%s2501_s8 + $0x8] sm:$0xff]  }
 0x472   : > { %v2031_v58 = vpop.eup %2030 }
 0x473   : > { %v939_v59 = vsel %vm766_vm2, %v2031_v58, 0.0 }
 0x474   : > { %940 = vadd.xlane.f32.xlu1 %v939_v59  ;;  %v2016_v59 = vld [vmem:[#allocation2 + $0x38] sm:$0xff]  }
 0x476   : > { %v2033_v60 = vpop.eup %2032 }
 0x477   : > { %v1163_v61 = vsel %vm766_vm2, %v2033_v60, 0.0 }
 0x478   : > { %1164 = vadd.xlane.f32.xlu1 %v1163_v61  ;;  %v2018_v61 = vld [vmem:[#allocation2 + $0x28] sm:$0xff]  }
 0x4ef   : > { %v1053_v3 = vpop.xlane.xlu0 %1052 }
 0x4fd   : > { %v941_v2 = vpop.xlane.xlu1 %940 }
 0x4fe   : > { %2034 = vrcp.f32 %v941_v2 }
 0x4ff   : > { %2036 = vrcp.f32 %v1053_v3 }
 0x501   : > { %v1165_v4 = vpop.xlane.xlu1 %1164 }
 0x502   : > { %2038 = vrcp.f32 %v1165_v4 }
 0x50b   : > { %v2035_v5 = vpop.eup %2034 }
 0x50c   : > { %v943_v7 = vmul.f32 %v2035_v5, %v2031_v58  ;;  %v2037_v9 = vpop.eup %2036  ;;  %v2015_v58 = vld [vmem:[%s2501_s8] sm:$0xff]  }
 0x50d   : > { %v1055_v10 = vmul.f32 %v2037_v9, %v2029_v53  ;;  %v2010_v53 = vld [vmem:[%s2501_s8 + $0x28] sm:$0xff]   ;;  %v1738_v9 = vld [vmem:[%s2500_s7] ss:$0 sm:$0xff] }
 0x50e   : > { %v944_v8 = vpack.c.bf16 %v943_v7, %v943_v7  ;;  %v1737_v7 = vld [vmem:[%s2499_s6] ss:$0 sm:$0xff] }
 0x50f   : > { %v1056_v11 = vpack.c.bf16 %v1055_v10, %v1055_v10  ;;  %v2039_v12 = vpop.eup %2038 }
 0x510   : > { %1854 = vmatmul.mubr.msk.bf16.vlgmr.msra.gmra.mxu1 %vm766_vm2, %v944_v8  ;;  %v1167_v13 = vmul.f32 %v2039_v12, %v2033_v60  ;;  %v2017_v60 = vld [vmem:[#allocation2 + $0x30] sm:$0xff]  }
 0x511   : > { %1864 = vmatpush3.bf16.msra.mxu1 %v2317_v54  ;;  %1865 = vmatprep.mubr.msk.bf16.mxu1 %vm2087_vm1, %v2086_v1 }
 0x512   : > { %1875 = vmatprep.subr.bf16.mxu1 %v2086_v1  ;;  %v1168_v14 = vpack.c.bf16 %v1167_v13, %v1167_v13  ;;  %v2022_v13 = vld [vmem:[#allocation2 + $0x8] sm:$0xff]  }
 0x518   : > { %1866 = vmatmul.mubr.msk.bf16.vlgmr.msra.gmra.mxu1 %vm766_vm2, %v1056_v11 }
 0x519   : > { %1876 = vmatpush3.bf16.msra.mxu1 %v2317_v54  ;;  %1877 = vmatprep.mubr.msk.bf16.mxu1 %vm2087_vm1, %v2086_v1  ;;  %v2004_v54 = vld [vmem:[%s2497_s4 + $0x18] sm:$0xff]  }
 0x51a   : > { %1901 = vmatprep.subr.bf16.mxu1 %v2086_v1  ;;  %1890 = vmatpush3.bf16.msra.mxu0 %v2004_v54 }
 0x51b   : > { %1891 = vmatprep.subr.bf16.mxu0 %v2086_v1 }
 0x51e   : > { %1892 = vmatpush3.bf16.msra.mxu0 %v2005_v16 }
 0x51f   : > { %1893 = vmatprep.subr.bf16.mxu0 %v2086_v1 }
 0x520   : > { %1878 = vmatmul.mubr.msk.bf16.vlgmr.msra.gmra.mxu1 %vm766_vm2, %v1168_v14  ;;  %v2023_v14 = vld [vmem:[#allocation2] sm:$0xff]  }
 0x521   : > { %1917 = vmatprep.mubr.msk.bf16.mxu1 %vm2087_vm1, %v2086_v1  ;;  %1902 = vmatpush3.bf16.msra.mxu1 %v2008_v47 }
 0x522   : > { %1894 = vmatpush3.bf16.msra.mxu0 %v2006_v18  ;;  %1903 = vmatprep.subr.bf16.mxu1 %v2086_v1 }
 0x523   : > { %1895 = vmatprep.subr.bf16.mxu0 %v2086_v1 }
 0x525   : > { %1904 = vmatpush3.bf16.msra.mxu1 %v2009_v48 }
 0x526   : > { %1896 = vmatpush3.bf16.msra.mxu0 %v2007_v19  ;;  %1905 = vmatprep.subr.bf16.mxu1 %v2086_v1 }
 0x527   : > { %1921 = vmatprep.subr.bf16.mxu0 %v2086_v1 }
 0x529   : > { %1906 = vmatpush3.bf16.msra.mxu1 %v2010_v53 }
 0x52a   : > { %1907 = vmatprep.subr.bf16.mxu1 %v2086_v1 }
 0x52d   : > { %1908 = vmatpush3.bf16.msra.mxu1 %v2011_v55 }
 0x52e   : > { %1909 = vmatprep.subr.bf16.mxu1 %v2086_v1 }
 0x531   : > { %1910 = vmatpush3.bf16.msra.mxu1 %v2012_v56 }
 0x532   : > { %1911 = vmatprep.subr.bf16.mxu1 %v2086_v1 }
 0x535   : > { %1912 = vmatpush3.bf16.msra.mxu1 %v2013_v57 }
 0x536   : > { %1913 = vmatprep.subr.bf16.mxu1 %v2086_v1 }
 0x539   : > { %1914 = vmatpush3.bf16.msra.mxu1 %v2014_v17 }
 0x53a   : > { %1915 = vmatprep.subr.bf16.mxu1 %v2086_v1 }
 0x53d   : > { %1916 = vmatpush3.bf16.msra.mxu1 %v2015_v58 }
 0x5d0   : > { %v982_v21 = vpop.f32.mrf.mxu1 }
 0x5d1   : > { %v991_v22 = vsel %vm990_vm8, %v982_v21, 0.0 }
 0x5d2   : > { %v992_v23 = vadd.f32 %v991_v22, %v2354_v30  ;;  %v1855_v24 = vpop.f32.mrf.mxu1 }
 0x5d3   : > { %v1748_v24 = vld [vmem:[%s2504_s11] ss:$0 sm:$0xff] }
 0x5d4   : > { %v985_v25 = vpop.f32.mrf.mxu1 }
 0x5d6   : > { %v1856_v26 = vpop.f32.mrf.mxu1 }
 0x5d8   : > { %v1094_v27 = vpop.f32.mrf.mxu1 }
 0x5d9   : > { %v1103_v28 = vsel %vm1102_vm11, %v1094_v27, 0.0 }
 0x5da   : > { %v1104_v31 = vadd.f32 %v1103_v28, %v992_v23  ;;  %v1867_v32 = vpop.f32.mrf.mxu1 }
 0x5dc   : > { %v1097_v6 = vpop.f32.mrf.mxu1 }
 0x5de   : > { %v1868_v33 = vpop.f32.mrf.mxu1 }
 0x5e0   : > { %v1206_v30 = vpop.f32.mrf.mxu1 }
 0x5e1   : > { %v1215_v34 = vsel %vm1214_vm14, %v1206_v30, 0.0 }
 0x5e2   : > { %v1216_v35 = vadd.f32 %v1215_v34, %v1104_v31  ;;  %v1879_v36 = vpop.f32.mrf.mxu1 }
 0x5e4   : > { %v1217_v37 = vpack.c.bf16 %v1216_v35, %v1216_v35  ;;  %v1209_v38 = vpop.f32.mrf.mxu1 }
 0x5e6   : > { %v1880_v39 = vpop.f32.mrf.mxu1  ;;  %1898 = vmatmul.mubr.bf16.vlgmr.msra.gmra.mxu0 %v1217_v37 }
 0x5e7   : > { %1937 = vmatprep.mubr.msk.bf16.mxu0 %vm2087_vm1, %v2086_v1  ;;  %1922 = vmatpush3.bf16.msra.mxu0 %v2016_v59  ;;  %v1757_v39 = vld [vmem:[%s2505_s12] ss:$0 sm:$0xff] }
 0x5e8   : > { %1923 = vmatprep.subr.bf16.mxu0 %v2086_v1 }
 0x5eb   : > { %1924 = vmatpush3.bf16.msra.mxu0 %v2017_v60 }
 0x5ec   : > { %1925 = vmatprep.subr.bf16.mxu0 %v2086_v1 }
 0x5ef   : > { %1926 = vmatpush3.bf16.msra.mxu0 %v2018_v61 }
 0x5f0   : > { %1927 = vmatprep.subr.bf16.mxu0 %v2086_v1 }
 0x5f3   : > { %1928 = vmatpush3.bf16.msra.mxu0 %v2019_v62 }
 0x5f4   : > { %1929 = vmatprep.subr.bf16.mxu0 %v2086_v1 }
 0x5f7   : > { %1930 = vmatpush3.bf16.msra.mxu0 %v2020_v63 }
 0x5f8   : > { %1931 = vmatprep.subr.bf16.mxu0 %v2086_v1 }
 0x5fb   : > { %1932 = vmatpush3.bf16.msra.mxu0 %v2021_v0 }
 0x5fc   : > { %1933 = vmatprep.subr.bf16.mxu0 %v2086_v1 }
 0x5ff   : > { %1934 = vmatpush3.bf16.msra.mxu0 %v2022_v13 }
 0x600   : > { %1935 = vmatprep.subr.bf16.mxu0 %v2086_v1 }
 0x603   : > { %1936 = vmatpush3.bf16.msra.mxu0 %v2023_v14 }
 0x6a6   : > { %v1323_v41 = vpop.f32.mrf.mxu0 }
 0x6a7   : > { %v1324_v42 = vadd.f32 %v1728_v40, %v1323_v41  ;;  %v1758_v41 = vld [vmem:[%s2506_s13] ss:$0 sm:$0xff] }
 0x6a8   : > { %v1899_v43 = vpop.f32.mrf.mxu0 }
 0x6a9   : > { %v1331_v44 = vadd.f32 %v1324_v42, %v2281_v29 }
 0x6aa   : > { %v1326_v45 = vpop.f32.mrf.mxu0 }
 0x6ab   : > { %1332 = vadd.xlane.f32.xlu0 %v1331_v44 }
 0x6ac   : > { %v1900_v46 = vpop.f32.mrf.mxu0 }
 0x734   : > { %v1333_v49 = vpop.xlane.xlu0 %1332 }
 0x735   : > { %v1334_v50 = vmul.f32 0.03125, %v1333_v49 }
 0x737   : > { %v1335_v29 = vsub.f32 %v1331_v44, %v1334_v50 }
 0x739   : > { %v1336_v51 = vsel %vm1213_vm13, %v1335_v29, 0.0 }
 0x73a   : > { %v1337_v52 = vmul.f32 %v1336_v51, %v1336_v51 }
 0x73c   : > { %1338 = vadd.xlane.f32.xlu1 %v1337_v52 }
 0x7c5   : > { %v1339_v2 = vpop.xlane.xlu1 %1338 }
 0x7c6   : > { %v1340_v3 = vmul.f32 0.03125, %v1339_v2 }
 0x7c8   : > { %v1341_v4 = vadd.f32 1e-05, %v1340_v3 }
 0x7ca   : > { %2040 = vrsqrt.f32 %v1341_v4 }
 0x7d7   : > { %v2041_v5 = vpop.eup %2040 }
 0x7d8   : > { %v1343_v8 = vmul.f32 %v2041_v5, %v1336_v51 }
 0x7da   : > { %v1350_v10 = vmul.f32 %v1737_v7, %v1343_v8 }
 0x7dc   : > { %v1357_v11 = vadd.f32 %v1738_v9, %v1350_v10 }
 0x7de   : > { %v1358_v12 = vpack.c.bf16 %v1357_v11, %v1357_v11 }
 0x7e0   : > { %1918 = vmatmul.mubr.bf16.vlgmr.msra.gmra.mxu1 %v1358_v12 }
 0x8a0   : > { %v1464_v54 = vpop.f32.mrf.mxu1 }
 0x8a1   : > { %v1465_v16 = vadd.f32 %v1739_v15, %v1464_v54 }
 0x8a2   : > { %v1919_v18 = vpop.f32.mrf.mxu1 }
 0x8a3   : > { %v1470_v19 = vmax.f32 %v1465_v16, 0.0 }
 0x8a4   : > { %v1467_v21 = vpop.f32.mrf.mxu1 }
 0x8a5   : > { %v1471_v22 = vpack.c.bf16 %v1470_v19, %v1470_v19 }
 0x8a6   : > { %v1920_v23 = vpop.f32.mrf.mxu1 }
 0x8a7   : > { %1938 = vmatmul.mubr.bf16.vlgmr.msra.gmra.mxu0 %v1471_v22 }
 0x967   : > { %v1577_v25 = vpop.f32.mrf.mxu0 }
 0x968   : > { %v1578_v1 = vadd.f32 %v1748_v24, %v1577_v25 }
 0x969   : > { %v1939_v26 = vpop.f32.mrf.mxu0 }
 0x96a   : > { %v1585_v27 = vadd.f32 %v1578_v1, %v1357_v11 }
 0x96b   : > { %v1580_v28 = vpop.f32.mrf.mxu0 }
 0x96c   : > { %1586 = vadd.xlane.f32.xlu0 %v1585_v27 }
 0x96d   : > { %v1940_v31 = vpop.f32.mrf.mxu0 }
 0x9f5   : > { %v1587_v32 = vpop.xlane.xlu0 %1586 }
 0x9f6   : > { %v1588_v6 = vmul.f32 0.03125, %v1587_v32 }
 0x9f8   : > { %v1589_v33 = vsub.f32 %v1585_v27, %v1588_v6 }
 0x9fa   : > { %v1590_v30 = vsel %vm1213_vm13, %v1589_v33, 0.0 }
 0x9fb   : > { %v1591_v34 = vmul.f32 %v1590_v30, %v1590_v30 }
 0x9fd   : > { %1592 = vadd.xlane.f32.xlu1 %v1591_v34 }
 0xa86   : > { %v1593_v35 = vpop.xlane.xlu1 %1592 }
 0xa87   : > { %v1594_v36 = vmul.f32 0.03125, %v1593_v35 }
 0xa89   : > { %v1595_v37 = vadd.f32 1e-05, %v1594_v36 }
 0xa8b   : > { %2042 = vrsqrt.f32 %v1595_v37 }
 0xa98   : > { %v2043_v38 = vpop.eup %2042 }
 0xa99   : > { %v1597_v40 = vmul.f32 %v2043_v38, %v1590_v30 }
 0xa9b   : > { %v1604_v42 = vmul.f32 %v1757_v39, %v1597_v40 }
 0xa9d   : > { %v1611_v20 = vadd.f32 %v1758_v41, %v1604_v42 }
 0xa9f   : > { %1612 = vst [vmem:[%s491_s25] sm:$0xff] %v1611_v20 }
 0xaa0 PF: > { %s25_s29 = sadd.s32 1, %s2080_s29  }
 0xaa1   : > { %p22_p1 = scmp.ge.s32.totalorder %s25_s29, 4  }
 0xaa3   :  { %24 = sbr.rel (!%p22_p1) target bundleno = 1 (0x1), region = 114 }
 0xaa8   :  { %1632 = vsyncpa [#allocation3], 1 }
 0xaa9   :  { %1634 = vsyncpa [#allocation3 + $0x1], 1 }

// kernel: transformer_forward.5
= control target key start
LH: loop header
LB: loop body
LE: loop exit
PB: predicated region body
PF: predicated region fallthrough
CT: control target
= control target key end

     0   :  { %19 = vsyncpa [#allocation3], 0  ;;  %s3034_s0 = inlined_call_operand.vmem [shape: f32[2,8,128], index: 0, kind: input, shape index: {}]   ;;  %s3035_s1 = inlined_call_operand.vmem [shape: f32[2,1,8], index: 1, kind: input, shape index: {}]   ;;  %s3036_s2 = inlined_call_operand.vmem [shape: bf16[128,384], index: 2, kind: input, shape index: {}]   ;;  %s3037_s3 = inlined_call_operand.hbm [shape: f32[1,384], index: 3, kind: input, shape index: {}]   ;;  %s3038_s4 = inlined_call_operand.vmem [shape: bf16[128,128], index: 4, kind: input, shape index: {}]   ;;  %s3039_s5 = inlined_call_operand.hbm [shape: f32[1,128], index: 5, kind: input, shape index: {}]   ;;  %s3040_s6 = inlined_call_operand.hbm [shape: f32[1,128], index: 6, kind: input, shape index: {}]   ;;  %s3041_s7 = inlined_call_operand.hbm [shape: f32[1,128], index: 7, kind: input, shape index: {}]   ;;  %s3042_s8 = inlined_call_operand.vmem [shape: bf16[128,128], index: 8, kind: input, shape index: {}]   ;;  %s3043_s9 = inlined_call_operand.hbm [shape: f32[1,128], index: 9, kind: input, shape index: {}]   ;;  %s3044_s10 = inlined_call_operand.vmem [shape: bf16[128,128], index: 10, kind: input, shape index: {}]   ;;  %s3045_s11 = inlined_call_operand.hbm [shape: f32[1,128], index: 11, kind: input, shape index: {}]   ;;  %s3046_s12 = inlined_call_operand.hbm [shape: f32[1,128], index: 12, kind: input, shape index: {}]   ;;  %s3047_s13 = inlined_call_operand.hbm [shape: f32[1,128], index: 13, kind: input, shape index: {}]   ;;  %s3048_s14 = inlined_call_operand.vmem [shape: f32[2,8,128], index: 14, kind: output, shape index: {}]  }
   0x1   :  { %20 = vsyncpa [#allocation5], 0 }
   0x2   :  { %21 = vsyncpa [#allocation8], 0 }
   0x3   :  { %22 = vsyncpa [#allocation11], 0 }
   0x4   :  { %23 = vsyncpa [#allocation14], 0  ;;  %s2604_s29 = smov 0  }
   0x5 LB: > { %s2515_s30 = smov [#allocation4]   ;;  %s2610_s16 = sadd.s32 4294967295, %s2513_s29   ;;  %s2513_s29 = sphi %s2604_s29, %s29_s29  }
   0x6   : > { %s394_s15 = sshll.u32 %s2515_s30, 4  ;;  %p1842_p0 = scmp.ge.s32.totalorder %s2513_s29, 1  ;;  %s395_s15 = int_to_ptr.vmem [resolvable:$true] %s394_s15 }
   0x7   : > { %p364_p1 = scmp.lt.s32.totalorder %s2513_s29, 3  ;;  %p3049_p2 = scmp.eq.s32.totalorder %s2610_s16, 0 }
   0x8   : > { %s2516_s18 = smov [#allocation7]   ;;  %s2517_s20 = smov [#allocation10]  }
   0x9   : > { %p2615_p3 = pnand %p1842_p0, %p364_p1  ;;  %s416_s19 = sshll.u32 %s2516_s18, 4  ;;  %s2621_s19 = int_to_ptr.vmem [resolvable:$true] %s416_s19 }
   0xa   : > { %s444_s21 = sshll.u32 %s2517_s20, 4  ;;  %s2518_s23 = smov [#allocation2]   ;;  %s2629_s21 = int_to_ptr.vmem [resolvable:$true] %s444_s21 }
   0xb   : > { %p2140_p4 = pneg %p2615_p3  ;;  %s380_s24 = sshll.u32 %s2518_s23, 4  ;;  %s2631_s24 = int_to_ptr.vmem [resolvable:$true] %s380_s24 }
   0xc   : > { %s2290_s26 = scalar_lea.vmem %s395_s15, 16  ;;  %s2297_s27 = scalar_lea.vmem %s395_s15, 32 }
   0xd   : > { %p2625_p5 = pnand %p3049_p2, %p2140_p4  ;;  %p2291_p7 = scmp.ne.s32.totalorder %s395_s15, %s2290_s26 }
   0xe   : > { %p2298_p10 = scmp.lt.s32.totalorder %s395_s15, %s395_s15  ;;  %p2299_p11 = scmp.lt.s32.totalorder %s2297_s27, %s2290_s26 }
   0xf   : > { %p2635_p6 = pneg %p2625_p5 }
  0x10   : > { %p2300_p12 = por %p2299_p11, %p2298_p10 }
  0x11   : > { %p2293_p8 = pnand %p2291_p7, %p2635_p6 }
  0x13   : > { %p2294_p9 = pneg %p2293_p8 }
  0x15   : > { %p2301_p13 = pnand %p2300_p12, %p2294_p9 }
  0x17   : > { %2304 = shalt.err (!%p2301_p13)
}
  0x18   : > { %2146 = dma.hbm_to_vmem [thread:$0]  (!%p2625_p5), %s3039_s5, 16, %s395_s15, [#allocation5]  }
  0x19   : > { %s2316_s18 = scalar_lea.vmem %s2621_s19, 16  ;;  %s2323_s20 = scalar_lea.vmem %s2621_s19, 32 }
  0x1a   : > { %p2317_p0 = scmp.ne.s32.totalorder %s2621_s19, %s2316_s18  ;;  %p2324_p7 = scmp.lt.s32.totalorder %s2621_s19, %s2621_s19 }
  0x1b   : > { %p2325_p8 = scmp.lt.s32.totalorder %s2323_s20, %s2316_s18 }
  0x1c   : > { %p2319_p1 = pnand %p2317_p0, %p2635_p6 }
  0x1d   : > { %p2326_p9 = por %p2325_p8, %p2324_p7 }
  0x1e   : > { %p2320_p4 = pneg %p2319_p1 }
  0x20   : > { %p2327_p10 = pnand %p2326_p9, %p2320_p4 }
  0x22   : > { %2330 = shalt.err (!%p2327_p10)
}
  0x23   : > { %2152 = dma.hbm_to_vmem [thread:$0]  (!%p2625_p5), %s3041_s7, 16, %s2621_s19, [#allocation8]  }
  0x24   : > { %s2342_s15 = scalar_lea.vmem %s2629_s21, 16  ;;  %s2349_s27 = scalar_lea.vmem %s2629_s21, 32 }
  0x25   : > { %p2343_p11 = scmp.ne.s32.totalorder %s2629_s21, %s2342_s15  ;;  %p2350_p0 = scmp.lt.s32.totalorder %s2629_s21, %s2629_s21 }
  0x26   : > { %p2351_p1 = scmp.lt.s32.totalorder %s2349_s27, %s2342_s15 }
  0x27   : > { %p2345_p12 = pnand %p2343_p11, %p2635_p6 }
  0x28   : > { %p2352_p4 = por %p2351_p1, %p2350_p0 }
  0x29   : > { %p2346_p13 = pneg %p2345_p12 }
  0x2b   : > { %p2353_p7 = pnand %p2352_p4, %p2346_p13 }
  0x2d   : > { %2356 = shalt.err (!%p2353_p7)
}
  0x2e   : > { %2158 = dma.hbm_to_vmem [thread:$0]  (!%p2625_p5), %s3045_s11, 16, %s2629_s21, [#allocation11]  }
  0x2f   : > { %s2368_s19 = scalar_lea.vmem %s2631_s24, 48  ;;  %s2375_s18 = scalar_lea.vmem %s2631_s24, 64 }
  0x30   : > { %p2369_p8 = scmp.ne.s32.totalorder %s2631_s24, %s2368_s19  ;;  %p2376_p11 = scmp.lt.s32.totalorder %s2631_s24, %s2631_s24 }
  0x31   : > { %p2377_p12 = scmp.lt.s32.totalorder %s2375_s18, %s2368_s19 }
  0x32   : > { %p2371_p9 = pnand %p2369_p8, %p2635_p6 }
  0x33   : > { %p2378_p13 = por %p2377_p12, %p2376_p11 }
  0x34   : > { %p2372_p10 = pneg %p2371_p9 }
  0x36   : > { %p2379_p0 = pnand %p2378_p13, %p2372_p10 }
  0x38   : > { %2382 = shalt.err (!%p2379_p0)
}
  0x39   : > { %2143 = dma.hbm_to_vmem [thread:$0]  (!%p2625_p5), %s3037_s3, 48, %s2631_s24, [#allocation3]  }
  0x3a   : > { %s2519_s21 = smov [#allocation6]   ;;  %s2520_s15 = smov [#allocation9]  }
  0x3b   : > { %s405_s26 = sshll.u32 %s2519_s21, 4  ;;  %s430_s27 = sshll.u32 %s2520_s15, 4  ;;  %s406_s26 = int_to_ptr.vmem [resolvable:$true] %s405_s26  ;;  %s431_s27 = int_to_ptr.vmem [resolvable:$true] %s430_s27 }
  0x3c   : > { %s2394_s28 = scalar_lea.vmem %s406_s26, 16  ;;  %s2401_s30 = scalar_lea.vmem %s406_s26, 32 }
  0x3d   : > { %p2395_p1 = scmp.ne.s32.totalorder %s406_s26, %s2394_s28  ;;  %p2402_p8 = scmp.lt.s32.totalorder %s406_s26, %s406_s26 }
  0x3e   : > { %p2403_p9 = scmp.lt.s32.totalorder %s2401_s30, %s2394_s28 }
  0x3f   : > { %p2397_p4 = pnand %p2395_p1, %p2635_p6 }
  0x40   : > { %p2404_p10 = por %p2403_p9, %p2402_p8 }
  0x41   : > { %p2398_p7 = pneg %p2397_p4 }
  0x43   : > { %p2405_p11 = pnand %p2404_p10, %p2398_p7 }
  0x45   : > { %2408 = shalt.err (!%p2405_p11)
}
  0x46   : > { %2149 = dma.hbm_to_vmem [thread:$0]  (!%p2625_p5), %s3040_s6, 16, %s406_s26, [#allocation5]  }
  0x47   : > { %s2420_s18 = scalar_lea.vmem %s431_s27, 16  ;;  %s2427_s20 = scalar_lea.vmem %s431_s27, 32 }
  0x48   : > { %p2421_p12 = scmp.ne.s32.totalorder %s431_s27, %s2420_s18  ;;  %p2428_p1 = scmp.lt.s32.totalorder %s431_s27, %s431_s27 }
  0x49   : > { %p2429_p4 = scmp.lt.s32.totalorder %s2427_s20, %s2420_s18 }
  0x4a   : > { %p2423_p13 = pnand %p2421_p12, %p2635_p6 }
  0x4b   : > { %p2430_p2 = por %p2429_p4, %p2428_p1 }
  0x4c   : > { %p2424_p0 = pneg %p2423_p13 }
  0x4e   : > { %p2431_p8 = pnand %p2430_p2, %p2424_p0 }
  0x50   : > { %2434 = shalt.err (!%p2431_p8)
}
  0x51   : > { %2155 = dma.hbm_to_vmem [thread:$0]  (!%p2625_p5), %s3043_s9, 16, %s431_s27, [#allocation8]  }
  0x52   : > { %s2521_s26 = smov [#allocation12]   ;;  %s2522_s28 = smov [#allocation13]  }
  0x53   : > { %s455_s15 = sshll.u32 %s2521_s26, 4  ;;  %s466_s30 = sshll.u32 %s2522_s28, 4  ;;  %s456_s15 = int_to_ptr.vmem [resolvable:$true] %s455_s15  ;;  %s467_s30 = int_to_ptr.vmem [resolvable:$true] %s466_s30 }
  0x54   : > { %s2446_s19 = scalar_lea.vmem %s456_s15, 16  ;;  %s2453_s24 = scalar_lea.vmem %s456_s15, 32 }
  0x55   : > { %p2447_p7 = scmp.ne.s32.totalorder %s456_s15, %s2446_s19  ;;  %p2454_p2 = scmp.lt.s32.totalorder %s456_s15, %s456_s15 }
  0x56   : > { %p2455_p11 = scmp.lt.s32.totalorder %s2453_s24, %s2446_s19 }
  0x57   : > { %p2449_p9 = pnand %p2447_p7, %p2635_p6 }
  0x58   : > { %p2456_p12 = por %p2455_p11, %p2454_p2 }
  0x59   : > { %p2450_p10 = pneg %p2449_p9 }
  0x5b   : > { %p2457_p13 = pnand %p2456_p12, %p2450_p10 }
  0x5d   : > { %2460 = shalt.err (!%p2457_p13)
}
  0x5e   : > { %2161 = dma.hbm_to_vmem [thread:$0]  (!%p2625_p5), %s3046_s12, 16, %s456_s15, [#allocation11]  }
  0x5f   : > { %s2472_s20 = scalar_lea.vmem %s467_s30, 16  ;;  %s2479_s23 = scalar_lea.vmem %s467_s30, 32 }
  0x60   : > { %p2473_p0 = scmp.ne.s32.totalorder %s467_s30, %s2472_s20  ;;  %p2480_p8 = scmp.lt.s32.totalorder %s467_s30, %s467_s30 }
  0x61   : > { %p2481_p7 = scmp.lt.s32.totalorder %s2479_s23, %s2472_s20 }
  0x62   : > { %p2475_p1 = pnand %p2473_p0, %p2635_p6 }
  0x63   : > { %p2482_p9 = por %p2481_p7, %p2480_p8 }
  0x64   : > { %p2476_p4 = pneg %p2475_p1 }
  0x66   : > { %p2483_p2 = pnand %p2482_p9, %p2476_p4 }
  0x68   : > { %2486 = shalt.err (!%p2483_p2)
}
  0x69   : > { %2164 = dma.hbm_to_vmem [thread:$0]  (!%p2625_p5), %s3047_s13, 16, %s467_s30, [#allocation14]  }
  0x6a   : > { %492 = sbr.rel (%p2615_p3) target bundleno = 2819 (0xb03), region = 76  ;;  %p3053_p10 = scmp.eq.s32.totalorder (!%p2615_p3), %s2610_s16, 0 }
  0x6f   : > { %2492 = dma.done.wait (%p3053_p10), [#allocation3], 48   ;;  %p3054_p6 = pmov %p3053_p10 }
  0x71   : > { %2494 = vsyncadd (%p3054_p6), [#allocation3], 4294967248  ;;  %p3055_p11 = pmov %p3054_p6 }
  0x72   : > { %p3056_p12 = pmov %p3054_p6 }
  0x73   : > { %2496 = dma.done.wait (%p3055_p11), [#allocation5], 32  }
  0x74   : > { %2498 = vsyncadd (%p3056_p12), [#allocation5], 4294967264  ;;  %p3057_p13 = pmov %p3054_p6 }
  0x75   : > { %p3058_p5 = pmov %p3054_p6 }
  0x76   : > { %2500 = dma.done.wait (%p3057_p13), [#allocation8], 32  }
  0x77   : > { %2502 = vsyncadd (%p3058_p5), [#allocation8], 4294967264  ;;  %p3059_p3 = pmov %p3058_p5 }
  0x79   : > { %2504 = dma.done.wait (%p3059_p3), [#allocation11], 32   ;;  %p3060_p0 = pmov %p3059_p3 }
  0x7b   : > { %2506 = vsyncadd (%p3060_p0), [#allocation11], 4294967264  ;;  %p3061_p1 = pmov %p3060_p0 }
  0x7c   : > { %p3062_p4 = pmov %p3060_p0 }
  0x7d   : > { %2508 = dma.done.wait (%p3061_p1), [#allocation14], 16  }
  0x7e   : > { %2510 = vsyncadd (%p3062_p4), [#allocation14], 4294967280  ;;  %v2523_v0 = vmov 0   ;;  %v2524_v1 = vmov 0.0   ;;  %v2203_v2 = vld [vmem:[%s3036_s2 + $0xac] ss:$12 sps:$4 sm:$0xff]   ;;  %v615_v6 = vlaneseq }
  0x7f   : > { %790 = vmatprep.mubr.bf16.mxu0 %v2523_v0  ;;  %1980 = vmatprep.subr.bf16.mxu1 %v2524_v1  ;;  %v2205_v3 = vld [vmem:[%s3036_s2 + $0xa8] ss:$12 sps:$4 sm:$0xff]   ;;  %p567_p8 = scmp.lt.s32.totalorder %s2610_s16, 1  ;;  %v2208_v5 = vld [vmem:[%s3036_s2 + $0x90] ss:$12 sps:$4 sm:$0xff]   ;;  %vm2525_vm1 = vmmov 0  }
  0x80   : > { %758 = vmatprep.subr.bf16.mxu0 %v2203_v2  ;;  %v2206_v4 = vld [vmem:[%s3036_s2 + $0x94] ss:$12 sps:$4 sm:$0xff]   ;;  %v2209_v7 = vld [vmem:[%s3036_s2 + $0x7c] ss:$12 sps:$4 sm:$0xff]   ;;  %v2211_v8 = vld [vmem:[%s3036_s2 + $0x78] ss:$12 sps:$4 sm:$0xff]   ;;  %1996 = vmatprep.mubr.msk.bf16.mxu1 %vm2525_vm1, %v2524_v1 }
  0x81   : > { %759 = vmatpush1.bf16.msra.mxu0 %v2205_v3  ;;  %s3064_s16 = smov (!%p567_p8, %s2610_s16), 1  ;;  %v2763_v9 = vshrl.u32 %v615_v6, 7  ;;  %v2212_v10 = vld [vmem:[%s3036_s2 + $0x64] ss:$12 sps:$4 sm:$0xff]   ;;  %v2214_v11 = vld [vmem:[%s3036_s2 + $0x60] ss:$12 sps:$4 sm:$0xff]  }
  0x82   : > { %760 = vmatprep.subr.bf16.mxu0 %v2206_v4  ;;  %s573_s17 = scalar_lea.vmem %s3035_s1, %s3064_s16  ;;  %v2215_v12 = vld [vmem:[%s3036_s2 + $0x4c] ss:$12 sps:$4 sm:$0xff]   ;;  %v2227_v16 = vld [vmem:[%s3036_s2 + $0xb0] ss:$12 sps:$4 sm:$0xff]   ;;  %v2217_v19 = vld [vmem:[%s3036_s2 + $0x48] ss:$12 sps:$4 sm:$0xff]  }
  0x83   : > { %v839_v13 = vld [vmem:[%s573_s17] sm:$0x1]  ;;  %v617_v14 = vsub.s32 0, %v2763_v9  ;;  %1981 = vmatpush3.bf16.msra.mxu1 %v2227_v16  ;;  %v2228_v18 = vld [vmem:[%s3036_s2 + $0x98] ss:$12 sps:$4 sm:$0xff]   ;;  %s1861_s26 = sshll.u32 %s3064_s16, 3 }
  0x84   : > { %vm840_vm0 = vcmp.gt.f32.partialorder %v839_v13, 0.5  ;;  %1982 = vmatprep.subr.bf16.mxu1 %v2524_v1  ;;  %v2218_v20 = vld [vmem:[%s3036_s2 + $0x34] ss:$12 sps:$4 sm:$0xff]   ;;  %v2220_v21 = vld [vmem:[%s3036_s2 + $0x30] ss:$12 sps:$4 sm:$0xff]   ;;  %s570_s15 = scalar_lea.vmem %s3034_s0, %s1861_s26  ;;  %v621_v34 = vsub.s32 1, %v2763_v9 }
  0x85   : > { %761 = vmatpush1.bf16.msra.mxu0 %v2208_v5  ;;  %v841_v15 = vsel %vm840_vm0, 1, %v2523_v0  ;;  %v2229_v22 = vld [vmem:[%s3036_s2 + $0x80] ss:$12 sps:$4 sm:$0xff]   ;;  %v2221_v23 = vld [vmem:[%s3036_s2 + $0x1c] ss:$12 sps:$4 sm:$0xff]   ;;  %vm852_vm2 = vcmask 64512  }
  0x86   : > { %762 = vmatprep.subr.bf16.mxu0 %v2209_v7  ;;  %v2778_v17 = vrot.slane %v841_v15, %v617_v14  ;;  %v2230_v24 = vld [vmem:[%s3036_s2 + $0x68] ss:$12 sps:$4 sm:$0xff]   ;;  %v2223_v25 = vld [vmem:[%s3036_s2 + $0x18] ss:$12 sps:$4 sm:$0xff]   ;;  %v2231_v27 = vld [vmem:[%s3036_s2 + $0x50] ss:$12 sps:$4 sm:$0xff]  }
  0x87   : > { %1983 = vmatpush3.bf16.msra.mxu1 %v2228_v18  ;;  %v2224_v26 = vld [vmem:[%s3036_s2 + $0x4] ss:$12 sps:$4 sm:$0xff]   ;;  %v2226_v28 = vld [vmem:[%s3036_s2] ss:$12 sps:$4 sm:$0xff]   ;;  %v2234_v33 = vld [vmem:[%s3036_s2 + $0x8] ss:$12 sps:$4 sm:$0xff]  }
  0x88   : > { %1984 = vmatprep.subr.bf16.mxu1 %v2524_v1  ;;  %v2822_v29 = vld [vmem:[%s570_s15] sm:$0xff]  ;;  %s2526_s22 = smov 120   ;;  %s2527_s25 = smov 112   ;;  %v625_v47 = vsub.s32 2, %v2763_v9  ;;  %vm916_vm3 = vcmask 1043456   ;;  %vm846_vm4 = vcmp.eq.s32.totalorder %v2778_v17, 1 }
  0x89   : > { %763 = vmatpush1.bf16.msra.mxu0 %v2211_v8  ;;  %v2232_v30 = vld [vmem:[%s3036_s2 + $0x38] ss:$12 sps:$4 sm:$0xff]   ;;  %v580_v31 = vpack.c.bf16 %v2822_v29, %v2822_v29  ;;  %v2233_v32 = vld [vmem:[%s3036_s2 + $0x20] ss:$12 sps:$4 sm:$0xff]   ;;  %s2528_s15 = smov 104  }
  0x8a   : > { %764 = vmatprep.subr.bf16.mxu0 %v2212_v10  ;;  %v613_v35 = vld [vmem:[#allocation2] sm:$0x7] }
  0x8b   : > { %1985 = vmatpush3.bf16.msra.mxu1 %v2229_v22  ;;  %v622_v36 = vrot.slane %v613_v35, %v621_v34  ;;  %v618_v38 = vrot.slane %v613_v35, %v617_v14  ;;  %v626_v48 = vrot.slane %v613_v35, %v625_v47 }
  0x8c   : > { %1986 = vmatprep.subr.bf16.mxu1 %v2524_v1 }
  0x8d   : > { %765 = vmatpush1.bf16.msra.mxu0 %v2214_v11 }
  0x8e   : > { %766 = vmatprep.subr.bf16.mxu0 %v2215_v12 }
  0x8f   : > { %1987 = vmatpush3.bf16.msra.mxu1 %v2230_v24 }
  0x90   : > { %1988 = vmatprep.subr.bf16.mxu1 %v2524_v1 }
  0x91   : > { %767 = vmatpush1.bf16.msra.mxu0 %v2217_v19 }
  0x92   : > { %768 = vmatprep.subr.bf16.mxu0 %v2218_v20  ;;  %v2886_v20 = vand.u32 127, %v615_v6 }
  0x93   : > { %1989 = vmatpush3.bf16.msra.mxu1 %v2231_v27 }
  0x94   : > { %1990 = vmatprep.subr.bf16.mxu1 %v2524_v1  ;;  %vm961_vm5 = vcmp.lt.s32.totalorder %v2886_v20, 8  ;;  %vm1074_vm6 = vcmp.ge.s32.totalorder %v2886_v20, 8  ;;  %vm1075_vm7 = vcmp.lt.s32.totalorder %v2886_v20, 16  ;;  %vm1186_vm9 = vcmp.ge.s32.totalorder %v2886_v20, 16 }
  0x95   : > { %769 = vmatpush1.bf16.msra.mxu0 %v2220_v21  ;;  %vm1076_vm8 = vmand %vm1074_vm6, %vm1075_vm7  ;;  %vm1187_vm10 = vcmp.lt.s32.totalorder %v2886_v20, 24  ;;  %vm1298_vm12 = vcmp.ge.s32.totalorder %v2886_v20, 24  ;;  %vm1299_vm13 = vcmp.lt.s32.totalorder %v2886_v20, 32 }
  0x96   : > { %770 = vmatprep.subr.bf16.mxu0 %v2221_v23  ;;  %vm1188_vm11 = vmand %vm1186_vm9, %vm1187_vm10 }
  0x97   : > { %1991 = vmatpush3.bf16.msra.mxu1 %v2232_v30  ;;  %vm1300_vm14 = vmand %vm1298_vm12, %vm1299_vm13 }
  0x98   : > { %1992 = vmatprep.subr.bf16.mxu1 %v2524_v1 }
  0x99   : > { %771 = vmatpush1.bf16.msra.mxu0 %v2223_v25 }
  0x9a   : > { %772 = vmatprep.subr.bf16.mxu0 %v2224_v26 }
  0x9b   : > { %1993 = vmatpush3.bf16.msra.mxu1 %v2233_v32 }
  0x9c   : > { %1994 = vmatprep.subr.bf16.mxu1 %v2524_v1 }
  0x9d   : > { %773 = vmatpush1.bf16.msra.mxu0 %v2226_v28 }
  0x9e   : > { %2024 = vmatprep.subr.bf16.mxu0 %v2524_v1 }
  0x9f   : > { %1995 = vmatpush3.bf16.msra.mxu1 %v2234_v33 }
  0xa0   : > { %791 = vmatmul.mubr.bf16.vlgmr.msra.gmra.mxu0 %v580_v31  ;;  %2000 = vmatprep.subr.bf16.mxu1 %v2524_v1 }
  0xa1   : > { %2026 = vmatprep.mubr.msk.bf16.mxu0 %vm2525_vm1, %v2524_v1 }
  0xa2   : > { %1997 = vmatmul.mubr.bf16.vlgmr.msra.gmra.mxu1 %v580_v31 }
  0xa3   : > { %2002 = vmatprep.mubr.msk.bf16.mxu1 %vm2525_vm1, %v2524_v1 }
 0x160   : > { %v792_v37 = vpop.f32.mrf.mxu0 }
 0x161   : > { %v793_v42 = vadd.f32 %v792_v37, %v618_v38 }
 0x162   : > { %v794_v39 = vpop.f32.mrf.mxu0  ;;  %v833_v49 = vpop.f32.mrf.mxu1 }
 0x163   : > { %v795_v40 = vadd.f32 %v794_v39, %v622_v36  ;;  %v850_v46 = vpack.c.bf16 %v793_v42, %v793_v42  ;;  %v834_v50 = vadd.f32 %v833_v49, %v626_v48 }
 0x164   : > { %v796_v41 = vpop.f32.mrf.mxu0  ;;  %v1998_v51 = vpop.f32.mrf.mxu1 }
 0x165   : > { %v851_v43 = vpack.c.bf16 %v795_v40, %v795_v40  ;;  %v847_v52 = vpack.c.bf16 %v834_v50, %v834_v50 }
 0x166   : > { %v797_v44 = vpop.f32.mrf.mxu0  ;;  %v836_v53 = vpop.f32.mrf.mxu1 }
 0x167   : > { %969 = vrot.lane.b32.xlu1 %v851_v43, %s2526_s22  ;;  %v857_v45 = vsel %vm852_vm2, %v851_v43, 0  ;;  %v2855_v54 = vsel %vm916_vm3, %v847_v52, 0 }
 0x168   : > { %2001 = vmatpush3.bf16.xpose.msra.mxu1 %v857_v45  ;;  %v1999_v55 = vpop.f32.mrf.mxu1 }
 0x169   : > { %2006 = vmatprep.subr.bf16.mxu1 %v2524_v1 }
 0x16b   : > { %966 = vrot.lane.b32.xlu1 %v850_v46, %s2526_s22 }
 0x16f   : > { %1079 = vrot.lane.b32.xlu1 %v850_v46, %s2527_s25  ;;  %2003 = vmatmul.mubr.msk.bf16.vlgmr.msra.gmra.mxu1 %vm852_vm2, %v850_v46 }
 0x170   : > { %2008 = vmatprep.mubr.msk.bf16.mxu1 %vm2525_vm1, %v2524_v1  ;;  %2007 = vmatpush3.bf16.msra.mxu1 %v2855_v54 }
 0x171   : > { %2012 = vmatprep.subr.bf16.mxu1 %v2524_v1 }
 0x173   : > { %1193 = vrot.lane.b32.xlu1 %v851_v43, %s2528_s15 }
 0x177   : > { %1191 = vrot.lane.b32.xlu1 %v850_v46, %s2528_s15 }
 0x1d9   : > { %v970_v5 = vpop.permute.xlu1 %969 }
 0x1da   : > { %v975_v18 = vsel %vm852_vm2, %v970_v5, 0 }
 0x1dd   : > { %v967_v7 = vpop.permute.xlu1 %966 }
 0x1e1   : > { %v1080_v9 = vpop.permute.xlu1 %1079 }
 0x1e5   : > { %v1194_v12 = vpop.permute.xlu1 %1193 }
 0x1e6   : > { %v1199_v13 = vsel %vm852_vm2, %v1194_v12, 0 }
 0x1e9   : > { %v1192_v19 = vpop.permute.xlu1 %1191 }
 0x22f   : > { %v893_v56 = vpop.f32.mrf.mxu1 }
 0x230   : > { %v899_v57 = vmul.f32 0.35355338, %v893_v56 }
 0x231   : > { %v2004_v58 = vpop.f32.mrf.mxu1 }
 0x232   : > { %v900_v59 = vsel %vm846_vm4, %v899_v57, -1e+09 }
 0x233   : > { %v896_v60 = vpop.f32.mrf.mxu1  ;;  %v901_v61 = vsel %vm852_vm2, %v900_v59, -inf }
 0x234   : > { %902 = vmax.xlane.f32.xlu0 %v901_v61 }
 0x235   : > { %v2005_v62 = vpop.f32.mrf.mxu1 }
 0x236   : > { %v2235_v62 = vld [vmem:[%s3038_s4 + $0x38] sm:$0xff]  }
 0x2bd   : > { %v903_v63 = vpop.xlane.xlu0 %902 }
 0x2be   : > { %v904_v0 = vsub.f32 %v900_v59, %v903_v63  ;;  %v2236_v63 = vld [vmem:[%s3038_s4 + $0x30] sm:$0xff]  }
 0x2c0   : > { %v905_v2 = vmul.f32 1.442695, %v904_v0  ;;  %v2237_v0 = vld [vmem:[%s3038_s4 + $0x28] sm:$0xff]  }
 0x2c2   : > { %2259 = vpow2.f32 %v905_v2 }
 0x2cf   : > { %v2260_v3 = vpop.eup %2259 }
 0x2d0   : > { %v907_v4 = vsel %vm852_vm2, %v2260_v3, 0.0 }
 0x2d1   : > { %908 = vadd.xlane.f32.xlu0 %v907_v4 }
 0x2e7   : > { %1081 = vrot.lane.b32.xlu0 %v851_v43, %s2527_s25  ;;  %s577_s25 = scalar_lea.vmem %s3048_s14, %s1861_s26 }
 0x35a   : > { %v909_v8 = vpop.xlane.xlu0 %908 }
 0x35b   : > { %2261 = vrcp.f32 %v909_v8 }
 0x35e   : > { %v1082_v10 = vpop.permute.xlu0 %1081 }
 0x35f   : > { %v1087_v11 = vsel %vm852_vm2, %v1082_v10, 0 }
 0x360   : > { %2025 = vmatpush3.bf16.xpose.msra.mxu0 %v1087_v11 }
 0x361   : > { %2036 = vmatprep.subr.bf16.mxu0 %v2524_v1 }
 0x367   : > { %2027 = vmatmul.mubr.msk.bf16.vlgmr.msra.gmra.mxu0 %vm852_vm2, %v1080_v9 }
 0x368   : > { %v2262_v14 = vpop.eup %2261  ;;  %2037 = vmatpush3.bf16.xpose.msra.mxu0 %v1199_v13  ;;  %2038 = vmatprep.mubr.msk.bf16.mxu0 %vm2525_vm1, %v2524_v1 }
 0x369   : > { %v911_v15 = vmul.f32 %v2262_v14, %v2260_v3  ;;  %2048 = vmatprep.subr.bf16.mxu0 %v2524_v1 }
 0x36b   : > { %v912_v16 = vpack.c.bf16 %v911_v15, %v911_v15  ;;  %v2238_v15 = vld [vmem:[%s3038_s4 + $0x20] sm:$0xff]  }
 0x36d   : > { %2009 = vmatmul.mubr.msk.bf16.vlgmr.msra.gmra.mxu1 %vm852_vm2, %v912_v16  ;;  %v2240_v16 = vld [vmem:[%s3038_s4 + $0x10] sm:$0xff]  }
 0x36e   : > { %2013 = vmatpush3.bf16.xpose.msra.mxu1 %v975_v18  ;;  %2014 = vmatprep.mubr.msk.bf16.mxu1 %vm2525_vm1, %v2524_v1  ;;  %v2241_v18 = vld [vmem:[%s3038_s4 + $0x8] sm:$0xff]  }
 0x36f   : > { %2039 = vmatmul.mubr.msk.bf16.vlgmr.msra.gmra.mxu0 %vm852_vm2, %v1192_v19  ;;  %2018 = vmatprep.subr.bf16.mxu1 %v2524_v1  ;;  %v2242_v19 = vld [vmem:[%s3038_s4] sm:$0xff]  }
 0x370   : > { %2064 = vmatprep.mubr.msk.bf16.mxu0 %vm2525_vm1, %v2524_v1  ;;  %2049 = vmatpush3.bf16.msra.mxu0 %v2235_v62  ;;  %v2254_v62 = vld [vmem:[%s3044_s10 + $0x20] sm:$0xff]  }
 0x371   : > { %2050 = vmatprep.subr.bf16.mxu0 %v2524_v1 }
 0x374   : > { %2051 = vmatpush3.bf16.msra.mxu0 %v2236_v63  ;;  %v2255_v63 = vld [vmem:[%s3044_s10 + $0x18] sm:$0xff]  }
 0x375   : > { %2015 = vmatmul.mubr.msk.bf16.vlgmr.msra.gmra.mxu1 %vm852_vm2, %v967_v7  ;;  %2052 = vmatprep.subr.bf16.mxu0 %v2524_v1 }
 0x376   : > { %2019 = vmatpush3.bf16.msra.mxu1 %v2855_v54  ;;  %2020 = vmatprep.mubr.msk.bf16.mxu1 %vm2525_vm1, %v2524_v1 }
 0x377   : > { %2030 = vmatprep.subr.bf16.mxu1 %v2524_v1 }
 0x378   : > { %2053 = vmatpush3.bf16.msra.mxu0 %v2237_v0  ;;  %v2256_v0 = vld [vmem:[%s3044_s10 + $0x10] sm:$0xff]  }
 0x379   : > { %2054 = vmatprep.subr.bf16.mxu0 %v2524_v1 }
 0x37c   : > { %2055 = vmatpush3.bf16.msra.mxu0 %v2238_v15  ;;  %v1906_v15 = vld [vmem:[#allocation9] ss:$0 sm:$0xff] }
 0x37d   : > { %2056 = vmatprep.subr.bf16.mxu0 %v2524_v1 }
 0x427   : > { %v1123_v21 = vpop.f32.mrf.mxu0 }
 0x428   : > { %v1129_v22 = vmul.f32 0.35355338, %v1123_v21 }
 0x429   : > { %v2028_v23 = vpop.f32.mrf.mxu0 }
 0x42a   : > { %v1130_v24 = vsel %vm846_vm4, %v1129_v22, -1e+09 }
 0x42b   : > { %v1126_v25 = vpop.f32.mrf.mxu0  ;;  %v1131_v26 = vsel %vm852_vm2, %v1130_v24, -inf }
 0x42c   : > { %1132 = vmax.xlane.f32.xlu0 %v1131_v26 }
 0x42d   : > { %v954_v27 = vpop.f32.mrf.mxu1  ;;  %v2029_v28 = vpop.f32.mrf.mxu0 }
 0x42e   : > { %v2892_v30 = vsel %vm961_vm5, %v954_v27, 0.0 }
 0x42f   : > { %v2010_v31 = vpop.f32.mrf.mxu1  ;;  %v1235_v32 = vpop.f32.mrf.mxu0 }
 0x430   : > { %v1241_v38 = vmul.f32 0.35355338, %v1235_v32 }
 0x431   : > { %v957_v6 = vpop.f32.mrf.mxu1  ;;  %v2040_v33 = vpop.f32.mrf.mxu0 }
 0x432   : > { %v1242_v44 = vsel %vm846_vm4, %v1241_v38, -1e+09 }
 0x433   : > { %v2011_v34 = vpop.f32.mrf.mxu1  ;;  %v1238_v35 = vpop.f32.mrf.mxu0  ;;  %v1243_v46 = vsel %vm852_vm2, %v1242_v44, -inf }
 0x435   : > { %v1011_v36 = vpop.f32.mrf.mxu1  ;;  %v2041_v37 = vpop.f32.mrf.mxu0 }
 0x436   : > { %v1017_v39 = vmul.f32 0.35355338, %v1011_v36 }
 0x437   : > { %v2016_v40 = vpop.f32.mrf.mxu1 }
 0x438   : > { %v1018_v41 = vsel %vm846_vm4, %v1017_v39, -1e+09  ;;  %v1895_v40 = vld [vmem:[#allocation4] ss:$0 sm:$0xff] }
 0x439   : > { %v1014_v42 = vpop.f32.mrf.mxu1  ;;  %v1019_v43 = vsel %vm852_vm2, %v1018_v41, -inf }
 0x43a   : > { %1020 = vmax.xlane.f32.xlu1 %v1019_v43 }
 0x43b   : > { %v2017_v45 = vpop.f32.mrf.mxu1 }
 0x43e   : > { %1244 = vmax.xlane.f32.xlu1 %v1243_v46 }
 0x4b5   : > { %v1133_v47 = vpop.xlane.xlu0 %1132 }
 0x4b6   : > { %v1134_v48 = vsub.f32 %v1130_v24, %v1133_v47  ;;  %v2243_v47 = vld [vmem:[%s3042_s8 + $0x38] sm:$0xff]  }
 0x4b8   : > { %v1135_v49 = vmul.f32 1.442695, %v1134_v48  ;;  %v2244_v48 = vld [vmem:[%s3042_s8 + $0x30] sm:$0xff]  }
 0x4ba   : > { %2263 = vpow2.f32 %v1135_v49 }
 0x4c3   : > { %v1021_v50 = vpop.xlane.xlu1 %1020 }
 0x4c4   : > { %v1022_v51 = vsub.f32 %v1018_v41, %v1021_v50 }
 0x4c6   : > { %v1023_v52 = vmul.f32 1.442695, %v1022_v51 }
 0x4c7   : > { %v2264_v53 = vpop.eup %2263  ;;  %v1245_v55 = vpop.xlane.xlu1 %1244 }
 0x4c8   : > { %2265 = vpow2.f32 %v1023_v52  ;;  %v1246_v56 = vsub.f32 %v1242_v44, %v1245_v55  ;;  %v1137_v57 = vsel %vm852_vm2, %v2264_v53, 0.0  ;;  %v2246_v55 = vld [vmem:[%s3042_s8 + $0x20] sm:$0xff]  }
 0x4c9   : > { %1138 = vadd.xlane.f32.xlu0 %v1137_v57  ;;  %v2248_v57 = vld [vmem:[%s3042_s8 + $0x10] sm:$0xff]  }
 0x4ca   : > { %v1247_v17 = vmul.f32 1.442695, %v1246_v56  ;;  %v2247_v56 = vld [vmem:[%s3042_s8 + $0x18] sm:$0xff]  }
 0x4cc   : > { %2267 = vpow2.f32 %v1247_v17  ;;  %v2249_v17 = vld [vmem:[%s3042_s8 + $0x8] sm:$0xff]  }
 0x4d5   : > { %v2266_v58 = vpop.eup %2265 }
 0x4d6   : > { %v1025_v59 = vsel %vm852_vm2, %v2266_v58, 0.0 }
 0x4d7   : > { %1026 = vadd.xlane.f32.xlu1 %v1025_v59  ;;  %v2251_v59 = vld [vmem:[%s3044_s10 + $0x38] sm:$0xff]  }
 0x4d9   : > { %v2268_v60 = vpop.eup %2267 }
 0x4da   : > { %v1249_v61 = vsel %vm852_vm2, %v2268_v60, 0.0 }
 0x4db   : > { %1250 = vadd.xlane.f32.xlu1 %v1249_v61  ;;  %v2253_v61 = vld [vmem:[%s3044_s10 + $0x28] sm:$0xff]  }
 0x552   : > { %v1139_v3 = vpop.xlane.xlu0 %1138 }
 0x560   : > { %v1027_v2 = vpop.xlane.xlu1 %1026 }
 0x561   : > { %2269 = vrcp.f32 %v1027_v2 }
 0x562   : > { %2271 = vrcp.f32 %v1139_v3 }
 0x564   : > { %v1251_v4 = vpop.xlane.xlu1 %1250 }
 0x565   : > { %2273 = vrcp.f32 %v1251_v4 }
 0x56e   : > { %v2270_v5 = vpop.eup %2269 }
 0x56f   : > { %v1029_v7 = vmul.f32 %v2270_v5, %v2266_v58  ;;  %v2272_v9 = vpop.eup %2271  ;;  %v2250_v58 = vld [vmem:[%s3042_s8] sm:$0xff]  }
 0x570   : > { %v1141_v10 = vmul.f32 %v2272_v9, %v2264_v53  ;;  %v2245_v53 = vld [vmem:[%s3042_s8 + $0x28] sm:$0xff]  }
 0x571   : > { %v1030_v8 = vpack.c.bf16 %v1029_v7, %v1029_v7  ;;  %v1904_v7 = vld [vmem:[#allocation6] ss:$0 sm:$0xff]  ;;  %v1905_v9 = vld [vmem:[#allocation7] ss:$0 sm:$0xff] }
 0x572   : > { %v1142_v11 = vpack.c.bf16 %v1141_v10, %v1141_v10  ;;  %v2274_v12 = vpop.eup %2273 }
 0x573   : > { %2021 = vmatmul.mubr.msk.bf16.vlgmr.msra.gmra.mxu1 %vm852_vm2, %v1030_v8  ;;  %v1253_v13 = vmul.f32 %v2274_v12, %v2268_v60  ;;  %v2252_v60 = vld [vmem:[%s3044_s10 + $0x30] sm:$0xff]  }
 0x574   : > { %2031 = vmatpush3.bf16.msra.mxu1 %v2855_v54  ;;  %2032 = vmatprep.mubr.msk.bf16.mxu1 %vm2525_vm1, %v2524_v1 }
 0x575   : > { %2042 = vmatprep.subr.bf16.mxu1 %v2524_v1  ;;  %v1254_v14 = vpack.c.bf16 %v1253_v13, %v1253_v13  ;;  %v2257_v13 = vld [vmem:[%s3044_s10 + $0x8] sm:$0xff]  }
 0x57b   : > { %2033 = vmatmul.mubr.msk.bf16.vlgmr.msra.gmra.mxu1 %vm852_vm2, %v1142_v11 }
 0x57c   : > { %2043 = vmatpush3.bf16.msra.mxu1 %v2855_v54  ;;  %2044 = vmatprep.mubr.msk.bf16.mxu1 %vm2525_vm1, %v2524_v1  ;;  %v2239_v54 = vld [vmem:[%s3038_s4 + $0x18] sm:$0xff]  }
 0x57d   : > { %2068 = vmatprep.subr.bf16.mxu1 %v2524_v1  ;;  %2057 = vmatpush3.bf16.msra.mxu0 %v2239_v54 }
 0x57e   : > { %2058 = vmatprep.subr.bf16.mxu0 %v2524_v1 }
 0x581   : > { %2059 = vmatpush3.bf16.msra.mxu0 %v2240_v16 }
 0x582   : > { %2060 = vmatprep.subr.bf16.mxu0 %v2524_v1 }
 0x583   : > { %2045 = vmatmul.mubr.msk.bf16.vlgmr.msra.gmra.mxu1 %vm852_vm2, %v1254_v14  ;;  %v2258_v14 = vld [vmem:[%s3044_s10] sm:$0xff]  }
 0x584   : > { %2084 = vmatprep.mubr.msk.bf16.mxu1 %vm2525_vm1, %v2524_v1  ;;  %2069 = vmatpush3.bf16.msra.mxu1 %v2243_v47 }
 0x585   : > { %2061 = vmatpush3.bf16.msra.mxu0 %v2241_v18  ;;  %2070 = vmatprep.subr.bf16.mxu1 %v2524_v1 }
 0x586   : > { %2062 = vmatprep.subr.bf16.mxu0 %v2524_v1 }
 0x588   : > { %2071 = vmatpush3.bf16.msra.mxu1 %v2244_v48 }
 0x589   : > { %2063 = vmatpush3.bf16.msra.mxu0 %v2242_v19  ;;  %2072 = vmatprep.subr.bf16.mxu1 %v2524_v1 }
 0x58a   : > { %2088 = vmatprep.subr.bf16.mxu0 %v2524_v1 }
 0x58c   : > { %2073 = vmatpush3.bf16.msra.mxu1 %v2245_v53 }
 0x58d   : > { %2074 = vmatprep.subr.bf16.mxu1 %v2524_v1 }
 0x590   : > { %2075 = vmatpush3.bf16.msra.mxu1 %v2246_v55 }
 0x591   : > { %2076 = vmatprep.subr.bf16.mxu1 %v2524_v1 }
 0x594   : > { %2077 = vmatpush3.bf16.msra.mxu1 %v2247_v56 }
 0x595   : > { %2078 = vmatprep.subr.bf16.mxu1 %v2524_v1 }
 0x598   : > { %2079 = vmatpush3.bf16.msra.mxu1 %v2248_v57 }
 0x599   : > { %2080 = vmatprep.subr.bf16.mxu1 %v2524_v1 }
 0x59c   : > { %2081 = vmatpush3.bf16.msra.mxu1 %v2249_v17 }
 0x59d   : > { %2082 = vmatprep.subr.bf16.mxu1 %v2524_v1 }
 0x5a0   : > { %2083 = vmatpush3.bf16.msra.mxu1 %v2250_v58 }
 0x633   : > { %v1068_v21 = vpop.f32.mrf.mxu1 }
 0x634   : > { %v1077_v22 = vsel %vm1076_vm8, %v1068_v21, 0.0 }
 0x635   : > { %v1078_v23 = vadd.f32 %v1077_v22, %v2892_v30  ;;  %v2022_v24 = vpop.f32.mrf.mxu1 }
 0x636   : > { %v1915_v24 = vld [vmem:[#allocation10] ss:$0 sm:$0xff] }
 0x637   : > { %v1071_v25 = vpop.f32.mrf.mxu1 }
 0x639   : > { %v2023_v26 = vpop.f32.mrf.mxu1 }
 0x63b   : > { %v1180_v27 = vpop.f32.mrf.mxu1 }
 0x63c   : > { %v1189_v28 = vsel %vm1188_vm11, %v1180_v27, 0.0 }
 0x63d   : > { %v1190_v31 = vadd.f32 %v1189_v28, %v1078_v23  ;;  %v2034_v32 = vpop.f32.mrf.mxu1 }
 0x63f   : > { %v1183_v6 = vpop.f32.mrf.mxu1 }
 0x641   : > { %v2035_v33 = vpop.f32.mrf.mxu1 }
 0x643   : > { %v1292_v30 = vpop.f32.mrf.mxu1 }
 0x644   : > { %v1301_v34 = vsel %vm1300_vm14, %v1292_v30, 0.0 }
 0x645   : > { %v1302_v35 = vadd.f32 %v1301_v34, %v1190_v31  ;;  %v2046_v36 = vpop.f32.mrf.mxu1 }
 0x647   : > { %v1303_v37 = vpack.c.bf16 %v1302_v35, %v1302_v35  ;;  %v1295_v38 = vpop.f32.mrf.mxu1 }
 0x649   : > { %v2047_v39 = vpop.f32.mrf.mxu1  ;;  %2065 = vmatmul.mubr.bf16.vlgmr.msra.gmra.mxu0 %v1303_v37 }
 0x64a   : > { %2104 = vmatprep.mubr.msk.bf16.mxu0 %vm2525_vm1, %v2524_v1  ;;  %2089 = vmatpush3.bf16.msra.mxu0 %v2251_v59  ;;  %v1924_v39 = vld [vmem:[#allocation12] ss:$0 sm:$0xff] }
 0x64b   : > { %2090 = vmatprep.subr.bf16.mxu0 %v2524_v1 }
 0x64e   : > { %2091 = vmatpush3.bf16.msra.mxu0 %v2252_v60 }
 0x64f   : > { %2092 = vmatprep.subr.bf16.mxu0 %v2524_v1 }
 0x652   : > { %2093 = vmatpush3.bf16.msra.mxu0 %v2253_v61 }
 0x653   : > { %2094 = vmatprep.subr.bf16.mxu0 %v2524_v1 }
 0x656   : > { %2095 = vmatpush3.bf16.msra.mxu0 %v2254_v62 }
 0x657   : > { %2096 = vmatprep.subr.bf16.mxu0 %v2524_v1 }
 0x65a   : > { %2097 = vmatpush3.bf16.msra.mxu0 %v2255_v63 }
 0x65b   : > { %2098 = vmatprep.subr.bf16.mxu0 %v2524_v1 }
 0x65e   : > { %2099 = vmatpush3.bf16.msra.mxu0 %v2256_v0 }
 0x65f   : > { %2100 = vmatprep.subr.bf16.mxu0 %v2524_v1 }
 0x662   : > { %2101 = vmatpush3.bf16.msra.mxu0 %v2257_v13 }
 0x663   : > { %2102 = vmatprep.subr.bf16.mxu0 %v2524_v1 }
 0x666   : > { %2103 = vmatpush3.bf16.msra.mxu0 %v2258_v14 }
 0x709   : > { %v1409_v41 = vpop.f32.mrf.mxu0 }
 0x70a   : > { %v1410_v42 = vadd.f32 %v1895_v40, %v1409_v41  ;;  %v1925_v41 = vld [vmem:[#allocation13] ss:$0 sm:$0xff] }
 0x70b   : > { %v2066_v43 = vpop.f32.mrf.mxu0 }
 0x70c   : > { %v1417_v44 = vadd.f32 %v1410_v42, %v2822_v29 }
 0x70d   : > { %v1412_v45 = vpop.f32.mrf.mxu0 }
 0x70e   : > { %1418 = vadd.xlane.f32.xlu0 %v1417_v44 }
 0x70f   : > { %v2067_v46 = vpop.f32.mrf.mxu0 }
 0x797   : > { %v1419_v49 = vpop.xlane.xlu0 %1418 }
 0x798   : > { %v1420_v50 = vmul.f32 0.03125, %v1419_v49 }
 0x79a   : > { %v1421_v29 = vsub.f32 %v1417_v44, %v1420_v50 }
 0x79c   : > { %v1422_v51 = vsel %vm1299_vm13, %v1421_v29, 0.0 }
 0x79d   : > { %v1423_v52 = vmul.f32 %v1422_v51, %v1422_v51 }
 0x79f   : > { %1424 = vadd.xlane.f32.xlu1 %v1423_v52 }
 0x828   : > { %v1425_v2 = vpop.xlane.xlu1 %1424 }
 0x829   : > { %v1426_v3 = vmul.f32 0.03125, %v1425_v2 }
 0x82b   : > { %v1427_v4 = vadd.f32 1e-05, %v1426_v3 }
 0x82d   : > { %2275 = vrsqrt.f32 %v1427_v4 }
 0x83a   : > { %v2276_v5 = vpop.eup %2275 }
 0x83b   : > { %v1429_v8 = vmul.f32 %v2276_v5, %v1422_v51 }
 0x83d   : > { %v1436_v10 = vmul.f32 %v1904_v7, %v1429_v8 }
 0x83f   : > { %v1443_v11 = vadd.f32 %v1905_v9, %v1436_v10 }
 0x841   : > { %v1444_v12 = vpack.c.bf16 %v1443_v11, %v1443_v11 }
 0x843   : > { %2085 = vmatmul.mubr.bf16.vlgmr.msra.gmra.mxu1 %v1444_v12 }
 0x903   : > { %v1550_v54 = vpop.f32.mrf.mxu1 }
 0x904   : > { %v1551_v16 = vadd.f32 %v1906_v15, %v1550_v54 }
 0x905   : > { %v2086_v18 = vpop.f32.mrf.mxu1 }
 0x906   : > { %v1556_v19 = vmax.f32 %v1551_v16, 0.0 }
 0x907   : > { %v1553_v21 = vpop.f32.mrf.mxu1 }
 0x908   : > { %v1557_v22 = vpack.c.bf16 %v1556_v19, %v1556_v19 }
 0x909   : > { %v2087_v23 = vpop.f32.mrf.mxu1 }
 0x90a   : > { %2105 = vmatmul.mubr.bf16.vlgmr.msra.gmra.mxu0 %v1557_v22 }
 0x9ca   : > { %v1663_v25 = vpop.f32.mrf.mxu0 }
 0x9cb   : > { %v1664_v26 = vadd.f32 %v1915_v24, %v1663_v25 }
 0x9cc   : > { %v2106_v27 = vpop.f32.mrf.mxu0 }
 0x9cd   : > { %v1671_v28 = vadd.f32 %v1664_v26, %v1443_v11 }
 0x9ce   : > { %v1666_v1 = vpop.f32.mrf.mxu0 }
 0x9cf   : > { %1672 = vadd.xlane.f32.xlu0 %v1671_v28 }
 0x9d0   : > { %v2107_v31 = vpop.f32.mrf.mxu0 }
 0xa58   : > { %v1673_v32 = vpop.xlane.xlu0 %1672 }
 0xa59   : > { %v1674_v6 = vmul.f32 0.03125, %v1673_v32 }
 0xa5b   : > { %v1675_v33 = vsub.f32 %v1671_v28, %v1674_v6 }
 0xa5d   : > { %v1676_v30 = vsel %vm1299_vm13, %v1675_v33, 0.0 }
 0xa5e   : > { %v1677_v34 = vmul.f32 %v1676_v30, %v1676_v30 }
 0xa60   : > { %1678 = vadd.xlane.f32.xlu1 %v1677_v34 }
 0xae9   : > { %v1679_v35 = vpop.xlane.xlu1 %1678 }
 0xaea   : > { %v1680_v36 = vmul.f32 0.03125, %v1679_v35 }
 0xaec   : > { %v1681_v37 = vadd.f32 1e-05, %v1680_v36 }
 0xaee   : > { %2277 = vrsqrt.f32 %v1681_v37 }
 0xafb   : > { %v2278_v38 = vpop.eup %2277 }
 0xafc   : > { %v1683_v40 = vmul.f32 %v2278_v38, %v1676_v30 }
 0xafe   : > { %v1690_v42 = vmul.f32 %v1924_v39, %v1683_v40 }
 0xb00   : > { %v1697_v43 = vadd.f32 %v1925_v41, %v1690_v42 }
 0xb02   : > { %1698 = vst [vmem:[%s577_s25] sm:$0xff] %v1697_v43 }
 0xb03 PF: > { %s29_s29 = sadd.s32 1, %s2513_s29  }
 0xb04   : > { %p26_p7 = scmp.ge.s32.totalorder %s29_s29, 4  }
 0xb06   :  { %28 = sbr.rel (!%p26_p7) target bundleno = 5 (0x5), region = 142 }
 0xb0b   :  { %1718 = vsyncpa [#allocation3], 1 }
 0xb0c   :  { %1720 = vsyncpa [#allocation3 + $0x1], 1 }
 0xb0d   :  { %1721 = vsyncpa [#allocation5], 1 }
 0xb0e   :  { %1722 = vsyncpa [#allocation8], 1 }
 0xb0f   :  { %1723 = vsyncpa [#allocation11], 1 }
 0xb10   :  { %1724 = vsyncpa [#allocation14], 1 }

// kernel: transformer_forward.7
= control target key start
LH: loop header
LB: loop body
LE: loop exit
PB: predicated region body
PF: predicated region fallthrough
CT: control target
= control target key end

     0   :  { %s4146_s0 = inlined_call_operand.vmem [shape: f32[2,8,128], index: 0, kind: input, shape index: {}]   ;;  %s4147_s1 = inlined_call_operand.vmem [shape: f32[2,8,128], index: 1, kind: input, shape index: {}]   ;;  %s4148_s2 = inlined_call_operand.vmem [shape: f32[2,8,1], index: 2, kind: input, shape index: {}]   ;;  %s4149_s3 = inlined_call_operand.vmem [shape: f32[2,1,8], index: 3, kind: input, shape index: {}]   ;;  %s4150_s4 = inlined_call_operand.vmem [shape: bf16[128,384], index: 4, kind: input, shape index: {}]   ;;  %s4151_s5 = inlined_call_operand.vmem [shape: f32[1,384], index: 5, kind: input, shape index: {}]   ;;  %s4152_s6 = inlined_call_operand.vmem [shape: bf16[128,128], index: 6, kind: input, shape index: {}]   ;;  %s4153_s7 = inlined_call_operand.vmem [shape: f32[1,128], index: 7, kind: input, shape index: {}]   ;;  %s4154_s8 = inlined_call_operand.vmem [shape: f32[1,128], index: 8, kind: input, shape index: {}]   ;;  %s4155_s9 = inlined_call_operand.vmem [shape: f32[1,128], index: 9, kind: input, shape index: {}]   ;;  %s4156_s10 = inlined_call_operand.vmem [shape: bf16[128,128], index: 10, kind: input, shape index: {}]   ;;  %s4157_s11 = inlined_call_operand.vmem [shape: f32[1,128], index: 11, kind: input, shape index: {}]   ;;  %s4158_s12 = inlined_call_operand.vmem [shape: bf16[128,256], index: 12, kind: input, shape index: {}]   ;;  %s4159_s13 = inlined_call_operand.vmem [shape: f32[1,256], index: 13, kind: input, shape index: {}]   ;;  %s4160_s14 = inlined_call_operand.vmem [shape: bf16[128,128], index: 14, kind: input, shape index: {}]   ;;  %s4161_s15 = inlined_call_operand.vmem [shape: f32[1,128], index: 15, kind: input, shape index: {}]   ;;  %s4162_s16 = inlined_call_operand.vmem [shape: f32[1,128], index: 16, kind: input, shape index: {}]   ;;  %s4163_s17 = inlined_call_operand.vmem [shape: f32[1,128], index: 17, kind: input, shape index: {}]   ;;  %s4164_s18 = inlined_call_operand.vmem [shape: bf16[128,128], index: 18, kind: input, shape index: {}]   ;;  %s4165_s19 = inlined_call_operand.vmem [shape: f32[1,128], index: 19, kind: input, shape index: {}]   ;;  %s4166_s20 = inlined_call_operand.vmem [shape: bf16[128,128], index: 20, kind: input, shape index: {}]   ;;  %s4167_s21 = inlined_call_operand.vmem [shape: f32[1,128], index: 21, kind: input, shape index: {}]   ;;  %s4168_s22 = inlined_call_operand.vmem [shape: f32[1,128], index: 22, kind: input, shape index: {}]   ;;  %s4169_s23 = inlined_call_operand.vmem [shape: f32[1,128], index: 23, kind: input, shape index: {}]   ;;  %s4170_s24 = inlined_call_operand.vmem [shape: f32[2,8,128], index: 24, kind: output, shape index: {}]  }
   0x1   :  { %4181 = sst [smem:[#allocation2_spill]] %s4146_s0 }
   0x2   :  { %4182 = sst [smem:[#allocation3_spill]] %s4147_s1 }
   0x3   :  { %4183 = sst [smem:[#allocation4_spill]] %s4148_s2 }
   0x4   :  { %4184 = sst [smem:[#allocation5_spill]] %s4149_s3 }
   0x5   :  { %4185 = sst [smem:[#allocation6_spill]] %s4150_s4 }
   0x6   :  { %4186 = sst [smem:[#allocation7_spill]] %s4151_s5  ;;  %s3551_s5 = smov 0  }
   0x7   :  { %4187 = sst [smem:[#allocation8_spill]] %s4152_s6 }
   0x8   :  { %4188 = sst [smem:[#allocation9_spill]] %s4153_s7 }
   0x9   :  { %4189 = sst [smem:[#allocation10_spill]] %s4154_s8 }
   0xa LB: > { %s2843_s26 = sadd.s32 4294967295, %s3418_s5   ;;  %p2847_p0 = scmp.ge.s32.totalorder %s3418_s5, 1  ;;  %s3418_s5 = sphi %s3551_s5, %s34_s5  }
   0xb   : > { %p687_p1 = scmp.lt.s32.totalorder %s3418_s5, 3 }
   0xd   : > { %p688_p2 = pnand %p2847_p0, %p687_p1 }
   0xe   : > { %s4190_s6 = sld [smem:[#allocation6_spill]] (!%p688_p2)  ;;  %p762_p3 = scmp.lt.s32.totalorder (!%p688_p2), %s2843_s26, 1 }
   0xf   : > { %691 = sbr.rel (%p688_p2) target bundleno = 4658 (0x1232), region = 116  ;;  %s4191_s30 = sld [smem:[#allocation2_spill]] (!%p688_p2) }
  0x10   : > { %s4192_s8 = sld [smem:[#allocation4_spill]] (!%p688_p2)  ;;  %s4177_s29 = smov (!%p688_p2), 120  }
  0x11   : > { %s4193_s2 = sld [smem:[#allocation7_spill]] (!%p688_p2)  ;;  %s4173_s0 = smov (!%p688_p2), 104  }
  0x12   : > { %s4175_s7 = smov (!%p688_p2), 112   ;;  %s4196_s25 = sld [smem:[#allocation8_spill]] (!%p688_p2) }
  0x13   : > { %s4203_s27 = sld [smem:[#allocation9_spill]] (!%p688_p2) }
  0x14   : > { %v3278_v0 = vld [vmem:[%s4190_s6 + $0xac] ss:$12 sps:$4 sm:$0xff]   ;;  %v3280_v1 = vld [vmem:[%s4190_s6 + $0xa8] ss:$12 sps:$4 sm:$0xff]   ;;  %v3420_v2 = vmov 0   ;;  %v3421_v4 = vmov 0.0   ;;  %v819_v30 = vlaneseq }
  0x15   : > { %994 = vmatprep.mubr.bf16.mxu0 %v3420_v2  ;;  %3277 = vset.pattern.permute.xlu0 %v3420_v2  ;;  %v3281_v3 = vld [vmem:[%s4190_s6 + $0x94] ss:$12 sps:$4 sm:$0xff]   ;;  %v3283_v5 = vld [vmem:[%s4190_s6 + $0x90] ss:$12 sps:$4 sm:$0xff]   ;;  %v3286_v7 = vld [vmem:[%s4190_s6 + $0x78] ss:$12 sps:$4 sm:$0xff]  }
  0x16   : > { %962 = vmatprep.subr.bf16.mxu0 %v3278_v0  ;;  %3047 = vmatprep.subr.bf16.mxu1 %v3421_v4  ;;  %v3284_v6 = vld [vmem:[%s4190_s6 + $0x7c] ss:$12 sps:$4 sm:$0xff]   ;;  %v3287_v8 = vld [vmem:[%s4190_s6 + $0x64] ss:$12 sps:$4 sm:$0xff]   ;;  %v3289_v9 = vld [vmem:[%s4190_s6 + $0x60] ss:$12 sps:$4 sm:$0xff]  }
  0x17   : > { %963 = vmatpush1.bf16.msra.mxu0 %v3280_v1  ;;  %s4213_s26 = smov (!%p762_p3, %s2843_s26), 1  ;;  %v3302_v10 = vld [vmem:[%s4190_s6 + $0xb0] ss:$12 sps:$4 sm:$0xff]   ;;  %v3290_v11 = vld [vmem:[%s4190_s6 + $0x4c] ss:$12 sps:$4 sm:$0xff]   ;;  %vm3422_vm0 = vmmov 0  }
  0x18   : > { %964 = vmatprep.subr.bf16.mxu0 %v3281_v3  ;;  %3048 = vmatpush3.bf16.msra.mxu1 %v3302_v10  ;;  %v3303_v12 = vld [vmem:[%s4190_s6 + $0x98] ss:$12 sps:$4 sm:$0xff]   ;;  %s3598_s4 = sshll.u32 %s4213_s26, 3  ;;  %v3292_v13 = vld [vmem:[%s4190_s6 + $0x48] ss:$12 sps:$4 sm:$0xff]   ;;  %v3667_v31 = vshrl.u32 %v819_v30, 7 }
  0x19   : > { %3049 = vmatprep.subr.bf16.mxu1 %v3421_v4  ;;  %v3293_v14 = vld [vmem:[%s4190_s6 + $0x34] ss:$12 sps:$4 sm:$0xff]   ;;  %v3295_v15 = vld [vmem:[%s4190_s6 + $0x30] ss:$12 sps:$4 sm:$0xff]   ;;  %v3298_v19 = vld [vmem:[%s4190_s6 + $0x18] ss:$12 sps:$4 sm:$0xff]   ;;  %s765_s3 = scalar_lea.vmem %s4191_s30, %s3598_s4  ;;  %3063 = vmatprep.mubr.msk.bf16.mxu1 %vm3422_vm0, %v3421_v4  ;;  %s773_s1 = scalar_lea.vmem %s4192_s8, %s3598_s4 }
  0x1a   : > { %v3304_v16 = vld [vmem:[%s4190_s6 + $0x80] ss:$12 sps:$4 sm:$0xff]   ;;  %v3296_v17 = vld [vmem:[%s4190_s6 + $0x1c] ss:$12 sps:$4 sm:$0xff]   ;;  %v3299_v20 = vld [vmem:[%s4190_s6 + $0x4] ss:$12 sps:$4 sm:$0xff]  }
  0x1b   : > { %965 = vmatpush1.bf16.msra.mxu0 %v3283_v5  ;;  %v3305_v18 = vld [vmem:[%s4190_s6 + $0x68] ss:$12 sps:$4 sm:$0xff]   ;;  %v3306_v21 = vld [vmem:[%s4190_s6 + $0x50] ss:$12 sps:$4 sm:$0xff]   ;;  %v3301_v22 = vld [vmem:[%s4190_s6] ss:$12 sps:$4 sm:$0xff]  }
  0x1c   : > { %966 = vmatprep.subr.bf16.mxu0 %v3284_v6  ;;  %3050 = vmatpush3.bf16.msra.mxu1 %v3303_v12  ;;  %v3637_v23 = vld [vmem:[%s765_s3] sm:$0xff]  ;;  %v3309_v27 = vld [vmem:[%s4190_s6 + $0x8] ss:$12 sps:$4 sm:$0xff]   ;;  %v825_v32 = vsub.s32 1, %v3667_v31  ;;  %v3676_v36 = vsub.s32 0, %v3667_v31  ;;  %vm1059_vm2 = vcmask 64512  }
  0x1d   : > { %3051 = vmatprep.subr.bf16.mxu1 %v3421_v4  ;;  %v3307_v24 = vld [vmem:[%s4190_s6 + $0x38] ss:$12 sps:$4 sm:$0xff]   ;;  %v784_v25 = vpack.c.bf16 %v3637_v23, %v3637_v23  ;;  %v3308_v26 = vld [vmem:[%s4190_s6 + $0x20] ss:$12 sps:$4 sm:$0xff]   ;;  %v829_v46 = vsub.s32 2, %v3667_v31  ;;  %vm1123_vm3 = vcmask 1043456  }
  0x1e   : > { %v1043_v28 = vld [vmem:[%s773_s1] sm:$0xff]  ;;  %v3691_v55 = vand.u32 127, %v819_v30  ;;  %s4204_s6 = sld [smem:[#allocation3_spill]] }
  0x1f   : > { %967 = vmatpush1.bf16.msra.mxu0 %v3286_v7  ;;  %vm1044_vm1 = vcmp.gt.f32.partialorder %v1043_v28, 0.5  ;;  %v817_v33 = vld [vmem:[%s4193_s2] sm:$0x7]  ;;  %s4205_s28 = sld [smem:[#allocation10_spill]] }
  0x20   : > { %968 = vmatprep.subr.bf16.mxu0 %v3287_v8  ;;  %3052 = vmatpush3.bf16.msra.mxu1 %v3304_v16  ;;  %v1045_v29 = vsel %vm1044_vm1, 1, %v3420_v2  ;;  %v826_v34 = vrot.slane %v817_v33, %v825_v32  ;;  %v822_v40 = vrot.slane %v817_v33, %v3676_v36  ;;  %v830_v47 = vrot.slane %v817_v33, %v829_v46  ;;  %s4206_s8 = sld [smem:[#allocation5_spill]] }
  0x21   : > { %3053 = vmatprep.subr.bf16.mxu1 %v3421_v4  ;;  %1047 = vperm.xlu0 %3277, %v1045_v29   ;;  %vm1054_vm4 = vcmp.le.s32.totalorder %v3691_v55, %v3667_v31  ;;  %vm1281_vm7 = vcmp.ge.s32.totalorder %v3691_v55, 8  ;;  %vm1282_vm8 = vcmp.lt.s32.totalorder %v3691_v55, 16  ;;  %vm1393_vm9 = vcmp.ge.s32.totalorder %v3691_v55, 16 }
  0x22   : > { %vm1394_vm10 = vcmp.lt.s32.totalorder %v3691_v55, 24  ;;  %vm3790_vm11 = vmand %vm1281_vm7, %vm1282_vm8  ;;  %vm1168_vm12 = vcmp.lt.s32.totalorder %v3691_v55, 8  ;;  %vm1505_vm14 = vcmp.ge.s32.totalorder %v3691_v55, 24  ;;  %vm1506_vm15 = vcmp.lt.s32.totalorder %v3691_v55, 32 }
  0x23   : > { %969 = vmatpush1.bf16.msra.mxu0 %v3289_v9  ;;  %vm3795_vm13 = vmand %vm1393_vm9, %vm1394_vm10 }
  0x24   : > { %970 = vmatprep.subr.bf16.mxu0 %v3290_v11  ;;  %3054 = vmatpush3.bf16.msra.mxu1 %v3305_v18  ;;  %vm3810_vm1 = vmand %vm1505_vm14, %vm1506_vm15 }
  0x25   : > { %3055 = vmatprep.subr.bf16.mxu1 %v3421_v4 }
  0x26   : > { %s776_s1 = scalar_lea.vmem %s4206_s8, %s4213_s26  ;;  %s4209_s26 = smov 120  }
  0x27   : > { %971 = vmatpush1.bf16.msra.mxu0 %v3292_v13 }
  0x28   : > { %972 = vmatprep.subr.bf16.mxu0 %v3293_v14  ;;  %3056 = vmatpush3.bf16.msra.mxu1 %v3306_v21 }
  0x29   : > { %3057 = vmatprep.subr.bf16.mxu1 %v3421_v4 }
  0x2b   : > { %973 = vmatpush1.bf16.msra.mxu0 %v3295_v15 }
  0x2c   : > { %974 = vmatprep.subr.bf16.mxu0 %v3296_v17  ;;  %3058 = vmatpush3.bf16.msra.mxu1 %v3307_v24 }
  0x2d   : > { %3059 = vmatprep.subr.bf16.mxu1 %v3421_v4 }
  0x2f   : > { %975 = vmatpush1.bf16.msra.mxu0 %v3298_v19 }
  0x30   : > { %976 = vmatprep.subr.bf16.mxu0 %v3299_v20  ;;  %3060 = vmatpush3.bf16.msra.mxu1 %v3308_v26 }
  0x31   : > { %3061 = vmatprep.subr.bf16.mxu1 %v3421_v4 }
  0x33   : > { %977 = vmatpush1.bf16.msra.mxu0 %v3301_v22 }
  0x34   : > { %3091 = vmatprep.subr.bf16.mxu0 %v3421_v4  ;;  %3062 = vmatpush3.bf16.msra.mxu1 %v3309_v27 }
  0x35   : > { %3067 = vmatprep.subr.bf16.mxu1 %v3421_v4 }
  0x36   : > { %995 = vmatmul.mubr.bf16.vlgmr.msra.gmra.mxu0 %v784_v25 }
  0x37   : > { %3093 = vmatprep.mubr.msk.bf16.mxu0 %vm3422_vm0, %v3421_v4  ;;  %3064 = vmatmul.mubr.bf16.vlgmr.msra.gmra.mxu1 %v784_v25 }
  0x38   : > { %3069 = vmatprep.mubr.msk.bf16.mxu1 %vm3422_vm0, %v3421_v4 }
  0x9c   : > { %v1048_v56 = vpop.permute.xlu0 %1047 }
  0x9d   : > { %vm1049_vm5 = vcmp.eq.s32.totalorder %v1048_v56, 1 }
  0x9e   : > { %vm3695_vm6 = vmand %vm1049_vm5, %vm1054_vm4 }
  0xf6   : > { %v996_v35 = vpop.f32.mrf.mxu0 }
  0xf7   : > { %v997_v44 = vadd.f32 %v996_v35, %v822_v40  ;;  %v1037_v48 = vpop.f32.mrf.mxu1 }
  0xf8   : > { %v998_v37 = vpop.f32.mrf.mxu0  ;;  %v1038_v49 = vadd.f32 %v1037_v48, %v830_v47 }
  0xf9   : > { %v999_v38 = vadd.f32 %v998_v37, %v826_v34  ;;  %v1057_v45 = vpack.c.bf16 %v997_v44, %v997_v44  ;;  %v3065_v50 = vpop.f32.mrf.mxu1 }
  0xfa   : > { %v1000_v39 = vpop.f32.mrf.mxu0  ;;  %v1056_v51 = vpack.c.bf16 %v1038_v49, %v1038_v49 }
  0xfb   : > { %v1058_v41 = vpack.c.bf16 %v999_v38, %v999_v38  ;;  %v1040_v52 = vpop.f32.mrf.mxu1 }
  0xfc   : > { %v1001_v42 = vpop.f32.mrf.mxu0  ;;  %v3687_v53 = vsel %vm1123_vm3, %v1056_v51, 0 }
  0xfd   : > { %1176 = vrot.lane.b32.xlu1 %v1058_v41, %s4177_s29  ;;  %v1064_v43 = vsel %vm1059_vm2, %v1058_v41, 0  ;;  %v3066_v54 = vpop.f32.mrf.mxu1 }
  0xfe   : > { %3068 = vmatpush3.bf16.xpose.msra.mxu1 %v1064_v43 }
  0xff   : > { %3073 = vmatprep.subr.bf16.mxu1 %v3421_v4 }
 0x105   : > { %3070 = vmatmul.mubr.msk.bf16.vlgmr.msra.gmra.mxu1 %vm1059_vm2, %v1057_v45 }
 0x106   : > { %3075 = vmatprep.mubr.msk.bf16.mxu1 %vm3422_vm0, %v3421_v4  ;;  %3074 = vmatpush3.bf16.msra.mxu1 %v3687_v53 }
 0x107   : > { %3079 = vmatprep.subr.bf16.mxu1 %v3421_v4 }
 0x16f   : > { %v1177_v8 = vpop.permute.xlu1 %1176 }
 0x170   : > { %v1182_v19 = vsel %vm1059_vm2, %v1177_v8, 0 }
 0x1c5   : > { %v1100_v58 = vpop.f32.mrf.mxu1 }
 0x1c6   : > { %v1106_v59 = vmul.f32 0.35355338, %v1100_v58 }
 0x1c7   : > { %v3071_v60 = vpop.f32.mrf.mxu1 }
 0x1c8   : > { %v1107_v61 = vsel %vm3695_vm6, %v1106_v59, -1e+09 }
 0x1c9   : > { %v1103_v62 = vpop.f32.mrf.mxu1  ;;  %v1108_v63 = vsel %vm1059_vm2, %v1107_v61, -inf }
 0x1ca   : > { %1109 = vmax.xlane.f32.xlu0 %v1108_v63 }
 0x1cb   : > { %v3072_v0 = vpop.f32.mrf.mxu1 }
 0x1e0   : > { %1398 = vrot.lane.b32.xlu0 %v1057_v45, %s4173_s0 }
 0x253   : > { %v1110_v1 = vpop.xlane.xlu0 %1109 }
 0x254   : > { %v1111_v3 = vsub.f32 %v1107_v61, %v1110_v1 }
 0x256   : > { %v1112_v5 = vmul.f32 1.442695, %v1111_v3 }
 0x257   : > { %v1399_v20 = vpop.permute.xlu0 %1398 }
 0x258   : > { %3374 = vpow2.f32 %v1112_v5  ;;  %v3310_v5 = vld [vmem:[%s4196_s25 + $0x38] sm:$0xff]  }
 0x265   : > { %v3375_v6 = vpop.eup %3374 }
 0x266   : > { %v1114_v7 = vsel %vm1059_vm2, %v3375_v6, 0.0 }
 0x267   : > { %1115 = vadd.xlane.f32.xlu1 %v1114_v7  ;;  %v3312_v7 = vld [vmem:[%s4196_s25 + $0x28] sm:$0xff]  }
 0x278   : > { %1173 = vrot.lane.b32.xlu1 %v1057_v45, %s4177_s29 }
 0x27c   : > { %1288 = vrot.lane.b32.xlu1 %v1058_v41, %s4175_s7 }
 0x280   : > { %1286 = vrot.lane.b32.xlu1 %v1057_v45, %s4175_s7 }
 0x284   : > { %1400 = vrot.lane.b32.xlu1 %v1058_v41, %s4173_s0 }
 0x2f0   : > { %v1116_v9 = vpop.xlane.xlu1 %1115 }
 0x2f1   : > { %3376 = vrcp.f32 %v1116_v9 }
 0x2f4   : > { %v1174_v10 = vpop.permute.xlu1 %1173 }
 0x2f8   : > { %v1289_v11 = vpop.permute.xlu1 %1288 }
 0x2f9   : > { %v1294_v12 = vsel %vm1059_vm2, %v1289_v11, 0 }
 0x2fa   : > { %3092 = vmatpush3.bf16.xpose.msra.mxu0 %v1294_v12 }
 0x2fb   : > { %3103 = vmatprep.subr.bf16.mxu0 %v3421_v4 }
 0x2fc   : > { %v1287_v13 = vpop.permute.xlu1 %1286 }
 0x2fe   : > { %v3377_v14 = vpop.eup %3376 }
 0x2ff   : > { %v1118_v15 = vmul.f32 %v3377_v14, %v3375_v6  ;;  %v3311_v6 = vld [vmem:[%s4196_s25 + $0x30] sm:$0xff]  }
 0x300   : > { %v1401_v16 = vpop.permute.xlu1 %1400 }
 0x301   : > { %v1406_v17 = vsel %vm1059_vm2, %v1401_v16, 0  ;;  %3094 = vmatmul.mubr.msk.bf16.vlgmr.msra.gmra.mxu0 %vm1059_vm2, %v1287_v13  ;;  %v1119_v18 = vpack.c.bf16 %v1118_v15, %v1118_v15 }
 0x302   : > { %3104 = vmatpush3.bf16.xpose.msra.mxu0 %v1406_v17  ;;  %3105 = vmatprep.mubr.msk.bf16.mxu0 %vm3422_vm0, %v3421_v4 }
 0x303   : > { %3076 = vmatmul.mubr.msk.bf16.vlgmr.msra.gmra.mxu1 %vm1059_vm2, %v1119_v18  ;;  %3115 = vmatprep.subr.bf16.mxu0 %v3421_v4 }
 0x304   : > { %3080 = vmatpush3.bf16.xpose.msra.mxu1 %v1182_v19  ;;  %3081 = vmatprep.mubr.msk.bf16.mxu1 %vm3422_vm0, %v3421_v4 }
 0x305   : > { %3085 = vmatprep.subr.bf16.mxu1 %v3421_v4 }
 0x309   : > { %3106 = vmatmul.mubr.msk.bf16.vlgmr.msra.gmra.mxu0 %vm1059_vm2, %v1399_v20  ;;  %v3313_v20 = vld [vmem:[%s4196_s25 + $0x20] sm:$0xff]  }
 0x30a   : > { %3131 = vmatprep.mubr.msk.bf16.mxu0 %vm3422_vm0, %v3421_v4  ;;  %3116 = vmatpush3.bf16.msra.mxu0 %v3310_v5  ;;  %v3329_v5 = vld [vmem:[%s4158_s12 + $0x44] ss:$8 sps:$4 sm:$0xff]  }
 0x30b   : > { %3082 = vmatmul.mubr.msk.bf16.vlgmr.msra.gmra.mxu1 %vm1059_vm2, %v1174_v10  ;;  %3117 = vmatprep.subr.bf16.mxu0 %v3421_v4 }
 0x30c   : > { %3086 = vmatpush3.bf16.msra.mxu1 %v3687_v53  ;;  %3087 = vmatprep.mubr.msk.bf16.mxu1 %vm3422_vm0, %v3421_v4 }
 0x30d   : > { %3097 = vmatprep.subr.bf16.mxu1 %v3421_v4 }
 0x30e   : > { %3118 = vmatpush3.bf16.msra.mxu0 %v3311_v6  ;;  %v3327_v6 = vld [vmem:[%s4158_s12 + $0x40] ss:$8 sps:$4 sm:$0xff]  }
 0x30f   : > { %3119 = vmatprep.subr.bf16.mxu0 %v3421_v4 }
 0x312   : > { %3120 = vmatpush3.bf16.msra.mxu0 %v3312_v7  ;;  %v3333_v7 = vld [vmem:[%s4158_s12 + $0x34] ss:$8 sps:$4 sm:$0xff]  }
 0x313   : > { %3121 = vmatprep.subr.bf16.mxu0 %v3421_v4 }
 0x316   : > { %3122 = vmatpush3.bf16.msra.mxu0 %v3313_v20  ;;  %v3345_v20 = vld [vmem:[%s4158_s12 + $0x4] ss:$8 sps:$4 sm:$0xff]  }
 0x317   : > { %3123 = vmatprep.subr.bf16.mxu0 %v3421_v4 }
 0x3c1   : > { %v1330_v21 = vpop.f32.mrf.mxu0 }
 0x3c2   : > { %v1336_v22 = vmul.f32 0.35355338, %v1330_v21  ;;  %v3315_v21 = vld [vmem:[%s4196_s25 + $0x10] sm:$0xff]  }
 0x3c3   : > { %v3728_v24 = vpop.f32.mrf.mxu1  ;;  %v3095_v25 = vpop.f32.mrf.mxu0 }
 0x3c4   : > { %v1337_v26 = vsel %vm3695_vm6, %v1336_v22, -1e+09  ;;  %v3316_v22 = vld [vmem:[%s4196_s25 + $0x8] sm:$0xff]   ;;  %v3317_v25 = vld [vmem:[%s4196_s25] sm:$0xff]  }
 0x3c5   : > { %v3077_v27 = vpop.f32.mrf.mxu1  ;;  %v1333_v28 = vpop.f32.mrf.mxu0  ;;  %v1338_v29 = vsel %vm1059_vm2, %v1337_v26, -inf }
 0x3c6   : > { %1339 = vmax.xlane.f32.xlu0 %v1338_v29 }
 0x3c7   : > { %v1164_v30 = vpop.f32.mrf.mxu1  ;;  %v3096_v33 = vpop.f32.mrf.mxu0 }
 0x3c9   : > { %v3078_v34 = vpop.f32.mrf.mxu1  ;;  %v1442_v35 = vpop.f32.mrf.mxu0 }
 0x3ca   : > { %v1448_v39 = vmul.f32 0.35355338, %v1442_v35  ;;  %v2928_v34 = vld [vmem:[%s4161_s15] ss:$0 sm:$0xff] }
 0x3cb   : > { %v1218_v37 = vpop.f32.mrf.mxu1  ;;  %v3107_v38 = vpop.f32.mrf.mxu0 }
 0x3cc   : > { %v1224_v40 = vmul.f32 0.35355338, %v1218_v37  ;;  %v1449_v47 = vsel %vm3695_vm6, %v1448_v39, -1e+09  ;;  %v1170_v39 = vsel %vm1168_vm12, %v3728_v24, 0.0 }
 0x3cd   : > { %v3083_v41 = vpop.f32.mrf.mxu1  ;;  %v1445_v42 = vpop.f32.mrf.mxu0  ;;  %v1450_v49 = vsel %vm1059_vm2, %v1449_v47, -inf }
 0x3ce   : > { %v1225_v43 = vsel %vm3695_vm6, %v1224_v40, -1e+09 }
 0x3cf   : > { %v1221_v44 = vpop.f32.mrf.mxu1  ;;  %v3108_v45 = vpop.f32.mrf.mxu0  ;;  %v1226_v46 = vsel %vm1059_vm2, %v1225_v43, -inf }
 0x3d0   : > { %1227 = vmax.xlane.f32.xlu1 %v1226_v46 }
 0x3d1   : > { %v3084_v48 = vpop.f32.mrf.mxu1 }
 0x3d4   : > { %1451 = vmax.xlane.f32.xlu1 %v1450_v49 }
 0x44f   : > { %v1340_v50 = vpop.xlane.xlu0 %1339 }
 0x450   : > { %v1341_v51 = vsub.f32 %v1337_v26, %v1340_v50 }
 0x452   : > { %v1342_v56 = vmul.f32 1.442695, %v1341_v51  ;;  %v2884_v51 = vld [vmem:[%s4203_s27] ss:$0 sm:$0xff]  ;;  %s4210_s27 = smov 112  }
 0x459   : > { %v1228_v52 = vpop.xlane.xlu1 %1227 }
 0x45a   : > { %v1229_v54 = vsub.f32 %v1225_v43, %v1228_v52 }
 0x45c   : > { %v1230_v58 = vmul.f32 1.442695, %v1229_v54 }
 0x45d   : > { %v1452_v59 = vpop.xlane.xlu1 %1451 }
 0x45e   : > { %3378 = vpow2.f32 %v1230_v58  ;;  %v1453_v60 = vsub.f32 %v1449_v47, %v1452_v59 }
 0x45f   : > { %3380 = vpow2.f32 %v1342_v56 }
 0x460   : > { %v1454_v61 = vmul.f32 1.442695, %v1453_v60 }
 0x462   : > { %3382 = vpow2.f32 %v1454_v61  ;;  %v3318_v61 = vld [vmem:[%s4158_s12 + $0x70] ss:$8 sps:$4 sm:$0xff]  }
 0x46b   : > { %v3379_v62 = vpop.eup %3378 }
 0x46c   : > { %v1232_v57 = vsel %vm1059_vm2, %v3379_v62, 0.0  ;;  %v3381_v63 = vpop.eup %3380 }
 0x46d   : > { %1233 = vadd.xlane.f32.xlu1 %v1232_v57  ;;  %v1344_v0 = vsel %vm1059_vm2, %v3381_v63, 0.0  ;;  %v3323_v57 = vld [vmem:[%s4158_s12 + $0x64] ss:$8 sps:$4 sm:$0xff]  }
 0x46f   : > { %v3383_v1 = vpop.eup %3382 }
 0x470   : > { %v1456_v3 = vsel %vm1059_vm2, %v3383_v1, 0.0 }
 0x471   : > { %1345 = vadd.xlane.f32.xlu1 %v1344_v0  ;;  %v3326_v0 = vld [vmem:[%s4158_s12 + $0x54] ss:$8 sps:$4 sm:$0xff]  }
 0x475   : > { %1457 = vadd.xlane.f32.xlu1 %v1456_v3  ;;  %v3324_v3 = vld [vmem:[%s4158_s12 + $0x50] ss:$8 sps:$4 sm:$0xff]  }
 0x4f6   : > { %v1234_v8 = vpop.xlane.xlu1 %1233 }
 0x4f7   : > { %3384 = vrcp.f32 %v1234_v8  ;;  %v3331_v8 = vld [vmem:[%s4158_s12 + $0x30] ss:$8 sps:$4 sm:$0xff]  }
 0x4fa   : > { %v1346_v9 = vpop.xlane.xlu1 %1345 }
 0x4fb   : > { %3386 = vrcp.f32 %v1346_v9 }
 0x4fe   : > { %v1458_v10 = vpop.xlane.xlu1 %1457 }
 0x4ff   : > { %3388 = vrcp.f32 %v1458_v10 }
 0x504   : > { %v3385_v11 = vpop.eup %3384 }
 0x505   : > { %v1236_v12 = vmul.f32 %v3385_v11, %v3379_v62  ;;  %v3320_v62 = vld [vmem:[%s4158_s12 + $0x74] ss:$8 sps:$4 sm:$0xff]  }
 0x507   : > { %v1237_v13 = vpack.c.bf16 %v1236_v12, %v1236_v12 }
 0x508   : > { %v3387_v14 = vpop.eup %3386 }
 0x509   : > { %3088 = vmatmul.mubr.msk.bf16.vlgmr.msra.gmra.mxu1 %vm1059_vm2, %v1237_v13  ;;  %v1348_v15 = vmul.f32 %v3387_v14, %v3381_v63  ;;  %v3321_v63 = vld [vmem:[%s4158_s12 + $0x60] ss:$8 sps:$4 sm:$0xff]   ;;  %v3337_v14 = vld [vmem:[%s4158_s12 + $0x24] ss:$8 sps:$4 sm:$0xff]  }
 0x50a   : > { %3098 = vmatpush3.bf16.msra.mxu1 %v3687_v53  ;;  %3099 = vmatprep.mubr.msk.bf16.mxu1 %vm3422_vm0, %v3421_v4 }
 0x50b   : > { %3109 = vmatprep.subr.bf16.mxu1 %v3421_v4  ;;  %v1349_v16 = vpack.c.bf16 %v1348_v15, %v1348_v15  ;;  %v3335_v15 = vld [vmem:[%s4158_s12 + $0x20] ss:$8 sps:$4 sm:$0xff]  }
 0x50c   : > { %v3389_v17 = vpop.eup %3388 }
 0x50d   : > { %v1460_v18 = vmul.f32 %v3389_v17, %v3383_v1  ;;  %v3334_v1 = vld [vmem:[%s4156_s10 + $0x30] sm:$0xff]  }
 0x50e   : > { %v3341_v17 = vld [vmem:[%s4158_s12 + $0x14] ss:$8 sps:$4 sm:$0xff]  }
 0x50f   : > { %v1461_v19 = vpack.c.bf16 %v1460_v18, %v1460_v18  ;;  %v3339_v18 = vld [vmem:[%s4158_s12 + $0x10] ss:$8 sps:$4 sm:$0xff]  }
 0x511   : > { %3100 = vmatmul.mubr.msk.bf16.vlgmr.msra.gmra.mxu1 %vm1059_vm2, %v1349_v16  ;;  %v3338_v16 = vld [vmem:[%s4156_s10 + $0x28] sm:$0xff]  }
 0x512   : > { %3110 = vmatpush3.bf16.msra.mxu1 %v3687_v53  ;;  %3111 = vmatprep.mubr.msk.bf16.mxu1 %vm3422_vm0, %v3421_v4  ;;  %v3314_v53 = vld [vmem:[%s4196_s25 + $0x18] sm:$0xff]   ;;  %s769_s25 = scalar_lea.vmem %s4204_s6, %s3598_s4 }
 0x513   : > { %3135 = vmatprep.subr.bf16.mxu1 %v3421_v4  ;;  %3124 = vmatpush3.bf16.msra.mxu0 %v3314_v53  ;;  %v3343_v53 = vld [vmem:[%s4158_s12] ss:$8 sps:$4 sm:$0xff]  }
 0x514   : > { %3125 = vmatprep.subr.bf16.mxu0 %v3421_v4 }
 0x517   : > { %3126 = vmatpush3.bf16.msra.mxu0 %v3315_v21  ;;  %v783_v21 = vld [vmem:[%s769_s25] sm:$0xff] }
 0x518   : > { %3127 = vmatprep.subr.bf16.mxu0 %v3421_v4 }
 0x519   : > { %3112 = vmatmul.mubr.msk.bf16.vlgmr.msra.gmra.mxu1 %vm1059_vm2, %v1461_v19  ;;  %v3342_v19 = vld [vmem:[%s4156_s10 + $0x20] sm:$0xff]  }
 0x51a   : > { %3151 = vmatprep.mubr.msk.bf16.mxu1 %vm3422_vm0, %v3421_v4 }
 0x51b   : > { %3128 = vmatpush3.bf16.msra.mxu0 %v3316_v22  ;;  %v3346_v22 = vld [vmem:[%s4156_s10 + $0x18] sm:$0xff]  }
 0x51c   : > { %3129 = vmatprep.subr.bf16.mxu0 %v3421_v4 }
 0x51f   : > { %3130 = vmatpush3.bf16.msra.mxu0 %v3317_v25  ;;  %v1763_v25 = vpack.c.bf16 %v783_v21, %v783_v21 }
 0x520   : > { %1872 = vmatprep.subr.bf16.mxu0 %v3320_v62 }
 0x5c9   : > { %v1275_v26 = vpop.f32.mrf.mxu1 }
 0x5ca   : > { %v1284_v37 = vsel %vm3790_vm11, %v1275_v26, 0.0  ;;  %v3347_v26 = vld [vmem:[%s4156_s10 + $0x10] sm:$0xff]  }
 0x5cb   : > { %v3089_v27 = vpop.f32.mrf.mxu1  ;;  %v1285_v41 = vadd.f32 %v1284_v37, %v1170_v39 }
 0x5cc   : > { %v3348_v27 = vld [vmem:[%s4156_s10 + $0x8] sm:$0xff]  }
 0x5cd   : > { %v1278_v28 = vpop.f32.mrf.mxu1 }
 0x5ce   : > { %v3349_v28 = vld [vmem:[%s4156_s10] sm:$0xff]  }
 0x5cf   : > { %v3090_v29 = vpop.f32.mrf.mxu1 }
 0x5d1   : > { %v1387_v33 = vpop.f32.mrf.mxu1 }
 0x5d2   : > { %v1396_v40 = vsel %vm3795_vm13, %v1387_v33, 0.0 }
 0x5d3   : > { %v3101_v35 = vpop.f32.mrf.mxu1  ;;  %v1397_v44 = vadd.f32 %v1396_v40, %v1285_v41  ;;  %v2894_v40 = vld [vmem:[%s4155_s9] ss:$0 sm:$0xff] }
 0x5d5   : > { %v1390_v38 = vpop.f32.mrf.mxu1 }
 0x5d6   : > { %v2893_v38 = vld [vmem:[%s4205_s28] ss:$0 sm:$0xff]  ;;  %s4211_s28 = smov 104  }
 0x5d7   : > { %v3102_v42 = vpop.f32.mrf.mxu1 }
 0x5d9   : > { %v1499_v45 = vpop.f32.mrf.mxu1 }
 0x5da   : > { %v1508_v46 = vsel %vm3810_vm1, %v1499_v45, 0.0  ;;  %v1780_v45 = vld [vmem:[%s4159_s13] sm:$0x3] }
 0x5db   : > { %v1509_v47 = vadd.f32 %v1508_v46, %v1397_v44  ;;  %v3113_v48 = vpop.f32.mrf.mxu1  ;;  %v1785_v46 = vrot.slane %v1780_v45, %v3676_v36 }
 0x5dd   : > { %v1510_v49 = vpack.c.bf16 %v1509_v47, %v1509_v47  ;;  %v1502_v24 = vpop.f32.mrf.mxu1  ;;  %v1789_v47 = vrot.slane %v1780_v45, %v825_v32 }
 0x5df   : > { %v3114_v50 = vpop.f32.mrf.mxu1  ;;  %3132 = vmatmul.mubr.bf16.vlgmr.msra.gmra.mxu0 %v1510_v49 }
 0x5e0   : > { %1904 = vmatprep.mubr.bf16.mxu0 %v3420_v2  ;;  %1873 = vmatpush1.bf16.msra.mxu0 %v3318_v61 }
 0x5e1   : > { %1874 = vmatprep.subr.bf16.mxu0 %v3323_v57 }
 0x5e4   : > { %1875 = vmatpush1.bf16.msra.mxu0 %v3321_v63  ;;  %v1913_v63 = vld [vmem:[%s776_s1] sm:$0x1] }
 0x5e5   : > { %1876 = vmatprep.subr.bf16.mxu0 %v3326_v0  ;;  %vm1914_vm4 = vcmp.gt.f32.partialorder %v1913_v63, 0.5 }
 0x5e6   : > { %v1915_v0 = vsel %vm1914_vm4, 1, %v3420_v2 }
 0x5e8   : > { %1877 = vmatpush1.bf16.msra.mxu0 %v3324_v3 }
 0x5e9   : > { %1878 = vmatprep.subr.bf16.mxu0 %v3329_v5 }
 0x5ec   : > { %1879 = vmatpush1.bf16.msra.mxu0 %v3327_v6 }
 0x5ed   : > { %1880 = vmatprep.subr.bf16.mxu0 %v3333_v7 }
 0x5f0   : > { %1881 = vmatpush1.bf16.msra.mxu0 %v3331_v8 }
 0x5f1   : > { %1882 = vmatprep.subr.bf16.mxu0 %v3337_v14 }
 0x5f4   : > { %1883 = vmatpush1.bf16.msra.mxu0 %v3335_v15 }
 0x5f5   : > { %1884 = vmatprep.subr.bf16.mxu0 %v3341_v17 }
 0x5f8   : > { %1885 = vmatpush1.bf16.msra.mxu0 %v3339_v18 }
 0x5f9   : > { %1886 = vmatprep.subr.bf16.mxu0 %v3345_v20 }
 0x5fc   : > { %1887 = vmatpush1.bf16.msra.mxu0 %v3343_v53 }
 0x5fd   : > { %3179 = vmatprep.subr.bf16.mxu0 %v3421_v4 }
 0x5ff   : > { %1905 = vmatmul.mubr.bf16.vlgmr.msra.gmra.mxu0 %v1763_v25 }
 0x600   : > { %3181 = vmatprep.mubr.msk.bf16.mxu0 %vm3422_vm0, %v3421_v4 }
 0x69f   : > { %v1616_v52 = vpop.f32.mrf.mxu0 }
 0x6a0   : > { %v1617_v54 = vadd.f32 %v2884_v51, %v1616_v52 }
 0x6a1   : > { %v3133_v56 = vpop.f32.mrf.mxu0 }
 0x6a2   : > { %v1624_v58 = vadd.f32 %v1617_v54, %v3637_v23  ;;  %v3330_v23 = vld [vmem:[%s4156_s10 + $0x38] sm:$0xff]  }
 0x6a3   : > { %v1619_v59 = vpop.f32.mrf.mxu0  ;;  %3136 = vmatpush3.bf16.msra.mxu1 %v3330_v23 }
 0x6a4   : > { %1625 = vadd.xlane.f32.xlu0 %v1624_v58  ;;  %3137 = vmatprep.subr.bf16.mxu1 %v3421_v4 }
 0x6a5   : > { %v3134_v60 = vpop.f32.mrf.mxu0 }
 0x6a7   : > { %3138 = vmatpush3.bf16.msra.mxu1 %v3334_v1  ;;  %v1919_v1 = vrot.slane %v1915_v0, %v3676_v36 }
 0x6a8   : > { %3139 = vmatprep.subr.bf16.mxu1 %v3421_v4 }
 0x6ab   : > { %3140 = vmatpush3.bf16.msra.mxu1 %v3338_v16 }
 0x6ac   : > { %3141 = vmatprep.subr.bf16.mxu1 %v3421_v4 }
 0x6af   : > { %3142 = vmatpush3.bf16.msra.mxu1 %v3342_v19 }
 0x6b0   : > { %3143 = vmatprep.subr.bf16.mxu1 %v3421_v4 }
 0x6b3   : > { %3144 = vmatpush3.bf16.msra.mxu1 %v3346_v22 }
 0x6b4   : > { %3145 = vmatprep.subr.bf16.mxu1 %v3421_v4 }
 0x6b7   : > { %3146 = vmatpush3.bf16.msra.mxu1 %v3347_v26 }
 0x6b8   : > { %3147 = vmatprep.subr.bf16.mxu1 %v3421_v4 }
 0x6bb   : > { %3148 = vmatpush3.bf16.msra.mxu1 %v3348_v27 }
 0x6bc   : > { %3149 = vmatprep.subr.bf16.mxu1 %v3421_v4 }
 0x6bf   : > { %3150 = vmatpush3.bf16.msra.mxu1 %v3349_v28  ;;  %v1906_v48 = vpop.f32.mrf.mxu0 }
 0x6c0   : > { %3155 = vmatprep.subr.bf16.mxu1 %v3421_v4  ;;  %v1907_v49 = vadd.f32 %v1906_v48, %v1785_v46 }
 0x6c1   : > { %v1908_v24 = vpop.f32.mrf.mxu0 }
 0x6c2   : > { %v1923_v50 = vpack.c.bf16 %v1907_v49, %v1907_v49  ;;  %v1909_v51 = vadd.f32 %v1908_v24, %v1789_v47 }
 0x6c3   : > { %v1910_v52 = vpop.f32.mrf.mxu0 }
 0x6c4   : > { %v1928_v54 = vsel %vm1059_vm2, %v1923_v50, 0  ;;  %v1921_v31 = vpack.c.bf16 %v1909_v51, %v1909_v51 }
 0x6c5   : > { %v1911_v56 = vpop.f32.mrf.mxu0 }
 0x6c6   : > { %v3934_v57 = vsel %vm1123_vm3, %v1921_v31, 0  ;;  %vm3947_vm3 = vcmp.eq.s32.totalorder %v1919_v1, 1 }
 0x72d   : > { %v1626_v9 = vpop.xlane.xlu0 %1625 }
 0x72e   : > { %v1627_v10 = vmul.f32 0.03125, %v1626_v9 }
 0x730   : > { %v1628_v11 = vsub.f32 %v1624_v58, %v1627_v10  ;;  %v2895_v58 = vld [vmem:[%s4157_s11] ss:$0 sm:$0xff] }
 0x732   : > { %v1629_v12 = vsel %vm1506_vm15, %v1628_v11, 0.0 }
 0x733   : > { %v1630_v13 = vmul.f32 %v1629_v12, %v1629_v12 }
 0x735   : > { %1631 = vadd.xlane.f32.xlu1 %v1630_v13 }
 0x7be   : > { %v1632_v29 = vpop.xlane.xlu1 %1631 }
 0x7bf   : > { %v1633_v33 = vmul.f32 0.03125, %v1632_v29 }
 0x7c1   : > { %v1634_v35 = vadd.f32 1e-05, %v1633_v33 }
 0x7c3   : > { %3390 = vrsqrt.f32 %v1634_v35 }
 0x7d0   : > { %v3391_v37 = vpop.eup %3390 }
 0x7d1   : > { %v1636_v39 = vmul.f32 %v3391_v37, %v1629_v12 }
 0x7d3   : > { %v1643_v41 = vmul.f32 %v2893_v38, %v1636_v39 }
 0x7d5   : > { %v3916_v42 = vadd.f32 %v2894_v40, %v1643_v41 }
 0x7d7   : > { %v1651_v44 = vpack.c.bf16 %v3916_v42, %v3916_v42 }
 0x7d9   : > { %3152 = vmatmul.mubr.bf16.vlgmr.msra.gmra.mxu1 %v1651_v44 }
 0x7da   : > { %3157 = vmatprep.mubr.msk.bf16.mxu1 %vm3422_vm0, %v3421_v4  ;;  %3156 = vmatpush3.bf16.xpose.msra.mxu1 %v1928_v54 }
 0x7db   : > { %3161 = vmatprep.subr.bf16.mxu1 %v3421_v4 }
 0x899   : > { %v1757_v59 = vpop.f32.mrf.mxu1 }
 0x89a   : > { %v1758_v32 = vadd.f32 %v2895_v58, %v1757_v59 }
 0x89b   : > { %v3153_v60 = vpop.f32.mrf.mxu1 }
 0x89c   : > { %v1922_v61 = vpack.c.bf16 %v1758_v32, %v1758_v32 }
 0x89d   : > { %v1760_v62 = vpop.f32.mrf.mxu1 }
 0x89e   : > { %3158 = vmatmul.mubr.msk.bf16.vlgmr.msra.gmra.mxu1 %vm1059_vm2, %v1922_v61 }
 0x89f   : > { %3162 = vmatpush3.bf16.msra.mxu1 %v3934_v57  ;;  %v3154_v23 = vpop.f32.mrf.mxu1  ;;  %3163 = vmatprep.mubr.msk.bf16.mxu1 %vm3422_vm0, %v3421_v4 }
 0x8a0   : > { %3167 = vmatprep.subr.bf16.mxu1 %v3421_v4 }
 0x95e   : > { %v1964_v3 = vpop.f32.mrf.mxu1 }
 0x95f   : > { %v1970_v6 = vmul.f32 0.35355338, %v1964_v3 }
 0x960   : > { %v3159_v7 = vpop.f32.mrf.mxu1 }
 0x961   : > { %v1971_v8 = vsel %vm3947_vm3, %v1970_v6, -1e+09 }
 0x962   : > { %v1967_v9 = vpop.f32.mrf.mxu1  ;;  %v1972_v10 = vsel %vm1059_vm2, %v1971_v8, -inf }
 0x963   : > { %1973 = vmax.xlane.f32.xlu0 %v1972_v10 }
 0x964   : > { %v3160_v11 = vpop.f32.mrf.mxu1 }
 0x979   : > { %2036 = vrot.lane.b32.xlu0 %v1923_v50, %s4209_s26 }
 0x97d   : > { %2143 = vrot.lane.b32.xlu0 %v1922_v61, %s4210_s27 }
 0x981   : > { %2252 = vrot.lane.b32.xlu0 %v1922_v61, %s4211_s28 }
 0x9ec   : > { %v1974_v2 = vpop.xlane.xlu0 %1973 }
 0x9ed   : > { %v1975_v36 = vsub.f32 %v1971_v8, %v1974_v2 }
 0x9ef   : > { %v1976_v12 = vmul.f32 1.442695, %v1975_v36  ;;  %v3350_v36 = vld [vmem:[%s4160_s14 + $0x38] sm:$0xff]  }
 0x9f0   : > { %v2037_v19 = vpop.permute.xlu0 %2036 }
 0x9f1   : > { %3392 = vpow2.f32 %v1976_v12  ;;  %v2042_v27 = vsel %vm1059_vm2, %v2037_v19, 0  ;;  %v3351_v12 = vld [vmem:[%s4160_s14 + $0x30] sm:$0xff]  }
 0x9f4   : > { %v2144_v22 = vpop.permute.xlu0 %2143 }
 0x9f8   : > { %v2253_v28 = vpop.permute.xlu0 %2252 }
 0x9fe   : > { %v3393_v13 = vpop.eup %3392 }
 0x9ff   : > { %v1978_v14 = vsel %vm1059_vm2, %v3393_v13, 0.0 }
 0xa00   : > { %1979 = vadd.xlane.f32.xlu1 %v1978_v14 }
 0xa11   : > { %2033 = vrot.lane.b32.xlu1 %v1922_v61, %s4209_s26 }
 0xa15   : > { %2145 = vrot.lane.b32.xlu1 %v1923_v50, %s4210_s27 }
 0xa19   : > { %2254 = vrot.lane.b32.xlu1 %v1923_v50, %s4211_s28  ;;  %s780_s28 = scalar_lea.vmem %s4170_s24, %s3598_s4 }
 0xa89   : > { %v1980_v15 = vpop.xlane.xlu1 %1979 }
 0xa8a   : > { %3394 = vrcp.f32 %v1980_v15 }
 0xa8d   : > { %v2034_v16 = vpop.permute.xlu1 %2033 }
 0xa91   : > { %v2146_v17 = vpop.permute.xlu1 %2145 }
 0xa92   : > { %v2151_v18 = vsel %vm1059_vm2, %v2146_v17, 0 }
 0xa93   : > { %3180 = vmatpush3.bf16.xpose.msra.mxu0 %v2151_v18 }
 0xa94   : > { %3191 = vmatprep.subr.bf16.mxu0 %v3421_v4 }
 0xa95   : > { %v2255_v53 = vpop.permute.xlu1 %2254 }
 0xa96   : > { %v2260_v25 = vsel %vm1059_vm2, %v2255_v53, 0 }
 0xa97   : > { %v3395_v20 = vpop.eup %3394 }
 0xa98   : > { %v1982_v21 = vmul.f32 %v3395_v20, %v3393_v13  ;;  %v3352_v13 = vld [vmem:[%s4160_s14 + $0x28] sm:$0xff]  }
 0xa9a   : > { %3182 = vmatmul.mubr.msk.bf16.vlgmr.msra.gmra.mxu0 %vm1059_vm2, %v2144_v22  ;;  %v1983_v26 = vpack.c.bf16 %v1982_v21, %v1982_v21 }
 0xa9b   : > { %3192 = vmatpush3.bf16.xpose.msra.mxu0 %v2260_v25  ;;  %3193 = vmatprep.mubr.msk.bf16.mxu0 %vm3422_vm0, %v3421_v4 }
 0xa9c   : > { %3164 = vmatmul.mubr.msk.bf16.vlgmr.msra.gmra.mxu1 %vm1059_vm2, %v1983_v26  ;;  %3203 = vmatprep.subr.bf16.mxu0 %v3421_v4 }
 0xa9d   : > { %3168 = vmatpush3.bf16.xpose.msra.mxu1 %v2042_v27  ;;  %3169 = vmatprep.mubr.msk.bf16.mxu1 %vm3422_vm0, %v3421_v4  ;;  %v3353_v27 = vld [vmem:[%s4160_s14 + $0x20] sm:$0xff]  }
 0xa9e   : > { %3173 = vmatprep.subr.bf16.mxu1 %v3421_v4 }
 0xaa2   : > { %3194 = vmatmul.mubr.msk.bf16.vlgmr.msra.gmra.mxu0 %vm1059_vm2, %v2253_v28  ;;  %v3355_v28 = vld [vmem:[%s4160_s14 + $0x10] sm:$0xff]  }
 0xaa3   : > { %3219 = vmatprep.mubr.msk.bf16.mxu0 %vm3422_vm0, %v3421_v4  ;;  %3204 = vmatpush3.bf16.msra.mxu0 %v3350_v36  ;;  %v3368_v36 = vld [vmem:[%s4166_s20 + $0x28] sm:$0xff]  }
 0xaa4   : > { %3170 = vmatmul.mubr.msk.bf16.vlgmr.msra.gmra.mxu1 %vm1059_vm2, %v2034_v16  ;;  %3205 = vmatprep.subr.bf16.mxu0 %v3421_v4 }
 0xaa5   : > { %3174 = vmatpush3.bf16.msra.mxu1 %v3934_v57  ;;  %3175 = vmatprep.mubr.msk.bf16.mxu1 %vm3422_vm0, %v3421_v4 }
 0xaa6   : > { %3185 = vmatprep.subr.bf16.mxu1 %v3421_v4 }
 0xaa7   : > { %3206 = vmatpush3.bf16.msra.mxu0 %v3351_v12  ;;  %v3369_v12 = vld [vmem:[%s4166_s20 + $0x20] sm:$0xff]  }
 0xaa8   : > { %3207 = vmatprep.subr.bf16.mxu0 %v3421_v4 }
 0xaab   : > { %3208 = vmatpush3.bf16.msra.mxu0 %v3352_v13  ;;  %v3370_v13 = vld [vmem:[%s4166_s20 + $0x18] sm:$0xff]  }
 0xaac   : > { %3209 = vmatprep.subr.bf16.mxu0 %v3421_v4 }
 0xaaf   : > { %3210 = vmatpush3.bf16.msra.mxu0 %v3353_v27  ;;  %v3373_v27 = vld [vmem:[%s4166_s20] sm:$0xff]  }
 0xab0   : > { %3211 = vmatprep.subr.bf16.mxu0 %v3421_v4 }
 0xb5a   : > { %v2187_v29 = vpop.f32.mrf.mxu0 }
 0xb5b   : > { %v2193_v33 = vmul.f32 0.35355338, %v2187_v29  ;;  %v3356_v29 = vld [vmem:[%s4160_s14 + $0x8] sm:$0xff]  }
 0xb5c   : > { %v3981_v35 = vpop.f32.mrf.mxu1  ;;  %v3183_v37 = vpop.f32.mrf.mxu0 }
 0xb5d   : > { %v2194_v38 = vsel %vm3947_vm3, %v2193_v33, -1e+09  ;;  %v3357_v33 = vld [vmem:[%s4160_s14] sm:$0xff]  }
 0xb5e   : > { %v3165_v39 = vpop.f32.mrf.mxu1  ;;  %v2190_v40 = vpop.f32.mrf.mxu0  ;;  %v2195_v41 = vsel %vm1059_vm2, %v2194_v38, -inf }
 0xb5f   : > { %2196 = vmax.xlane.f32.xlu0 %v2195_v41 }
 0xb60   : > { %v2027_v44 = vpop.f32.mrf.mxu1  ;;  %v3184_v45 = vpop.f32.mrf.mxu0 }
 0xb62   : > { %v3166_v46 = vpop.f32.mrf.mxu1  ;;  %v2296_v47 = vpop.f32.mrf.mxu0 }
 0xb63   : > { %v2302_v48 = vmul.f32 0.35355338, %v2296_v47  ;;  %v2030_v47 = vsel %vm1168_vm12, %v3981_v35, 0.0 }
 0xb64   : > { %v2078_v49 = vpop.f32.mrf.mxu1  ;;  %v3195_v24 = vpop.f32.mrf.mxu0 }
 0xb65   : > { %v2084_v50 = vmul.f32 0.35355338, %v2078_v49  ;;  %v2303_v51 = vsel %vm3947_vm3, %v2302_v48, -1e+09 }
 0xb66   : > { %v3171_v52 = vpop.f32.mrf.mxu1  ;;  %v2299_v54 = vpop.f32.mrf.mxu0  ;;  %v2304_v56 = vsel %vm1059_vm2, %v2303_v51, -inf }
 0xb67   : > { %2305 = vmax.xlane.f32.xlu0 %v2304_v56  ;;  %v2085_v58 = vsel %vm3947_vm3, %v2084_v50, -1e+09 }
 0xb68   : > { %v2081_v59 = vpop.f32.mrf.mxu1  ;;  %v3196_v31 = vpop.f32.mrf.mxu0  ;;  %v2086_v32 = vsel %vm1059_vm2, %v2085_v58, -inf }
 0xb69   : > { %2087 = vmax.xlane.f32.xlu1 %v2086_v32 }
 0xb6a   : > { %v3172_v60 = vpop.f32.mrf.mxu1 }
 0xbe8   : > { %v2197_v61 = vpop.xlane.xlu0 %2196 }
 0xbe9   : > { %v2198_v62 = vsub.f32 %v2194_v38, %v2197_v61 }
 0xbeb   : > { %v2199_v23 = vmul.f32 1.442695, %v2198_v62  ;;  %v3358_v62 = vld [vmem:[%s4164_s18 + $0x38] sm:$0xff]  }
 0xbed   : > { %3396 = vpow2.f32 %v2199_v23  ;;  %v3359_v23 = vld [vmem:[%s4164_s18 + $0x30] sm:$0xff]  }
 0xbf0   : > { %v2306_v63 = vpop.xlane.xlu0 %2305 }
 0xbf1   : > { %v2307_v0 = vsub.f32 %v2303_v51, %v2306_v63 }
 0xbf2   : > { %v2088_v1 = vpop.xlane.xlu1 %2087 }
 0xbf3   : > { %v2089_v3 = vsub.f32 %v2085_v58, %v2088_v1  ;;  %v2308_v6 = vmul.f32 1.442695, %v2307_v0 }
 0xbf5   : > { %v2090_v7 = vmul.f32 1.442695, %v2089_v3 }
 0xbf7   : > { %3398 = vpow2.f32 %v2090_v7  ;;  %v3361_v7 = vld [vmem:[%s4164_s18 + $0x20] sm:$0xff]  }
 0xbf8   : > { %3400 = vpow2.f32 %v2308_v6  ;;  %v3360_v6 = vld [vmem:[%s4164_s18 + $0x28] sm:$0xff]  }
 0xbfa   : > { %v3397_v5 = vpop.eup %3396 }
 0xbfb   : > { %v2201_v8 = vsel %vm1059_vm2, %v3397_v5, 0.0 }
 0xbfc   : > { %2202 = vadd.xlane.f32.xlu0 %v2201_v8  ;;  %v3363_v8 = vld [vmem:[%s4164_s18 + $0x10] sm:$0xff]  }
 0xc04   : > { %v3399_v9 = vpop.eup %3398 }
 0xc05   : > { %v2092_v10 = vsel %vm1059_vm2, %v3399_v9, 0.0  ;;  %v3401_v11 = vpop.eup %3400 }
 0xc06   : > { %2093 = vadd.xlane.f32.xlu1 %v2092_v10  ;;  %v2310_v2 = vsel %vm1059_vm2, %v3401_v11, 0.0  ;;  %v3365_v10 = vld [vmem:[%s4164_s18] sm:$0xff]  }
 0xc0a   : > { %2311 = vadd.xlane.f32.xlu1 %v2310_v2  ;;  %v3367_v2 = vld [vmem:[%s4166_s20 + $0x30] sm:$0xff]  }
 0xc85   : > { %v2203_v15 = vpop.xlane.xlu0 %2202 }
 0xc8f   : > { %v2094_v14 = vpop.xlane.xlu1 %2093 }
 0xc90   : > { %3402 = vrcp.f32 %v2094_v14  ;;  %v3371_v14 = vld [vmem:[%s4166_s20 + $0x10] sm:$0xff]  }
 0xc91   : > { %3404 = vrcp.f32 %v2203_v15 }
 0xc93   : > { %v2312_v16 = vpop.xlane.xlu1 %2311 }
 0xc94   : > { %3406 = vrcp.f32 %v2312_v16 }
 0xc9d   : > { %v3403_v17 = vpop.eup %3402 }
 0xc9e   : > { %v2096_v18 = vmul.f32 %v3403_v17, %v3399_v9  ;;  %v3405_v20 = vpop.eup %3404  ;;  %v3364_v9 = vld [vmem:[%s4164_s18 + $0x8] sm:$0xff]  }
 0xc9f   : > { %v2205_v53 = vmul.f32 %v3405_v20, %v3397_v5  ;;  %v3362_v5 = vld [vmem:[%s4164_s18 + $0x18] sm:$0xff]  }
 0xca0   : > { %v2097_v19 = vpack.c.bf16 %v2096_v18, %v2096_v18 }
 0xca1   : > { %v2206_v21 = vpack.c.bf16 %v2205_v53, %v2205_v53  ;;  %v3407_v22 = vpop.eup %3406  ;;  %v2938_v53 = vld [vmem:[%s4163_s17] ss:$0 sm:$0xff] }
 0xca2   : > { %3176 = vmatmul.mubr.msk.bf16.vlgmr.msra.gmra.mxu1 %vm1059_vm2, %v2097_v19  ;;  %v2314_v25 = vmul.f32 %v3407_v22, %v3401_v11  ;;  %v3366_v11 = vld [vmem:[%s4166_s20 + $0x38] sm:$0xff]   ;;  %v2937_v19 = vld [vmem:[%s4162_s16] ss:$0 sm:$0xff] }
 0xca3   : > { %3186 = vmatpush3.bf16.msra.mxu1 %v3934_v57  ;;  %3187 = vmatprep.mubr.msk.bf16.mxu1 %vm3422_vm0, %v3421_v4 }
 0xca4   : > { %3197 = vmatprep.subr.bf16.mxu1 %v3421_v4  ;;  %v2315_v26 = vpack.c.bf16 %v2314_v25, %v2314_v25 }
 0xcaa   : > { %3188 = vmatmul.mubr.msk.bf16.vlgmr.msra.gmra.mxu1 %vm1059_vm2, %v2206_v21 }
 0xcab   : > { %3198 = vmatpush3.bf16.msra.mxu1 %v3934_v57  ;;  %3199 = vmatprep.mubr.msk.bf16.mxu1 %vm3422_vm0, %v3421_v4  ;;  %v3354_v57 = vld [vmem:[%s4160_s14 + $0x18] sm:$0xff]  }
 0xcac   : > { %3223 = vmatprep.subr.bf16.mxu1 %v3421_v4  ;;  %3212 = vmatpush3.bf16.msra.mxu0 %v3354_v57  ;;  %v2939_v57 = vld [vmem:[%s4165_s19] ss:$0 sm:$0xff] }
 0xcad   : > { %3213 = vmatprep.subr.bf16.mxu0 %v3421_v4 }
 0xcb0   : > { %3214 = vmatpush3.bf16.msra.mxu0 %v3355_v28 }
 0xcb1   : > { %3215 = vmatprep.subr.bf16.mxu0 %v3421_v4 }
 0xcb2   : > { %3200 = vmatmul.mubr.msk.bf16.vlgmr.msra.gmra.mxu1 %vm1059_vm2, %v2315_v26  ;;  %v3372_v26 = vld [vmem:[%s4166_s20 + $0x8] sm:$0xff]  }
 0xcb3   : > { %3239 = vmatprep.mubr.msk.bf16.mxu1 %vm3422_vm0, %v3421_v4  ;;  %3224 = vmatpush3.bf16.msra.mxu1 %v3358_v62 }
 0xcb4   : > { %3216 = vmatpush3.bf16.msra.mxu0 %v3356_v29  ;;  %3225 = vmatprep.subr.bf16.mxu1 %v3421_v4 }
 0xcb5   : > { %3217 = vmatprep.subr.bf16.mxu0 %v3421_v4 }
 0xcb7   : > { %3226 = vmatpush3.bf16.msra.mxu1 %v3359_v23 }
 0xcb8   : > { %3218 = vmatpush3.bf16.msra.mxu0 %v3357_v33  ;;  %3227 = vmatprep.subr.bf16.mxu1 %v3421_v4 }
 0xcb9   : > { %3243 = vmatprep.subr.bf16.mxu0 %v3421_v4 }
 0xcbb   : > { %3228 = vmatpush3.bf16.msra.mxu1 %v3360_v6 }
 0xcbc   : > { %3229 = vmatprep.subr.bf16.mxu1 %v3421_v4 }
 0xcbf   : > { %3230 = vmatpush3.bf16.msra.mxu1 %v3361_v7 }
 0xcc0   : > { %3231 = vmatprep.subr.bf16.mxu1 %v3421_v4 }
 0xcc3   : > { %3232 = vmatpush3.bf16.msra.mxu1 %v3362_v5 }
 0xcc4   : > { %3233 = vmatprep.subr.bf16.mxu1 %v3421_v4 }
 0xcc7   : > { %3234 = vmatpush3.bf16.msra.mxu1 %v3363_v8 }
 0xcc8   : > { %3235 = vmatprep.subr.bf16.mxu1 %v3421_v4 }
 0xccb   : > { %3236 = vmatpush3.bf16.msra.mxu1 %v3364_v9 }
 0xccc   : > { %3237 = vmatprep.subr.bf16.mxu1 %v3421_v4 }
 0xccf   : > { %3238 = vmatpush3.bf16.msra.mxu1 %v3365_v10 }
 0xd62   : > { %v2135_v37 = vpop.f32.mrf.mxu1 }
 0xd63   : > { %v2141_v45 = vsel %vm3790_vm11, %v2135_v37, 0.0 }
 0xd64   : > { %v3177_v38 = vpop.f32.mrf.mxu1  ;;  %v2142_v49 = vadd.f32 %v2141_v45, %v2030_v47 }
 0xd66   : > { %v2138_v39 = vpop.f32.mrf.mxu1 }
 0xd68   : > { %v3178_v40 = vpop.f32.mrf.mxu1 }
 0xd6a   : > { %v2244_v41 = vpop.f32.mrf.mxu1 }
 0xd6b   : > { %v2250_v48 = vsel %vm3795_vm13, %v2244_v41, 0.0 }
 0xd6c   : > { %v3189_v44 = vpop.f32.mrf.mxu1  ;;  %v2251_v50 = vadd.f32 %v2250_v48, %v2142_v49 }
 0xd6e   : > { %v2247_v46 = vpop.f32.mrf.mxu1 }
 0xd70   : > { %v3190_v24 = vpop.f32.mrf.mxu1 }
 0xd72   : > { %v2353_v51 = vpop.f32.mrf.mxu1 }
 0xd73   : > { %v2359_v52 = vsel %vm3810_vm1, %v2353_v51, 0.0 }
 0xd74   : > { %v2360_v54 = vadd.f32 %v2359_v52, %v2251_v50  ;;  %v3201_v56 = vpop.f32.mrf.mxu1 }
 0xd76   : > { %v2361_v58 = vpack.c.bf16 %v2360_v54, %v2360_v54  ;;  %v2356_v30 = vpop.f32.mrf.mxu1 }
 0xd78   : > { %v3202_v59 = vpop.f32.mrf.mxu1  ;;  %3220 = vmatmul.mubr.bf16.vlgmr.msra.gmra.mxu0 %v2361_v58 }
 0xd79   : > { %3259 = vmatprep.mubr.msk.bf16.mxu0 %vm3422_vm0, %v3421_v4  ;;  %3244 = vmatpush3.bf16.msra.mxu0 %v3366_v11  ;;  %v2957_v59 = vld [vmem:[%s4168_s22] ss:$0 sm:$0xff] }
 0xd7a   : > { %3245 = vmatprep.subr.bf16.mxu0 %v3421_v4 }
 0xd7d   : > { %3246 = vmatpush3.bf16.msra.mxu0 %v3367_v2 }
 0xd7e   : > { %3247 = vmatprep.subr.bf16.mxu0 %v3421_v4 }
 0xd81   : > { %3248 = vmatpush3.bf16.msra.mxu0 %v3368_v36 }
 0xd82   : > { %3249 = vmatprep.subr.bf16.mxu0 %v3421_v4 }
 0xd85   : > { %3250 = vmatpush3.bf16.msra.mxu0 %v3369_v12 }
 0xd86   : > { %3251 = vmatprep.subr.bf16.mxu0 %v3421_v4 }
 0xd89   : > { %3252 = vmatpush3.bf16.msra.mxu0 %v3370_v13 }
 0xd8a   : > { %3253 = vmatprep.subr.bf16.mxu0 %v3421_v4 }
 0xd8d   : > { %3254 = vmatpush3.bf16.msra.mxu0 %v3371_v14 }
 0xd8e   : > { %3255 = vmatprep.subr.bf16.mxu0 %v3421_v4 }
 0xd91   : > { %3256 = vmatpush3.bf16.msra.mxu0 %v3372_v26 }
 0xd92   : > { %3257 = vmatprep.subr.bf16.mxu0 %v3421_v4  ;;  %v2948_v4 = vld [vmem:[%s4167_s21] ss:$0 sm:$0xff] }
 0xd95   : > { %3258 = vmatpush3.bf16.msra.mxu0 %v3373_v27 }
 0xe38   : > { %v2467_v35 = vpop.f32.mrf.mxu0 }
 0xe39   : > { %v2468_v31 = vadd.f32 %v2928_v34, %v2467_v35  ;;  %v2958_v35 = vld [vmem:[%s4169_s23] ss:$0 sm:$0xff] }
 0xe3a   : > { %v3221_v32 = vpop.f32.mrf.mxu0 }
 0xe3b   : > { %v2475_v60 = vadd.f32 %v2468_v31, %v3916_v42 }
 0xe3c   : > { %v2470_v43 = vpop.f32.mrf.mxu0 }
 0xe3d   : > { %2476 = vadd.xlane.f32.xlu0 %v2475_v60 }
 0xe3e   : > { %v3222_v61 = vpop.f32.mrf.mxu0 }
 0xec6   : > { %v2477_v63 = vpop.xlane.xlu0 %2476 }
 0xec7   : > { %v2478_v0 = vmul.f32 0.03125, %v2477_v63 }
 0xec9   : > { %v2479_v42 = vsub.f32 %v2475_v60, %v2478_v0 }
 0xecb   : > { %v2480_v1 = vsel %vm1506_vm15, %v2479_v42, 0.0 }
 0xecc   : > { %v2481_v3 = vmul.f32 %v2480_v1, %v2480_v1 }
 0xece   : > { %2482 = vadd.xlane.f32.xlu1 %v2481_v3 }
 0xf57   : > { %v2483_v15 = vpop.xlane.xlu1 %2482 }
 0xf58   : > { %v2484_v16 = vmul.f32 0.03125, %v2483_v15 }
 0xf5a   : > { %v2485_v17 = vadd.f32 1e-05, %v2484_v16 }
 0xf5c   : > { %3408 = vrsqrt.f32 %v2485_v17 }
 0xf69   : > { %v3409_v18 = vpop.eup %3408 }
 0xf6a   : > { %v2487_v20 = vmul.f32 %v3409_v18, %v2480_v1 }
 0xf6c   : > { %v2494_v21 = vmul.f32 %v2937_v19, %v2487_v20 }
 0xf6e   : > { %v2501_v22 = vadd.f32 %v2938_v53, %v2494_v21 }
 0xf70   : > { %v2502_v25 = vpack.c.bf16 %v2501_v22, %v2501_v22 }
 0xf72   : > { %3240 = vmatmul.mubr.bf16.vlgmr.msra.gmra.mxu1 %v2502_v25 }
0x1032   : > { %v2608_v28 = vpop.f32.mrf.mxu1 }
0x1033   : > { %v2609_v29 = vadd.f32 %v2939_v57, %v2608_v28 }
0x1034   : > { %v3241_v33 = vpop.f32.mrf.mxu1 }
0x1035   : > { %v2614_v37 = vmax.f32 %v2609_v29, 0.0 }
0x1036   : > { %v2611_v38 = vpop.f32.mrf.mxu1 }
0x1037   : > { %v2615_v39 = vpack.c.bf16 %v2614_v37, %v2614_v37 }
0x1038   : > { %v3242_v40 = vpop.f32.mrf.mxu1 }
0x1039   : > { %3260 = vmatmul.mubr.bf16.vlgmr.msra.gmra.mxu0 %v2615_v39 }
0x10f9   : > { %v2721_v41 = vpop.f32.mrf.mxu0 }
0x10fa   : > { %v2722_v44 = vadd.f32 %v2948_v4, %v2721_v41 }
0x10fb   : > { %v3261_v45 = vpop.f32.mrf.mxu0 }
0x10fc   : > { %v2729_v46 = vadd.f32 %v2722_v44, %v2501_v22 }
0x10fd   : > { %v2724_v47 = vpop.f32.mrf.mxu0 }
0x10fe   : > { %2730 = vadd.xlane.f32.xlu0 %v2729_v46 }
0x10ff   : > { %v3262_v48 = vpop.f32.mrf.mxu0 }
0x1187   : > { %v2731_v49 = vpop.xlane.xlu0 %2730 }
0x1188   : > { %v2732_v24 = vmul.f32 0.03125, %v2731_v49 }
0x118a   : > { %v2733_v50 = vsub.f32 %v2729_v46, %v2732_v24 }
0x118c   : > { %v2734_v51 = vsel %vm1506_vm15, %v2733_v50, 0.0 }
0x118d   : > { %v2735_v52 = vmul.f32 %v2734_v51, %v2734_v51 }
0x118f   : > { %2736 = vadd.xlane.f32.xlu1 %v2735_v52 }
0x1218   : > { %v2737_v54 = vpop.xlane.xlu1 %2736 }
0x1219   : > { %v2738_v56 = vmul.f32 0.03125, %v2737_v54 }
0x121b   : > { %v2739_v58 = vadd.f32 1e-05, %v2738_v56 }
0x121d   : > { %3410 = vrsqrt.f32 %v2739_v58 }
0x122a   : > { %v3411_v30 = vpop.eup %3410 }
0x122b   : > { %v2741_v34 = vmul.f32 %v3411_v30, %v2734_v51 }
0x122d   : > { %v2748_v31 = vmul.f32 %v2957_v59, %v2741_v34 }
0x122f   : > { %v2755_v55 = vadd.f32 %v2958_v35, %v2748_v31 }
0x1231   : > { %2756 = vst [vmem:[%s780_s28] sm:$0xff] %v2755_v55 }
0x1232 PF: > { %s34_s5 = sadd.s32 1, %s3418_s5  }
0x1233   : > { %p31_p4 = scmp.ge.s32.totalorder %s34_s5, 4  }
0x1235   :  { %33 = sbr.rel (!%p31_p4) target bundleno = 10 (0xa), region = 155 }

// kernel: transformer_forward.9
= control target key start
LH: loop header
LB: loop body
LE: loop exit
PB: predicated region body
PF: predicated region fallthrough
CT: control target
= control target key end

     0   :  { %s429_s12 = smov 0   ;;  %s473_s0 = inlined_call_operand.vmem [shape: f32[16,128], index: 0, kind: input, shape index: {}]   ;;  %s474_s1 = inlined_call_operand.vmem [shape: bf16[128,128], index: 1, kind: input, shape index: {}]   ;;  %s475_s2 = inlined_call_operand.vmem [shape: f32[1,128], index: 2, kind: input, shape index: {}]   ;;  %s476_s3 = inlined_call_operand.vmem [shape: f32[16,128], index: 3, kind: output, shape index: {}]  }
   0x1 LB: > { %s334_s13 = sadd.s32 4294967295, %s405_s12   ;;  %p338_p0 = scmp.ge.s32.totalorder %s405_s12, 1  ;;  %s405_s12 = sphi %s429_s12, %s13_s12  }
   0x2   : > { %p136_p1 = scmp.lt.s32.totalorder %s405_s12, 3 }
   0x4   : > { %p137_p2 = pnand %p338_p0, %p136_p1 }
   0x5   : > { %p158_p3 = scmp.lt.s32.totalorder (!%p137_p2), %s334_s13, 1 }
   0x6   : > { %140 = sbr.rel (%p137_p2) target bundleno = 243 (0xf3), region = 32 }
   0xb   : > { %v391_v0 = vld [vmem:[%s474_s1 + $0x38] sm:$0xff]   ;;  %v407_v1 = vmov 0.0   ;;  %v392_v2 = vld [vmem:[%s474_s1 + $0x30] sm:$0xff]   ;;  %vm408_vm0 = vmmov 0   ;;  %v393_v3 = vld [vmem:[%s474_s1 + $0x28] sm:$0xff]   ;;  %s478_s13 = smov (!%p158_p3, %s334_s13), 1 }
   0xc   : > { %361 = vmatprep.subr.bf16.mxu0 %v407_v1  ;;  %377 = vmatprep.mubr.msk.bf16.mxu0 %vm408_vm0, %v407_v1  ;;  %v394_v4 = vld [vmem:[%s474_s1 + $0x20] sm:$0xff]   ;;  %v395_v5 = vld [vmem:[%s474_s1 + $0x18] sm:$0xff]   ;;  %v396_v6 = vld [vmem:[%s474_s1 + $0x10] sm:$0xff]   ;;  %s339_s26 = sshll.u32 %s478_s13, 3 }
   0xd   : > { %362 = vmatpush3.bf16.msra.mxu0 %v391_v0  ;;  %v397_v7 = vld [vmem:[%s474_s1 + $0x8] sm:$0xff]   ;;  %s161_s4 = scalar_lea.vmem %s473_s0, %s339_s26  ;;  %v398_v8 = vld [vmem:[%s474_s1] sm:$0xff]   ;;  %s165_s11 = scalar_lea.vmem %s476_s3, %s339_s26 }
   0xe   : > { %363 = vmatprep.subr.bf16.mxu0 %v407_v1  ;;  %v167_v9 = vld [vmem:[%s161_s4] sm:$0xff] }
   0xf   : > { %v168_v10 = vpack.c.bf16 %v167_v9, %v167_v9  ;;  %v341_v11 = vld [vmem:[%s475_s2] ss:$0 sm:$0xff] }
  0x11   : > { %364 = vmatpush3.bf16.msra.mxu0 %v392_v2 }
  0x12   : > { %365 = vmatprep.subr.bf16.mxu0 %v407_v1 }
  0x15   : > { %366 = vmatpush3.bf16.msra.mxu0 %v393_v3 }
  0x16   : > { %367 = vmatprep.subr.bf16.mxu0 %v407_v1 }
  0x19   : > { %368 = vmatpush3.bf16.msra.mxu0 %v394_v4 }
  0x1a   : > { %369 = vmatprep.subr.bf16.mxu0 %v407_v1 }
  0x1d   : > { %370 = vmatpush3.bf16.msra.mxu0 %v395_v5 }
  0x1e   : > { %371 = vmatprep.subr.bf16.mxu0 %v407_v1 }
  0x21   : > { %372 = vmatpush3.bf16.msra.mxu0 %v396_v6 }
  0x22   : > { %373 = vmatprep.subr.bf16.mxu0 %v407_v1 }
  0x25   : > { %374 = vmatpush3.bf16.msra.mxu0 %v397_v7 }
  0x26   : > { %375 = vmatprep.subr.bf16.mxu0 %v407_v1 }
  0x29   : > { %376 = vmatpush3.bf16.msra.mxu0 %v398_v8 }
  0x2c   : > { %378 = vmatmul.mubr.bf16.vlgmr.msra.gmra.mxu0 %v168_v10 }
  0xec   : > { %v274_v12 = vpop.f32.mrf.mxu0 }
  0xed   : > { %v275_v13 = vadd.f32 %v341_v11, %v274_v12 }
  0xee   : > { %v379_v14 = vpop.f32.mrf.mxu0 }
  0xef   : > { %280 = vst [vmem:[%s165_s11] sm:$0xff] %v275_v13 }
  0xf0   : > { %v277_v15 = vpop.f32.mrf.mxu0 }
  0xf2   : > { %v380_v16 = vpop.f32.mrf.mxu0 }
  0xf3 PF: > { %s13_s12 = sadd.s32 1, %s405_s12  }
  0xf4   : > { %p10_p4 = scmp.ge.s32.totalorder %s13_s12, 4  }
  0xf6   :  { %12 = sbr.rel (!%p10_p4) target bundleno = 1 (0x1), region = 62 }

// kernel: transformer_forward.8
= control target key start
LH: loop header
LB: loop body
LE: loop exit
PB: predicated region body
PF: predicated region fallthrough
CT: control target
= control target key end

     0   :  { %s4234_s0 = inlined_call_operand.vmem [shape: f32[2,8,128], index: 0, kind: input, shape index: {}]   ;;  %s4235_s1 = inlined_call_operand.vmem [shape: f32[2,8,128], index: 1, kind: input, shape index: {}]   ;;  %s4236_s2 = inlined_call_operand.vmem [shape: f32[2,8,1], index: 2, kind: input, shape index: {}]   ;;  %s4237_s3 = inlined_call_operand.vmem [shape: f32[2,1,8], index: 3, kind: input, shape index: {}]   ;;  %s4238_s4 = inlined_call_operand.vmem [shape: bf16[128,384], index: 4, kind: input, shape index: {}]   ;;  %s4239_s5 = inlined_call_operand.vmem [shape: f32[1,384], index: 5, kind: input, shape index: {}]   ;;  %s4240_s6 = inlined_call_operand.vmem [shape: bf16[128,128], index: 6, kind: input, shape index: {}]   ;;  %s4241_s7 = inlined_call_operand.vmem [shape: f32[1,128], index: 7, kind: input, shape index: {}]   ;;  %s4242_s8 = inlined_call_operand.vmem [shape: f32[1,128], index: 8, kind: input, shape index: {}]   ;;  %s4243_s9 = inlined_call_operand.vmem [shape: f32[1,128], index: 9, kind: input, shape index: {}]   ;;  %s4244_s10 = inlined_call_operand.vmem [shape: bf16[128,128], index: 10, kind: input, shape index: {}]   ;;  %s4245_s11 = inlined_call_operand.vmem [shape: f32[1,128], index: 11, kind: input, shape index: {}]   ;;  %s4246_s12 = inlined_call_operand.vmem [shape: bf16[128,256], index: 12, kind: input, shape index: {}]   ;;  %s4247_s13 = inlined_call_operand.vmem [shape: f32[1,256], index: 13, kind: input, shape index: {}]   ;;  %s4248_s14 = inlined_call_operand.vmem [shape: bf16[128,128], index: 14, kind: input, shape index: {}]   ;;  %s4249_s15 = inlined_call_operand.vmem [shape: f32[1,128], index: 15, kind: input, shape index: {}]   ;;  %s4250_s16 = inlined_call_operand.vmem [shape: f32[1,128], index: 16, kind: input, shape index: {}]   ;;  %s4251_s17 = inlined_call_operand.vmem [shape: f32[1,128], index: 17, kind: input, shape index: {}]   ;;  %s4252_s18 = inlined_call_operand.vmem [shape: bf16[128,128], index: 18, kind: input, shape index: {}]   ;;  %s4253_s19 = inlined_call_operand.vmem [shape: f32[1,128], index: 19, kind: input, shape index: {}]   ;;  %s4254_s20 = inlined_call_operand.vmem [shape: bf16[128,128], index: 20, kind: input, shape index: {}]   ;;  %s4255_s21 = inlined_call_operand.vmem [shape: f32[1,128], index: 21, kind: input, shape index: {}]   ;;  %s4256_s22 = inlined_call_operand.vmem [shape: f32[1,128], index: 22, kind: input, shape index: {}]   ;;  %s4257_s23 = inlined_call_operand.hbm [shape: f32[1,128], index: 23, kind: input, shape index: {}]   ;;  %s4258_s24 = inlined_call_operand.vmem [shape: f32[2,8,128], index: 24, kind: output, shape index: {}]  }
   0x1   :  { %4268 = sst [smem:[#allocation5_spill]] %s4234_s0 }
   0x2   :  { %4269 = sst [smem:[#allocation6_spill]] %s4235_s1 }
   0x3   :  { %4270 = sst [smem:[#allocation7_spill]] %s4236_s2 }
   0x4   :  { %4271 = sst [smem:[#allocation8_spill]] %s4237_s3 }
   0x5   :  { %4272 = sst [smem:[#allocation9_spill]] %s4238_s4 }
   0x6   :  { %4273 = sst [smem:[#allocation10_spill]] %s4239_s5 }
   0x7   :  { %4274 = sst [smem:[#allocation11_spill]] %s4240_s6 }
   0x8   :  { %4275 = sst [smem:[#allocation12_spill]] %s4241_s7 }
   0x9   :  { %4276 = sst [smem:[#allocation13_spill]] %s4242_s8 }
   0xa   :  { %4277 = sst [smem:[#allocation14_spill]] %s4257_s23 }
   0xb   :  { %29 = vsyncpa [#allocation3], 0  ;;  %s3620_s5 = smov 0  }
   0xc LB: > { %s3626_s26 = sadd.s32 4294967295, %s3486_s5   ;;  %p2870_p0 = scmp.ge.s32.totalorder %s3486_s5, 1  ;;  %s3486_s5 = sphi %s3620_s5, %s35_s5  }
   0xd   : > { %p590_p1 = scmp.lt.s32.totalorder %s3486_s5, 3  ;;  %p3298_p3 = scmp.eq.s32.totalorder %s3626_s26, 0 }
   0xe   : > { %s3488_s28 = smov [#allocation2]  }
   0xf   : > { %p3630_p2 = pnand %p2870_p0, %p590_p1  ;;  %s660_s6 = sshll.u32 %s3488_s28, 4  ;;  %s661_s6 = int_to_ptr.vmem [resolvable:$true] %s660_s6 }
  0x10   : > { %s3461_s2 = scalar_lea.vmem %s661_s6, 16  ;;  %s3468_s29 = scalar_lea.vmem %s661_s6, 32 }
  0x11   : > { %p3294_p4 = pneg %p3630_p2  ;;  %p3462_p7 = scmp.ne.s32.totalorder %s661_s6, %s3461_s2 }
  0x12   : > { %p3469_p10 = scmp.lt.s32.totalorder %s661_s6, %s661_s6  ;;  %p3470_p11 = scmp.lt.s32.totalorder %s3468_s29, %s3461_s2 }
  0x13   : > { %p3295_p5 = pnand %p3298_p3, %p3294_p4 }
  0x14   : > { %p3471_p12 = por %p3470_p11, %p3469_p10 }
  0x15   : > { %p3452_p6 = pneg %p3295_p5 }
  0x17   : > { %p3464_p8 = pnand %p3462_p7, %p3452_p6 }
  0x19   : > { %p3465_p9 = pneg %p3464_p8 }
  0x1b   : > { %p3472_p13 = pnand %p3471_p12, %p3465_p9 }
  0x1d   : > { %3475 = shalt.err (!%p3472_p13)
}
  0x1e   : > { %s4279_s23 = sld [smem:[#allocation14_spill]] }
  0x20   : > { %700 = sbr.rel (%p3630_p2) target bundleno = 4681 (0x1249), region = 116 }
  0x24   : > { %3297 = dma.hbm_to_vmem [thread:$0]  (!%p3295_p5), %s4279_s23, 16, %s661_s6, [#allocation3]  }
  0x25   : > { %3481 = dma.done.wait (%p3298_p3), [#allocation3], 16  }
  0x26   : > { %3483 = vsyncadd (%p3298_p3), [#allocation3], 4294967280  ;;  %v3489_v0 = vmov 0   ;;  %v3490_v1 = vmov 0.0   ;;  %s4280_s25 = sld [smem:[#allocation9_spill]]  ;;  %p775_p0 = scmp.lt.s32.totalorder %s3626_s26, 1  ;;  %v832_v30 = vlaneseq }
  0x27   : > { %1007 = vmatprep.mubr.bf16.mxu0 %v3489_v0  ;;  %3074 = vmatprep.subr.bf16.mxu1 %v3490_v1  ;;  %s4281_s28 = sld [smem:[#allocation5_spill]]  ;;  %vm3491_vm0 = vmmov 0   ;;  %vm1072_vm2 = vcmask 64512   ;;  %s4265_s4 = smov 120   ;;  %vm1136_vm3 = vcmask 1043456  }
  0x28   : > { %3315 = vset.pattern.permute.xlu0 %v3489_v0  ;;  %s4303_s26 = smov (!%p775_p0, %s3626_s26), 1  ;;  %3090 = vmatprep.mubr.msk.bf16.mxu1 %vm3491_vm0, %v3490_v1  ;;  %s4282_s29 = sld [smem:[#allocation7_spill]]  ;;  %v3758_v31 = vshrl.u32 %v832_v30, 7  ;;  %v3782_v55 = vand.u32 127, %v832_v30 }
  0x29   : > { %s3689_s0 = sshll.u32 %s4303_s26, 3  ;;  %s4283_s8 = sld [smem:[#allocation10_spill]] }
  0x2a   : > { %v838_v32 = vsub.s32 1, %v3758_v31  ;;  %v3767_v36 = vsub.s32 0, %v3758_v31  ;;  %v842_v46 = vsub.s32 2, %v3758_v31  ;;  %vm1067_vm4 = vcmp.le.s32.totalorder %v3782_v55, %v3758_v31  ;;  %s4261_s1 = smov 104   ;;  %s4263_s27 = smov 112  }
  0x2b   : > { %s4286_s2 = sld [smem:[#allocation11_spill]]  ;;  %vm1294_vm7 = vcmp.ge.s32.totalorder %v3782_v55, 8  ;;  %vm1295_vm8 = vcmp.lt.s32.totalorder %v3782_v55, 16  ;;  %vm1406_vm9 = vcmp.ge.s32.totalorder %v3782_v55, 16  ;;  %vm1407_vm10 = vcmp.lt.s32.totalorder %v3782_v55, 24 }
  0x2c   : > { %v3316_v2 = vld [vmem:[%s4280_s25 + $0xac] ss:$12 sps:$4 sm:$0xff]   ;;  %v3318_v3 = vld [vmem:[%s4280_s25 + $0xa8] ss:$12 sps:$4 sm:$0xff]   ;;  %v3321_v5 = vld [vmem:[%s4280_s25 + $0x90] ss:$12 sps:$4 sm:$0xff]  }
  0x2d   : > { %975 = vmatprep.subr.bf16.mxu0 %v3316_v2  ;;  %v3319_v4 = vld [vmem:[%s4280_s25 + $0x94] ss:$12 sps:$4 sm:$0xff]   ;;  %v3322_v6 = vld [vmem:[%s4280_s25 + $0x7c] ss:$12 sps:$4 sm:$0xff]   ;;  %v3324_v7 = vld [vmem:[%s4280_s25 + $0x78] ss:$12 sps:$4 sm:$0xff]   ;;  %s778_s6 = scalar_lea.vmem %s4281_s28, %s3689_s0 }
  0x2e   : > { %976 = vmatpush1.bf16.msra.mxu0 %v3318_v3  ;;  %v3325_v8 = vld [vmem:[%s4280_s25 + $0x64] ss:$12 sps:$4 sm:$0xff]   ;;  %v3327_v9 = vld [vmem:[%s4280_s25 + $0x60] ss:$12 sps:$4 sm:$0xff]   ;;  %v3330_v13 = vld [vmem:[%s4280_s25 + $0x48] ss:$12 sps:$4 sm:$0xff]   ;;  %s786_s7 = scalar_lea.vmem %s4282_s29, %s3689_s0 }
  0x2f   : > { %977 = vmatprep.subr.bf16.mxu0 %v3319_v4  ;;  %v3340_v10 = vld [vmem:[%s4280_s25 + $0xb0] ss:$12 sps:$4 sm:$0xff]   ;;  %v3328_v11 = vld [vmem:[%s4280_s25 + $0x4c] ss:$12 sps:$4 sm:$0xff]   ;;  %v3331_v14 = vld [vmem:[%s4280_s25 + $0x34] ss:$12 sps:$4 sm:$0xff]  }
  0x30   : > { %3075 = vmatpush3.bf16.msra.mxu1 %v3340_v10  ;;  %v3341_v12 = vld [vmem:[%s4280_s25 + $0x98] ss:$12 sps:$4 sm:$0xff]   ;;  %v3333_v15 = vld [vmem:[%s4280_s25 + $0x30] ss:$12 sps:$4 sm:$0xff]   ;;  %v3342_v16 = vld [vmem:[%s4280_s25 + $0x80] ss:$12 sps:$4 sm:$0xff]  }
  0x31   : > { %3076 = vmatprep.subr.bf16.mxu1 %v3490_v1  ;;  %v3334_v17 = vld [vmem:[%s4280_s25 + $0x1c] ss:$12 sps:$4 sm:$0xff]   ;;  %v3336_v19 = vld [vmem:[%s4280_s25 + $0x18] ss:$12 sps:$4 sm:$0xff]   ;;  %v3339_v22 = vld [vmem:[%s4280_s25] ss:$12 sps:$4 sm:$0xff]  }
  0x32   : > { %978 = vmatpush1.bf16.msra.mxu0 %v3321_v5  ;;  %v3343_v18 = vld [vmem:[%s4280_s25 + $0x68] ss:$12 sps:$4 sm:$0xff]   ;;  %v3337_v20 = vld [vmem:[%s4280_s25 + $0x4] ss:$12 sps:$4 sm:$0xff]   ;;  %v3346_v26 = vld [vmem:[%s4280_s25 + $0x20] ss:$12 sps:$4 sm:$0xff]  }
  0x33   : > { %979 = vmatprep.subr.bf16.mxu0 %v3322_v6  ;;  %v3344_v21 = vld [vmem:[%s4280_s25 + $0x50] ss:$12 sps:$4 sm:$0xff]   ;;  %v3728_v23 = vld [vmem:[%s778_s6] sm:$0xff]  ;;  %v3347_v27 = vld [vmem:[%s4280_s25 + $0x8] ss:$12 sps:$4 sm:$0xff]   ;;  %vm1181_vm12 = vcmp.lt.s32.totalorder %v3782_v55, 8 }
  0x34   : > { %3077 = vmatpush3.bf16.msra.mxu1 %v3341_v12  ;;  %v3345_v24 = vld [vmem:[%s4280_s25 + $0x38] ss:$12 sps:$4 sm:$0xff]   ;;  %v797_v25 = vpack.c.bf16 %v3728_v23, %v3728_v23  ;;  %v830_v33 = vld [vmem:[%s4283_s8] sm:$0x7]  ;;  %vm3881_vm11 = vmand %vm1294_vm7, %vm1295_vm8  ;;  %vm1518_vm14 = vcmp.ge.s32.totalorder %v3782_v55, 24  ;;  %vm1519_vm15 = vcmp.lt.s32.totalorder %v3782_v55, 32 }
  0x35   : > { %3078 = vmatprep.subr.bf16.mxu1 %v3490_v1  ;;  %v1056_v28 = vld [vmem:[%s786_s7] sm:$0xff]  ;;  %v839_v34 = vrot.slane %v830_v33, %v838_v32  ;;  %v835_v40 = vrot.slane %v830_v33, %v3767_v36  ;;  %v843_v47 = vrot.slane %v830_v33, %v842_v46  ;;  %vm3886_vm13 = vmand %vm1406_vm9, %vm1407_vm10  ;;  %s4293_s30 = sld [smem:[#allocation12_spill]] }
  0x36   : > { %980 = vmatpush1.bf16.msra.mxu0 %v3324_v7  ;;  %vm1057_vm1 = vcmp.gt.f32.partialorder %v1056_v28, 0.5  ;;  %s4295_s3 = sld [smem:[#allocation13_spill]] }
  0x37   : > { %981 = vmatprep.subr.bf16.mxu0 %v3325_v8  ;;  %v1058_v29 = vsel %vm1057_vm1, 1, %v3489_v0  ;;  %vm3901_vm1 = vmand %vm1518_vm14, %vm1519_vm15  ;;  %s4296_s29 = sld [smem:[#allocation8_spill]] }
  0x38   : > { %3079 = vmatpush3.bf16.msra.mxu1 %v3342_v16  ;;  %1060 = vperm.xlu0 %3315, %v1058_v29  }
  0x39   : > { %3080 = vmatprep.subr.bf16.mxu1 %v3490_v1 }
  0x3a   : > { %982 = vmatpush1.bf16.msra.mxu0 %v3327_v9 }
  0x3b   : > { %983 = vmatprep.subr.bf16.mxu0 %v3328_v11 }
  0x3c   : > { %3081 = vmatpush3.bf16.msra.mxu1 %v3343_v18 }
  0x3d   : > { %3082 = vmatprep.subr.bf16.mxu1 %v3490_v1  ;;  %s789_s7 = scalar_lea.vmem %s4296_s29, %s4303_s26  ;;  %s4299_s26 = smov 120  }
  0x3e   : > { %984 = vmatpush1.bf16.msra.mxu0 %v3330_v13 }
  0x3f   : > { %985 = vmatprep.subr.bf16.mxu0 %v3331_v14 }
  0x40   : > { %3083 = vmatpush3.bf16.msra.mxu1 %v3344_v21 }
  0x41   : > { %3084 = vmatprep.subr.bf16.mxu1 %v3490_v1 }
  0x42   : > { %986 = vmatpush1.bf16.msra.mxu0 %v3333_v15 }
  0x43   : > { %987 = vmatprep.subr.bf16.mxu0 %v3334_v17 }
  0x44   : > { %3085 = vmatpush3.bf16.msra.mxu1 %v3345_v24 }
  0x45   : > { %3086 = vmatprep.subr.bf16.mxu1 %v3490_v1 }
  0x46   : > { %988 = vmatpush1.bf16.msra.mxu0 %v3336_v19 }
  0x47   : > { %989 = vmatprep.subr.bf16.mxu0 %v3337_v20 }
  0x48   : > { %3087 = vmatpush3.bf16.msra.mxu1 %v3346_v26 }
  0x49   : > { %3088 = vmatprep.subr.bf16.mxu1 %v3490_v1 }
  0x4a   : > { %990 = vmatpush1.bf16.msra.mxu0 %v3339_v22 }
  0x4b   : > { %3118 = vmatprep.subr.bf16.mxu0 %v3490_v1 }
  0x4c   : > { %3089 = vmatpush3.bf16.msra.mxu1 %v3347_v27 }
  0x4d   : > { %1008 = vmatmul.mubr.bf16.vlgmr.msra.gmra.mxu0 %v797_v25  ;;  %3094 = vmatprep.subr.bf16.mxu1 %v3490_v1 }
  0x4e   : > { %3120 = vmatprep.mubr.msk.bf16.mxu0 %vm3491_vm0, %v3490_v1 }
  0x4f   : > { %3091 = vmatmul.mubr.bf16.vlgmr.msra.gmra.mxu1 %v797_v25 }
  0x50   : > { %3096 = vmatprep.mubr.msk.bf16.mxu1 %vm3491_vm0, %v3490_v1 }
  0xb3   : > { %v1061_v56 = vpop.permute.xlu0 %1060 }
  0xb4   : > { %vm1062_vm5 = vcmp.eq.s32.totalorder %v1061_v56, 1 }
  0xb5   : > { %vm3786_vm6 = vmand %vm1062_vm5, %vm1067_vm4 }
 0x10d   : > { %v1009_v35 = vpop.f32.mrf.mxu0 }
 0x10e   : > { %v1010_v44 = vadd.f32 %v1009_v35, %v835_v40 }
 0x10f   : > { %v1011_v37 = vpop.f32.mrf.mxu0  ;;  %v1050_v48 = vpop.f32.mrf.mxu1 }
 0x110   : > { %v1012_v38 = vadd.f32 %v1011_v37, %v839_v34  ;;  %v1070_v45 = vpack.c.bf16 %v1010_v44, %v1010_v44  ;;  %v1051_v49 = vadd.f32 %v1050_v48, %v843_v47 }
 0x111   : > { %v1013_v39 = vpop.f32.mrf.mxu0  ;;  %v3092_v50 = vpop.f32.mrf.mxu1 }
 0x112   : > { %v1071_v41 = vpack.c.bf16 %v1012_v38, %v1012_v38  ;;  %v1069_v51 = vpack.c.bf16 %v1051_v49, %v1051_v49 }
 0x113   : > { %v1014_v42 = vpop.f32.mrf.mxu0  ;;  %v1053_v52 = vpop.f32.mrf.mxu1 }
 0x114   : > { %1189 = vrot.lane.b32.xlu1 %v1071_v41, %s4265_s4  ;;  %v1077_v43 = vsel %vm1072_vm2, %v1071_v41, 0  ;;  %v3778_v53 = vsel %vm1136_vm3, %v1069_v51, 0 }
 0x115   : > { %3095 = vmatpush3.bf16.xpose.msra.mxu1 %v1077_v43  ;;  %v3093_v54 = vpop.f32.mrf.mxu1 }
 0x116   : > { %3100 = vmatprep.subr.bf16.mxu1 %v3490_v1 }
 0x11c   : > { %3097 = vmatmul.mubr.msk.bf16.vlgmr.msra.gmra.mxu1 %vm1072_vm2, %v1070_v45 }
 0x11d   : > { %3102 = vmatprep.mubr.msk.bf16.mxu1 %vm3491_vm0, %v3490_v1  ;;  %3101 = vmatpush3.bf16.msra.mxu1 %v3778_v53 }
 0x11e   : > { %3106 = vmatprep.subr.bf16.mxu1 %v3490_v1 }
 0x186   : > { %v1190_v8 = vpop.permute.xlu1 %1189 }
 0x187   : > { %v1195_v19 = vsel %vm1072_vm2, %v1190_v8, 0 }
 0x1dc   : > { %v1113_v58 = vpop.f32.mrf.mxu1 }
 0x1dd   : > { %v1119_v59 = vmul.f32 0.35355338, %v1113_v58 }
 0x1de   : > { %v3098_v60 = vpop.f32.mrf.mxu1 }
 0x1df   : > { %v1120_v61 = vsel %vm3786_vm6, %v1119_v59, -1e+09 }
 0x1e0   : > { %v1116_v62 = vpop.f32.mrf.mxu1  ;;  %v1121_v63 = vsel %vm1072_vm2, %v1120_v61, -inf }
 0x1e1   : > { %1122 = vmax.xlane.f32.xlu0 %v1121_v63 }
 0x1e2   : > { %v3099_v2 = vpop.f32.mrf.mxu1 }
 0x1f7   : > { %1411 = vrot.lane.b32.xlu0 %v1070_v45, %s4261_s1 }
 0x26a   : > { %v1123_v3 = vpop.xlane.xlu0 %1122 }
 0x26b   : > { %v1124_v4 = vsub.f32 %v1120_v61, %v1123_v3 }
 0x26d   : > { %v1125_v5 = vmul.f32 1.442695, %v1124_v4 }
 0x26e   : > { %v1412_v20 = vpop.permute.xlu0 %1411 }
 0x26f   : > { %3412 = vpow2.f32 %v1125_v5  ;;  %v3348_v5 = vld [vmem:[%s4286_s2 + $0x38] sm:$0xff]  }
 0x27c   : > { %v3413_v6 = vpop.eup %3412 }
 0x27d   : > { %v1127_v7 = vsel %vm1072_vm2, %v3413_v6, 0.0 }
 0x27e   : > { %1128 = vadd.xlane.f32.xlu1 %v1127_v7  ;;  %v3350_v7 = vld [vmem:[%s4286_s2 + $0x28] sm:$0xff]  }
 0x28f   : > { %1186 = vrot.lane.b32.xlu1 %v1070_v45, %s4265_s4 }
 0x293   : > { %1301 = vrot.lane.b32.xlu1 %v1071_v41, %s4263_s27 }
 0x297   : > { %1299 = vrot.lane.b32.xlu1 %v1070_v45, %s4263_s27 }
 0x29b   : > { %1413 = vrot.lane.b32.xlu1 %v1071_v41, %s4261_s1 }
 0x307   : > { %v1129_v9 = vpop.xlane.xlu1 %1128 }
 0x308   : > { %3414 = vrcp.f32 %v1129_v9 }
 0x30b   : > { %v1187_v10 = vpop.permute.xlu1 %1186 }
 0x30f   : > { %v1302_v11 = vpop.permute.xlu1 %1301 }
 0x310   : > { %v1307_v12 = vsel %vm1072_vm2, %v1302_v11, 0 }
 0x311   : > { %3119 = vmatpush3.bf16.xpose.msra.mxu0 %v1307_v12 }
 0x312   : > { %3130 = vmatprep.subr.bf16.mxu0 %v3490_v1 }
 0x313   : > { %v1300_v13 = vpop.permute.xlu1 %1299 }
 0x315   : > { %v3415_v14 = vpop.eup %3414 }
 0x316   : > { %v1131_v15 = vmul.f32 %v3415_v14, %v3413_v6  ;;  %v3349_v6 = vld [vmem:[%s4286_s2 + $0x30] sm:$0xff]  }
 0x317   : > { %v1414_v16 = vpop.permute.xlu1 %1413 }
 0x318   : > { %v1419_v17 = vsel %vm1072_vm2, %v1414_v16, 0  ;;  %3121 = vmatmul.mubr.msk.bf16.vlgmr.msra.gmra.mxu0 %vm1072_vm2, %v1300_v13  ;;  %v1132_v18 = vpack.c.bf16 %v1131_v15, %v1131_v15 }
 0x319   : > { %3131 = vmatpush3.bf16.xpose.msra.mxu0 %v1419_v17  ;;  %3132 = vmatprep.mubr.msk.bf16.mxu0 %vm3491_vm0, %v3490_v1 }
 0x31a   : > { %3103 = vmatmul.mubr.msk.bf16.vlgmr.msra.gmra.mxu1 %vm1072_vm2, %v1132_v18  ;;  %3142 = vmatprep.subr.bf16.mxu0 %v3490_v1 }
 0x31b   : > { %3107 = vmatpush3.bf16.xpose.msra.mxu1 %v1195_v19  ;;  %3108 = vmatprep.mubr.msk.bf16.mxu1 %vm3491_vm0, %v3490_v1 }
 0x31c   : > { %3112 = vmatprep.subr.bf16.mxu1 %v3490_v1 }
 0x320   : > { %3133 = vmatmul.mubr.msk.bf16.vlgmr.msra.gmra.mxu0 %vm1072_vm2, %v1412_v20  ;;  %v3351_v20 = vld [vmem:[%s4286_s2 + $0x20] sm:$0xff]  }
 0x321   : > { %3158 = vmatprep.mubr.msk.bf16.mxu0 %vm3491_vm0, %v3490_v1  ;;  %3143 = vmatpush3.bf16.msra.mxu0 %v3348_v5  ;;  %v3367_v5 = vld [vmem:[%s4246_s12 + $0x44] ss:$8 sps:$4 sm:$0xff]  }
 0x322   : > { %3109 = vmatmul.mubr.msk.bf16.vlgmr.msra.gmra.mxu1 %vm1072_vm2, %v1187_v10  ;;  %3144 = vmatprep.subr.bf16.mxu0 %v3490_v1 }
 0x323   : > { %3113 = vmatpush3.bf16.msra.mxu1 %v3778_v53  ;;  %3114 = vmatprep.mubr.msk.bf16.mxu1 %vm3491_vm0, %v3490_v1 }
 0x324   : > { %3124 = vmatprep.subr.bf16.mxu1 %v3490_v1 }
 0x325   : > { %3145 = vmatpush3.bf16.msra.mxu0 %v3349_v6  ;;  %v3365_v6 = vld [vmem:[%s4246_s12 + $0x40] ss:$8 sps:$4 sm:$0xff]  }
 0x326   : > { %3146 = vmatprep.subr.bf16.mxu0 %v3490_v1 }
 0x329   : > { %3147 = vmatpush3.bf16.msra.mxu0 %v3350_v7  ;;  %v3371_v7 = vld [vmem:[%s4246_s12 + $0x34] ss:$8 sps:$4 sm:$0xff]  }
 0x32a   : > { %3148 = vmatprep.subr.bf16.mxu0 %v3490_v1 }
 0x32d   : > { %3149 = vmatpush3.bf16.msra.mxu0 %v3351_v20  ;;  %v3383_v20 = vld [vmem:[%s4246_s12 + $0x4] ss:$8 sps:$4 sm:$0xff]  }
 0x32e   : > { %3150 = vmatprep.subr.bf16.mxu0 %v3490_v1 }
 0x3d8   : > { %v1343_v21 = vpop.f32.mrf.mxu0 }
 0x3d9   : > { %v1349_v22 = vmul.f32 0.35355338, %v1343_v21  ;;  %v3353_v21 = vld [vmem:[%s4286_s2 + $0x10] sm:$0xff]  }
 0x3da   : > { %v3819_v24 = vpop.f32.mrf.mxu1  ;;  %v3122_v25 = vpop.f32.mrf.mxu0 }
 0x3db   : > { %v1350_v26 = vsel %vm3786_vm6, %v1349_v22, -1e+09  ;;  %v3354_v22 = vld [vmem:[%s4286_s2 + $0x8] sm:$0xff]   ;;  %v3355_v25 = vld [vmem:[%s4286_s2] sm:$0xff]  }
 0x3dc   : > { %v3104_v27 = vpop.f32.mrf.mxu1  ;;  %v1346_v28 = vpop.f32.mrf.mxu0  ;;  %v1351_v29 = vsel %vm1072_vm2, %v1350_v26, -inf }
 0x3dd   : > { %1352 = vmax.xlane.f32.xlu0 %v1351_v29 }
 0x3de   : > { %v1177_v30 = vpop.f32.mrf.mxu1  ;;  %v3123_v33 = vpop.f32.mrf.mxu0 }
 0x3e0   : > { %v3105_v34 = vpop.f32.mrf.mxu1  ;;  %v1455_v35 = vpop.f32.mrf.mxu0 }
 0x3e1   : > { %v1461_v39 = vmul.f32 0.35355338, %v1455_v35  ;;  %v2955_v34 = vld [vmem:[%s4249_s15] ss:$0 sm:$0xff] }
 0x3e2   : > { %v1231_v37 = vpop.f32.mrf.mxu1  ;;  %v3134_v38 = vpop.f32.mrf.mxu0 }
 0x3e3   : > { %v1237_v40 = vmul.f32 0.35355338, %v1231_v37  ;;  %v1462_v47 = vsel %vm3786_vm6, %v1461_v39, -1e+09  ;;  %v1183_v39 = vsel %vm1181_vm12, %v3819_v24, 0.0 }
 0x3e4   : > { %v3110_v41 = vpop.f32.mrf.mxu1  ;;  %v1458_v42 = vpop.f32.mrf.mxu0  ;;  %v1463_v49 = vsel %vm1072_vm2, %v1462_v47, -inf }
 0x3e5   : > { %v1238_v43 = vsel %vm3786_vm6, %v1237_v40, -1e+09 }
 0x3e6   : > { %v1234_v44 = vpop.f32.mrf.mxu1  ;;  %v3135_v45 = vpop.f32.mrf.mxu0  ;;  %v1239_v46 = vsel %vm1072_vm2, %v1238_v43, -inf }
 0x3e7   : > { %1240 = vmax.xlane.f32.xlu1 %v1239_v46 }
 0x3e8   : > { %v3111_v48 = vpop.f32.mrf.mxu1 }
 0x3eb   : > { %1464 = vmax.xlane.f32.xlu1 %v1463_v49 }
 0x466   : > { %v1353_v50 = vpop.xlane.xlu0 %1352 }
 0x467   : > { %v1354_v51 = vsub.f32 %v1350_v26, %v1353_v50 }
 0x469   : > { %v1355_v56 = vmul.f32 1.442695, %v1354_v51  ;;  %v2911_v51 = vld [vmem:[%s4293_s30] ss:$0 sm:$0xff]  ;;  %s4300_s30 = smov 112  }
 0x470   : > { %v1241_v52 = vpop.xlane.xlu1 %1240 }
 0x471   : > { %v1242_v54 = vsub.f32 %v1238_v43, %v1241_v52 }
 0x473   : > { %v1243_v58 = vmul.f32 1.442695, %v1242_v54 }
 0x474   : > { %v1465_v59 = vpop.xlane.xlu1 %1464 }
 0x475   : > { %3416 = vpow2.f32 %v1243_v58  ;;  %v1466_v60 = vsub.f32 %v1462_v47, %v1465_v59 }
 0x476   : > { %3418 = vpow2.f32 %v1355_v56 }
 0x477   : > { %v1467_v61 = vmul.f32 1.442695, %v1466_v60 }
 0x479   : > { %3420 = vpow2.f32 %v1467_v61  ;;  %v3356_v61 = vld [vmem:[%s4246_s12 + $0x70] ss:$8 sps:$4 sm:$0xff]  }
 0x482   : > { %v3417_v62 = vpop.eup %3416 }
 0x483   : > { %v1245_v57 = vsel %vm1072_vm2, %v3417_v62, 0.0  ;;  %v3419_v63 = vpop.eup %3418 }
 0x484   : > { %1246 = vadd.xlane.f32.xlu1 %v1245_v57  ;;  %v1357_v2 = vsel %vm1072_vm2, %v3419_v63, 0.0  ;;  %v3361_v57 = vld [vmem:[%s4246_s12 + $0x64] ss:$8 sps:$4 sm:$0xff]  }
 0x486   : > { %v3421_v3 = vpop.eup %3420 }
 0x487   : > { %v1469_v4 = vsel %vm1072_vm2, %v3421_v3, 0.0 }
 0x488   : > { %1358 = vadd.xlane.f32.xlu1 %v1357_v2  ;;  %v3364_v2 = vld [vmem:[%s4246_s12 + $0x54] ss:$8 sps:$4 sm:$0xff]  }
 0x48c   : > { %1470 = vadd.xlane.f32.xlu1 %v1469_v4  ;;  %v3362_v4 = vld [vmem:[%s4246_s12 + $0x50] ss:$8 sps:$4 sm:$0xff]  }
 0x50d   : > { %v1247_v8 = vpop.xlane.xlu1 %1246 }
 0x50e   : > { %3422 = vrcp.f32 %v1247_v8  ;;  %v3369_v8 = vld [vmem:[%s4246_s12 + $0x30] ss:$8 sps:$4 sm:$0xff]  }
 0x511   : > { %v1359_v9 = vpop.xlane.xlu1 %1358 }
 0x512   : > { %3424 = vrcp.f32 %v1359_v9 }
 0x515   : > { %v1471_v10 = vpop.xlane.xlu1 %1470 }
 0x516   : > { %3426 = vrcp.f32 %v1471_v10 }
 0x51b   : > { %v3423_v11 = vpop.eup %3422 }
 0x51c   : > { %v1249_v12 = vmul.f32 %v3423_v11, %v3417_v62  ;;  %v3358_v62 = vld [vmem:[%s4246_s12 + $0x74] ss:$8 sps:$4 sm:$0xff]  }
 0x51e   : > { %v1250_v13 = vpack.c.bf16 %v1249_v12, %v1249_v12 }
 0x51f   : > { %v3425_v14 = vpop.eup %3424 }
 0x520   : > { %3115 = vmatmul.mubr.msk.bf16.vlgmr.msra.gmra.mxu1 %vm1072_vm2, %v1250_v13  ;;  %v1361_v15 = vmul.f32 %v3425_v14, %v3419_v63  ;;  %v3359_v63 = vld [vmem:[%s4246_s12 + $0x60] ss:$8 sps:$4 sm:$0xff]   ;;  %v3375_v14 = vld [vmem:[%s4246_s12 + $0x24] ss:$8 sps:$4 sm:$0xff]  }
 0x521   : > { %3125 = vmatpush3.bf16.msra.mxu1 %v3778_v53  ;;  %3126 = vmatprep.mubr.msk.bf16.mxu1 %vm3491_vm0, %v3490_v1 }
 0x522   : > { %3136 = vmatprep.subr.bf16.mxu1 %v3490_v1  ;;  %v1362_v16 = vpack.c.bf16 %v1361_v15, %v1361_v15  ;;  %v3373_v15 = vld [vmem:[%s4246_s12 + $0x20] ss:$8 sps:$4 sm:$0xff]  }
 0x523   : > { %v3427_v17 = vpop.eup %3426 }
 0x524   : > { %v1473_v18 = vmul.f32 %v3427_v17, %v3421_v3  ;;  %v3372_v3 = vld [vmem:[%s4244_s10 + $0x30] sm:$0xff]  }
 0x525   : > { %v3379_v17 = vld [vmem:[%s4246_s12 + $0x14] ss:$8 sps:$4 sm:$0xff]  }
 0x526   : > { %v1474_v19 = vpack.c.bf16 %v1473_v18, %v1473_v18  ;;  %v3377_v18 = vld [vmem:[%s4246_s12 + $0x10] ss:$8 sps:$4 sm:$0xff]  }
 0x528   : > { %3127 = vmatmul.mubr.msk.bf16.vlgmr.msra.gmra.mxu1 %vm1072_vm2, %v1362_v16  ;;  %v3376_v16 = vld [vmem:[%s4244_s10 + $0x28] sm:$0xff]  }
 0x529   : > { %3137 = vmatpush3.bf16.msra.mxu1 %v3778_v53  ;;  %3138 = vmatprep.mubr.msk.bf16.mxu1 %vm3491_vm0, %v3490_v1  ;;  %v3352_v53 = vld [vmem:[%s4286_s2 + $0x18] sm:$0xff]   ;;  %s4294_s2 = sld [smem:[#allocation6_spill]] }
 0x52a   : > { %3162 = vmatprep.subr.bf16.mxu1 %v3490_v1  ;;  %3151 = vmatpush3.bf16.msra.mxu0 %v3352_v53  ;;  %v3381_v53 = vld [vmem:[%s4246_s12] ss:$8 sps:$4 sm:$0xff]  }
 0x52b   : > { %3152 = vmatprep.subr.bf16.mxu0 %v3490_v1 }
 0x52e   : > { %3153 = vmatpush3.bf16.msra.mxu0 %v3353_v21 }
 0x52f   : > { %3154 = vmatprep.subr.bf16.mxu0 %v3490_v1  ;;  %s782_s23 = scalar_lea.vmem %s4294_s2, %s3689_s0 }
 0x530   : > { %3139 = vmatmul.mubr.msk.bf16.vlgmr.msra.gmra.mxu1 %vm1072_vm2, %v1474_v19  ;;  %v3380_v19 = vld [vmem:[%s4244_s10 + $0x20] sm:$0xff]  }
 0x531   : > { %3178 = vmatprep.mubr.msk.bf16.mxu1 %vm3491_vm0, %v3490_v1  ;;  %v796_v21 = vld [vmem:[%s782_s23] sm:$0xff] }
 0x532   : > { %3155 = vmatpush3.bf16.msra.mxu0 %v3354_v22  ;;  %v3384_v22 = vld [vmem:[%s4244_s10 + $0x18] sm:$0xff]  }
 0x533   : > { %3156 = vmatprep.subr.bf16.mxu0 %v3490_v1 }
 0x536   : > { %3157 = vmatpush3.bf16.msra.mxu0 %v3355_v25  ;;  %v1776_v25 = vpack.c.bf16 %v796_v21, %v796_v21 }
 0x537   : > { %1885 = vmatprep.subr.bf16.mxu0 %v3358_v62 }
 0x5e0   : > { %v1288_v26 = vpop.f32.mrf.mxu1 }
 0x5e1   : > { %v1297_v37 = vsel %vm3881_vm11, %v1288_v26, 0.0  ;;  %v3385_v26 = vld [vmem:[%s4244_s10 + $0x10] sm:$0xff]  }
 0x5e2   : > { %v3116_v27 = vpop.f32.mrf.mxu1  ;;  %v1298_v41 = vadd.f32 %v1297_v37, %v1183_v39 }
 0x5e3   : > { %v3386_v27 = vld [vmem:[%s4244_s10 + $0x8] sm:$0xff]  }
 0x5e4   : > { %v1291_v28 = vpop.f32.mrf.mxu1 }
 0x5e5   : > { %v3387_v28 = vld [vmem:[%s4244_s10] sm:$0xff]  }
 0x5e6   : > { %v3117_v29 = vpop.f32.mrf.mxu1 }
 0x5e8   : > { %v1400_v33 = vpop.f32.mrf.mxu1 }
 0x5e9   : > { %v1409_v40 = vsel %vm3886_vm13, %v1400_v33, 0.0 }
 0x5ea   : > { %v3128_v35 = vpop.f32.mrf.mxu1  ;;  %v1410_v44 = vadd.f32 %v1409_v40, %v1298_v41  ;;  %v2921_v40 = vld [vmem:[%s4243_s9] ss:$0 sm:$0xff] }
 0x5ec   : > { %v1403_v38 = vpop.f32.mrf.mxu1 }
 0x5ed   : > { %v2920_v38 = vld [vmem:[%s4295_s3] ss:$0 sm:$0xff]  ;;  %s4301_s3 = smov 104  }
 0x5ee   : > { %v3129_v42 = vpop.f32.mrf.mxu1 }
 0x5f0   : > { %v1512_v45 = vpop.f32.mrf.mxu1 }
 0x5f1   : > { %v1521_v46 = vsel %vm3901_vm1, %v1512_v45, 0.0  ;;  %v1793_v45 = vld [vmem:[%s4247_s13] sm:$0x3] }
 0x5f2   : > { %v1522_v47 = vadd.f32 %v1521_v46, %v1410_v44  ;;  %v3140_v48 = vpop.f32.mrf.mxu1  ;;  %v1798_v46 = vrot.slane %v1793_v45, %v3767_v36 }
 0x5f4   : > { %v1523_v49 = vpack.c.bf16 %v1522_v47, %v1522_v47  ;;  %v1515_v24 = vpop.f32.mrf.mxu1  ;;  %v1802_v47 = vrot.slane %v1793_v45, %v838_v32 }
 0x5f6   : > { %v3141_v50 = vpop.f32.mrf.mxu1  ;;  %3159 = vmatmul.mubr.bf16.vlgmr.msra.gmra.mxu0 %v1523_v49 }
 0x5f7   : > { %1917 = vmatprep.mubr.bf16.mxu0 %v3489_v0  ;;  %1886 = vmatpush1.bf16.msra.mxu0 %v3356_v61 }
 0x5f8   : > { %1887 = vmatprep.subr.bf16.mxu0 %v3361_v57 }
 0x5fb   : > { %1888 = vmatpush1.bf16.msra.mxu0 %v3359_v63  ;;  %v1926_v63 = vld [vmem:[%s789_s7] sm:$0x1] }
 0x5fc   : > { %1889 = vmatprep.subr.bf16.mxu0 %v3364_v2  ;;  %vm1927_vm4 = vcmp.gt.f32.partialorder %v1926_v63, 0.5 }
 0x5fd   : > { %v1928_v2 = vsel %vm1927_vm4, 1, %v3489_v0 }
 0x5ff   : > { %1890 = vmatpush1.bf16.msra.mxu0 %v3362_v4 }
 0x600   : > { %1891 = vmatprep.subr.bf16.mxu0 %v3367_v5 }
 0x603   : > { %1892 = vmatpush1.bf16.msra.mxu0 %v3365_v6 }
 0x604   : > { %1893 = vmatprep.subr.bf16.mxu0 %v3371_v7 }
 0x607   : > { %1894 = vmatpush1.bf16.msra.mxu0 %v3369_v8 }
 0x608   : > { %1895 = vmatprep.subr.bf16.mxu0 %v3375_v14 }
 0x60b   : > { %1896 = vmatpush1.bf16.msra.mxu0 %v3373_v15 }
 0x60c   : > { %1897 = vmatprep.subr.bf16.mxu0 %v3379_v17 }
 0x60f   : > { %1898 = vmatpush1.bf16.msra.mxu0 %v3377_v18 }
 0x610   : > { %1899 = vmatprep.subr.bf16.mxu0 %v3383_v20 }
 0x613   : > { %1900 = vmatpush1.bf16.msra.mxu0 %v3381_v53 }
 0x614   : > { %3206 = vmatprep.subr.bf16.mxu0 %v3490_v1 }
 0x616   : > { %1918 = vmatmul.mubr.bf16.vlgmr.msra.gmra.mxu0 %v1776_v25 }
 0x617   : > { %3208 = vmatprep.mubr.msk.bf16.mxu0 %vm3491_vm0, %v3490_v1 }
 0x6b6   : > { %v1629_v52 = vpop.f32.mrf.mxu0 }
 0x6b7   : > { %v1630_v54 = vadd.f32 %v2911_v51, %v1629_v52 }
 0x6b8   : > { %v3160_v56 = vpop.f32.mrf.mxu0 }
 0x6b9   : > { %v1637_v58 = vadd.f32 %v1630_v54, %v3728_v23  ;;  %v3368_v23 = vld [vmem:[%s4244_s10 + $0x38] sm:$0xff]  }
 0x6ba   : > { %v1632_v59 = vpop.f32.mrf.mxu0  ;;  %3163 = vmatpush3.bf16.msra.mxu1 %v3368_v23 }
 0x6bb   : > { %1638 = vadd.xlane.f32.xlu0 %v1637_v58  ;;  %3164 = vmatprep.subr.bf16.mxu1 %v3490_v1 }
 0x6bc   : > { %v3161_v60 = vpop.f32.mrf.mxu0 }
 0x6be   : > { %3165 = vmatpush3.bf16.msra.mxu1 %v3372_v3  ;;  %v1932_v3 = vrot.slane %v1928_v2, %v3767_v36 }
 0x6bf   : > { %3166 = vmatprep.subr.bf16.mxu1 %v3490_v1 }
 0x6c2   : > { %3167 = vmatpush3.bf16.msra.mxu1 %v3376_v16 }
 0x6c3   : > { %3168 = vmatprep.subr.bf16.mxu1 %v3490_v1 }
 0x6c6   : > { %3169 = vmatpush3.bf16.msra.mxu1 %v3380_v19 }
 0x6c7   : > { %3170 = vmatprep.subr.bf16.mxu1 %v3490_v1 }
 0x6ca   : > { %3171 = vmatpush3.bf16.msra.mxu1 %v3384_v22 }
 0x6cb   : > { %3172 = vmatprep.subr.bf16.mxu1 %v3490_v1 }
 0x6ce   : > { %3173 = vmatpush3.bf16.msra.mxu1 %v3385_v26 }
 0x6cf   : > { %3174 = vmatprep.subr.bf16.mxu1 %v3490_v1 }
 0x6d2   : > { %3175 = vmatpush3.bf16.msra.mxu1 %v3386_v27 }
 0x6d3   : > { %3176 = vmatprep.subr.bf16.mxu1 %v3490_v1 }
 0x6d6   : > { %3177 = vmatpush3.bf16.msra.mxu1 %v3387_v28  ;;  %v1919_v48 = vpop.f32.mrf.mxu0 }
 0x6d7   : > { %3182 = vmatprep.subr.bf16.mxu1 %v3490_v1  ;;  %v1920_v49 = vadd.f32 %v1919_v48, %v1798_v46 }
 0x6d8   : > { %v1921_v24 = vpop.f32.mrf.mxu0 }
 0x6d9   : > { %v1936_v50 = vpack.c.bf16 %v1920_v49, %v1920_v49  ;;  %v1922_v51 = vadd.f32 %v1921_v24, %v1802_v47 }
 0x6da   : > { %v1923_v52 = vpop.f32.mrf.mxu0 }
 0x6db   : > { %v1941_v54 = vsel %vm1072_vm2, %v1936_v50, 0  ;;  %v1934_v31 = vpack.c.bf16 %v1922_v51, %v1922_v51 }
 0x6dc   : > { %v1924_v56 = vpop.f32.mrf.mxu0 }
 0x6dd   : > { %v4025_v57 = vsel %vm1136_vm3, %v1934_v31, 0  ;;  %vm4038_vm3 = vcmp.eq.s32.totalorder %v1932_v3, 1 }
 0x744   : > { %v1639_v9 = vpop.xlane.xlu0 %1638 }
 0x745   : > { %v1640_v10 = vmul.f32 0.03125, %v1639_v9 }
 0x747   : > { %v1641_v11 = vsub.f32 %v1637_v58, %v1640_v10  ;;  %v2922_v58 = vld [vmem:[%s4245_s11] ss:$0 sm:$0xff] }
 0x749   : > { %v1642_v12 = vsel %vm1519_vm15, %v1641_v11, 0.0 }
 0x74a   : > { %v1643_v13 = vmul.f32 %v1642_v12, %v1642_v12 }
 0x74c   : > { %1644 = vadd.xlane.f32.xlu1 %v1643_v13 }
 0x7d5   : > { %v1645_v29 = vpop.xlane.xlu1 %1644 }
 0x7d6   : > { %v1646_v33 = vmul.f32 0.03125, %v1645_v29 }
 0x7d8   : > { %v1647_v35 = vadd.f32 1e-05, %v1646_v33 }
 0x7da   : > { %3428 = vrsqrt.f32 %v1647_v35 }
 0x7e7   : > { %v3429_v37 = vpop.eup %3428 }
 0x7e8   : > { %v1649_v39 = vmul.f32 %v3429_v37, %v1642_v12 }
 0x7ea   : > { %v1656_v41 = vmul.f32 %v2920_v38, %v1649_v39 }
 0x7ec   : > { %v4007_v42 = vadd.f32 %v2921_v40, %v1656_v41 }
 0x7ee   : > { %v1664_v44 = vpack.c.bf16 %v4007_v42, %v4007_v42 }
 0x7f0   : > { %3179 = vmatmul.mubr.bf16.vlgmr.msra.gmra.mxu1 %v1664_v44 }
 0x7f1   : > { %3184 = vmatprep.mubr.msk.bf16.mxu1 %vm3491_vm0, %v3490_v1  ;;  %3183 = vmatpush3.bf16.xpose.msra.mxu1 %v1941_v54 }
 0x7f2   : > { %3188 = vmatprep.subr.bf16.mxu1 %v3490_v1 }
 0x8b0   : > { %v1770_v59 = vpop.f32.mrf.mxu1 }
 0x8b1   : > { %v1771_v32 = vadd.f32 %v2922_v58, %v1770_v59 }
 0x8b2   : > { %v3180_v60 = vpop.f32.mrf.mxu1 }
 0x8b3   : > { %v1935_v61 = vpack.c.bf16 %v1771_v32, %v1771_v32 }
 0x8b4   : > { %v1773_v62 = vpop.f32.mrf.mxu1 }
 0x8b5   : > { %3185 = vmatmul.mubr.msk.bf16.vlgmr.msra.gmra.mxu1 %vm1072_vm2, %v1935_v61 }
 0x8b6   : > { %3189 = vmatpush3.bf16.msra.mxu1 %v4025_v57  ;;  %v3181_v23 = vpop.f32.mrf.mxu1  ;;  %3190 = vmatprep.mubr.msk.bf16.mxu1 %vm3491_vm0, %v3490_v1 }
 0x8b7   : > { %3194 = vmatprep.subr.bf16.mxu1 %v3490_v1 }
 0x975   : > { %v1977_v4 = vpop.f32.mrf.mxu1 }
 0x976   : > { %v1983_v6 = vmul.f32 0.35355338, %v1977_v4 }
 0x977   : > { %v3186_v7 = vpop.f32.mrf.mxu1 }
 0x978   : > { %v1984_v8 = vsel %vm4038_vm3, %v1983_v6, -1e+09 }
 0x979   : > { %v1980_v9 = vpop.f32.mrf.mxu1  ;;  %v1985_v10 = vsel %vm1072_vm2, %v1984_v8, -inf }
 0x97a   : > { %1986 = vmax.xlane.f32.xlu0 %v1985_v10 }
 0x97b   : > { %v3187_v11 = vpop.f32.mrf.mxu1 }
 0x990   : > { %2049 = vrot.lane.b32.xlu0 %v1936_v50, %s4299_s26 }
 0x994   : > { %2156 = vrot.lane.b32.xlu0 %v1935_v61, %s4300_s30 }
 0x998   : > { %2265 = vrot.lane.b32.xlu0 %v1935_v61, %s4301_s3 }
 0xa03   : > { %v1987_v0 = vpop.xlane.xlu0 %1986 }
 0xa04   : > { %v1988_v36 = vsub.f32 %v1984_v8, %v1987_v0 }
 0xa06   : > { %v1989_v12 = vmul.f32 1.442695, %v1988_v36  ;;  %v3388_v36 = vld [vmem:[%s4248_s14 + $0x38] sm:$0xff]  }
 0xa07   : > { %v2050_v19 = vpop.permute.xlu0 %2049 }
 0xa08   : > { %3430 = vpow2.f32 %v1989_v12  ;;  %v2055_v27 = vsel %vm1072_vm2, %v2050_v19, 0  ;;  %v3389_v12 = vld [vmem:[%s4248_s14 + $0x30] sm:$0xff]  }
 0xa0b   : > { %v2157_v22 = vpop.permute.xlu0 %2156 }
 0xa0f   : > { %v2266_v28 = vpop.permute.xlu0 %2265 }
 0xa15   : > { %v3431_v13 = vpop.eup %3430 }
 0xa16   : > { %v1991_v14 = vsel %vm1072_vm2, %v3431_v13, 0.0 }
 0xa17   : > { %1992 = vadd.xlane.f32.xlu1 %v1991_v14 }
 0xa28   : > { %2046 = vrot.lane.b32.xlu1 %v1935_v61, %s4299_s26  ;;  %s793_s26 = scalar_lea.vmem %s4258_s24, %s3689_s0 }
 0xa2c   : > { %2158 = vrot.lane.b32.xlu1 %v1936_v50, %s4300_s30 }
 0xa30   : > { %2267 = vrot.lane.b32.xlu1 %v1936_v50, %s4301_s3 }
 0xaa0   : > { %v1993_v15 = vpop.xlane.xlu1 %1992 }
 0xaa1   : > { %3432 = vrcp.f32 %v1993_v15 }
 0xaa4   : > { %v2047_v16 = vpop.permute.xlu1 %2046 }
 0xaa8   : > { %v2159_v17 = vpop.permute.xlu1 %2158 }
 0xaa9   : > { %v2164_v18 = vsel %vm1072_vm2, %v2159_v17, 0 }
 0xaaa   : > { %3207 = vmatpush3.bf16.xpose.msra.mxu0 %v2164_v18 }
 0xaab   : > { %3218 = vmatprep.subr.bf16.mxu0 %v3490_v1 }
 0xaac   : > { %v2268_v53 = vpop.permute.xlu1 %2267 }
 0xaad   : > { %v2273_v25 = vsel %vm1072_vm2, %v2268_v53, 0 }
 0xaae   : > { %v3433_v20 = vpop.eup %3432 }
 0xaaf   : > { %v1995_v21 = vmul.f32 %v3433_v20, %v3431_v13  ;;  %v3390_v13 = vld [vmem:[%s4248_s14 + $0x28] sm:$0xff]  }
 0xab1   : > { %3209 = vmatmul.mubr.msk.bf16.vlgmr.msra.gmra.mxu0 %vm1072_vm2, %v2157_v22  ;;  %v1996_v26 = vpack.c.bf16 %v1995_v21, %v1995_v21 }
 0xab2   : > { %3219 = vmatpush3.bf16.xpose.msra.mxu0 %v2273_v25  ;;  %3220 = vmatprep.mubr.msk.bf16.mxu0 %vm3491_vm0, %v3490_v1 }
 0xab3   : > { %3191 = vmatmul.mubr.msk.bf16.vlgmr.msra.gmra.mxu1 %vm1072_vm2, %v1996_v26  ;;  %3230 = vmatprep.subr.bf16.mxu0 %v3490_v1 }
 0xab4   : > { %3195 = vmatpush3.bf16.xpose.msra.mxu1 %v2055_v27  ;;  %3196 = vmatprep.mubr.msk.bf16.mxu1 %vm3491_vm0, %v3490_v1  ;;  %v3391_v27 = vld [vmem:[%s4248_s14 + $0x20] sm:$0xff]  }
 0xab5   : > { %3200 = vmatprep.subr.bf16.mxu1 %v3490_v1 }
 0xab9   : > { %3221 = vmatmul.mubr.msk.bf16.vlgmr.msra.gmra.mxu0 %vm1072_vm2, %v2266_v28  ;;  %v3393_v28 = vld [vmem:[%s4248_s14 + $0x10] sm:$0xff]  }
 0xaba   : > { %3246 = vmatprep.mubr.msk.bf16.mxu0 %vm3491_vm0, %v3490_v1  ;;  %3231 = vmatpush3.bf16.msra.mxu0 %v3388_v36  ;;  %v3406_v36 = vld [vmem:[%s4254_s20 + $0x28] sm:$0xff]  }
 0xabb   : > { %3197 = vmatmul.mubr.msk.bf16.vlgmr.msra.gmra.mxu1 %vm1072_vm2, %v2047_v16  ;;  %3232 = vmatprep.subr.bf16.mxu0 %v3490_v1 }
 0xabc   : > { %3201 = vmatpush3.bf16.msra.mxu1 %v4025_v57  ;;  %3202 = vmatprep.mubr.msk.bf16.mxu1 %vm3491_vm0, %v3490_v1 }
 0xabd   : > { %3212 = vmatprep.subr.bf16.mxu1 %v3490_v1 }
 0xabe   : > { %3233 = vmatpush3.bf16.msra.mxu0 %v3389_v12  ;;  %v3407_v12 = vld [vmem:[%s4254_s20 + $0x20] sm:$0xff]  }
 0xabf   : > { %3234 = vmatprep.subr.bf16.mxu0 %v3490_v1 }
 0xac2   : > { %3235 = vmatpush3.bf16.msra.mxu0 %v3390_v13  ;;  %v3408_v13 = vld [vmem:[%s4254_s20 + $0x18] sm:$0xff]  }
 0xac3   : > { %3236 = vmatprep.subr.bf16.mxu0 %v3490_v1 }
 0xac6   : > { %3237 = vmatpush3.bf16.msra.mxu0 %v3391_v27  ;;  %v3411_v27 = vld [vmem:[%s4254_s20] sm:$0xff]  }
 0xac7   : > { %3238 = vmatprep.subr.bf16.mxu0 %v3490_v1 }
 0xb71   : > { %v2200_v29 = vpop.f32.mrf.mxu0 }
 0xb72   : > { %v2206_v33 = vmul.f32 0.35355338, %v2200_v29  ;;  %v3394_v29 = vld [vmem:[%s4248_s14 + $0x8] sm:$0xff]  }
 0xb73   : > { %v4072_v35 = vpop.f32.mrf.mxu1  ;;  %v3210_v37 = vpop.f32.mrf.mxu0 }
 0xb74   : > { %v2207_v38 = vsel %vm4038_vm3, %v2206_v33, -1e+09  ;;  %v3395_v33 = vld [vmem:[%s4248_s14] sm:$0xff]  }
 0xb75   : > { %v3192_v39 = vpop.f32.mrf.mxu1  ;;  %v2203_v40 = vpop.f32.mrf.mxu0  ;;  %v2208_v41 = vsel %vm1072_vm2, %v2207_v38, -inf }
 0xb76   : > { %2209 = vmax.xlane.f32.xlu0 %v2208_v41 }
 0xb77   : > { %v2040_v44 = vpop.f32.mrf.mxu1  ;;  %v3211_v45 = vpop.f32.mrf.mxu0 }
 0xb79   : > { %v3193_v46 = vpop.f32.mrf.mxu1  ;;  %v2309_v47 = vpop.f32.mrf.mxu0 }
 0xb7a   : > { %v2315_v48 = vmul.f32 0.35355338, %v2309_v47  ;;  %v2043_v47 = vsel %vm1181_vm12, %v4072_v35, 0.0 }
 0xb7b   : > { %v2091_v49 = vpop.f32.mrf.mxu1  ;;  %v3222_v24 = vpop.f32.mrf.mxu0 }
 0xb7c   : > { %v2097_v50 = vmul.f32 0.35355338, %v2091_v49  ;;  %v2316_v51 = vsel %vm4038_vm3, %v2315_v48, -1e+09 }
 0xb7d   : > { %v3198_v52 = vpop.f32.mrf.mxu1  ;;  %v2312_v54 = vpop.f32.mrf.mxu0  ;;  %v2317_v56 = vsel %vm1072_vm2, %v2316_v51, -inf }
 0xb7e   : > { %2318 = vmax.xlane.f32.xlu0 %v2317_v56  ;;  %v2098_v58 = vsel %vm4038_vm3, %v2097_v50, -1e+09 }
 0xb7f   : > { %v2094_v59 = vpop.f32.mrf.mxu1  ;;  %v3223_v31 = vpop.f32.mrf.mxu0  ;;  %v2099_v32 = vsel %vm1072_vm2, %v2098_v58, -inf }
 0xb80   : > { %2100 = vmax.xlane.f32.xlu1 %v2099_v32 }
 0xb81   : > { %v3199_v60 = vpop.f32.mrf.mxu1 }
 0xbff   : > { %v2210_v61 = vpop.xlane.xlu0 %2209 }
 0xc00   : > { %v2211_v62 = vsub.f32 %v2207_v38, %v2210_v61 }
 0xc02   : > { %v2212_v23 = vmul.f32 1.442695, %v2211_v62  ;;  %v3396_v62 = vld [vmem:[%s4252_s18 + $0x38] sm:$0xff]  }
 0xc04   : > { %3434 = vpow2.f32 %v2212_v23  ;;  %v3397_v23 = vld [vmem:[%s4252_s18 + $0x30] sm:$0xff]  }
 0xc07   : > { %v2319_v63 = vpop.xlane.xlu0 %2318 }
 0xc08   : > { %v2320_v2 = vsub.f32 %v2316_v51, %v2319_v63 }
 0xc09   : > { %v2101_v3 = vpop.xlane.xlu1 %2100 }
 0xc0a   : > { %v2102_v4 = vsub.f32 %v2098_v58, %v2101_v3  ;;  %v2321_v6 = vmul.f32 1.442695, %v2320_v2 }
 0xc0c   : > { %v2103_v7 = vmul.f32 1.442695, %v2102_v4 }
 0xc0e   : > { %3436 = vpow2.f32 %v2103_v7  ;;  %v3399_v7 = vld [vmem:[%s4252_s18 + $0x20] sm:$0xff]  }
 0xc0f   : > { %3438 = vpow2.f32 %v2321_v6  ;;  %v3398_v6 = vld [vmem:[%s4252_s18 + $0x28] sm:$0xff]  }
 0xc11   : > { %v3435_v5 = vpop.eup %3434 }
 0xc12   : > { %v2214_v8 = vsel %vm1072_vm2, %v3435_v5, 0.0 }
 0xc13   : > { %2215 = vadd.xlane.f32.xlu0 %v2214_v8  ;;  %v3401_v8 = vld [vmem:[%s4252_s18 + $0x10] sm:$0xff]  }
 0xc1b   : > { %v3437_v9 = vpop.eup %3436 }
 0xc1c   : > { %v2105_v10 = vsel %vm1072_vm2, %v3437_v9, 0.0  ;;  %v3439_v11 = vpop.eup %3438 }
 0xc1d   : > { %2106 = vadd.xlane.f32.xlu1 %v2105_v10  ;;  %v2323_v0 = vsel %vm1072_vm2, %v3439_v11, 0.0  ;;  %v3403_v10 = vld [vmem:[%s4252_s18] sm:$0xff]  }
 0xc21   : > { %2324 = vadd.xlane.f32.xlu1 %v2323_v0  ;;  %v3405_v0 = vld [vmem:[%s4254_s20 + $0x30] sm:$0xff]  }
 0xc9c   : > { %v2216_v15 = vpop.xlane.xlu0 %2215 }
 0xca6   : > { %v2107_v14 = vpop.xlane.xlu1 %2106 }
 0xca7   : > { %3440 = vrcp.f32 %v2107_v14  ;;  %v3409_v14 = vld [vmem:[%s4254_s20 + $0x10] sm:$0xff]  }
 0xca8   : > { %3442 = vrcp.f32 %v2216_v15 }
 0xcaa   : > { %v2325_v16 = vpop.xlane.xlu1 %2324 }
 0xcab   : > { %3444 = vrcp.f32 %v2325_v16 }
 0xcb4   : > { %v3441_v17 = vpop.eup %3440 }
 0xcb5   : > { %v2109_v18 = vmul.f32 %v3441_v17, %v3437_v9  ;;  %v3443_v20 = vpop.eup %3442  ;;  %v3402_v9 = vld [vmem:[%s4252_s18 + $0x8] sm:$0xff]  }
 0xcb6   : > { %v2218_v53 = vmul.f32 %v3443_v20, %v3435_v5  ;;  %v3400_v5 = vld [vmem:[%s4252_s18 + $0x18] sm:$0xff]  }
 0xcb7   : > { %v2110_v19 = vpack.c.bf16 %v2109_v18, %v2109_v18 }
 0xcb8   : > { %v2219_v21 = vpack.c.bf16 %v2218_v53, %v2218_v53  ;;  %v3445_v22 = vpop.eup %3444  ;;  %v2965_v53 = vld [vmem:[%s4251_s17] ss:$0 sm:$0xff] }
 0xcb9   : > { %3203 = vmatmul.mubr.msk.bf16.vlgmr.msra.gmra.mxu1 %vm1072_vm2, %v2110_v19  ;;  %v2327_v25 = vmul.f32 %v3445_v22, %v3439_v11  ;;  %v3404_v11 = vld [vmem:[%s4254_s20 + $0x38] sm:$0xff]   ;;  %v2964_v19 = vld [vmem:[%s4250_s16] ss:$0 sm:$0xff] }
 0xcba   : > { %3213 = vmatpush3.bf16.msra.mxu1 %v4025_v57  ;;  %3214 = vmatprep.mubr.msk.bf16.mxu1 %vm3491_vm0, %v3490_v1 }
 0xcbb   : > { %3224 = vmatprep.subr.bf16.mxu1 %v3490_v1  ;;  %v2328_v26 = vpack.c.bf16 %v2327_v25, %v2327_v25 }
 0xcc1   : > { %3215 = vmatmul.mubr.msk.bf16.vlgmr.msra.gmra.mxu1 %vm1072_vm2, %v2219_v21 }
 0xcc2   : > { %3225 = vmatpush3.bf16.msra.mxu1 %v4025_v57  ;;  %3226 = vmatprep.mubr.msk.bf16.mxu1 %vm3491_vm0, %v3490_v1  ;;  %v3392_v57 = vld [vmem:[%s4248_s14 + $0x18] sm:$0xff]  }
 0xcc3   : > { %3250 = vmatprep.subr.bf16.mxu1 %v3490_v1  ;;  %3239 = vmatpush3.bf16.msra.mxu0 %v3392_v57  ;;  %v2966_v57 = vld [vmem:[%s4253_s19] ss:$0 sm:$0xff] }
 0xcc4   : > { %3240 = vmatprep.subr.bf16.mxu0 %v3490_v1 }
 0xcc7   : > { %3241 = vmatpush3.bf16.msra.mxu0 %v3393_v28 }
 0xcc8   : > { %3242 = vmatprep.subr.bf16.mxu0 %v3490_v1 }
 0xcc9   : > { %3227 = vmatmul.mubr.msk.bf16.vlgmr.msra.gmra.mxu1 %vm1072_vm2, %v2328_v26  ;;  %v3410_v26 = vld [vmem:[%s4254_s20 + $0x8] sm:$0xff]  }
 0xcca   : > { %3266 = vmatprep.mubr.msk.bf16.mxu1 %vm3491_vm0, %v3490_v1  ;;  %3251 = vmatpush3.bf16.msra.mxu1 %v3396_v62 }
 0xccb   : > { %3243 = vmatpush3.bf16.msra.mxu0 %v3394_v29  ;;  %3252 = vmatprep.subr.bf16.mxu1 %v3490_v1 }
 0xccc   : > { %3244 = vmatprep.subr.bf16.mxu0 %v3490_v1 }
 0xcce   : > { %3253 = vmatpush3.bf16.msra.mxu1 %v3397_v23 }
 0xccf   : > { %3245 = vmatpush3.bf16.msra.mxu0 %v3395_v33  ;;  %3254 = vmatprep.subr.bf16.mxu1 %v3490_v1 }
 0xcd0   : > { %3270 = vmatprep.subr.bf16.mxu0 %v3490_v1 }
 0xcd2   : > { %3255 = vmatpush3.bf16.msra.mxu1 %v3398_v6 }
 0xcd3   : > { %3256 = vmatprep.subr.bf16.mxu1 %v3490_v1 }
 0xcd6   : > { %3257 = vmatpush3.bf16.msra.mxu1 %v3399_v7 }
 0xcd7   : > { %3258 = vmatprep.subr.bf16.mxu1 %v3490_v1 }
 0xcda   : > { %3259 = vmatpush3.bf16.msra.mxu1 %v3400_v5 }
 0xcdb   : > { %3260 = vmatprep.subr.bf16.mxu1 %v3490_v1 }
 0xcde   : > { %3261 = vmatpush3.bf16.msra.mxu1 %v3401_v8 }
 0xcdf   : > { %3262 = vmatprep.subr.bf16.mxu1 %v3490_v1 }
 0xce2   : > { %3263 = vmatpush3.bf16.msra.mxu1 %v3402_v9 }
 0xce3   : > { %3264 = vmatprep.subr.bf16.mxu1 %v3490_v1 }
 0xce6   : > { %3265 = vmatpush3.bf16.msra.mxu1 %v3403_v10 }
 0xd79   : > { %v2148_v37 = vpop.f32.mrf.mxu1 }
 0xd7a   : > { %v2154_v45 = vsel %vm3881_vm11, %v2148_v37, 0.0 }
 0xd7b   : > { %v3204_v38 = vpop.f32.mrf.mxu1  ;;  %v2155_v49 = vadd.f32 %v2154_v45, %v2043_v47 }
 0xd7d   : > { %v2151_v39 = vpop.f32.mrf.mxu1 }
 0xd7f   : > { %v3205_v40 = vpop.f32.mrf.mxu1 }
 0xd81   : > { %v2257_v41 = vpop.f32.mrf.mxu1 }
 0xd82   : > { %v2263_v48 = vsel %vm3886_vm13, %v2257_v41, 0.0 }
 0xd83   : > { %v3216_v44 = vpop.f32.mrf.mxu1  ;;  %v2264_v50 = vadd.f32 %v2263_v48, %v2155_v49 }
 0xd85   : > { %v2260_v46 = vpop.f32.mrf.mxu1 }
 0xd87   : > { %v3217_v24 = vpop.f32.mrf.mxu1 }
 0xd89   : > { %v2366_v51 = vpop.f32.mrf.mxu1 }
 0xd8a   : > { %v2372_v52 = vsel %vm3901_vm1, %v2366_v51, 0.0 }
 0xd8b   : > { %v2373_v54 = vadd.f32 %v2372_v52, %v2264_v50  ;;  %v3228_v56 = vpop.f32.mrf.mxu1 }
 0xd8d   : > { %v2374_v58 = vpack.c.bf16 %v2373_v54, %v2373_v54  ;;  %v2369_v30 = vpop.f32.mrf.mxu1 }
 0xd8f   : > { %v3229_v59 = vpop.f32.mrf.mxu1  ;;  %3247 = vmatmul.mubr.bf16.vlgmr.msra.gmra.mxu0 %v2374_v58 }
 0xd90   : > { %3286 = vmatprep.mubr.msk.bf16.mxu0 %vm3491_vm0, %v3490_v1  ;;  %3271 = vmatpush3.bf16.msra.mxu0 %v3404_v11  ;;  %v2984_v59 = vld [vmem:[%s4256_s22] ss:$0 sm:$0xff] }
 0xd91   : > { %3272 = vmatprep.subr.bf16.mxu0 %v3490_v1 }
 0xd94   : > { %3273 = vmatpush3.bf16.msra.mxu0 %v3405_v0 }
 0xd95   : > { %3274 = vmatprep.subr.bf16.mxu0 %v3490_v1 }
 0xd98   : > { %3275 = vmatpush3.bf16.msra.mxu0 %v3406_v36 }
 0xd99   : > { %3276 = vmatprep.subr.bf16.mxu0 %v3490_v1 }
 0xd9c   : > { %3277 = vmatpush3.bf16.msra.mxu0 %v3407_v12 }
 0xd9d   : > { %3278 = vmatprep.subr.bf16.mxu0 %v3490_v1 }
 0xda0   : > { %3279 = vmatpush3.bf16.msra.mxu0 %v3408_v13 }
 0xda1   : > { %3280 = vmatprep.subr.bf16.mxu0 %v3490_v1 }
 0xda4   : > { %3281 = vmatpush3.bf16.msra.mxu0 %v3409_v14 }
 0xda5   : > { %3282 = vmatprep.subr.bf16.mxu0 %v3490_v1 }
 0xda8   : > { %3283 = vmatpush3.bf16.msra.mxu0 %v3410_v26 }
 0xda9   : > { %3284 = vmatprep.subr.bf16.mxu0 %v3490_v1  ;;  %v2975_v1 = vld [vmem:[%s4255_s21] ss:$0 sm:$0xff] }
 0xdac   : > { %3285 = vmatpush3.bf16.msra.mxu0 %v3411_v27 }
 0xe4f   : > { %v2480_v35 = vpop.f32.mrf.mxu0 }
 0xe50   : > { %v2481_v31 = vadd.f32 %v2955_v34, %v2480_v35  ;;  %v2985_v35 = vld [vmem:[#allocation2] ss:$0 sm:$0xff] }
 0xe51   : > { %v3248_v32 = vpop.f32.mrf.mxu0 }
 0xe52   : > { %v2488_v60 = vadd.f32 %v2481_v31, %v4007_v42 }
 0xe53   : > { %v2483_v43 = vpop.f32.mrf.mxu0 }
 0xe54   : > { %2489 = vadd.xlane.f32.xlu0 %v2488_v60 }
 0xe55   : > { %v3249_v61 = vpop.f32.mrf.mxu0 }
 0xedd   : > { %v2490_v63 = vpop.xlane.xlu0 %2489 }
 0xede   : > { %v2491_v2 = vmul.f32 0.03125, %v2490_v63 }
 0xee0   : > { %v2492_v42 = vsub.f32 %v2488_v60, %v2491_v2 }
 0xee2   : > { %v2493_v3 = vsel %vm1519_vm15, %v2492_v42, 0.0 }
 0xee3   : > { %v2494_v4 = vmul.f32 %v2493_v3, %v2493_v3 }
 0xee5   : > { %2495 = vadd.xlane.f32.xlu1 %v2494_v4 }
 0xf6e   : > { %v2496_v15 = vpop.xlane.xlu1 %2495 }
 0xf6f   : > { %v2497_v16 = vmul.f32 0.03125, %v2496_v15 }
 0xf71   : > { %v2498_v17 = vadd.f32 1e-05, %v2497_v16 }
 0xf73   : > { %3446 = vrsqrt.f32 %v2498_v17 }
 0xf80   : > { %v3447_v18 = vpop.eup %3446 }
 0xf81   : > { %v2500_v20 = vmul.f32 %v3447_v18, %v2493_v3 }
 0xf83   : > { %v2507_v21 = vmul.f32 %v2964_v19, %v2500_v20 }
 0xf85   : > { %v2514_v22 = vadd.f32 %v2965_v53, %v2507_v21 }
 0xf87   : > { %v2515_v25 = vpack.c.bf16 %v2514_v22, %v2514_v22 }
 0xf89   : > { %3267 = vmatmul.mubr.bf16.vlgmr.msra.gmra.mxu1 %v2515_v25 }
0x1049   : > { %v2621_v28 = vpop.f32.mrf.mxu1 }
0x104a   : > { %v2622_v29 = vadd.f32 %v2966_v57, %v2621_v28 }
0x104b   : > { %v3268_v33 = vpop.f32.mrf.mxu1 }
0x104c   : > { %v2627_v37 = vmax.f32 %v2622_v29, 0.0 }
0x104d   : > { %v2624_v38 = vpop.f32.mrf.mxu1 }
0x104e   : > { %v2628_v39 = vpack.c.bf16 %v2627_v37, %v2627_v37 }
0x104f   : > { %v3269_v40 = vpop.f32.mrf.mxu1 }
0x1050   : > { %3287 = vmatmul.mubr.bf16.vlgmr.msra.gmra.mxu0 %v2628_v39 }
0x1110   : > { %v2734_v41 = vpop.f32.mrf.mxu0 }
0x1111   : > { %v2735_v44 = vadd.f32 %v2975_v1, %v2734_v41 }
0x1112   : > { %v3288_v45 = vpop.f32.mrf.mxu0 }
0x1113   : > { %v2742_v46 = vadd.f32 %v2735_v44, %v2514_v22 }
0x1114   : > { %v2737_v47 = vpop.f32.mrf.mxu0 }
0x1115   : > { %2743 = vadd.xlane.f32.xlu0 %v2742_v46 }
0x1116   : > { %v3289_v48 = vpop.f32.mrf.mxu0 }
0x119e   : > { %v2744_v49 = vpop.xlane.xlu0 %2743 }
0x119f   : > { %v2745_v24 = vmul.f32 0.03125, %v2744_v49 }
0x11a1   : > { %v2746_v50 = vsub.f32 %v2742_v46, %v2745_v24 }
0x11a3   : > { %v2747_v51 = vsel %vm1519_vm15, %v2746_v50, 0.0 }
0x11a4   : > { %v2748_v52 = vmul.f32 %v2747_v51, %v2747_v51 }
0x11a6   : > { %2749 = vadd.xlane.f32.xlu1 %v2748_v52 }
0x122f   : > { %v2750_v54 = vpop.xlane.xlu1 %2749 }
0x1230   : > { %v2751_v56 = vmul.f32 0.03125, %v2750_v54 }
0x1232   : > { %v2752_v58 = vadd.f32 1e-05, %v2751_v56 }
0x1234   : > { %3448 = vrsqrt.f32 %v2752_v58 }
0x1241   : > { %v3449_v30 = vpop.eup %3448 }
0x1242   : > { %v2754_v34 = vmul.f32 %v3449_v30, %v2747_v51 }
0x1244   : > { %v2761_v31 = vmul.f32 %v2984_v59, %v2754_v34 }
0x1246   : > { %v2768_v55 = vadd.f32 %v2985_v35, %v2761_v31 }
0x1248   : > { %2769 = vst [vmem:[%s793_s26] sm:$0xff] %v2768_v55 }
0x1249 PF: > { %s35_s5 = sadd.s32 1, %s3486_s5  }
0x124a   : > { %p32_p1 = scmp.ge.s32.totalorder %s35_s5, 4  }
0x124c   :  { %34 = sbr.rel (!%p32_p1) target bundleno = 12 (0xc), region = 160 }
0x1251   :  { %2789 = vsyncpa [#allocation3], 1 }
0x1252   :  { %2791 = vsyncpa [#allocation3 + $0x1], 1 }

</bundles_post_ra>
